<compile_context>
chip_gen: v7x
topology: tpu7x:2x2x1
jax: 0.10.0
libtpu: 0.0.40
codegen_flags: <defaults>
</compile_context>

<pallas_src>
import functools

import jax
import jax.numpy as jnp
import numpy as np
from jax import lax
from jax.experimental import pallas as pl
from jax.experimental.pallas import tpu as pltpu


def _round_up(v, m):
    return (v + m - 1) // m * m


# --------------------------------------------------------------------------- #
# Pass 1: per-graph statistics -> bf16 hi/lo [gmean | inv_std] tables          #
# --------------------------------------------------------------------------- #
def _stats_kernel(x_ref, seg_ref, cnt_ref, hi_ref, lo_ref, acc_ref,
                  *, eps, n_rows, c_real, c_pad):
    i = pl.program_id(0)
    tn = x_ref.shape[0]
    inv_c = 1.0 / c_real

    @pl.when(i == 0)
    def _init():
        acc_ref[...] = jnp.zeros_like(acc_ref)

    x = x_ref[...].astype(jnp.float32)                               # [TN, Cp]
    xc = x - jnp.sum(x, axis=-1, keepdims=True) * inv_c              # per-node centering

    # Mask ragged last tile rows (OOB block contents are undefined) and padded lanes.
    row = lax.broadcasted_iota(jnp.int32, (tn, 1), 0) + i * tn
    valid = row < n_rows
    if c_pad != c_real:
        lane = lax.broadcasted_iota(jnp.int32, (1, c_pad), 1)
        valid = jnp.logical_and(valid, lane < c_real)
    xc = jnp.where(valid, xc, 0.0)

    # Fold row-sum-of-squares into the same matmul as one extra 128-lane block.
    rowsq = jnp.sum(xc * xc, axis=-1, keepdims=True)                 # [TN, 1]   (XLU)
    xce = jnp.concatenate([xc, jnp.broadcast_to(rowsq, (tn, 128))], axis=-1)

    seg = seg_ref[...]                                               # [1, TN] int32
    gp = acc_ref.shape[0]
    gids = lax.broadcasted_iota(jnp.int32, (gp, tn), 0)
    onehot = (gids == seg).astype(jnp.float32)                       # [Gp, TN]

    # Per-graph [channel sums | row-sq sum] accumulated in f32 (precision-critical).
    acc_ref[...] += jnp.dot(onehot, xce, preferred_element_type=jnp.float32)

    @pl.when(i == pl.num_programs(0) - 1)
    def _finalize():
        inv_cnt = 1.0 / cnt_ref[...]                                 # [Gp, 1]
        gmean = acc_ref[:, :c_pad] * inv_cnt                         # [Gp, Cp]
        # var_g = grssq/(cnt*C) - mean_c(gmean^2)
        gvar = (acc_ref[:, c_pad:c_pad + 1] * inv_cnt
                - jnp.sum(gmean * gmean, axis=-1, keepdims=True)) * inv_c
        inv_std = lax.rsqrt(gvar + eps)                              # [Gp, 1]  (EUP)
        tab = jnp.concatenate(
            [gmean, jnp.broadcast_to(inv_std, (gp, 128))], axis=-1)  # [Gp, Cp+128]
        hi = tab.astype(jnp.bfloat16)
        lo = (tab - hi.astype(jnp.float32)).astype(jnp.bfloat16)     # hi/lo split
        hi_ref[...] = hi
        lo_ref[...] = lo


# --------------------------------------------------------------------------- #
# Pass 2: out = (xc - gmean[seg]) * inv_std[seg] * w + b                       #
# --------------------------------------------------------------------------- #
def _apply_kernel(x_ref, seg_ref, w_ref, b_ref, hi_ref, lo_ref, o_ref,
                  *, c_real, c_pad):
    tn = x_ref.shape[0]
    inv_c = 1.0 / c_real

    x = x_ref[...].astype(jnp.float32)                               # [TN, Cp]
    xc = x - jnp.sum(x, axis=-1, keepdims=True) * inv_c

    seg = seg_ref[...]                                               # [1, TN]
    gp = hi_ref.shape[0]
    gids = lax.broadcasted_iota(jnp.int32, (gp, tn), 0)
    onehot = (gids == seg).astype(jnp.bfloat16)                      # exact in bf16

    # bf16 MXU scatter of the per-graph table (hi + lo keeps ~f32 precision).
    dims = (((0,), (0,)), ((), ()))
    sc = lax.dot_general(onehot, hi_ref[...], dims,
                         preferred_element_type=jnp.float32)         # [TN, Cp+128]
    sc = sc + lax.dot_general(onehot, lo_ref[...], dims,
                              preferred_element_type=jnp.float32)
    gm_n = sc[:, :c_pad]                                             # [TN, Cp]
    istd_n = sc[:, c_pad:c_pad + 1]                                  # [TN, 1]

    o_ref[...] = ((xc - gm_n) * istd_n * w_ref[...] + b_ref[...]).astype(o_ref.dtype)
    # Ragged last tile rows need no mask: partial output blocks are write-masked.


# --------------------------------------------------------------------------- #
# Fused single-pass fast path (x resident, one launch, one HBM read of x)      #
# --------------------------------------------------------------------------- #
def _fused_kernel(x_ref, seg_ref, cnt_ref, w_ref, b_ref, o_ref,
                  *, eps, c_real, c_pad):
    n = x_ref.shape[0]
    gp = cnt_ref.shape[0]
    inv_c = 1.0 / c_real

    x = x_ref[...].astype(jnp.float32)
    xc = x - jnp.sum(x, axis=-1, keepdims=True) * inv_c
    if c_pad != c_real:
        lane = lax.broadcasted_iota(jnp.int32, (1, c_pad), 1)
        xc = jnp.where(lane < c_real, xc, 0.0)

    seg = seg_ref[...]
    gids = lax.broadcasted_iota(jnp.int32, (gp, n), 0)
    onehot = (gids == seg).astype(jnp.float32)                       # [Gp, N]

    rowsq = jnp.sum(xc * xc, axis=-1, keepdims=True)
    xce = jnp.concatenate([xc, jnp.broadcast_to(rowsq, (n, 128))], axis=-1)
    acc = jnp.dot(onehot, xce, preferred_element_type=jnp.float32)   # [Gp, Cp+128]

    inv_cnt = 1.0 / cnt_ref[...]
    gmean = acc[:, :c_pad] * inv_cnt
    gvar = (acc[:, c_pad:c_pad + 1] * inv_cnt
            - jnp.sum(gmean * gmean, axis=-1, keepdims=True)) * inv_c
    inv_std = lax.rsqrt(gvar + eps)

    tab = jnp.concatenate([gmean, jnp.broadcast_to(inv_std, (gp, 128))], axis=-1)
    hi = tab.astype(jnp.bfloat16)
    lo = (tab - hi.astype(jnp.float32)).astype(jnp.bfloat16)
    oh_bf = onehot.astype(jnp.bfloat16)
    dims = (((0,), (0,)), ((), ()))
    sc = lax.dot_general(oh_bf, hi, dims, preferred_element_type=jnp.float32)
    sc = sc + lax.dot_general(oh_bf, lo, dims, preferred_element_type=jnp.float32)
    gm_n = sc[:, :c_pad]
    istd_n = sc[:, c_pad:c_pad + 1]

    o_ref[...] = ((xc - gm_n) * istd_n * w_ref[...] + b_ref[...]).astype(o_ref.dtype)


# --------------------------------------------------------------------------- #
# Wrapper                                                                      #
# --------------------------------------------------------------------------- #
def graph_layer_norm(x, splits, weight, bias, *, eps=1e-6, block_n=1024,
                     single_pass=None):
    """x: [N, C] float, splits: [G] int32 node counts per graph (sum == N)."""
    N, C = x.shape
    G = int(splits.shape[0])
    dtype = x.dtype

    Cp = _round_up(C, 128)                 # lane-dense channel axis (pad only if needed)
    Gp = max(_round_up(G, 128), 128)       # lane-dense graph axis
    Cpe = Cp + 128                         # channels + folded row-sq / inv_std block

    xk = x
    if Cp != C:
        # Only needed for non-lane-aligned channel counts; costs one extra copy of x.
        xk = jnp.zeros((N, Cp), dtype).at[:, :C].set(x)

    seg = jnp.repeat(jnp.arange(G, dtype=jnp.int32), splits,
                     total_repeat_length=N).reshape(1, N)
    cnt = jnp.ones((Gp, 1), jnp.float32).at[:G, 0].set(
        jnp.maximum(splits, 1).astype(jnp.float32))
    if weight is None:
        w = jnp.ones((1, Cp), jnp.float32)
        b = jnp.zeros((1, Cp), jnp.float32)
    else:
        w = jnp.ones((1, Cp), jnp.float32).at[0, :C].set(weight.astype(jnp.float32))
        b = jnp.zeros((1, Cp), jnp.float32).at[0, :C].set(bias.astype(jnp.float32))

    # ----- fused fast path: everything fits comfortably in VMEM ----------------
    x_bytes = N * Cp * 4
    onehot_bytes = Gp * _round_up(N, 8) * 4
    if single_pass is None:
        single_pass = (x_bytes <= (2 << 20)) and (onehot_bytes <= (2 << 20))

    if single_pass:
        out = pl.pallas_call(
            functools.partial(_fused_kernel, eps=eps, c_real=C, c_pad=Cp),
            out_shape=jax.ShapeDtypeStruct((N, Cp), dtype),
            grid=(1,),
            in_specs=[
                pl.BlockSpec((N, Cp), lambda i: (0, 0)),       # x (whole, resident)
                pl.BlockSpec((1, N), lambda i: (0, 0)),        # segment ids
                pl.BlockSpec((Gp, 1), lambda i: (0, 0)),       # per-graph counts
                pl.BlockSpec((1, Cp), lambda i: (0, 0)),       # weight
                pl.BlockSpec((1, Cp), lambda i: (0, 0)),       # bias
            ],
            out_specs=pl.BlockSpec((N, Cp), lambda i: (0, 0)),
            compiler_params=pltpu.CompilerParams(vmem_limit_bytes=40 << 20),
        )(xk, seg, cnt, w, b)
        return out if Cp == C else out[:, :C]

    # ----- two-pass path --------------------------------------------------------
    # VMEM-aware node-tile size (v5e default scoped VMEM 16 MiB, v7x physical 64 MiB).
    vmem_budget = 20 << 20
    resident = Gp * Cpe * 4 * 4                         # acc scratch + hi/lo tables + slack
    per_row = 4 * (4 * Cp + 2 * Cpe + 2 * Gp)           # dbl-buffered tiles + temps + one-hot
    tn = max(128, min(block_n,
                      max(128, (vmem_budget - resident) // per_row) // 128 * 128))
    num_tiles = pl.cdiv(N, tn)

    tab_hi, tab_lo = pl.pallas_call(
        functools.partial(_stats_kernel, eps=eps, n_rows=N, c_real=C, c_pad=Cp),
        out_shape=(jax.ShapeDtypeStruct((Gp, Cpe), jnp.bfloat16),
                   jax.ShapeDtypeStruct((Gp, Cpe), jnp.bfloat16)),
        grid=(num_tiles,),
        in_specs=[
            pl.BlockSpec((tn, Cp), lambda i: (i, 0)),          # x tile
            pl.BlockSpec((1, tn), lambda i: (0, i)),           # segment ids (lane-dense)
            pl.BlockSpec((Gp, 1), lambda i: (0, 0)),           # per-graph counts (resident)
        ],
        out_specs=(pl.BlockSpec((Gp, Cpe), lambda i: (0, 0)),
                   pl.BlockSpec((Gp, Cpe), lambda i: (0, 0))),
        scratch_shapes=[pltpu.VMEM((Gp, Cpe), jnp.float32)],   # f32 stats accumulator
        compiler_params=pltpu.CompilerParams(
            dimension_semantics=("arbitrary",),
            vmem_limit_bytes=32 << 20),
    )(xk, seg, cnt)

    out = pl.pallas_call(
        functools.partial(_apply_kernel, c_real=C, c_pad=Cp),
        out_shape=jax.ShapeDtypeStruct((N, Cp), dtype),
        grid=(num_tiles,),
        in_specs=[
            pl.BlockSpec((tn, Cp), lambda i: (i, 0)),          # x tile
            pl.BlockSpec((1, tn), lambda i: (0, i)),           # segment ids
            pl.BlockSpec((1, Cp), lambda i: (0, 0)),           # weight (resident)
            pl.BlockSpec((1, Cp), lambda i: (0, 0)),           # bias (resident)
            pl.BlockSpec((Gp, Cpe), lambda i: (0, 0)),         # table hi (resident)
            pl.BlockSpec((Gp, Cpe), lambda i: (0, 0)),         # table lo (resident)
        ],
        out_specs=pl.BlockSpec((tn, Cp), lambda i: (i, 0)),
        compiler_params=pltpu.CompilerParams(
            dimension_semantics=("parallel",),
            vmem_limit_bytes=32 << 20),
    )(xk, seg, w, b, tab_hi, tab_lo)

    return out if Cp == C else out[:, :C]


# --------------------------------------------------------------------------- #
# Reference + demo                                                             #
# --------------------------------------------------------------------------- #
def _reference(x, splits, weight, bias, eps=1e-6):
    """Pure-numpy reference mirroring the PyTorch forward."""
    xn = np.asarray(x, dtype=np.float32)
    xn = xn - xn.mean(-1, keepdims=True)
    out = np.zeros_like(xn)
    start = 0
    for s in np.asarray(splits):
        seg = xn[start:start + s]
        seg = seg - seg.mean(0, keepdims=True)               # center_splits
        var = (seg * seg).mean(0).mean()                     # mean_splits then channel mean
        out[start:start + s] = seg / np.sqrt(var + eps)
        start += s
    return out * np.asarray(weight) + np.asarray(bias)


if __name__ == "__main__":
    key = jax.random.PRNGKey(0)
    C = 128                                              # in_channels (lane-dense)
    splits = jnp.array([137, 263, 200, 150, 128, 122], dtype=jnp.int32)
    N = int(np.sum(np.asarray(splits)))                  # 1000 nodes total

    k0, k1, k2 = jax.random.split(key, 3)
    x = jax.random.normal(k0, (N, C), jnp.float32)
    weight = 1.0 + 0.1 * jax.random.normal(k1, (C,), jnp.float32)
    bias = 0.05 * jax.random.normal(k2, (C,), jnp.float32)

    ref = _reference(x, splits, weight, bias, eps=1e-6)

    # Fused single-pass fast path (auto-selected for this small problem).
    out_fast = jax.block_until_ready(graph_layer_norm(x, splits, weight, bias, eps=1e-6))
    assert np.allclose(np.asarray(out_fast), ref, atol=2e-4, rtol=2e-4), \
        "fused path mismatch vs reference"

    # Two-pass tiled path (forced; small block_n exercises accumulation + ragged tile).
    out_tiled = jax.block_until_ready(
        graph_layer_norm(x, splits, weight, bias, eps=1e-6, block_n=256, single_pass=False))
    assert np.allclose(np.asarray(out_tiled), ref, atol=2e-4, rtol=2e-4), \
        "two-pass path mismatch vs reference"

    print("KERNEL_OK")
</pallas_src>

<mosaic_0001>
module attributes {stable_mosaic.version = 11 : i64} {
  func.func @_fused_kernel(%arg0: i32, %arg1: memref<1000x128xf32, #tpu.memory_space<vmem>>, %arg2: memref<1x1000xi32, #tpu.memory_space<vmem>>, %arg3: memref<128x1xf32, #tpu.memory_space<vmem>>, %arg4: memref<1x128xf32, #tpu.memory_space<vmem>>, %arg5: memref<1x128xf32, #tpu.memory_space<vmem>>, %arg6: memref<1000x128xf32, #tpu.memory_space<vmem>>) attributes {dimension_semantics = [#tpu.dimension_semantics<arbitrary>], iteration_bounds = array<i64: 1>, scalar_prefetch = 0 : i64, scratch_operands = 0 : i64, tpu.core_type = #tpu.core_type<tc>, window_params = [{pipeline_mode = #tpu.pipeline_mode<synchronous>, transform_indices = @transform_0, window_bounds = array<i64: 1000, 128>}, {pipeline_mode = #tpu.pipeline_mode<synchronous>, transform_indices = @transform_1, window_bounds = array<i64: 1, 1000>}, {pipeline_mode = #tpu.pipeline_mode<synchronous>, transform_indices = @transform_2, window_bounds = array<i64: 128, 1>}, {pipeline_mode = #tpu.pipeline_mode<synchronous>, transform_indices = @transform_3, window_bounds = array<i64: 1, 128>}, {pipeline_mode = #tpu.pipeline_mode<synchronous>, transform_indices = @transform_4, window_bounds = array<i64: 1, 128>}, {pipeline_mode = #tpu.pipeline_mode<synchronous>, transform_indices = @transform_5, window_bounds = array<i64: 1000, 128>}]} {
    %c0 = arith.constant 0 : index
    %c0_0 = arith.constant 0 : index
    %0 = vector.load %arg1[%c0, %c0_0] : memref<1000x128xf32, #tpu.memory_space<vmem>>, vector<1000x128xf32>
    %cst = arith.constant dense<0.000000e+00> : vector<1000xf32>
    %1 = vector.multi_reduction <add>, %0, %cst [1] : vector<1000x128xf32> to vector<1000xf32>
    %2 = vector.shape_cast %1 : vector<1000xf32> to vector<1000x1xf32>
    %cst_1 = arith.constant 7.812500e-03 : f32
    %3 = vector.broadcast %cst_1 : f32 to vector<1000x1xf32>
    %4 = arith.mulf %2, %3 : vector<1000x1xf32>
    %5 = vector.broadcast %4 : vector<1000x1xf32> to vector<1000x128xf32>
    %6 = arith.subf %0, %5 : vector<1000x128xf32>
    %c0_2 = arith.constant 0 : index
    %c0_3 = arith.constant 0 : index
    %7 = vector.load %arg2[%c0_2, %c0_3] : memref<1x1000xi32, #tpu.memory_space<vmem>>, vector<1x1000xi32>
    %8 = tpu.iota {dimensions = array<i32: 0>} : vector<128x1000xi32>
    %9 = vector.broadcast %7 : vector<1x1000xi32> to vector<128x1000xi32>
    %10 = arith.cmpi eq, %8, %9 : vector<128x1000xi32>
    %11 = arith.extui %10 : vector<128x1000xi1> to vector<128x1000xi32>
    %12 = arith.sitofp %11 : vector<128x1000xi32> to vector<128x1000xf32>
    %13 = arith.mulf %6, %6 : vector<1000x128xf32>
    %cst_4 = arith.constant dense<0.000000e+00> : vector<1000xf32>
    %14 = vector.multi_reduction <add>, %13, %cst_4 [1] : vector<1000x128xf32> to vector<1000xf32>
    %15 = vector.shape_cast %14 : vector<1000xf32> to vector<1000x1xf32>
    %16 = vector.shape_cast %15 : vector<1000x1xf32> to vector<1000x1xf32>
    %17 = vector.broadcast %16 : vector<1000x1xf32> to vector<1000x128xf32>
    %18 = tpu.concatenate %6, %17 in 1 : vector<1000x128xf32>, vector<1000x128xf32> -> vector<1000x256xf32>
    %cst_5 = arith.constant dense<0.000000e+00> : vector<128x256xf32>
    %19 = tpu.matmul %12, %18, %cst_5 {dimension_numbers = #tpu.dot_dimension_numbers<[1], [0], [0], [1], [0, 0, 1, 1], [], []>} : vector<128x1000xf32>, vector<1000x256xf32>, vector<128x256xf32> -> vector<128x256xf32>
    %c0_6 = arith.constant 0 : index
    %c0_7 = arith.constant 0 : index
    %20 = vector.load %arg3[%c0_6, %c0_7] : memref<128x1xf32, #tpu.memory_space<vmem>>, vector<128x1xf32>
    %cst_8 = arith.constant 1.000000e+00 : f32
    %21 = vector.broadcast %cst_8 : f32 to vector<128x1xf32>
    %22 = arith.divf %21, %20 : vector<128x1xf32>
    %23 = vector.extract_strided_slice %19 {offsets = [0, 0], sizes = [128, 128], strides = [1, 1]} : vector<128x256xf32> to vector<128x128xf32>
    %24 = vector.broadcast %22 : vector<128x1xf32> to vector<128x128xf32>
    %25 = arith.mulf %23, %24 : vector<128x128xf32>
    %26 = vector.extract_strided_slice %19 {offsets = [0, 128], sizes = [128, 1], strides = [1, 1]} : vector<128x256xf32> to vector<128x1xf32>
    %27 = arith.mulf %26, %22 : vector<128x1xf32>
    %28 = arith.mulf %25, %25 : vector<128x128xf32>
    %cst_9 = arith.constant dense<0.000000e+00> : vector<128xf32>
    %29 = vector.multi_reduction <add>, %28, %cst_9 [1] : vector<128x128xf32> to vector<128xf32>
    %30 = vector.shape_cast %29 : vector<128xf32> to vector<128x1xf32>
    %31 = arith.subf %27, %30 : vector<128x1xf32>
    %cst_10 = arith.constant 7.812500e-03 : f32
    %32 = vector.broadcast %cst_10 : f32 to vector<128x1xf32>
    %33 = arith.mulf %31, %32 : vector<128x1xf32>
    %cst_11 = arith.constant 9.99999997E-7 : f32
    %34 = vector.broadcast %cst_11 : f32 to vector<128x1xf32>
    %35 = arith.addf %33, %34 : vector<128x1xf32>
    %36 = math.rsqrt %35 : vector<128x1xf32>
    %37 = vector.shape_cast %36 : vector<128x1xf32> to vector<128x1xf32>
    %38 = vector.broadcast %37 : vector<128x1xf32> to vector<128x128xf32>
    %39 = tpu.concatenate %25, %38 in 1 : vector<128x128xf32>, vector<128x128xf32> -> vector<128x256xf32>
    %40 = arith.truncf %39 : vector<128x256xf32> to vector<128x256xbf16>
    %41 = arith.extf %40 : vector<128x256xbf16> to vector<128x256xf32>
    %42 = arith.subf %39, %41 : vector<128x256xf32>
    %43 = arith.truncf %42 : vector<128x256xf32> to vector<128x256xbf16>
    %44 = arith.truncf %12 : vector<128x1000xf32> to vector<128x1000xbf16>
    %cst_12 = arith.constant dense<0.000000e+00> : vector<1000x256xf32>
    %45 = tpu.matmul %44, %40, %cst_12 {dimension_numbers = #tpu.dot_dimension_numbers<[0], [0], [1], [1], [0, 1, 1, 1], [], []>} : vector<128x1000xbf16>, vector<128x256xbf16>, vector<1000x256xf32> -> vector<1000x256xf32>
    %cst_13 = arith.constant dense<0.000000e+00> : vector<1000x256xf32>
    %46 = tpu.matmul %44, %43, %cst_13 {dimension_numbers = #tpu.dot_dimension_numbers<[0], [0], [1], [1], [0, 1, 1, 1], [], []>} : vector<128x1000xbf16>, vector<128x256xbf16>, vector<1000x256xf32> -> vector<1000x256xf32>
    %47 = arith.addf %45, %46 : vector<1000x256xf32>
    %48 = vector.extract_strided_slice %47 {offsets = [0, 0], sizes = [1000, 128], strides = [1, 1]} : vector<1000x256xf32> to vector<1000x128xf32>
    %49 = vector.extract_strided_slice %47 {offsets = [0, 128], sizes = [1000, 1], strides = [1, 1]} : vector<1000x256xf32> to vector<1000x1xf32>
    %50 = arith.subf %6, %48 : vector<1000x128xf32>
    %51 = vector.broadcast %49 : vector<1000x1xf32> to vector<1000x128xf32>
    %52 = arith.mulf %50, %51 : vector<1000x128xf32>
    %c0_14 = arith.constant 0 : index
    %c0_15 = arith.constant 0 : index
    %53 = vector.load %arg4[%c0_14, %c0_15] : memref<1x128xf32, #tpu.memory_space<vmem>>, vector<1x128xf32>
    %54 = vector.broadcast %53 : vector<1x128xf32> to vector<1000x128xf32>
    %55 = arith.mulf %52, %54 : vector<1000x128xf32>
    %c0_16 = arith.constant 0 : index
    %c0_17 = arith.constant 0 : index
    %56 = vector.load %arg5[%c0_16, %c0_17] : memref<1x128xf32, #tpu.memory_space<vmem>>, vector<1x128xf32>
    %57 = vector.broadcast %56 : vector<1x128xf32> to vector<1000x128xf32>
    %58 = arith.addf %55, %57 : vector<1000x128xf32>
    %c0_18 = arith.constant 0 : index
    %c0_19 = arith.constant 0 : index
    %59 = vector.load %arg6[%c0_18, %c0_19] : memref<1000x128xf32, #tpu.memory_space<vmem>>, vector<1000x128xf32>
    tpu.vector_store %arg6[%c0_18, %c0_19], %58 {strides = array<i32>} : memref<1000x128xf32, #tpu.memory_space<vmem>>, vector<1000x128xf32>,
    return
  }
  func.func @transform_0(%arg0: i32) -> (i32, i32) {
    %c0_i32 = arith.constant 0 : i32
    %c0_i32_0 = arith.constant 0 : i32
    %c0_i32_1 = arith.constant 0 : i32
    return %c0_i32, %c0_i32_0 : i32, i32
  }
  func.func @transform_1(%arg0: i32) -> (i32, i32) {
    %c0_i32 = arith.constant 0 : i32
    %c0_i32_0 = arith.constant 0 : i32
    %c0_i32_1 = arith.constant 0 : i32
    return %c0_i32, %c0_i32_0 : i32, i32
  }
  func.func @transform_2(%arg0: i32) -> (i32, i32) {
    %c0_i32 = arith.constant 0 : i32
    %c0_i32_0 = arith.constant 0 : i32
    %c0_i32_1 = arith.constant 0 : i32
    return %c0_i32, %c0_i32_0 : i32, i32
  }
  func.func @transform_3(%arg0: i32) -> (i32, i32) {
    %c0_i32 = arith.constant 0 : i32
    %c0_i32_0 = arith.constant 0 : i32
    %c0_i32_1 = arith.constant 0 : i32
    return %c0_i32, %c0_i32_0 : i32, i32
  }
  func.func @transform_4(%arg0: i32) -> (i32, i32) {
    %c0_i32 = arith.constant 0 : i32
    %c0_i32_0 = arith.constant 0 : i32
    %c0_i32_1 = arith.constant 0 : i32
    return %c0_i32, %c0_i32_0 : i32, i32
  }
  func.func @transform_5(%arg0: i32) -> (i32, i32) {
    %c0_i32 = arith.constant 0 : i32
    %c0_i32_0 = arith.constant 0 : i32
    %c0_i32_1 = arith.constant 0 : i32
    return %c0_i32, %c0_i32_0 : i32, i32
  }
}

</mosaic_0001>

<bundles_post_ra>
// kernel: tpu_custom_call.1
= control target key start
LH: loop header
LB: loop body
LE: loop exit
PB: predicated region body
PF: predicated region fallthrough
CT: control target
= control target key end

     0   :  { %10 = vsyncpa [#allocation3], 0  ;;  %s11197_s0 = inlined_call_operand.hbm [shape: f32[1000,128], index: 0, kind: input, shape index: {}]   ;;  %s11198_s1 = inlined_call_operand.vmem [shape: s32[1,1000], index: 1, kind: input, shape index: {}]   ;;  %s11199_s2 = inlined_call_operand.vmem [shape: f32[128,1], index: 2, kind: input, shape index: {}]   ;;  %s11200_s3 = inlined_call_operand.vmem [shape: f32[1,128], index: 3, kind: input, shape index: {}]   ;;  %s11201_s4 = inlined_call_operand.vmem [shape: f32[1,128], index: 4, kind: input, shape index: {}]   ;;  %s11202_s5 = inlined_call_operand.hbm [shape: f32[1000,128], index: 5, kind: output, shape index: {}]  }
   0x1   :  { %11 = vsyncpa [#allocation4], 0  ;;  %s6414_s18 = smov [#allocation2]   ;;  %s6366_s22 = scalar_lea.hbm %s11197_s0, 16000 }
   0x2   :  { %s17_s19 = sshll.u32 %s6414_s18, 4  ;;  %p6367_p0 = scmp.ne.s32.totalorder %s11197_s0, %s6366_s22  ;;  %s18_s19 = int_to_ptr.vmem [resolvable:$true] %s17_s19 }
   0x3   :  { %p6370_p1 = scmp.lt.u32.totalorder %s6366_s22, %s11197_s0 }
   0x5   :  { %p6372_p2 = pnand %p6370_p1, %p6367_p0 }
   0x7   :  { %6375 = shalt.err (!%p6372_p2)
}
   0x8   :  { %s6376_s27 = scalar_lea.vmem %s18_s19, 16000  ;;  %p6381_p4 = scmp.lt.s32.totalorder %s18_s19, %s18_s19 }
   0x9   :  { %p6377_p3 = scmp.ne.s32.totalorder %s18_s19, %s6376_s27  ;;  %p6382_p5 = scmp.lt.s32.totalorder %s6376_s27, %s6376_s27 }
   0xb   :  { %p6383_p6 = por %p6382_p5, %p6381_p4 }
   0xd   :  { %p6384_p7 = pnand %p6383_p6, %p6377_p3 }
   0xf   :  { %6387 = shalt.err (!%p6384_p7)
}
  0x10   :  { %s6415_s28 = smov 128   ;;  %s6416_s29 = smov 8  }
  0x11   :  { %23 = dma.hbm_to_vmem [thread:$0]  %s11197_s0, 16000, %s18_s19, [#allocation3], %s6415_s28, %s6415_s28, %s6416_s29  }
  0x12   :  { %6410 = dma.done.wait [#allocation3], 16000  }
  0x13   :  { %6411 = vsyncadd [#allocation3], 4294951296  ;;  %v6466_v0 = vld [vmem:[#allocation2 + $0x10] sm:$0xff]  ;;  %v6468_v1 = vld [vmem:[#allocation2] sm:$0xff] }
  0x14   :  { %165 = vadd.xlane.f32.xlu1 %v6466_v0  ;;  %161 = vadd.xlane.f32.xlu0 %v6468_v1  ;;  %v6472_v2 = vld [vmem:[#allocation2 + $0x18] sm:$0xff]  ;;  %v6474_v3 = vld [vmem:[#allocation2 + $0x8] sm:$0xff]  ;;  %v6480_v5 = vld [vmem:[#allocation2 + $0x20] sm:$0xff] }
  0x15   :  { %v6478_v4 = vld [vmem:[#allocation2 + $0x28] sm:$0xff]  ;;  %v6484_v6 = vld [vmem:[#allocation2 + $0x38] sm:$0xff]  ;;  %v6486_v7 = vld [vmem:[#allocation2 + $0x30] sm:$0xff] }
  0x16   :  { %v6490_v8 = vld [vmem:[#allocation2 + $0x48] sm:$0xff]  ;;  %v6492_v9 = vld [vmem:[#allocation2 + $0x40] sm:$0xff]  ;;  %v6496_v10 = vld [vmem:[#allocation2 + $0x58] sm:$0xff] }
  0x17   :  { %v6498_v11 = vld [vmem:[#allocation2 + $0x50] sm:$0xff]  ;;  %v6502_v12 = vld [vmem:[#allocation2 + $0x68] sm:$0xff]  ;;  %v6504_v13 = vld [vmem:[#allocation2 + $0x60] sm:$0xff] }
  0x18   :  { %167 = vadd.xlane.f32.xlu1 %v6472_v2  ;;  %163 = vadd.xlane.f32.xlu0 %v6474_v3  ;;  %v6508_v14 = vld [vmem:[#allocation2 + $0x78] sm:$0xff]  ;;  %v6510_v15 = vld [vmem:[#allocation2 + $0x70] sm:$0xff]  ;;  %v6514_v16 = vld [vmem:[#allocation2 + $0x88] sm:$0xff] }
  0x19   :  { %v6516_v17 = vld [vmem:[#allocation2 + $0x80] sm:$0xff]  ;;  %v6520_v18 = vld [vmem:[#allocation2 + $0x98] sm:$0xff]  ;;  %v6522_v19 = vld [vmem:[#allocation2 + $0x90] sm:$0xff] }
  0x1a   :  { %v6526_v20 = vld [vmem:[#allocation2 + $0xa8] sm:$0xff]  ;;  %v6528_v21 = vld [vmem:[#allocation2 + $0xa0] sm:$0xff]  ;;  %v6532_v22 = vld [vmem:[#allocation2 + $0xb8] sm:$0xff] }
  0x1b   :  { %v6534_v23 = vld [vmem:[#allocation2 + $0xb0] sm:$0xff]  ;;  %v6538_v24 = vld [vmem:[#allocation2 + $0xc8] sm:$0xff]  ;;  %v6540_v25 = vld [vmem:[#allocation2 + $0xc0] sm:$0xff] }
  0x1c   :  { %171 = vadd.xlane.f32.xlu1 %v6478_v4  ;;  %169 = vadd.xlane.f32.xlu0 %v6480_v5  ;;  %v6544_v26 = vld [vmem:[#allocation2 + $0xd8] sm:$0xff]  ;;  %v6546_v27 = vld [vmem:[#allocation2 + $0xd0] sm:$0xff]  ;;  %v6550_v28 = vld [vmem:[#allocation2 + $0xe8] sm:$0xff] }
  0x1d   :  { %v6552_v29 = vld [vmem:[#allocation2 + $0xe0] sm:$0xff]  ;;  %v6556_v30 = vld [vmem:[#allocation2 + $0xf8] sm:$0xff]  ;;  %v6558_v31 = vld [vmem:[#allocation2 + $0xf0] sm:$0xff] }
  0x1e   :  { %v6562_v32 = vld [vmem:[#allocation2 + $0x108] sm:$0xff]  ;;  %v6564_v33 = vld [vmem:[#allocation2 + $0x100] sm:$0xff]  ;;  %v6568_v34 = vld [vmem:[#allocation2 + $0x118] sm:$0xff] }
  0x1f   :  { %v6570_v35 = vld [vmem:[#allocation2 + $0x110] sm:$0xff]  ;;  %v6574_v36 = vld [vmem:[#allocation2 + $0x128] sm:$0xff]  ;;  %v6576_v37 = vld [vmem:[#allocation2 + $0x120] sm:$0xff] }
  0x20   :  { %175 = vadd.xlane.f32.xlu1 %v6484_v6  ;;  %173 = vadd.xlane.f32.xlu0 %v6486_v7  ;;  %v6580_v38 = vld [vmem:[#allocation2 + $0x138] sm:$0xff]  ;;  %v6582_v39 = vld [vmem:[#allocation2 + $0x130] sm:$0xff]  ;;  %v6586_v40 = vld [vmem:[#allocation2 + $0x148] sm:$0xff] }
  0x21   :  { %v6588_v41 = vld [vmem:[#allocation2 + $0x140] sm:$0xff]  ;;  %v6592_v42 = vld [vmem:[#allocation2 + $0x158] sm:$0xff]  ;;  %v6594_v43 = vld [vmem:[#allocation2 + $0x150] sm:$0xff] }
  0x22   :  { %v6598_v44 = vld [vmem:[#allocation2 + $0x168] sm:$0xff]  ;;  %v6600_v45 = vld [vmem:[#allocation2 + $0x160] sm:$0xff]  ;;  %v6604_v46 = vld [vmem:[#allocation2 + $0x178] sm:$0xff] }
  0x23   :  { %v6606_v47 = vld [vmem:[#allocation2 + $0x170] sm:$0xff]  ;;  %v6610_v48 = vld [vmem:[#allocation2 + $0x188] sm:$0xff]  ;;  %v6612_v49 = vld [vmem:[#allocation2 + $0x180] sm:$0xff] }
  0x24   :  { %179 = vadd.xlane.f32.xlu1 %v6490_v8  ;;  %177 = vadd.xlane.f32.xlu0 %v6492_v9  ;;  %v6616_v50 = vld [vmem:[#allocation2 + $0x198] sm:$0xff]  ;;  %v6618_v51 = vld [vmem:[#allocation2 + $0x190] sm:$0xff]  ;;  %v6622_v52 = vld [vmem:[#allocation2 + $0x1a8] sm:$0xff] }
  0x25   :  { %11631 = vst [vmem:[#allocation8_spill] sm:$0xff] %v6616_v50  ;;  %11632 = vst [vmem:[#allocation9_spill] sm:$0xff] %v6622_v52  ;;  %v6624_v53 = vld [vmem:[#allocation2 + $0x1a0] sm:$0xff]  ;;  %v6628_v54 = vld [vmem:[#allocation2 + $0x1b8] sm:$0xff] }
  0x26   :  { %11633 = vst [vmem:[#allocation10_spill] sm:$0xff] %v6624_v53  ;;  %11634 = vst [vmem:[#allocation11_spill] sm:$0xff] %v6628_v54  ;;  %v6630_v55 = vld [vmem:[#allocation2 + $0x1b0] sm:$0xff]  ;;  %v6634_v56 = vld [vmem:[#allocation2 + $0x1c8] sm:$0xff] }
  0x27   :  { %11635 = vst [vmem:[#allocation12_spill] sm:$0xff] %v6630_v55  ;;  %11636 = vst [vmem:[#allocation13_spill] sm:$0xff] %v6634_v56  ;;  %v6636_v57 = vld [vmem:[#allocation2 + $0x1c0] sm:$0xff]  ;;  %v6640_v58 = vld [vmem:[#allocation2 + $0x1d8] sm:$0xff] }
  0x28   :  { %183 = vadd.xlane.f32.xlu1 %v6496_v10  ;;  %181 = vadd.xlane.f32.xlu0 %v6498_v11  ;;  %11637 = vst [vmem:[#allocation14_spill] sm:$0xff] %v6636_v57  ;;  %11638 = vst [vmem:[#allocation15_spill] sm:$0xff] %v6640_v58  ;;  %v6642_v59 = vld [vmem:[#allocation2 + $0x1d0] sm:$0xff] }
  0x29   :  { %11639 = vst [vmem:[#allocation16_spill] sm:$0xff] %v6642_v59 }
  0x2c   :  { %187 = vadd.xlane.f32.xlu1 %v6502_v12  ;;  %185 = vadd.xlane.f32.xlu0 %v6504_v13 }
  0x30   :  { %191 = vadd.xlane.f32.xlu1 %v6508_v14  ;;  %189 = vadd.xlane.f32.xlu0 %v6510_v15 }
  0x34   :  { %195 = vadd.xlane.f32.xlu1 %v6514_v16  ;;  %193 = vadd.xlane.f32.xlu0 %v6516_v17 }
  0x38   :  { %199 = vadd.xlane.f32.xlu1 %v6520_v18  ;;  %197 = vadd.xlane.f32.xlu0 %v6522_v19 }
  0x3c   :  { %203 = vadd.xlane.f32.xlu1 %v6526_v20  ;;  %201 = vadd.xlane.f32.xlu0 %v6528_v21 }
  0x40   :  { %207 = vadd.xlane.f32.xlu1 %v6532_v22  ;;  %205 = vadd.xlane.f32.xlu0 %v6534_v23 }
  0x44   :  { %211 = vadd.xlane.f32.xlu1 %v6538_v24  ;;  %209 = vadd.xlane.f32.xlu0 %v6540_v25 }
  0x48   :  { %215 = vadd.xlane.f32.xlu1 %v6544_v26  ;;  %213 = vadd.xlane.f32.xlu0 %v6546_v27 }
  0x4c   :  { %219 = vadd.xlane.f32.xlu1 %v6550_v28  ;;  %217 = vadd.xlane.f32.xlu0 %v6552_v29 }
  0x50   :  { %223 = vadd.xlane.f32.xlu1 %v6556_v30  ;;  %221 = vadd.xlane.f32.xlu0 %v6558_v31 }
  0x54   :  { %227 = vadd.xlane.f32.xlu1 %v6562_v32  ;;  %225 = vadd.xlane.f32.xlu0 %v6564_v33 }
  0x58   :  { %231 = vadd.xlane.f32.xlu1 %v6568_v34  ;;  %229 = vadd.xlane.f32.xlu0 %v6570_v35 }
  0x5c   :  { %235 = vadd.xlane.f32.xlu1 %v6574_v36  ;;  %233 = vadd.xlane.f32.xlu0 %v6576_v37 }
  0x60   :  { %239 = vadd.xlane.f32.xlu1 %v6580_v38  ;;  %237 = vadd.xlane.f32.xlu0 %v6582_v39 }
  0x64   :  { %243 = vadd.xlane.f32.xlu1 %v6586_v40  ;;  %241 = vadd.xlane.f32.xlu0 %v6588_v41 }
  0x68   :  { %247 = vadd.xlane.f32.xlu1 %v6592_v42  ;;  %245 = vadd.xlane.f32.xlu0 %v6594_v43 }
  0x6c   :  { %251 = vadd.xlane.f32.xlu1 %v6598_v44  ;;  %249 = vadd.xlane.f32.xlu0 %v6600_v45 }
  0x70   :  { %255 = vadd.xlane.f32.xlu1 %v6604_v46  ;;  %253 = vadd.xlane.f32.xlu0 %v6606_v47 }
  0x74   :  { %259 = vadd.xlane.f32.xlu1 %v6610_v48  ;;  %257 = vadd.xlane.f32.xlu0 %v6612_v49 }
  0x78   :  { %263 = vadd.xlane.f32.xlu1 %v6616_v50  ;;  %261 = vadd.xlane.f32.xlu0 %v6618_v51 }
  0x7c   :  { %267 = vadd.xlane.f32.xlu1 %v6622_v52  ;;  %265 = vadd.xlane.f32.xlu0 %v6624_v53 }
  0x80   :  { %271 = vadd.xlane.f32.xlu1 %v6628_v54  ;;  %269 = vadd.xlane.f32.xlu0 %v6630_v55 }
  0x84   :  { %275 = vadd.xlane.f32.xlu1 %v6634_v56  ;;  %273 = vadd.xlane.f32.xlu0 %v6636_v57 }
  0x88   :  { %279 = vadd.xlane.f32.xlu1 %v6640_v58  ;;  %277 = vadd.xlane.f32.xlu0 %v6642_v59 }
  0xa1   :  { %v166_v60 = vpop.xlane.xlu1 %165  ;;  %v162_v61 = vpop.xlane.xlu0 %161 }
  0xa2   :  { %v413_v62 = vmul.f32 0.0078125, %v166_v60  ;;  %v411_v63 = vmul.f32 0.0078125, %v162_v61 }
  0xa4   :  { %v6647_v54 = vsub.f32 %v6466_v0, %v413_v62  ;;  %v6650_v55 = vsub.f32 %v6468_v1, %v411_v63 }
  0xa5   :  { %v168_v56 = vpop.xlane.xlu1 %167  ;;  %v164_v57 = vpop.xlane.xlu0 %163 }
  0xa6   :  { %11640 = vst [vmem:[#allocation17_spill] sm:$0xff] %v6647_v54  ;;  %11641 = vst [vmem:[#allocation18_spill] sm:$0xff] %v6650_v55  ;;  %v414_v52 = vmul.f32 0.0078125, %v168_v56  ;;  %v412_v53 = vmul.f32 0.0078125, %v164_v57  ;;  %v1095_v50 = vmul.f32 %v6650_v55, %v6650_v55  ;;  %v1097_v60 = vmul.f32 %v6647_v54, %v6647_v54 }
  0xa8   :  { %v6655_v58 = vsub.f32 %v6474_v3, %v412_v53  ;;  %1220 = vadd.xlane.f32.xlu0 %v1095_v50  ;;  %v6660_v62 = vsub.f32 %v6472_v2, %v414_v52 }
  0xa9   :  { %v172_v61 = vpop.xlane.xlu1 %171  ;;  %v170_v0 = vpop.xlane.xlu0 %169 }
  0xaa   :  { %11642 = vst [vmem:[#allocation19_spill] sm:$0xff] %v6655_v58  ;;  %11643 = vst [vmem:[#allocation20_spill] sm:$0xff] %v6660_v62  ;;  %v416_v1 = vmul.f32 0.0078125, %v172_v61  ;;  %v415_v63 = vmul.f32 0.0078125, %v170_v0  ;;  %v1096_v56 = vmul.f32 %v6655_v58, %v6655_v58  ;;  %v1098_v3 = vmul.f32 %v6660_v62, %v6660_v62 }
  0xac   :  { %v6665_v57 = vsub.f32 %v6480_v5, %v415_v63  ;;  %1224 = vadd.xlane.f32.xlu0 %v1097_v60  ;;  %1222 = vadd.xlane.f32.xlu1 %v1096_v56  ;;  %v6670_v59 = vsub.f32 %v6478_v4, %v416_v1 }
  0xad   :  { %v176_v50 = vpop.xlane.xlu1 %175  ;;  %v174_v53 = vpop.xlane.xlu0 %173 }
  0xae   :  { %11644 = vst [vmem:[#allocation21_spill] sm:$0xff] %v6665_v57  ;;  %11645 = vst [vmem:[#allocation22_spill] sm:$0xff] %v6670_v59  ;;  %v418_v2 = vmul.f32 0.0078125, %v176_v50  ;;  %v417_v52 = vmul.f32 0.0078125, %v174_v53  ;;  %v1099_v61 = vmul.f32 %v6665_v57, %v6665_v57  ;;  %v1100_v5 = vmul.f32 %v6670_v59, %v6670_v59 }
  0xb0   :  { %v6675_v0 = vsub.f32 %v6486_v7, %v417_v52  ;;  %1226 = vadd.xlane.f32.xlu1 %v1098_v3  ;;  %1228 = vadd.xlane.f32.xlu0 %v1099_v61  ;;  %v6680_v56 = vsub.f32 %v6484_v6, %v418_v2 }
  0xb1   :  { %v180_v60 = vpop.xlane.xlu1 %179  ;;  %v178_v63 = vpop.xlane.xlu0 %177 }
  0xb2   :  { %11646 = vst [vmem:[#allocation23_spill] sm:$0xff] %v6675_v0  ;;  %11647 = vst [vmem:[#allocation24_spill] sm:$0xff] %v6680_v56  ;;  %v420_v4 = vmul.f32 0.0078125, %v180_v60  ;;  %v419_v1 = vmul.f32 0.0078125, %v178_v63  ;;  %v1101_v50 = vmul.f32 %v6675_v0, %v6675_v0  ;;  %v1102_v7 = vmul.f32 %v6680_v56, %v6680_v56 }
  0xb4   :  { %v6685_v53 = vsub.f32 %v6492_v9, %v419_v1  ;;  %1230 = vadd.xlane.f32.xlu1 %v1100_v5  ;;  %1232 = vadd.xlane.f32.xlu0 %v1101_v50  ;;  %v6690_v61 = vsub.f32 %v6490_v8, %v420_v4 }
  0xb5   :  { %v184_v3 = vpop.xlane.xlu1 %183  ;;  %v182_v52 = vpop.xlane.xlu0 %181 }
  0xb6   :  { %11648 = vst [vmem:[#allocation25_spill] sm:$0xff] %v6685_v53  ;;  %11649 = vst [vmem:[#allocation26_spill] sm:$0xff] %v6690_v61  ;;  %v422_v6 = vmul.f32 0.0078125, %v184_v3  ;;  %v421_v2 = vmul.f32 0.0078125, %v182_v52  ;;  %v1103_v60 = vmul.f32 %v6685_v53, %v6685_v53  ;;  %v1104_v9 = vmul.f32 %v6690_v61, %v6690_v61 }
  0xb8   :  { %v6695_v63 = vsub.f32 %v6498_v11, %v421_v2  ;;  %1234 = vadd.xlane.f32.xlu1 %v1102_v7  ;;  %1236 = vadd.xlane.f32.xlu0 %v1103_v60  ;;  %v6700_v50 = vsub.f32 %v6496_v10, %v422_v6 }
  0xb9   :  { %v188_v5 = vpop.xlane.xlu1 %187  ;;  %v186_v1 = vpop.xlane.xlu0 %185 }
  0xba   :  { %11650 = vst [vmem:[#allocation27_spill] sm:$0xff] %v6695_v63  ;;  %11651 = vst [vmem:[#allocation28_spill] sm:$0xff] %v6700_v50  ;;  %v424_v8 = vmul.f32 0.0078125, %v188_v5  ;;  %v423_v4 = vmul.f32 0.0078125, %v186_v1  ;;  %v1105_v3 = vmul.f32 %v6695_v63, %v6695_v63  ;;  %v1106_v11 = vmul.f32 %v6700_v50, %v6700_v50 }
  0xbc   :  { %v6705_v52 = vsub.f32 %v6504_v13, %v423_v4  ;;  %1238 = vadd.xlane.f32.xlu1 %v1104_v9  ;;  %1240 = vadd.xlane.f32.xlu0 %v1105_v3  ;;  %v6710_v60 = vsub.f32 %v6502_v12, %v424_v8 }
  0xbd   :  { %v192_v7 = vpop.xlane.xlu1 %191  ;;  %v190_v2 = vpop.xlane.xlu0 %189 }
  0xbe   :  { %11652 = vst [vmem:[#allocation29_spill] sm:$0xff] %v6705_v52  ;;  %11653 = vst [vmem:[#allocation30_spill] sm:$0xff] %v6710_v60  ;;  %v426_v10 = vmul.f32 0.0078125, %v192_v7  ;;  %v425_v6 = vmul.f32 0.0078125, %v190_v2  ;;  %v1107_v5 = vmul.f32 %v6705_v52, %v6705_v52  ;;  %v1108_v13 = vmul.f32 %v6710_v60, %v6710_v60 }
  0xc0   :  { %v6715_v1 = vsub.f32 %v6510_v15, %v425_v6  ;;  %1242 = vadd.xlane.f32.xlu1 %v1106_v11  ;;  %1244 = vadd.xlane.f32.xlu0 %v1107_v5  ;;  %v6720_v3 = vsub.f32 %v6508_v14, %v426_v10 }
  0xc1   :  { %v196_v9 = vpop.xlane.xlu1 %195  ;;  %v194_v4 = vpop.xlane.xlu0 %193 }
  0xc2   :  { %11654 = vst [vmem:[#allocation31_spill] sm:$0xff] %v6715_v1  ;;  %11655 = vst [vmem:[#allocation32_spill] sm:$0xff] %v6720_v3  ;;  %v428_v12 = vmul.f32 0.0078125, %v196_v9  ;;  %v427_v8 = vmul.f32 0.0078125, %v194_v4  ;;  %v1109_v7 = vmul.f32 %v6715_v1, %v6715_v1  ;;  %v1110_v15 = vmul.f32 %v6720_v3, %v6720_v3 }
  0xc4   :  { %v6725_v2 = vsub.f32 %v6516_v17, %v427_v8  ;;  %1246 = vadd.xlane.f32.xlu1 %v1108_v13  ;;  %1248 = vadd.xlane.f32.xlu0 %v1109_v7  ;;  %v6730_v5 = vsub.f32 %v6514_v16, %v428_v12 }
  0xc5   :  { %v200_v11 = vpop.xlane.xlu1 %199  ;;  %v198_v6 = vpop.xlane.xlu0 %197 }
  0xc6   :  { %11656 = vst [vmem:[#allocation33_spill] sm:$0xff] %v6725_v2  ;;  %11657 = vst [vmem:[#allocation34_spill] sm:$0xff] %v6730_v5  ;;  %v430_v14 = vmul.f32 0.0078125, %v200_v11  ;;  %v429_v10 = vmul.f32 0.0078125, %v198_v6  ;;  %v1111_v9 = vmul.f32 %v6725_v2, %v6725_v2  ;;  %v1112_v17 = vmul.f32 %v6730_v5, %v6730_v5 }
  0xc8   :  { %v6735_v4 = vsub.f32 %v6522_v19, %v429_v10  ;;  %1250 = vadd.xlane.f32.xlu1 %v1110_v15  ;;  %1252 = vadd.xlane.f32.xlu0 %v1111_v9  ;;  %v6740_v7 = vsub.f32 %v6520_v18, %v430_v14 }
  0xc9   :  { %v204_v13 = vpop.xlane.xlu1 %203  ;;  %v202_v8 = vpop.xlane.xlu0 %201 }
  0xca   :  { %11658 = vst [vmem:[#allocation35_spill] sm:$0xff] %v6735_v4  ;;  %11659 = vst [vmem:[#allocation36_spill] sm:$0xff] %v6740_v7  ;;  %v432_v16 = vmul.f32 0.0078125, %v204_v13  ;;  %v431_v12 = vmul.f32 0.0078125, %v202_v8  ;;  %v1113_v11 = vmul.f32 %v6735_v4, %v6735_v4  ;;  %v1114_v19 = vmul.f32 %v6740_v7, %v6740_v7 }
  0xcc   :  { %v6745_v6 = vsub.f32 %v6528_v21, %v431_v12  ;;  %1254 = vadd.xlane.f32.xlu1 %v1112_v17  ;;  %1256 = vadd.xlane.f32.xlu0 %v1113_v11  ;;  %v6750_v10 = vsub.f32 %v6526_v20, %v432_v16  ;;  %v6759_v17 = vld [vmem:[#allocation2 + $0x1e0] sm:$0xff]  ;;  %v6764_v11 = vld [vmem:[#allocation2 + $0x1e8] sm:$0xff] }
  0xcd   :  { %v206_v15 = vpop.xlane.xlu0 %205  ;;  %v208_v9 = vpop.xlane.xlu1 %207 }
  0xce   :  { %11660 = vst [vmem:[#allocation37_spill] sm:$0xff] %v6745_v6  ;;  %11661 = vst [vmem:[#allocation38_spill] sm:$0xff] %v6750_v10  ;;  %v1115_v18 = vmul.f32 %v6745_v6, %v6745_v6  ;;  %v433_v14 = vmul.f32 0.0078125, %v206_v15  ;;  %v1116_v21 = vmul.f32 %v6750_v10, %v6750_v10  ;;  %v434_v12 = vmul.f32 0.0078125, %v208_v9  ;;  %v6775_v9 = vld [vmem:[#allocation2 + $0x1f0] sm:$0xff] }
  0xcf   :  { %11665 = vst [vmem:[#allocation42_spill] sm:$0xff] %v6775_v9 }
  0xd0   :  { %1258 = vadd.xlane.f32.xlu1 %v1114_v19  ;;  %1260 = vadd.xlane.f32.xlu0 %v1115_v18  ;;  %v6755_v13 = vsub.f32 %v6534_v23, %v433_v14  ;;  %v6767_v19 = vsub.f32 %v6532_v22, %v434_v12 }
  0xd1   :  { %v210_v8 = vpop.xlane.xlu0 %209  ;;  %v212_v23 = vpop.xlane.xlu1 %211 }
  0xd2   :  { %11662 = vst [vmem:[#allocation39_spill] sm:$0xff] %v6755_v13  ;;  %v1117_v20 = vmul.f32 %v6755_v13, %v6755_v13  ;;  %v435_v16 = vmul.f32 0.0078125, %v210_v8  ;;  %11663 = vst [vmem:[#allocation40_spill] sm:$0xff] %v6767_v19  ;;  %v1118_v14 = vmul.f32 %v6767_v19, %v6767_v19  ;;  %v6780_v13 = vld [vmem:[#allocation2 + $0x1f8] sm:$0xff] }
  0xd3   :  { %11666 = vst [vmem:[#allocation43_spill] sm:$0xff] %v6780_v13 }
  0xd4   :  { %1262 = vadd.xlane.f32.xlu1 %v1116_v21  ;;  %281 = vadd.xlane.f32.xlu0 %v6759_v17  ;;  %v6771_v18 = vsub.f32 %v6540_v25, %v435_v16  ;;  %v436_v21 = vmul.f32 0.0078125, %v212_v23 }
  0xd5   :  { %v214_v15 = vpop.xlane.xlu0 %213 }
  0xd6   :  { %11664 = vst [vmem:[#allocation41_spill] sm:$0xff] %v6771_v18  ;;  %v1119_v22 = vmul.f32 %v6771_v18, %v6771_v18  ;;  %v437_v12 = vmul.f32 0.0078125, %v214_v15  ;;  %v6783_v25 = vsub.f32 %v6538_v24, %v436_v21 }
  0xd8   :  { %283 = vadd.xlane.f32.xlu1 %v6764_v11  ;;  %1264 = vadd.xlane.f32.xlu0 %v1117_v20  ;;  %v216_v20 = vpop.xlane.xlu1 %215  ;;  %11667 = vst [vmem:[#allocation44_spill] sm:$0xff] %v6783_v25  ;;  %v6787_v23 = vsub.f32 %v6546_v27, %v437_v12 }
  0xd9   :  { %v218_v8 = vpop.xlane.xlu0 %217  ;;  %v438_v15 = vmul.f32 0.0078125, %v216_v20 }
  0xda   :  { %11668 = vst [vmem:[#allocation45_spill] sm:$0xff] %v6787_v23  ;;  %v1121_v24 = vmul.f32 %v6787_v23, %v6787_v23  ;;  %v439_v21 = vmul.f32 0.0078125, %v218_v8 }
  0xdb   :  { %v6799_v27 = vsub.f32 %v6544_v26, %v438_v15 }
  0xdc   :  { %1266 = vadd.xlane.f32.xlu1 %v1118_v14  ;;  %285 = vadd.xlane.f32.xlu0 %v6775_v9  ;;  %v1120_v14 = vmul.f32 %v6783_v25, %v6783_v25  ;;  %v6791_v9 = vld [vmem:[#allocation2 + $0x200] sm:$0xff]  ;;  %v220_v18 = vpop.xlane.xlu1 %219  ;;  %v6803_v20 = vsub.f32 %v6552_v29, %v439_v21  ;;  %v6812_v25 = vld [vmem:[#allocation2 + $0x218] sm:$0xff] }
  0xdd   :  { %v222_v16 = vpop.xlane.xlu0 %221  ;;  %11669 = vst [vmem:[#allocation46_spill] sm:$0xff] %v6791_v9  ;;  %11671 = vst [vmem:[#allocation48_spill] sm:$0xff] %v6799_v27  ;;  %v440_v8 = vmul.f32 0.0078125, %v220_v18 }
  0xde   :  { %11672 = vst [vmem:[#allocation49_spill] sm:$0xff] %v6803_v20  ;;  %v1123_v26 = vmul.f32 %v6803_v20, %v6803_v20  ;;  %v441_v15 = vmul.f32 0.0078125, %v222_v16  ;;  %11674 = vst [vmem:[#allocation51_spill] sm:$0xff] %v6812_v25 }
  0xdf   :  { %v6815_v29 = vsub.f32 %v6550_v28, %v440_v8 }
  0xe0   :  { %287 = vadd.xlane.f32.xlu1 %v6780_v13  ;;  %1268 = vadd.xlane.f32.xlu0 %v1119_v22  ;;  %v6796_v13 = vld [vmem:[#allocation2 + $0x208] sm:$0xff]  ;;  %v224_v22 = vpop.xlane.xlu1 %223  ;;  %v6819_v21 = vsub.f32 %v6558_v31, %v441_v15  ;;  %v6839_v15 = vld [vmem:[#allocation2 + $0x230] sm:$0xff] }
  0xe1   :  { %v226_v19 = vpop.xlane.xlu0 %225  ;;  %11670 = vst [vmem:[#allocation47_spill] sm:$0xff] %v6796_v13  ;;  %11675 = vst [vmem:[#allocation52_spill] sm:$0xff] %v6815_v29  ;;  %v1124_v18 = vmul.f32 %v6815_v29, %v6815_v29  ;;  %v442_v20 = vmul.f32 0.0078125, %v224_v22 }
  0xe2   :  { %11676 = vst [vmem:[#allocation53_spill] sm:$0xff] %v6819_v21  ;;  %v1125_v28 = vmul.f32 %v6819_v21, %v6819_v21  ;;  %v443_v8 = vmul.f32 0.0078125, %v226_v19  ;;  %11680 = vst [vmem:[#allocation57_spill] sm:$0xff] %v6839_v15 }
  0xe3   :  { %v6831_v31 = vsub.f32 %v6556_v30, %v442_v20  ;;  %v6844_v20 = vld [vmem:[#allocation2 + $0x238] sm:$0xff] }
  0xe4   :  { %1270 = vadd.xlane.f32.xlu1 %v1120_v14  ;;  %289 = vadd.xlane.f32.xlu0 %v6791_v9  ;;  %v1122_v14 = vmul.f32 %v6799_v27, %v6799_v27  ;;  %v6807_v9 = vld [vmem:[#allocation2 + $0x210] sm:$0xff]  ;;  %v228_v23 = vpop.xlane.xlu1 %227  ;;  %11681 = vst [vmem:[#allocation58_spill] sm:$0xff] %v6844_v20 }
  0xe5   :  { %v230_v12 = vpop.xlane.xlu0 %229  ;;  %11673 = vst [vmem:[#allocation50_spill] sm:$0xff] %v6807_v9  ;;  %11678 = vst [vmem:[#allocation55_spill] sm:$0xff] %v6831_v31  ;;  %v1126_v22 = vmul.f32 %v6831_v31, %v6831_v31  ;;  %v444_v21 = vmul.f32 0.0078125, %v228_v23 }
  0xe6   :  { %v445_v19 = vmul.f32 0.0078125, %v230_v12 }
  0xe8   :  { %291 = vadd.xlane.f32.xlu1 %v6796_v13  ;;  %1272 = vadd.xlane.f32.xlu0 %v1121_v24  ;;  %v232_v24 = vpop.xlane.xlu1 %231  ;;  %v6853_v23 = vsub.f32 %v6570_v35, %v445_v19  ;;  %v6872_v19 = vld [vmem:[#allocation2 + $0x250] sm:$0xff] }
  0xe9   :  { %v234_v13 = vpop.xlane.xlu0 %233  ;;  %v446_v12 = vmul.f32 0.0078125, %v232_v24  ;;  %11687 = vst [vmem:[#allocation64_spill] sm:$0xff] %v6872_v19 }
  0xea   :  { %11683 = vst [vmem:[#allocation60_spill] sm:$0xff] %v6853_v23 }
  0xeb   :  { %v6867_v35 = vsub.f32 %v6568_v34, %v446_v12  ;;  %v662_v34 = vlaneseq }
  0xec   :  { %1274 = vadd.xlane.f32.xlu1 %v1122_v14  ;;  %293 = vadd.xlane.f32.xlu0 %v6807_v9  ;;  %v6823_v14 = vld [vmem:[#allocation2 + $0x220] sm:$0xff]  ;;  %v236_v16 = vpop.xlane.xlu1 %235 }
  0xed   :  { %11677 = vst [vmem:[#allocation54_spill] sm:$0xff] %v6823_v14  ;;  %v238_v9 = vpop.xlane.xlu0 %237  ;;  %11686 = vst [vmem:[#allocation63_spill] sm:$0xff] %v6867_v35  ;;  %v1130_v24 = vmul.f32 %v6867_v35, %v6867_v35  ;;  %v6886_v35 = vshrl.u32 %v662_v34, 7 }
  0xee   :  { %v449_v12 = vmul.f32 0.0078125, %v238_v9  ;;  %v6901_v9 = vld [vmem:[%s11198_s1] sm:$0xff] }
  0xef   :  { %v685_v34 = vsub.s32 1, %v6886_v35 }
  0xf0   :  { %295 = vadd.xlane.f32.xlu1 %v6812_v25  ;;  %1276 = vadd.xlane.f32.xlu0 %v1123_v26  ;;  %v6828_v25 = vld [vmem:[#allocation2 + $0x228] sm:$0xff]  ;;  %v6835_v26 = vsub.f32 %v6564_v33, %v443_v8  ;;  %v6847_v33 = vsub.f32 %v6562_v32, %v444_v21  ;;  %v1129_v32 = vmul.f32 %v6853_v23, %v6853_v23 }
  0xf1   :  { %v6862_v21 = vld [vmem:[#allocation2 + $0x248] sm:$0xff] }
  0xf2   :  { %11679 = vst [vmem:[#allocation56_spill] sm:$0xff] %v6835_v26  ;;  %v1127_v30 = vmul.f32 %v6835_v26, %v6835_v26  ;;  %11682 = vst [vmem:[#allocation59_spill] sm:$0xff] %v6847_v33 }
  0xf3   :  { %11685 = vst [vmem:[#allocation62_spill] sm:$0xff] %v6862_v21 }
  0xf4   :  { %1278 = vadd.xlane.f32.xlu1 %v1124_v18  ;;  %297 = vadd.xlane.f32.xlu0 %v6823_v14  ;;  %v240_v18 = vpop.xlane.xlu1 %239  ;;  %v242_v14 = vpop.xlane.xlu0 %241 }
  0xf8   :  { %299 = vadd.xlane.f32.xlu1 %v6828_v25  ;;  %1280 = vadd.xlane.f32.xlu0 %v1125_v28  ;;  %v244_v28 = vpop.xlane.xlu1 %243  ;;  %v6849_v8 = vpop.xlane.xlu0 %245 }
  0xfc   :  { %1282 = vadd.xlane.f32.xlu1 %v1126_v22  ;;  %301 = vadd.xlane.f32.xlu0 %v6839_v15  ;;  %v1128_v22 = vmul.f32 %v6847_v33, %v6847_v33  ;;  %v6857_v15 = vld [vmem:[#allocation2 + $0x240] sm:$0xff]  ;;  %v248_v26 = vpop.xlane.xlu1 %247  ;;  %v448_v33 = vmul.f32 0.0078125, %v236_v16 }
  0xfd   :  { %11684 = vst [vmem:[#allocation61_spill] sm:$0xff] %v6857_v15 }
 0x100   :  { %303 = vadd.xlane.f32.xlu1 %v6844_v20  ;;  %1284 = vadd.xlane.f32.xlu0 %v1127_v30  ;;  %v6864_v20 = vpop.xlane.xlu0 %249  ;;  %v447_v30 = vmul.f32 0.0078125, %v234_v13  ;;  %v6877_v23 = vpop.xlane.xlu1 %251  ;;  %v6882_v13 = vld [vmem:[#allocation2 + $0x258] sm:$0xff] }
 0x101   :  { %11689 = vst [vmem:[#allocation66_spill] sm:$0xff] %v6882_v13 }
 0x104   :  { %1286 = vadd.xlane.f32.xlu1 %v1128_v22  ;;  %305 = vadd.xlane.f32.xlu0 %v6857_v15  ;;  %v6875_v22 = vsub.f32 %v6576_v37, %v447_v30  ;;  %v6879_v15 = vpop.xlane.xlu0 %253  ;;  %v6889_v37 = vsub.f32 %v6574_v36, %v448_v33  ;;  %v6892_v30 = vld [vmem:[#allocation2 + $0x260] sm:$0xff]  ;;  %v6894_v16 = vpop.xlane.xlu1 %255  ;;  %v6910_v33 = vrot.slane %v6901_v9, %v685_v34 }
 0x105   :  { %11691 = vst [vmem:[#allocation68_spill] sm:$0xff] %v6892_v30 }
 0x106   :  { %11688 = vst [vmem:[#allocation65_spill] sm:$0xff] %v6875_v22  ;;  %11690 = vst [vmem:[#allocation67_spill] sm:$0xff] %v6889_v37  ;;  %v1132_v36 = vmul.f32 %v6889_v37, %v6889_v37  ;;  %vm11299_vm0 = vcmp.eq.s32.totalorder %v6886_v35, %v6910_v33  ;;  %v452_v37 = vmul.f32 0.0078125, %v244_v28  ;;  %v6952_v28 = vld [vmem:[#allocation2 + $0x280] sm:$0xff] }
 0x107   :  { %11693 = vst [vmem:[#allocation70_spill] sm:$0xff] %v6910_v33  ;;  %11698 = vst [vmem:[#allocation75_spill] sm:$0xff] %v6952_v28 }
 0x108   :  { %307 = vadd.xlane.f32.xlu1 %v6862_v21  ;;  %1288 = vadd.xlane.f32.xlu0 %v1129_v32  ;;  %v1131_v32 = vmul.f32 %v6875_v22, %v6875_v22  ;;  %v6905_v22 = vsub.f32 %v6582_v39, %v449_v12  ;;  %v11253_v12 = vmov 1.0   ;;  %v6923_v34 = vpop.xlane.xlu1 %259 }
 0x109   :  { %5534 = vmatprep.mubr.msk.f32.mxu0 %vm11299_vm0, %v11253_v12  ;;  %v6939_v12 = vld [vmem:[#allocation2 + $0x278] sm:$0xff] }
 0x10a   :  { %11692 = vst [vmem:[#allocation69_spill] sm:$0xff] %v6905_v22  ;;  %v1133_v39 = vmul.f32 %v6905_v22, %v6905_v22 }
 0x10c   :  { %1290 = vadd.xlane.f32.xlu1 %v1130_v24  ;;  %309 = vadd.xlane.f32.xlu0 %v6872_v19  ;;  %v6896_v24 = vpop.xlane.xlu0 %257  ;;  %v451_v19 = vmul.f32 0.0078125, %v242_v14  ;;  %v6931_v14 = vld [vmem:[#allocation2 + $0x270] sm:$0xff]  ;;  %v6941_v21 = vpop.xlane.xlu1 %263 }
 0x10d   :  { %11695 = vst [vmem:[#allocation72_spill] sm:$0xff] %v6931_v14 }
 0x10e   :  { %v6934_v22 = vsub.f32 %v6588_v41, %v451_v19  ;;  %v6949_v41 = vsub.f32 %v6586_v40, %v452_v37  ;;  %v6964_v40 = vld [vmem:[#allocation2 + $0x288] sm:$0xff]  ;;  %v455_v37 = vmul.f32 0.0078125, %v6864_v20 }
 0x10f   :  { %11700 = vst [vmem:[#allocation77_spill] sm:$0xff] %v6964_v40 }
 0x110   :  { %311 = vadd.xlane.f32.xlu1 %v6882_v13  ;;  %1292 = vadd.xlane.f32.xlu0 %v1131_v32  ;;  %v450_v32 = vmul.f32 0.0078125, %v240_v18  ;;  %v6913_v13 = vld [vmem:[#allocation2 + $0x268] sm:$0xff]  ;;  %v6925_v18 = vpop.xlane.xlu0 %261  ;;  %11696 = vst [vmem:[#allocation73_spill] sm:$0xff] %v6934_v22  ;;  %11697 = vst [vmem:[#allocation74_spill] sm:$0xff] %v6949_v41 }
 0x114   :  { %1294 = vadd.xlane.f32.xlu1 %v1132_v36  ;;  %313 = vadd.xlane.f32.xlu0 %v6892_v30  ;;  %v6928_v36 = vsub.f32 %v6580_v38, %v450_v32  ;;  %v6943_v38 = vpop.xlane.xlu0 %265  ;;  %v453_v32 = vmul.f32 0.0078125, %v6849_v8 }
 0x116   :  { %11694 = vst [vmem:[#allocation71_spill] sm:$0xff] %v6928_v36  ;;  %v1134_v30 = vmul.f32 %v6928_v36, %v6928_v36  ;;  %v6955_v19 = vsub.f32 %v6594_v43, %v453_v32  ;;  %v454_v36 = vmul.f32 0.0078125, %v248_v26 }
 0x118   :  { %315 = vadd.xlane.f32.xlu1 %v6913_v13  ;;  %1296 = vadd.xlane.f32.xlu0 %v1133_v39  ;;  %v1135_v39 = vmul.f32 %v6934_v22, %v6934_v22  ;;  %11699 = vst [vmem:[#allocation76_spill] sm:$0xff] %v6955_v19  ;;  %v6961_v8 = vpop.xlane.xlu0 %269  ;;  %v6970_v43 = vsub.f32 %v6592_v42, %v454_v36  ;;  %v6986_v42 = vld [vmem:[#allocation2 + $0x298] sm:$0xff]  ;;  %v457_v36 = vmul.f32 0.0078125, %v6879_v15 }
 0x119   :  { %11704 = vst [vmem:[#allocation81_spill] sm:$0xff] %v6986_v42 }
 0x11a   :  { %11701 = vst [vmem:[#allocation78_spill] sm:$0xff] %v6970_v43  ;;  %v1138_v20 = vmul.f32 %v6970_v43, %v6970_v43 }
 0x11c   :  { %1298 = vadd.xlane.f32.xlu1 %v1134_v30  ;;  %317 = vadd.xlane.f32.xlu0 %v6931_v14  ;;  %v1136_v30 = vmul.f32 %v6949_v41, %v6949_v41  ;;  %v6959_v14 = vpop.xlane.xlu1 %267  ;;  %v6975_v41 = vld [vmem:[#allocation2 + $0x290] sm:$0xff]  ;;  %v6977_v26 = vpop.xlane.xlu0 %273 }
 0x11d   :  { %11702 = vst [vmem:[#allocation79_spill] sm:$0xff] %v6975_v41 }
 0x120   :  { %319 = vadd.xlane.f32.xlu1 %v6939_v12  ;;  %1300 = vadd.xlane.f32.xlu0 %v1135_v39  ;;  %v1137_v39 = vmul.f32 %v6955_v19, %v6955_v19  ;;  %v6973_v32 = vpop.xlane.xlu1 %271  ;;  %v456_v19 = vmul.f32 0.0078125, %v6877_v23  ;;  %v6999_v23 = vld [vmem:[#allocation2 + $0x2a0] sm:$0xff] }
 0x121   :  { %11706 = vst [vmem:[#allocation83_spill] sm:$0xff] %v6999_v23 }
 0x124   :  { %1302 = vadd.xlane.f32.xlu1 %v1136_v30  ;;  %321 = vadd.xlane.f32.xlu0 %v6952_v28  ;;  %v6980_v30 = vsub.f32 %v6600_v45, %v455_v37  ;;  %v6993_v28 = vpop.xlane.xlu0 %277  ;;  %v6996_v45 = vsub.f32 %v6598_v44, %v456_v19  ;;  %v7002_v37 = vsub.f32 %v6606_v47, %v457_v36  ;;  %v121_v19 = vld [vmem:[#allocation2 + $0x2a8] sm:$0xff] }
 0x126   :  { %11703 = vst [vmem:[#allocation80_spill] sm:$0xff] %v6980_v30  ;;  %11705 = vst [vmem:[#allocation82_spill] sm:$0xff] %v6996_v45  ;;  %v1140_v15 = vmul.f32 %v6996_v45, %v6996_v45 }
 0x127   :  { %11707 = vst [vmem:[#allocation84_spill] sm:$0xff] %v7002_v37 }
 0x128   :  { %323 = vadd.xlane.f32.xlu1 %v6964_v40  ;;  %1304 = vadd.xlane.f32.xlu0 %v1137_v39  ;;  %v1139_v39 = vmul.f32 %v6980_v30, %v6980_v30  ;;  %v6991_v40 = vpop.xlane.xlu1 %275 }
 0x12c   :  { %1306 = vadd.xlane.f32.xlu1 %v1138_v20  ;;  %325 = vadd.xlane.f32.xlu0 %v6975_v41  ;;  %v458_v20 = vmul.f32 0.0078125, %v6894_v16  ;;  %v7008_v30 = vpop.xlane.xlu1 %279  ;;  %v122_v16 = vld [vmem:[#allocation2 + $0x2b0] sm:$0xff] }
 0x12e   :  { %v7014_v47 = vsub.f32 %v6604_v46, %v458_v20  ;;  %v5666_v46 = vpack.c.bf16 %v6655_v58, %v6650_v55  ;;  %v7297_v58 = vld [vmem:[#allocation2 + $0x320] sm:$0xff] }
 0x130   :  { %327 = vadd.xlane.f32.xlu1 %v6986_v42  ;;  %1308 = vadd.xlane.f32.xlu0 %v1139_v39  ;;  %v459_v42 = vmul.f32 0.0078125, %v6896_v24  ;;  %v1141_v39 = vmul.f32 %v7002_v37, %v7002_v37  ;;  %11708 = vst [vmem:[#allocation85_spill] sm:$0xff] %v7014_v47  ;;  %v460_v24 = vmul.f32 0.0078125, %v6923_v34  ;;  %v461_v37 = vmul.f32 0.0078125, %v6925_v18 }
 0x131   :  { %v5670_v34 = vpack.c.bf16 %v6660_v62, %v6647_v54 }
 0x134   :  { %1310 = vadd.xlane.f32.xlu1 %v1140_v15  ;;  %329 = vadd.xlane.f32.xlu0 %v6999_v23  ;;  %v7017_v15 = vsub.f32 %v6612_v49, %v459_v42  ;;  %v1142_v23 = vmul.f32 %v7014_v47, %v7014_v47  ;;  %v7028_v42 = vsub.f32 %v6610_v48, %v460_v24  ;;  %v462_v48 = vmul.f32 0.0078125, %v6941_v21 }
 0x135   :  { %v1221_v44 = vpop.xlane.xlu0 %1220  ;;  %v5678_v21 = vpack.c.bf16 %v6680_v56, %v6675_v0  ;;  %v7266_v56 = vld [vmem:[#allocation2 + $0x318] sm:$0xff] }
 0x136   :  { %11709 = vst [vmem:[#allocation86_spill] sm:$0xff] %v7017_v15  ;;  %v1143_v49 = vmul.f32 %v7017_v15, %v7017_v15  ;;  %11710 = vst [vmem:[#allocation87_spill] sm:$0xff] %v7028_v42 }
 0x138   :  { %331 = vadd.xlane.f32.xlu1 %v121_v19  ;;  %1312 = vadd.xlane.f32.xlu0 %v1141_v39  ;;  %v123_v39 = vld [vmem:[#allocation2 + $0x2b8] sm:$0xff] }
 0x139   :  { %v1223_v36 = vpop.xlane.xlu1 %1222  ;;  %v1225_v45 = vpop.xlane.xlu0 %1224 }
 0x13a   :  { %v5664_v41 = vpack.c.bf16 %v1223_v36, %v1221_v44  ;;  %v124_v44 = vld [vmem:[#allocation2 + $0x2c0] sm:$0xff]  ;;  %v7033_v36 = vsub.f32 %v6618_v51, %v461_v37 }
 0x13c   :  { %1314 = vadd.xlane.f32.xlu1 %v1142_v23  ;;  %333 = vadd.xlane.f32.xlu0 %v122_v16  ;;  %11711 = vst [vmem:[#allocation88_spill] sm:$0xff] %v7033_v36  ;;  %v5674_v16 = vpack.c.bf16 %v6670_v59, %v6665_v57  ;;  %v1145_v37 = vmul.f32 %v7033_v36, %v7033_v36  ;;  %v11750_v57 = vld [vmem:[#allocation43_spill] sm:$0xff] }
 0x13d   :  { %5665 = vmatprep.subr.bf16.mxu0 %v5664_v41  ;;  %v1227_v20 = vpop.xlane.xlu1 %1226  ;;  %v1229_v19 = vpop.xlane.xlu0 %1228 }
 0x13e   :  { %v5668_v43 = vpack.c.bf16 %v1227_v20, %v1225_v45  ;;  %5667 = vmatpush1.bf16.msra.mxu0 %v5666_v46  ;;  %v1144_v45 = vmul.f32 %v7028_v42, %v7028_v42  ;;  %v125_v46 = vld [vmem:[#allocation2 + $0x2c8] sm:$0xff]  ;;  %v463_v20 = vmul.f32 0.0078125, %v6943_v38 }
 0x140   :  { %335 = vadd.xlane.f32.xlu1 %v123_v39  ;;  %1316 = vadd.xlane.f32.xlu0 %v1143_v49 }
 0x141   :  { %5669 = vmatprep.subr.bf16.mxu0 %v5668_v43  ;;  %v1231_v41 = vpop.xlane.xlu1 %1230  ;;  %v1233_v23 = vpop.xlane.xlu0 %1232 }
 0x142   :  { %v5672_v18 = vpack.c.bf16 %v1231_v41, %v1229_v19  ;;  %5671 = vmatpush1.bf16.msra.mxu0 %v5670_v34  ;;  %v11712_v19 = vld [vmem:[#allocation8_spill] sm:$0xff] }
 0x143   :  { %v7044_v39 = vsub.f32 %v11712_v19, %v462_v48  ;;  %v126_v41 = vld [vmem:[#allocation2 + $0x2d0] sm:$0xff]  ;;  %v5682_v48 = vpack.c.bf16 %v6690_v61, %v6685_v53 }
 0x144   :  { %1318 = vadd.xlane.f32.xlu1 %v1144_v45  ;;  %337 = vadd.xlane.f32.xlu0 %v124_v44  ;;  %v11714_v44 = vld [vmem:[#allocation10_spill] sm:$0xff]  ;;  %v464_v45 = vmul.f32 0.0078125, %v6959_v14  ;;  %v5686_v14 = vpack.c.bf16 %v6700_v50, %v6695_v63  ;;  %v11743_v50 = vld [vmem:[#allocation40_spill] sm:$0xff] }
 0x145   :  { %5673 = vmatprep.subr.bf16.mxu0 %v5672_v18  ;;  %v1235_v43 = vpop.xlane.xlu1 %1234  ;;  %v1237_v24 = vpop.xlane.xlu0 %1236  ;;  %11713 = vst [vmem:[#allocation8_spill] sm:$0xff] %v7044_v39  ;;  %v7049_v18 = vsub.f32 %v11714_v44, %v463_v20  ;;  %v11718_v44 = vld [vmem:[#allocation12_spill] sm:$0xff] }
 0x146   :  { %v5676_v51 = vpack.c.bf16 %v1235_v43, %v1233_v23  ;;  %5675 = vmatpush1.bf16.msra.mxu0 %v5674_v16  ;;  %v1146_v23 = vmul.f32 %v7044_v39, %v7044_v39  ;;  %v7229_v63 = vld [vmem:[#allocation2 + $0x310] sm:$0xff] }
 0x147   :  { %11715 = vst [vmem:[#allocation10_spill] sm:$0xff] %v7049_v18 }
 0x148   :  { %339 = vadd.xlane.f32.xlu1 %v125_v46  ;;  %1320 = vadd.xlane.f32.xlu0 %v1145_v37  ;;  %v127_v46 = vld [vmem:[#allocation2 + $0x2d8] sm:$0xff] }
 0x149   :  { %5677 = vmatprep.subr.bf16.mxu0 %v5676_v51  ;;  %v1239_v49 = vpop.xlane.xlu1 %1238  ;;  %v1241_v34 = vpop.xlane.xlu0 %1240  ;;  %v465_v51 = vmul.f32 0.0078125, %v6961_v8  ;;  %v11716_v37 = vld [vmem:[#allocation9_spill] sm:$0xff] }
 0x14a   :  { %v5680_v38 = vpack.c.bf16 %v1239_v49, %v1237_v24  ;;  %5679 = vmatpush1.bf16.msra.mxu0 %v5678_v21  ;;  %v1147_v24 = vmul.f32 %v7049_v18, %v7049_v18  ;;  %v7060_v19 = vsub.f32 %v11716_v37, %v464_v45  ;;  %v5690_v45 = vpack.c.bf16 %v6710_v60, %v6705_v52  ;;  %v11742_v52 = vld [vmem:[#allocation39_spill] sm:$0xff] }
 0x14c   :  { %1322 = vadd.xlane.f32.xlu1 %v1146_v23  ;;  %341 = vadd.xlane.f32.xlu0 %v126_v41  ;;  %11717 = vst [vmem:[#allocation9_spill] sm:$0xff] %v7060_v19  ;;  %v128_v41 = vld [vmem:[#allocation2 + $0x2e0] sm:$0xff]  ;;  %v466_v23 = vmul.f32 0.0078125, %v6973_v32  ;;  %v11720_v32 = vld [vmem:[#allocation11_spill] sm:$0xff] }
 0x14d   :  { %5681 = vmatprep.subr.bf16.mxu0 %v5680_v38  ;;  %v1243_v16 = vpop.xlane.xlu1 %1242  ;;  %v1245_v43 = vpop.xlane.xlu0 %1244  ;;  %v7065_v38 = vsub.f32 %v11718_v44, %v465_v51 }
 0x14e   :  { %v5684_v20 = vpack.c.bf16 %v1243_v16, %v1241_v34  ;;  %5683 = vmatpush1.bf16.msra.mxu0 %v5682_v48  ;;  %v1148_v34 = vmul.f32 %v7060_v19, %v7060_v19  ;;  %v467_v48 = vmul.f32 0.0078125, %v6977_v26  ;;  %v7079_v37 = vsub.f32 %v11720_v32, %v466_v23  ;;  %v130_v23 = vld [vmem:[#allocation2 + $0x2f0] sm:$0xff] }
 0x14f   :  { %11719 = vst [vmem:[#allocation12_spill] sm:$0xff] %v7065_v38  ;;  %v5694_v26 = vpack.c.bf16 %v6720_v3, %v6715_v1 }
 0x150   :  { %343 = vadd.xlane.f32.xlu1 %v127_v46  ;;  %1324 = vadd.xlane.f32.xlu0 %v1147_v24  ;;  %v7076_v24 = vadd.s32 16, %v6886_v35  ;;  %11721 = vst [vmem:[#allocation11_spill] sm:$0xff] %v7079_v37 }
 0x151   :  { %5685 = vmatprep.subr.bf16.mxu0 %v5684_v20  ;;  %v1247_v21 = vpop.xlane.xlu1 %1246  ;;  %v1249_v49 = vpop.xlane.xlu0 %1248  ;;  %v129_v20 = vld [vmem:[#allocation2 + $0x2e8] sm:$0xff] }
 0x152   :  { %v5688_v8 = vpack.c.bf16 %v1247_v21, %v1245_v43  ;;  %5687 = vmatpush1.bf16.msra.mxu0 %v5686_v14  ;;  %v1149_v43 = vmul.f32 %v7065_v38, %v7065_v38  ;;  %v681_v14 = vsub.s32 0, %v6886_v35  ;;  %v11722_v21 = vld [vmem:[#allocation14_spill] sm:$0xff]  ;;  %vm728_vm1 = vcmp.eq.s32.totalorder %v7076_v24, %v6910_v33 }
 0x154   :  { %1326 = vadd.xlane.f32.xlu1 %v1148_v34  ;;  %345 = vadd.xlane.f32.xlu0 %v128_v41  ;;  %v7085_v41 = vsub.f32 %v11722_v21, %v467_v48  ;;  %v1150_v34 = vmul.f32 %v7079_v37, %v7079_v37  ;;  %v468_v48 = vmul.f32 0.0078125, %v6991_v40 }
 0x155   :  { %5689 = vmatprep.subr.bf16.mxu0 %v5688_v8  ;;  %v1251_v16 = vpop.xlane.xlu1 %1250  ;;  %v1253_v46 = vpop.xlane.xlu0 %1252 }
 0x156   :  { %v5692_v51 = vpack.c.bf16 %v1251_v16, %v1249_v49  ;;  %5691 = vmatpush1.bf16.msra.mxu0 %v5690_v45  ;;  %11723 = vst [vmem:[#allocation14_spill] sm:$0xff] %v7085_v41  ;;  %v469_v49 = vmul.f32 0.0078125, %v6993_v28  ;;  %v7093_v16 = vadd.s32 24, %v6886_v35  ;;  %v11277_v28 = vmov 0.0  }
 0x158   :  { %347 = vadd.xlane.f32.xlu1 %v129_v20  ;;  %1328 = vadd.xlane.f32.xlu0 %v1149_v43  ;;  %v7097_v20 = vrot.slane %v6901_v9, %v681_v14  ;;  %vm736_vm2 = vcmp.eq.s32.totalorder %v7093_v16, %v6910_v33  ;;  %v11726_v43 = vld [vmem:[#allocation16_spill] sm:$0xff]  ;;  %v131_v14 = vld [vmem:[#allocation2 + $0x2f8] sm:$0xff] }
 0x159   :  { %5693 = vmatprep.subr.bf16.mxu0 %v5692_v51  ;;  %v1255_v44 = vpop.xlane.xlu1 %1254  ;;  %v1257_v8 = vpop.xlane.xlu0 %1256  ;;  %v7103_v51 = vsel %vm728_vm1, 1.0, %v11277_v28  ;;  %v7110_v40 = vsub.f32 %v11726_v43, %v469_v49  ;;  %v7120_v21 = vsel %vm736_vm2, 1.0, %v11277_v28 }
 0x15a   :  { %v5696_v45 = vpack.c.bf16 %v1255_v44, %v1253_v46  ;;  %5695 = vmatpush1.bf16.msra.mxu0 %v5694_v26  ;;  %11724 = vst [vmem:[#allocation89_spill] sm:$0xff] %v7097_v20  ;;  %11725 = vst [vmem:[#allocation90_spill] sm:$0xff] %v7103_v51  ;;  %v5698_v46 = vpack.c.bf16 %v6730_v5, %v6725_v2  ;;  %v1151_v26 = vmul.f32 %v7085_v41, %v7085_v41  ;;  %v11735_v5 = vld [vmem:[#allocation15_spill] sm:$0xff] }
 0x15b   :  { %11727 = vst [vmem:[#allocation16_spill] sm:$0xff] %v7110_v40  ;;  %vm727_vm3 = vcmp.eq.s32.totalorder %v7076_v24, %v7097_v20  ;;  %11728 = vst [vmem:[#allocation91_spill] sm:$0xff] %v7120_v21  ;;  %vm735_vm4 = vcmp.eq.s32.totalorder %v7093_v16, %v7097_v20 }
 0x15c   :  { %1330 = vadd.xlane.f32.xlu1 %v1150_v34  ;;  %349 = vadd.xlane.f32.xlu0 %v130_v23  ;;  %v7126_v49 = vsel %vm727_vm3, 1.0, %v11277_v28  ;;  %v7131_v23 = vadd.s32 32, %v6886_v35 }
 0x15d   :  { %5697 = vmatprep.subr.bf16.mxu0 %v5696_v45  ;;  %v1259_v9 = vpop.xlane.xlu1 %1258  ;;  %v1261_v32 = vpop.xlane.xlu0 %1260  ;;  %11729 = vst [vmem:[#allocation92_spill] sm:$0xff] %v7126_v49  ;;  %v11730_v45 = vld [vmem:[#allocation13_spill] sm:$0xff] }
 0x15e   :  { %v5700_v44 = vpack.c.bf16 %v1259_v9, %v1257_v8  ;;  %5699 = vmatpush1.bf16.msra.mxu0 %v5698_v46  ;;  %v7134_v43 = vsub.f32 %v11730_v45, %v468_v48  ;;  %v470_v8 = vmul.f32 0.0078125, %v7008_v30  ;;  %v5702_v46 = vpack.c.bf16 %v6740_v7, %v6735_v4 }
 0x15f   :  { %v7145_v9 = vsel %vm735_vm4, 1.0, %v11277_v28  ;;  %v1153_v30 = vmul.f32 %v7110_v40, %v7110_v40  ;;  %vm744_vm5 = vcmp.eq.s32.totalorder %v7131_v23, %v6910_v33  ;;  %v7156_v28 = vadd.s32 40, %v6886_v35 }
 0x160   :  { %11731 = vst [vmem:[#allocation13_spill] sm:$0xff] %v7134_v43  ;;  %351 = vadd.xlane.f32.xlu1 %v131_v14  ;;  %1332 = vadd.xlane.f32.xlu0 %v1151_v26  ;;  %11732 = vst [vmem:[#allocation93_spill] sm:$0xff] %v7145_v9  ;;  %v1152_v45 = vmul.f32 %v7134_v43, %v7134_v43  ;;  %v7165_v2 = vsub.f32 %v11735_v5, %v470_v8  ;;  %v7197_v14 = vadd.s32 48, %v6886_v35 }
 0x161   :  { %5701 = vmatprep.subr.bf16.mxu0 %v5700_v44  ;;  %v1263_v34 = vpop.xlane.xlu1 %1262  ;;  %v282_v48 = vpop.xlane.xlu0 %281  ;;  %v11733_v44 = vmov 0.0   ;;  %vm752_vm6 = vcmp.eq.s32.totalorder %v7156_v28, %v6910_v33  ;;  %vm743_vm7 = vcmp.eq.s32.totalorder %v7131_v23, %v7097_v20  ;;  %vm751_vm8 = vcmp.eq.s32.totalorder %v7156_v28, %v7097_v20 }
 0x162   :  { %v5704_v26 = vpack.c.bf16 %v1263_v34, %v1261_v32  ;;  %5703 = vmatpush1.bf16.msra.mxu0 %v5702_v46  ;;  %v471_v7 = vmul.f32 0.0078125, %v282_v48  ;;  %v7162_v4 = vsel %vm744_vm5, 1.0, %v11733_v44  ;;  %11736 = vst [vmem:[#allocation15_spill] sm:$0xff] %v7165_v2  ;;  %v5706_v32 = vpack.c.bf16 %v6750_v10, %v6745_v6  ;;  %v7171_v48 = vld [vmem:[#allocation2 + $0x300] sm:$0xff]  ;;  %v7206_v6 = vld [vmem:[#allocation2 + $0x308] sm:$0xff] }
 0x163   :  { %11734 = vst [vmem:[#allocation94_spill] sm:$0xff] %v7162_v4  ;;  %v7179_v5 = vsel %vm752_vm6, 1.0, %v11733_v44  ;;  %vm760_vm9 = vcmp.eq.s32.totalorder %v7197_v14, %v6910_v33  ;;  %vm759_vm10 = vcmp.eq.s32.totalorder %v7197_v14, %v7097_v20 }
 0x164   :  { %1334 = vadd.xlane.f32.xlu1 %v1152_v45  ;;  %1336 = vadd.xlane.f32.xlu0 %v1153_v30  ;;  %11737 = vst [vmem:[#allocation95_spill] sm:$0xff] %v7179_v5  ;;  %v7182_v8 = vsub.f32 %v6759_v17, %v471_v7  ;;  %v1154_v45 = vmul.f32 %v7165_v2, %v7165_v2  ;;  %v7190_v30 = vsel %vm743_vm7, 1.0, %v11733_v44  ;;  %v7204_v17 = vsel %vm751_vm8, 1.0, %v11733_v44  ;;  %v7328_v5 = vld [vmem:[#allocation2 + $0x328] sm:$0xff] }
 0x165   :  { %5705 = vmatprep.subr.bf16.mxu0 %v5704_v26  ;;  %v284_v34 = vpop.xlane.xlu1 %283  ;;  %v1265_v46 = vpop.xlane.xlu0 %1264  ;;  %11739 = vst [vmem:[#allocation97_spill] sm:$0xff] %v7190_v30  ;;  %11740 = vst [vmem:[#allocation98_spill] sm:$0xff] %v7204_v17  ;;  %v5710_v26 = vpack.c.bf16 %v11743_v50, %v11742_v52  ;;  %v7388_v30 = vld [vmem:[#allocation2 + $0x338] sm:$0xff] }
 0x166   :  { %11738 = vst [vmem:[#allocation96_spill] sm:$0xff] %v7182_v8  ;;  %5707 = vmatpush1.bf16.msra.mxu0 %v5706_v32  ;;  %v472_v7 = vmul.f32 0.0078125, %v284_v34  ;;  %v1155_v34 = vmul.f32 %v7182_v8, %v7182_v8  ;;  %11772 = vst [vmem:[#allocation115_spill] sm:$0xff] %v7388_v30 }
 0x168   :  { %1338 = vadd.xlane.f32.xlu1 %v1154_v45  ;;  %353 = vadd.xlane.f32.xlu0 %v7171_v48  ;;  %v7215_v45 = vadd.s32 56, %v6886_v35  ;;  %v7218_v60 = vsub.f32 %v6764_v11, %v472_v7  ;;  %v11745_v11 = vld [vmem:[#allocation42_spill] sm:$0xff] }
 0x169   :  { %v1267_v32 = vpop.xlane.xlu1 %1266  ;;  %v286_v10 = vpop.xlane.xlu0 %285 }
 0x16a   :  { %v5708_v3 = vpack.c.bf16 %v1267_v32, %v1265_v46  ;;  %v473_v1 = vmul.f32 0.0078125, %v286_v10  ;;  %11741 = vst [vmem:[#allocation99_spill] sm:$0xff] %v7218_v60  ;;  %v7227_v10 = vsel %vm760_vm9, 1.0, %v11733_v44  ;;  %vm768_vm11 = vcmp.eq.s32.totalorder %v7215_v45, %v6910_v33 }
 0x16b   :  { %11744 = vst [vmem:[#allocation100_spill] sm:$0xff] %v7227_v10  ;;  %v7250_v50 = vsel %vm768_vm11, 1.0, %v11733_v44  ;;  %vm767_vm12 = vcmp.eq.s32.totalorder %v7215_v45, %v7097_v20 }
 0x16c   :  { %355 = vadd.xlane.f32.xlu1 %v7206_v6  ;;  %1340 = vadd.xlane.f32.xlu0 %v1155_v34  ;;  %v7236_v7 = vsub.f32 %v11745_v11, %v473_v1  ;;  %v1156_v34 = vmul.f32 %v7218_v60, %v7218_v60  ;;  %11748 = vst [vmem:[#allocation102_spill] sm:$0xff] %v7250_v50  ;;  %v7264_v52 = vsel %vm767_vm12, 1.0, %v11733_v44 }
 0x16d   :  { %5709 = vmatprep.subr.bf16.mxu0 %v5708_v3  ;;  %v288_v46 = vpop.xlane.xlu1 %287  ;;  %v1269_v32 = vpop.xlane.xlu0 %1268  ;;  %v7244_v3 = vsel %vm759_vm10, 1.0, %v11733_v44  ;;  %11749 = vst [vmem:[#allocation103_spill] sm:$0xff] %v7264_v52 }
 0x16e   :  { %11746 = vst [vmem:[#allocation42_spill] sm:$0xff] %v7236_v7  ;;  %5711 = vmatpush1.bf16.msra.mxu0 %v5710_v26  ;;  %11747 = vst [vmem:[#allocation101_spill] sm:$0xff] %v7244_v3  ;;  %v7257_v26 = vadd.s32 64, %v6886_v35  ;;  %v474_v11 = vmul.f32 0.0078125, %v288_v46  ;;  %v1157_v46 = vmul.f32 %v7236_v7, %v7236_v7 }
 0x170   :  { %1342 = vadd.xlane.f32.xlu1 %v1156_v34  ;;  %357 = vadd.xlane.f32.xlu0 %v7229_v63  ;;  %vm11312_vm13 = vcmp.eq.s32.totalorder %v7257_v26, %v6910_v33  ;;  %vm11311_vm14 = vcmp.eq.s32.totalorder %v7257_v26, %v7097_v20  ;;  %v7277_v34 = vadd.s32 72, %v6886_v35  ;;  %v7280_v62 = vsub.f32 %v11750_v57, %v474_v11 }
 0x171   :  { %v1271_v61 = vpop.xlane.xlu1 %1270  ;;  %v290_v53 = vpop.xlane.xlu0 %289  ;;  %v7289_v1 = vsel %vm11312_vm13, 1.0, %v11733_v44  ;;  %v7295_v54 = vsel %vm11311_vm14, 1.0, %v11733_v44 }
 0x172   :  { %v5712_v0 = vpack.c.bf16 %v1271_v61, %v1269_v32  ;;  %v475_v59 = vmul.f32 0.0078125, %v290_v53  ;;  %11751 = vst [vmem:[#allocation43_spill] sm:$0xff] %v7280_v62  ;;  %v11752_v61 = vld [vmem:[#allocation41_spill] sm:$0xff]  ;;  %v11753_v53 = vld [vmem:[#allocation44_spill] sm:$0xff]  ;;  %11754 = vst [vmem:[#allocation104_spill] sm:$0xff] %v7289_v1  ;;  %vm11309_vm15 = vcmp.eq.s32.totalorder %v7277_v34, %v6910_v33  ;;  %vm11308_vm0 = vcmp.eq.s32.totalorder %v7277_v34, %v7097_v20 }
 0x173   :  { %v5714_v32 = vpack.c.bf16 %v11753_v53, %v11752_v61  ;;  %11755 = vst [vmem:[#allocation105_spill] sm:$0xff] %v7295_v54  ;;  %v1158_v61 = vmul.f32 %v7280_v62, %v7280_v62  ;;  %v7318_v55 = vsel %vm11308_vm0, 1.0, %v11733_v44  ;;  %v7357_v1 = vld [vmem:[#allocation2 + $0x330] sm:$0xff] }
 0x174   :  { %359 = vadd.xlane.f32.xlu1 %v7266_v56  ;;  %1344 = vadd.xlane.f32.xlu0 %v1157_v46  ;;  %v11756_v46 = vld [vmem:[#allocation46_spill] sm:$0xff]  ;;  %11759 = vst [vmem:[#allocation107_spill] sm:$0xff] %v7318_v55  ;;  %11766 = vst [vmem:[#allocation111_spill] sm:$0xff] %v7357_v1 }
 0x175   :  { %5713 = vmatprep.subr.bf16.mxu0 %v5712_v0  ;;  %v292_v57 = vpop.xlane.xlu1 %291  ;;  %v1273_v11 = vpop.xlane.xlu0 %1272  ;;  %v7304_v53 = vsub.f32 %v11756_v46, %v475_v59  ;;  %v7312_v0 = vsel %vm11309_vm15, 1.0, %v11733_v44  ;;  %v7325_v46 = vadd.s32 80, %v6886_v35 }
 0x176   :  { %5715 = vmatpush1.bf16.msra.mxu0 %v5714_v32  ;;  %11758 = vst [vmem:[#allocation106_spill] sm:$0xff] %v7312_v0  ;;  %v476_v10 = vmul.f32 0.0078125, %v292_v57  ;;  %v7337_v57 = vadd.s32 88, %v6886_v35 }
 0x177   :  { %11757 = vst [vmem:[#allocation46_spill] sm:$0xff] %v7304_v53  ;;  %v1159_v3 = vmul.f32 %v7304_v53, %v7304_v53  ;;  %vm11326_vm0 = vcmp.eq.s32.totalorder %v7325_v46, %v6910_v33  ;;  %vm11325_vm15 = vcmp.eq.s32.totalorder %v7325_v46, %v7097_v20 }
 0x178   :  { %1346 = vadd.xlane.f32.xlu1 %v1158_v61  ;;  %361 = vadd.xlane.f32.xlu0 %v7297_v58  ;;  %11760 = vst [vmem:[#allocation108_spill] sm:$0xff] %v7337_v57  ;;  %v11761_v61 = vld [vmem:[#allocation47_spill] sm:$0xff]  ;;  %v7355_v32 = vsel %vm11325_vm15, 1.0, %v11733_v44  ;;  %vm11323_vm14 = vcmp.eq.s32.totalorder %v7337_v57, %v6910_v33  ;;  %vm11322_vm13 = vcmp.eq.s32.totalorder %v7337_v57, %v7097_v20 }
 0x179   :  { %v1275_v50 = vpop.xlane.xlu1 %1274  ;;  %v294_v4 = vpop.xlane.xlu0 %293  ;;  %v7340_v59 = vsub.f32 %v11761_v61, %v476_v10  ;;  %11765 = vst [vmem:[#allocation110_spill] sm:$0xff] %v7355_v32  ;;  %v7378_v0 = vsel %vm11322_vm13, 1.0, %v11733_v44 }
 0x17a   :  { %v5716_v51 = vpack.c.bf16 %v1275_v50, %v1273_v11  ;;  %v477_v21 = vmul.f32 0.0078125, %v294_v4  ;;  %v11763_v50 = vld [vmem:[#allocation45_spill] sm:$0xff]  ;;  %v7349_v11 = vsel %vm11326_vm0, 1.0, %v11733_v44  ;;  %11770 = vst [vmem:[#allocation113_spill] sm:$0xff] %v7378_v0 }
 0x17b   :  { %11762 = vst [vmem:[#allocation47_spill] sm:$0xff] %v7340_v59  ;;  %v5718_v4 = vpack.c.bf16 %v6799_v27, %v11763_v50  ;;  %11764 = vst [vmem:[#allocation109_spill] sm:$0xff] %v7349_v11  ;;  %v1160_v50 = vmul.f32 %v7340_v59, %v7340_v59  ;;  %v7417_v11 = vld [vmem:[#allocation2 + $0x340] sm:$0xff] }
 0x17c   :  { %363 = vadd.xlane.f32.xlu1 %v7328_v5  ;;  %1348 = vadd.xlane.f32.xlu0 %v1159_v3  ;;  %v11767_v3 = vld [vmem:[#allocation50_spill] sm:$0xff]  ;;  %11779 = vst [vmem:[#allocation119_spill] sm:$0xff] %v7417_v11 }
 0x17d   :  { %5717 = vmatprep.subr.bf16.mxu0 %v5716_v51  ;;  %v296_v10 = vpop.xlane.xlu1 %295  ;;  %v1277_v61 = vpop.xlane.xlu0 %1276  ;;  %v7364_v27 = vsub.f32 %v11767_v3, %v477_v21  ;;  %v7372_v51 = vsel %vm11323_vm14, 1.0, %v11733_v44  ;;  %v7385_v3 = vadd.s32 96, %v6886_v35 }
 0x17e   :  { %5719 = vmatpush1.bf16.msra.mxu0 %v5718_v4  ;;  %11769 = vst [vmem:[#allocation112_spill] sm:$0xff] %v7372_v51  ;;  %v478_v54 = vmul.f32 0.0078125, %v296_v10  ;;  %v7397_v10 = vadd.s32 104, %v6886_v35 }
 0x17f   :  { %11768 = vst [vmem:[#allocation50_spill] sm:$0xff] %v7364_v27  ;;  %11771 = vst [vmem:[#allocation114_spill] sm:$0xff] %v7385_v3  ;;  %v1161_v9 = vmul.f32 %v7364_v27, %v7364_v27  ;;  %vm11343_vm13 = vcmp.eq.s32.totalorder %v7385_v3, %v6910_v33  ;;  %vm11342_vm14 = vcmp.eq.s32.totalorder %v7385_v3, %v7097_v20  ;;  %v7448_v27 = vld [vmem:[#allocation2 + $0x348] sm:$0xff] }
 0x180   :  { %1350 = vadd.xlane.f32.xlu1 %v1160_v50  ;;  %365 = vadd.xlane.f32.xlu0 %v7357_v1  ;;  %11773 = vst [vmem:[#allocation116_spill] sm:$0xff] %v7397_v10  ;;  %v11774_v50 = vld [vmem:[#allocation51_spill] sm:$0xff]  ;;  %v7415_v4 = vsel %vm11342_vm14, 1.0, %v11733_v44  ;;  %vm11340_vm15 = vcmp.eq.s32.totalorder %v7397_v10, %v6910_v33  ;;  %vm11339_vm0 = vcmp.eq.s32.totalorder %v7397_v10, %v7097_v20  ;;  %11785 = vst [vmem:[#allocation123_spill] sm:$0xff] %v7448_v27 }
 0x181   :  { %v1279_v55 = vpop.xlane.xlu1 %1278  ;;  %v298_v52 = vpop.xlane.xlu0 %297  ;;  %v7400_v21 = vsub.f32 %v11774_v50, %v478_v54  ;;  %11778 = vst [vmem:[#allocation118_spill] sm:$0xff] %v7415_v4  ;;  %v7438_v51 = vsel %vm11339_vm0, 1.0, %v11733_v44  ;;  %vm11436_vm14 = vcmp.eq.s32.totalorder %v6886_v35, %v7097_v20 }
 0x182   :  { %v5720_v17 = vpack.c.bf16 %v1279_v55, %v1277_v61  ;;  %v479_v49 = vmul.f32 0.0078125, %v298_v52  ;;  %v11776_v55 = vld [vmem:[#allocation49_spill] sm:$0xff]  ;;  %v7409_v61 = vsel %vm11343_vm13, 1.0, %v11733_v44  ;;  %11783 = vst [vmem:[#allocation121_spill] sm:$0xff] %v7438_v51 }
 0x183   :  { %11775 = vst [vmem:[#allocation51_spill] sm:$0xff] %v7400_v21  ;;  %v5722_v52 = vpack.c.bf16 %v6815_v29, %v11776_v55  ;;  %11777 = vst [vmem:[#allocation117_spill] sm:$0xff] %v7409_v61  ;;  %v1162_v55 = vmul.f32 %v7400_v21, %v7400_v21  ;;  %v7480_v61 = vld [vmem:[#allocation2 + $0x350] sm:$0xff] }
 0x184   :  { %367 = vadd.xlane.f32.xlu1 %v7388_v30  ;;  %1352 = vadd.xlane.f32.xlu0 %v1161_v9  ;;  %v11780_v9 = vld [vmem:[#allocation54_spill] sm:$0xff] }
 0x185   :  { %5721 = vmatprep.subr.bf16.mxu0 %v5720_v17  ;;  %v300_v54 = vpop.xlane.xlu1 %299  ;;  %v1281_v50 = vpop.xlane.xlu0 %1280  ;;  %v7424_v29 = vsub.f32 %v11780_v9, %v479_v49  ;;  %v7432_v17 = vsel %vm11340_vm15, 1.0, %v11733_v44  ;;  %v7445_v9 = vadd.s32 112, %v6886_v35  ;;  %v7453_v49 = vadd.s32 8, %v6886_v35 }
 0x186   :  { %5723 = vmatpush1.bf16.msra.mxu0 %v5722_v52  ;;  %11782 = vst [vmem:[#allocation120_spill] sm:$0xff] %v7432_v17  ;;  %v480_v32 = vmul.f32 0.0078125, %v300_v54 }
 0x187   :  { %11781 = vst [vmem:[#allocation54_spill] sm:$0xff] %v7424_v29  ;;  %11784 = vst [vmem:[#allocation122_spill] sm:$0xff] %v7445_v9  ;;  %v1163_v59 = vmul.f32 %v7424_v29, %v7424_v29  ;;  %vm11344_vm0 = vcmp.eq.s32.totalorder %v7445_v9, %v6910_v33  ;;  %vm11347_vm15 = vcmp.eq.s32.totalorder %v7445_v9, %v7097_v20  ;;  %v11795_v29 = vmov 1.0  }
 0x188   :  { %1354 = vadd.xlane.f32.xlu1 %v1162_v55  ;;  %369 = vadd.xlane.f32.xlu0 %v7417_v11  ;;  %v7460_v55 = vadd.s32 120, %v6886_v35  ;;  %v7463_v54 = vsub.f32 %v6828_v25, %v480_v32  ;;  %v7478_v52 = vsel %vm11347_vm15, 1.0, %v11733_v44  ;;  %vm11432_vm15 = vcmp.eq.s32.totalorder %v7453_v49, %v6910_v33 }
 0x189   :  { %v1283_v0 = vpop.xlane.xlu1 %1282  ;;  %v302_v21 = vpop.xlane.xlu0 %301  ;;  %11790 = vst [vmem:[#allocation127_spill] sm:$0xff] %v7478_v52  ;;  %v11801_v52 = vld [vmem:[#allocation61_spill] sm:$0xff] }
 0x18a   :  { %v5724_v30 = vpack.c.bf16 %v1283_v0, %v1281_v50  ;;  %v481_v1 = vmul.f32 0.0078125, %v302_v21  ;;  %11786 = vst [vmem:[#allocation124_spill] sm:$0xff] %v7460_v55  ;;  %11787 = vst [vmem:[#allocation125_spill] sm:$0xff] %v7463_v54  ;;  %v11788_v0 = vld [vmem:[#allocation53_spill] sm:$0xff]  ;;  %v7472_v50 = vsel %vm11344_vm0, 1.0, %v11733_v44  ;;  %vm832_vm13 = vcmp.eq.s32.totalorder %v7460_v55, %v6910_v33 }
 0x18b   :  { %v5726_v21 = vpack.c.bf16 %v6831_v31, %v11788_v0  ;;  %11789 = vst [vmem:[#allocation126_spill] sm:$0xff] %v7472_v50  ;;  %vm11356_vm0 = vcmp.eq.s32.totalorder %v7460_v55, %v7097_v20  ;;  %v7497_v0 = vsel %vm832_vm13, 1.0, %v11733_v44 }
 0x18c   :  { %371 = vadd.xlane.f32.xlu1 %v7448_v27  ;;  %1356 = vadd.xlane.f32.xlu0 %v1163_v59  ;;  %v11791_v59 = vld [vmem:[#allocation57_spill] sm:$0xff]  ;;  %11793 = vst [vmem:[#allocation128_spill] sm:$0xff] %v7497_v0  ;;  %v7503_v17 = vsel %vm11356_vm0, 1.0, %v11733_v44  ;;  %vm11433_vm0 = vcmp.eq.s32.totalorder %v7453_v49, %v7097_v20  ;;  %v7532_v0 = vld [vmem:[#allocation2 + $0x360] sm:$0xff] }
 0x18d   :  { %5725 = vmatprep.subr.bf16.mxu0 %v5724_v30  ;;  %v304_v25 = vpop.xlane.xlu1 %303  ;;  %v1285_v32 = vpop.xlane.xlu0 %1284  ;;  %v7489_v31 = vsub.f32 %v11791_v59, %v481_v1  ;;  %v1164_v30 = vmul.f32 %v7463_v54, %v7463_v54  ;;  %11794 = vst [vmem:[#allocation129_spill] sm:$0xff] %v7503_v17  ;;  %v7512_v54 = vld [vmem:[#allocation2 + $0x358] sm:$0xff]  ;;  %11800 = vst [vmem:[#allocation130_spill] sm:$0xff] %v7532_v0 }
 0x18e   :  { %5727 = vmatpush1.bf16.msra.mxu0 %v5726_v21  ;;  %v482_v59 = vmul.f32 0.0078125, %v304_v25  ;;  %v11796_v25 = vld [vmem:[#allocation58_spill] sm:$0xff]  ;;  %v11798_v21 = vld [vmem:[#allocation56_spill] sm:$0xff] }
 0x18f   :  { %11792 = vst [vmem:[#allocation57_spill] sm:$0xff] %v7489_v31  ;;  %v1165_v1 = vmul.f32 %v7489_v31, %v7489_v31 }
 0x190   :  { %1358 = vadd.xlane.f32.xlu1 %v1164_v30  ;;  %373 = vadd.xlane.f32.xlu0 %v7480_v61  ;;  %v7527_v30 = vsub.f32 %v11796_v25, %v482_v59 }
 0x191   :  { %v1287_v4 = vpop.xlane.xlu1 %1286  ;;  %v306_v51 = vpop.xlane.xlu0 %305  ;;  %5535 = vmatmul.mubr.msk.f32.vlgmr.msra.gmra.mrb[0].mxu0 %vm11436_vm14, %v11795_v29 }
 0x192   :  { %v5728_v27 = vpack.c.bf16 %v1287_v4, %v1285_v32  ;;  %v483_v11 = vmul.f32 0.0078125, %v306_v51  ;;  %5536 = vmatprep.mubr.msk.f32.mxu0 %vm11432_vm15, %v11795_v29  ;;  %11797 = vst [vmem:[#allocation58_spill] sm:$0xff] %v7527_v30  ;;  %v11799_v4 = vld [vmem:[#allocation59_spill] sm:$0xff] }
 0x193   :  { %v5730_v51 = vpack.c.bf16 %v11799_v4, %v11798_v21  ;;  %v7548_v4 = vld [vmem:[#allocation2 + $0x368] sm:$0xff]  ;;  %v11806_v21 = vld [vmem:[#allocation60_spill] sm:$0xff] }
 0x194   :  { %375 = vadd.xlane.f32.xlu1 %v7512_v54  ;;  %1360 = vadd.xlane.f32.xlu0 %v1165_v1  ;;  %v7539_v17 = vsub.f32 %v11801_v52, %v483_v11  ;;  %v1166_v1 = vmul.f32 %v7527_v30, %v7527_v30  ;;  %11803 = vst [vmem:[#allocation131_spill] sm:$0xff] %v7548_v4 }
 0x195   :  { %5729 = vmatprep.subr.bf16.mxu0 %v5728_v27  ;;  %v308_v32 = vpop.xlane.xlu1 %307  ;;  %v1289_v50 = vpop.xlane.xlu0 %1288  ;;  %5537 = vmatmul.mubr.msk.f32.gmra.mrb[2].mxu0 %vm11433_vm0, %v11795_v29 }
 0x196   :  { %11802 = vst [vmem:[#allocation61_spill] sm:$0xff] %v7539_v17  ;;  %5731 = vmatpush1.bf16.msra.mxu0 %v5730_v51  ;;  %5538 = vmatprep.mubr.msk.f32.mxu0 %vm728_vm1, %v11795_v29  ;;  %v484_v27 = vmul.f32 0.0078125, %v308_v32  ;;  %v1167_v51 = vmul.f32 %v7539_v17, %v7539_v17  ;;  %v11804_v32 = vld [vmem:[#allocation62_spill] sm:$0xff]  ;;  %v11809_v17 = vld [vmem:[#allocation64_spill] sm:$0xff]  ;;  %vm11824_vm1 = vcmp.eq.s32.totalorder %v7257_v26, %v6910_v33 }
 0x198   :  { %1362 = vadd.xlane.f32.xlu1 %v1166_v1  ;;  %377 = vadd.xlane.f32.xlu0 %v7532_v0  ;;  %v7561_v1 = vsub.f32 %v11804_v32, %v484_v27  ;;  %v11807_v0 = vld [vmem:[#allocation63_spill] sm:$0xff] }
 0x199   :  { %v1291_v59 = vpop.xlane.xlu1 %1290  ;;  %v310_v25 = vpop.xlane.xlu0 %309  ;;  %5539 = vmatmul.mubr.msk.f32.gmra.mrb[4].mxu0 %vm727_vm3, %v11795_v29  ;;  %v5734_v30 = vpack.c.bf16 %v11807_v0, %v11806_v21  ;;  %v7582_v0 = vld [vmem:[#allocation2 + $0x378] sm:$0xff]  ;;  %vm11827_vm3 = vcmp.eq.s32.totalorder %v7277_v34, %v6910_v33 }
 0x19a   :  { %v5732_v11 = vpack.c.bf16 %v1291_v59, %v1289_v50  ;;  %v485_v52 = vmul.f32 0.0078125, %v310_v25  ;;  %5540 = vmatprep.mubr.msk.f32.mxu0 %vm736_vm2, %v11795_v29  ;;  %11805 = vst [vmem:[#allocation62_spill] sm:$0xff] %v7561_v1  ;;  %v7566_v25 = vld [vmem:[#allocation2 + $0x370] sm:$0xff]  ;;  %v1168_v27 = vmul.f32 %v7561_v1, %v7561_v1  ;;  %v11813_v21 = vld [vmem:[#allocation65_spill] sm:$0xff]  ;;  %vm11826_vm2 = vcmp.eq.s32.totalorder %v7257_v26, %v7097_v20 }
 0x19b   :  { %11808 = vst [vmem:[#allocation132_spill] sm:$0xff] %v7566_v25 }
 0x19c   :  { %379 = vadd.xlane.f32.xlu1 %v7548_v4  ;;  %1364 = vadd.xlane.f32.xlu0 %v1167_v51  ;;  %v7573_v31 = vsub.f32 %v11809_v17, %v485_v52 }
 0x19d   :  { %5733 = vmatprep.subr.bf16.mxu0 %v5732_v11  ;;  %v312_v50 = vpop.xlane.xlu1 %311  ;;  %v1293_v59 = vpop.xlane.xlu0 %1292  ;;  %5541 = vmatmul.mubr.msk.f32.gmra.mrb[6].mxu0 %vm735_vm4, %v11795_v29  ;;  %vm11831_vm4 = vcmp.eq.s32.totalorder %v7277_v34, %v7097_v20 }
 0x19e   :  { %11810 = vst [vmem:[#allocation64_spill] sm:$0xff] %v7573_v31  ;;  %5735 = vmatpush1.bf16.msra.mxu0 %v5734_v30  ;;  %5542 = vmatprep.mubr.msk.f32.mxu0 %vm744_vm5, %v11795_v29  ;;  %v486_v11 = vmul.f32 0.0078125, %v312_v50  ;;  %v1169_v52 = vmul.f32 %v7573_v31, %v7573_v31  ;;  %v11811_v50 = vld [vmem:[#allocation66_spill] sm:$0xff]  ;;  %v11816_v31 = vld [vmem:[#allocation68_spill] sm:$0xff]  ;;  %vm11834_vm5 = vcmp.eq.s32.totalorder %v7325_v46, %v6910_v33 }
 0x1a0   :  { %1366 = vadd.xlane.f32.xlu1 %v1168_v27  ;;  %381 = vadd.xlane.f32.xlu0 %v7566_v25  ;;  %v7595_v27 = vsub.f32 %v11811_v50, %v486_v11  ;;  %v11814_v25 = vld [vmem:[#allocation67_spill] sm:$0xff] }
 0x1a1   :  { %v1295_v51 = vpop.xlane.xlu1 %1294  ;;  %v314_v32 = vpop.xlane.xlu0 %313  ;;  %5543 = vmatmul.mubr.msk.f32.gmra.mrb[8].mxu0 %vm743_vm7, %v11795_v29  ;;  %v5738_v1 = vpack.c.bf16 %v11814_v25, %v11813_v21  ;;  %v7616_v25 = vld [vmem:[#allocation2 + $0x388] sm:$0xff]  ;;  %vm11837_vm7 = vcmp.eq.s32.totalorder %v7337_v57, %v6910_v33 }
 0x1a2   :  { %v5736_v17 = vpack.c.bf16 %v1295_v51, %v1293_v59  ;;  %v487_v30 = vmul.f32 0.0078125, %v314_v32  ;;  %5544 = vmatprep.mubr.msk.f32.mxu0 %vm752_vm6, %v11795_v29  ;;  %11812 = vst [vmem:[#allocation66_spill] sm:$0xff] %v7595_v27  ;;  %v7600_v32 = vld [vmem:[#allocation2 + $0x380] sm:$0xff]  ;;  %v1170_v11 = vmul.f32 %v7595_v27, %v7595_v27  ;;  %v11820_v21 = vld [vmem:[#allocation71_spill] sm:$0xff]  ;;  %vm11836_vm6 = vcmp.eq.s32.totalorder %v7325_v46, %v7097_v20 }
 0x1a3   :  { %11815 = vst [vmem:[#allocation133_spill] sm:$0xff] %v7600_v32 }
 0x1a4   :  { %383 = vadd.xlane.f32.xlu1 %v7582_v0  ;;  %1368 = vadd.xlane.f32.xlu0 %v1169_v52  ;;  %v7607_v4 = vsub.f32 %v11816_v31, %v487_v30 }
 0x1a5   :  { %5737 = vmatprep.subr.bf16.mxu0 %v5736_v17  ;;  %v316_v59 = vpop.xlane.xlu1 %315  ;;  %v1297_v51 = vpop.xlane.xlu0 %1296  ;;  %5545 = vmatmul.mubr.msk.f32.gmra.mrb[10].mxu0 %vm751_vm8, %v11795_v29  ;;  %vm11843_vm8 = vcmp.eq.s32.totalorder %v7337_v57, %v7097_v20 }
 0x1a6   :  { %11817 = vst [vmem:[#allocation68_spill] sm:$0xff] %v7607_v4  ;;  %5739 = vmatpush1.bf16.msra.mxu0 %v5738_v1  ;;  %5546 = vmatprep.mubr.msk.f32.mxu0 %vm760_vm9, %v11795_v29  ;;  %v488_v17 = vmul.f32 0.0078125, %v316_v59  ;;  %v1171_v30 = vmul.f32 %v7607_v4, %v7607_v4  ;;  %v11822_v4 = vld [vmem:[#allocation72_spill] sm:$0xff]  ;;  %vm11846_vm9 = vcmp.eq.s32.totalorder %v7385_v3, %v6910_v33 }
 0x1a8   :  { %1370 = vadd.xlane.f32.xlu1 %v1170_v11  ;;  %385 = vadd.xlane.f32.xlu0 %v7600_v32  ;;  %v7629_v59 = vsub.f32 %v6913_v13, %v488_v17  ;;  %v11819_v11 = vld [vmem:[#allocation69_spill] sm:$0xff] }
 0x1a9   :  { %v1299_v52 = vpop.xlane.xlu1 %1298  ;;  %v318_v50 = vpop.xlane.xlu0 %317  ;;  %5547 = vmatmul.mubr.msk.f32.gmra.mrb[12].mxu0 %vm759_vm10, %v11795_v29  ;;  %v5742_v32 = vpack.c.bf16 %v11820_v21, %v11819_v11  ;;  %v7650_v21 = vld [vmem:[#allocation2 + $0x398] sm:$0xff]  ;;  %vm11847_vm10 = vcmp.eq.s32.totalorder %v7385_v3, %v7097_v20 }
 0x1aa   :  { %v5740_v31 = vpack.c.bf16 %v1299_v52, %v1297_v51  ;;  %v489_v1 = vmul.f32 0.0078125, %v318_v50  ;;  %5548 = vmatprep.mubr.msk.f32.mxu0 %vm768_vm11, %v11795_v29  ;;  %11818 = vst [vmem:[#allocation134_spill] sm:$0xff] %v7629_v59  ;;  %v7634_v50 = vld [vmem:[#allocation2 + $0x390] sm:$0xff]  ;;  %v1172_v13 = vmul.f32 %v7629_v59, %v7629_v59  ;;  %11825 = vst [vmem:[#allocation136_spill] sm:$0xff] %v7650_v21 }
 0x1ab   :  { %11821 = vst [vmem:[#allocation135_spill] sm:$0xff] %v7634_v50  ;;  %vm11848_vm11 = vcmp.eq.s32.totalorder %v7397_v10, %v6910_v33 }
 0x1ac   :  { %387 = vadd.xlane.f32.xlu1 %v7616_v25  ;;  %1372 = vadd.xlane.f32.xlu0 %v1171_v30  ;;  %v7641_v27 = vsub.f32 %v11822_v4, %v489_v1 }
 0x1ad   :  { %5741 = vmatprep.subr.bf16.mxu0 %v5740_v31  ;;  %v320_v51 = vpop.xlane.xlu1 %319  ;;  %v1301_v52 = vpop.xlane.xlu0 %1300  ;;  %5549 = vmatmul.mubr.msk.f32.gmra.mrb[14].mxu0 %vm767_vm12, %v11795_v29  ;;  %vm11854_vm12 = vcmp.eq.s32.totalorder %v7397_v10, %v7097_v20 }
 0x1ae   :  { %11823 = vst [vmem:[#allocation72_spill] sm:$0xff] %v7641_v27  ;;  %5743 = vmatpush1.bf16.msra.mxu0 %v5742_v32  ;;  %5550 = vmatprep.mubr.msk.f32.mxu0 %vm11824_vm1, %v11795_v29  ;;  %v490_v17 = vmul.f32 0.0078125, %v320_v51  ;;  %v1173_v1 = vmul.f32 %v7641_v27, %v7641_v27  ;;  %v11832_v27 = vld [vmem:[#allocation75_spill] sm:$0xff]  ;;  %vm11857_vm1 = vcmp.eq.s32.totalorder %v7445_v9, %v6910_v33  ;;  %v689_v33 = vsub.s32 2, %v6886_v35 }
 0x1b0   :  { %1374 = vadd.xlane.f32.xlu1 %v1172_v13  ;;  %389 = vadd.xlane.f32.xlu0 %v7634_v50  ;;  %v7663_v51 = vsub.f32 %v6939_v12, %v490_v17  ;;  %v11829_v13 = vld [vmem:[#allocation74_spill] sm:$0xff] }
 0x1b1   :  { %v1303_v31 = vpop.xlane.xlu1 %1302  ;;  %v322_v30 = vpop.xlane.xlu0 %321  ;;  %5551 = vmatmul.mubr.msk.f32.gmra.mrb[16].mxu0 %vm11826_vm2, %v11795_v29  ;;  %v5746_v11 = vpack.c.bf16 %v11829_v13, %v6934_v22  ;;  %v7684_v13 = vld [vmem:[#allocation2 + $0x3a8] sm:$0xff]  ;;  %v11840_v22 = vld [vmem:[#allocation76_spill] sm:$0xff]  ;;  %vm11859_vm2 = vcmp.eq.s32.totalorder %v7445_v9, %v7097_v20 }
 0x1b2   :  { %v5744_v4 = vpack.c.bf16 %v1303_v31, %v1301_v52  ;;  %v491_v32 = vmul.f32 0.0078125, %v322_v30  ;;  %5552 = vmatprep.mubr.msk.f32.mxu0 %vm11827_vm3, %v11795_v29  ;;  %11828 = vst [vmem:[#allocation137_spill] sm:$0xff] %v7663_v51  ;;  %v7668_v30 = vld [vmem:[#allocation2 + $0x3a0] sm:$0xff]  ;;  %v1174_v12 = vmul.f32 %v7663_v51, %v7663_v51  ;;  %11835 = vst [vmem:[#allocation139_spill] sm:$0xff] %v7684_v13 }
 0x1b3   :  { %11830 = vst [vmem:[#allocation138_spill] sm:$0xff] %v7668_v30 }
 0x1b4   :  { %391 = vadd.xlane.f32.xlu1 %v7650_v21  ;;  %1376 = vadd.xlane.f32.xlu0 %v1173_v1  ;;  %v7675_v50 = vsub.f32 %v11832_v27, %v491_v32 }
 0x1b5   :  { %5745 = vmatprep.subr.bf16.mxu0 %v5744_v4  ;;  %v324_v52 = vpop.xlane.xlu1 %323  ;;  %v1305_v31 = vpop.xlane.xlu0 %1304  ;;  %5553 = vmatmul.mubr.msk.f32.gmra.mrb[18].mxu0 %vm11831_vm4, %v11795_v29 }
 0x1b6   :  { %11833 = vst [vmem:[#allocation75_spill] sm:$0xff] %v7675_v50  ;;  %5747 = vmatpush1.bf16.msra.mxu0 %v5746_v11  ;;  %5554 = vmatprep.mubr.msk.f32.mxu0 %vm11834_vm5, %v11795_v29  ;;  %v492_v17 = vmul.f32 0.0078125, %v324_v52  ;;  %v1175_v32 = vmul.f32 %v7675_v50, %v7675_v50  ;;  %v11838_v52 = vld [vmem:[#allocation77_spill] sm:$0xff]  ;;  %v11844_v50 = vld [vmem:[#allocation79_spill] sm:$0xff] }
 0x1b8   :  { %1378 = vadd.xlane.f32.xlu1 %v1174_v12  ;;  %393 = vadd.xlane.f32.xlu0 %v7668_v30  ;;  %v7697_v12 = vsub.f32 %v11838_v52, %v492_v17  ;;  %v11841_v30 = vld [vmem:[#allocation78_spill] sm:$0xff] }
 0x1b9   :  { %v1307_v4 = vpop.xlane.xlu1 %1306  ;;  %v326_v1 = vpop.xlane.xlu0 %325  ;;  %5555 = vmatmul.mubr.msk.f32.gmra.mrb[20].mxu0 %vm11836_vm6, %v11795_v29  ;;  %v5750_v51 = vpack.c.bf16 %v11841_v30, %v11840_v22  ;;  %v7718_v30 = vld [vmem:[#allocation2 + $0x3b8] sm:$0xff] }
 0x1ba   :  { %v5748_v27 = vpack.c.bf16 %v1307_v4, %v1305_v31  ;;  %v493_v11 = vmul.f32 0.0078125, %v326_v1  ;;  %5556 = vmatprep.mubr.msk.f32.mxu0 %vm11837_vm7, %v11795_v29  ;;  %11839 = vst [vmem:[#allocation77_spill] sm:$0xff] %v7697_v12  ;;  %v7702_v1 = vld [vmem:[#allocation2 + $0x3b0] sm:$0xff]  ;;  %v1176_v17 = vmul.f32 %v7697_v12, %v7697_v12  ;;  %v11852_v12 = vld [vmem:[#allocation82_spill] sm:$0xff] }
 0x1bb   :  { %11842 = vst [vmem:[#allocation140_spill] sm:$0xff] %v7702_v1 }
 0x1bc   :  { %395 = vadd.xlane.f32.xlu1 %v7684_v13  ;;  %1380 = vadd.xlane.f32.xlu0 %v1175_v32  ;;  %v7709_v21 = vsub.f32 %v11844_v50, %v493_v11  ;;  %v11855_v13 = vld [vmem:[#allocation83_spill] sm:$0xff] }
 0x1bd   :  { %5749 = vmatprep.subr.bf16.mxu0 %v5748_v27  ;;  %v328_v31 = vpop.xlane.xlu1 %327  ;;  %v1309_v4 = vpop.xlane.xlu0 %1308  ;;  %5557 = vmatmul.mubr.msk.f32.gmra.mrb[22].mxu0 %vm11843_vm8, %v11795_v29 }
 0x1be   :  { %11845 = vst [vmem:[#allocation79_spill] sm:$0xff] %v7709_v21  ;;  %5751 = vmatpush1.bf16.msra.mxu0 %v5750_v51  ;;  %5558 = vmatprep.mubr.msk.f32.mxu0 %vm11846_vm9, %v11795_v29  ;;  %v494_v27 = vmul.f32 0.0078125, %v328_v31  ;;  %v1177_v11 = vmul.f32 %v7709_v21, %v7709_v21  ;;  %v693_v31 = vsub.s32 3, %v6886_v35  ;;  %v7737_v21 = vld [vmem:[#allocation2 + $0x3c0] sm:$0xff] }
 0x1bf   :  { %11853 = vst [vmem:[#allocation141_spill] sm:$0xff] %v7737_v21 }
 0x1c0   :  { %1382 = vadd.xlane.f32.xlu1 %v1176_v17  ;;  %397 = vadd.xlane.f32.xlu0 %v7702_v1  ;;  %v11849_v17 = vld [vmem:[#allocation81_spill] sm:$0xff]  ;;  %v11851_v1 = vld [vmem:[#allocation80_spill] sm:$0xff] }
 0x1c1   :  { %v1311_v32 = vpop.xlane.xlu1 %1310  ;;  %v330_v52 = vpop.xlane.xlu0 %329  ;;  %5559 = vmatmul.mubr.msk.f32.gmra.mrb[24].mxu0 %vm11847_vm10, %v11795_v29  ;;  %v7732_v22 = vsub.f32 %v11849_v17, %v494_v27 }
 0x1c2   :  { %v5752_v50 = vpack.c.bf16 %v1311_v32, %v1309_v4  ;;  %v495_v51 = vmul.f32 0.0078125, %v330_v52  ;;  %5560 = vmatprep.mubr.msk.f32.mxu0 %vm11848_vm11, %v11795_v29  ;;  %v5754_v4 = vpack.c.bf16 %v11852_v12, %v11851_v1 }
 0x1c3   :  { %11850 = vst [vmem:[#allocation81_spill] sm:$0xff] %v7732_v22  ;;  %v1178_v27 = vmul.f32 %v7732_v22, %v7732_v22 }
 0x1c4   :  { %399 = vadd.xlane.f32.xlu1 %v7718_v30  ;;  %1384 = vadd.xlane.f32.xlu0 %v1177_v11  ;;  %v7744_v59 = vsub.f32 %v11855_v13, %v495_v51 }
 0x1c5   :  { %5753 = vmatprep.subr.bf16.mxu0 %v5752_v50  ;;  %v332_v32 = vpop.xlane.xlu1 %331  ;;  %v1313_v52 = vpop.xlane.xlu0 %1312  ;;  %5561 = vmatmul.mubr.msk.f32.gmra.mrb[26].mxu0 %vm11854_vm12, %v11795_v29  ;;  %v7755_v50 = vld [vmem:[%s11198_s1] sm:$0xff] }
 0x1c6   :  { %11856 = vst [vmem:[#allocation83_spill] sm:$0xff] %v7744_v59  ;;  %5755 = vmatpush1.bf16.msra.mxu0 %v5754_v4  ;;  %5562 = vmatprep.mubr.msk.f32.mxu0 %vm11857_vm1, %v11795_v29  ;;  %v7758_v11 = vrot.slane %v7755_v50, %v693_v31  ;;  %v496_v17 = vmul.f32 0.0078125, %v332_v32  ;;  %v7761_v4 = vld [vmem:[#allocation2 + $0x3c8] sm:$0xff]  ;;  %v1179_v22 = vmul.f32 %v7744_v59, %v7744_v59  ;;  %v7780_v59 = vld [vmem:[#allocation2 + $0x3d0] sm:$0xff] }
 0x1c7   :  { %11858 = vst [vmem:[#allocation142_spill] sm:$0xff] %v7761_v4  ;;  %v6350_v31 = vld [vmem:[#allocation2 + $0x2a8] sm:$0xff]  ;;  %11862 = vst [vmem:[#allocation144_spill] sm:$0xff] %v7780_v59 }
 0x1c8   :  { %1386 = vadd.xlane.f32.xlu1 %v1178_v27  ;;  %401 = vadd.xlane.f32.xlu0 %v7737_v21  ;;  %vm714_vm3 = vcmp.eq.s32.totalorder %v6886_v35, %v7758_v11  ;;  %v7775_v32 = vsub.f32 %v6350_v31, %v496_v17  ;;  %v11861_v27 = vld [vmem:[#allocation84_spill] sm:$0xff]  ;;  %vm722_vm4 = vcmp.eq.s32.totalorder %v7453_v49, %v7758_v11 }
 0x1c9   :  { %v1315_v13 = vpop.xlane.xlu1 %1314  ;;  %v334_v51 = vpop.xlane.xlu0 %333  ;;  %5563 = vmatmul.mubr.msk.f32.gmra.mrb[28].mxu0 %vm11859_vm2, %v11795_v29  ;;  %v6351_v17 = vld [vmem:[#allocation2 + $0x2b0] sm:$0xff]  ;;  %vm730_vm7 = vcmp.eq.s32.totalorder %v7076_v24, %v7758_v11  ;;  %vm738_vm9 = vcmp.eq.s32.totalorder %v7093_v16, %v7758_v11  ;;  %vm746_vm11 = vcmp.eq.s32.totalorder %v7131_v23, %v7758_v11  ;;  %vm754_vm1 = vcmp.eq.s32.totalorder %v7156_v28, %v7758_v11 }
 0x1ca   :  { %v5756_v12 = vpack.c.bf16 %v1315_v13, %v1313_v52  ;;  %v497_v1 = vmul.f32 0.0078125, %v334_v51  ;;  %5564 = vmatprep.mubr.msk.f32.mxu0 %vm832_vm13, %v11795_v29  ;;  %11860 = vst [vmem:[#allocation143_spill] sm:$0xff] %v7775_v32  ;;  %v5758_v52 = vpack.c.bf16 %v7014_v47, %v11861_v27  ;;  %vm11863_vm13 = vcmp.eq.s32.totalorder %v7460_v55, %v7097_v20  ;;  %v7796_v20 = vld [vmem:[#allocation2 + $0x3d8] sm:$0xff] }
 0x1cb   :  { %vm11441_vm15 = vcmp.eq.s32.totalorder %v7215_v45, %v7758_v11  ;;  %vm11442_vm14 = vcmp.eq.s32.totalorder %v7257_v26, %v7758_v11 }
 0x1cc   :  { %403 = vadd.xlane.f32.xlu1 %v7761_v4  ;;  %1388 = vadd.xlane.f32.xlu0 %v1179_v22  ;;  %v7787_v31 = vsub.f32 %v6351_v17, %v497_v1  ;;  %v1180_v22 = vmul.f32 %v7775_v32, %v7775_v32  ;;  %v7799_v1 = vrot.slane %v7755_v50, %v689_v33  ;;  %v6352_v4 = vld [vmem:[#allocation2 + $0x2b8] sm:$0xff] }
 0x1cd   :  { %5757 = vmatprep.subr.bf16.mxu0 %v5756_v12  ;;  %v336_v13 = vpop.xlane.xlu1 %335  ;;  %v1317_v51 = vpop.xlane.xlu0 %1316  ;;  %5565 = vmatmul.mubr.msk.f32.gmra.mrb[30].mxu0 %vm11863_vm13, %v11795_v29  ;;  %v5762_v33 = vpack.c.bf16 %v7028_v42, %v7017_v15 }
 0x1ce   :  { %11864 = vst [vmem:[#allocation145_spill] sm:$0xff] %v7787_v31  ;;  %5759 = vmatpush1.bf16.msra.mxu0 %v5758_v52  ;;  %5566 = vmatprep.mubr.msk.f32.mxu0 %vm714_vm3, %v11795_v29  ;;  %v498_v12 = vmul.f32 0.0078125, %v336_v13  ;;  %v1181_v32 = vmul.f32 %v7787_v31, %v7787_v31  ;;  %v7809_v13 = vsel %vm714_vm3, 1.0, %v11733_v44  ;;  %vm713_vm5 = vcmp.eq.s32.totalorder %v6886_v35, %v7799_v1 }
 0x1cf   :  { %11866 = vst [vmem:[#allocation147_spill] sm:$0xff] %v7809_v13  ;;  %vm721_vm6 = vcmp.eq.s32.totalorder %v7453_v49, %v7799_v1  ;;  %v7850_v13 = vld [vmem:[#allocation2 + $0x3e0] sm:$0xff]  ;;  %vm729_vm8 = vcmp.eq.s32.totalorder %v7076_v24, %v7799_v1  ;;  %vm737_vm10 = vcmp.eq.s32.totalorder %v7093_v16, %v7799_v1  ;;  %vm745_vm12 = vcmp.eq.s32.totalorder %v7131_v23, %v7799_v1 }
 0x1d0   :  { %1390 = vadd.xlane.f32.xlu1 %v1180_v22  ;;  %405 = vadd.xlane.f32.xlu0 %v7780_v59  ;;  %v7803_v21 = vsub.f32 %v6352_v4, %v498_v12  ;;  %v6353_v22 = vld [vmem:[#allocation2 + $0x2c0] sm:$0xff]  ;;  %11872 = vst [vmem:[#allocation153_spill] sm:$0xff] %v7850_v13  ;;  %vm753_vm2 = vcmp.eq.s32.totalorder %v7156_v28, %v7799_v1 }
 0x1d1   :  { %v1319_v47 = vpop.xlane.xlu1 %1318  ;;  %v338_v27 = vpop.xlane.xlu0 %337  ;;  %vm762_vm3 = vcmp.eq.s32.totalorder %v7197_v14, %v7758_v11  ;;  %vm11465_vm13 = vcmp.eq.s32.totalorder %v7197_v14, %v7799_v1  ;;  %vm11440_vm0 = vcmp.eq.s32.totalorder %v7215_v45, %v7799_v1 }
 0x1d2   :  { %v5760_v52 = vpack.c.bf16 %v1319_v47, %v1317_v51  ;;  %v499_v17 = vmul.f32 0.0078125, %v338_v27  ;;  %11865 = vst [vmem:[#allocation146_spill] sm:$0xff] %v7803_v21  ;;  %v1182_v27 = vmul.f32 %v7803_v21, %v7803_v21 }
 0x1d4   :  { %v7811_v59 = vsub.f32 %v6353_v22, %v499_v17  ;;  %407 = vadd.xlane.f32.xlu1 %v7796_v20  ;;  %1392 = vadd.xlane.f32.xlu0 %v1181_v32  ;;  %v7826_v32 = vsel %vm722_vm4, 1.0, %v11733_v44  ;;  %v7838_v17 = vsel %vm713_vm5, 1.0, %v11733_v44  ;;  %v7844_v22 = vsel %vm721_vm6, 1.0, %v11733_v44 }
 0x1d5   :  { %5761 = vmatprep.subr.bf16.mxu0 %v5760_v52  ;;  %v340_v47 = vpop.xlane.xlu1 %339  ;;  %v1321_v4 = vpop.xlane.xlu0 %1320  ;;  %11868 = vst [vmem:[#allocation149_spill] sm:$0xff] %v7826_v32  ;;  %11869 = vst [vmem:[#allocation150_spill] sm:$0xff] %v7838_v17 }
 0x1d6   :  { %11867 = vst [vmem:[#allocation148_spill] sm:$0xff] %v7811_v59  ;;  %v500_v51 = vmul.f32 0.0078125, %v340_v47  ;;  %5763 = vmatpush1.bf16.msra.mxu0 %v5762_v33  ;;  %v1183_v12 = vmul.f32 %v7811_v59, %v7811_v59  ;;  %11870 = vst [vmem:[#allocation151_spill] sm:$0xff] %v7844_v22  ;;  %v6354_v47 = vld [vmem:[#allocation2 + $0x2c8] sm:$0xff] }
 0x1d8   :  { %v7846_v33 = vsub.f32 %v6354_v47, %v500_v51  ;;  %1394 = vadd.xlane.f32.xlu1 %v1182_v27  ;;  %1396 = vadd.xlane.f32.xlu0 %v1183_v12  ;;  %v7860_v27 = vsel %vm730_vm7, 1.0, %v11733_v44  ;;  %v6355_v51 = vld [vmem:[#allocation2 + $0x2d0] sm:$0xff] }
 0x1d9   :  { %v1323_v42 = vpop.xlane.xlu1 %1322  ;;  %v342_v15 = vpop.xlane.xlu0 %341  ;;  %11873 = vst [vmem:[#allocation154_spill] sm:$0xff] %v7860_v27  ;;  %v5770_v27 = vpack.c.bf16 %v7060_v19, %v7049_v18 }
 0x1da   :  { %11871 = vst [vmem:[#allocation152_spill] sm:$0xff] %v7846_v33  ;;  %v5764_v32 = vpack.c.bf16 %v1323_v42, %v1321_v4  ;;  %v501_v59 = vmul.f32 0.0078125, %v342_v15  ;;  %v1184_v21 = vmul.f32 %v7846_v33, %v7846_v33  ;;  %v5766_v15 = vpack.c.bf16 %v7044_v39, %v7033_v36  ;;  %v6356_v36 = vld [vmem:[#allocation2 + $0x2d8] sm:$0xff] }
 0x1db   :  { %v7873_v42 = vsel %vm729_vm8, 1.0, %v11733_v44 }
 0x1dc   :  { %v7864_v12 = vsub.f32 %v6355_v51, %v501_v59  ;;  %1398 = vadd.xlane.f32.xlu1 %v1184_v21  ;;  %409 = vadd.xlane.f32.xlu0 %v7850_v13  ;;  %11875 = vst [vmem:[#allocation156_spill] sm:$0xff] %v7873_v42  ;;  %v7881_v21 = vsel %vm738_vm9, 1.0, %v11733_v44 }
 0x1dd   :  { %5765 = vmatprep.subr.bf16.mxu0 %v5764_v32  ;;  %v344_v4 = vpop.xlane.xlu1 %343  ;;  %v1325_v47 = vpop.xlane.xlu0 %1324  ;;  %11876 = vst [vmem:[#allocation157_spill] sm:$0xff] %v7881_v21  ;;  %v7893_v32 = vsel %vm737_vm10, 1.0, %v11733_v44  ;;  %v6357_v21 = vld [vmem:[#allocation2 + $0x2e0] sm:$0xff] }
 0x1de   :  { %11874 = vst [vmem:[#allocation155_spill] sm:$0xff] %v7864_v12  ;;  %v502_v59 = vmul.f32 0.0078125, %v344_v4  ;;  %5767 = vmatpush1.bf16.msra.mxu0 %v5766_v15  ;;  %v1185_v51 = vmul.f32 %v7864_v12, %v7864_v12  ;;  %11877 = vst [vmem:[#allocation158_spill] sm:$0xff] %v7893_v32  ;;  %v11973_v32 = vld [vmem:[#allocation140_spill] sm:$0xff] }
 0x1e0   :  { %v7897_v17 = vsub.f32 %v6356_v36, %v502_v59  ;;  %1400 = vadd.xlane.f32.xlu1 %v1185_v51  ;;  %v7911_v36 = vsel %vm746_vm11, 1.0, %v11733_v44  ;;  %v7939_v51 = vsel %vm753_vm2, 1.0, %v11733_v44 }
 0x1e1   :  { %v1327_v15 = vpop.xlane.xlu1 %1326  ;;  %v346_v4 = vpop.xlane.xlu0 %345  ;;  %11880 = vst [vmem:[#allocation161_spill] sm:$0xff] %v7911_v36  ;;  %11883 = vst [vmem:[#allocation164_spill] sm:$0xff] %v7939_v51  ;;  %v5774_v36 = vpack.c.bf16 %v7079_v37, %v7065_v38  ;;  %v6360_v37 = vld [vmem:[#allocation2 + $0x2f8] sm:$0xff] }
 0x1e2   :  { %11878 = vst [vmem:[#allocation159_spill] sm:$0xff] %v7897_v17  ;;  %v5768_v22 = vpack.c.bf16 %v1327_v15, %v1325_v47  ;;  %v503_v12 = vmul.f32 0.0078125, %v346_v4  ;;  %v1186_v52 = vmul.f32 %v7897_v17, %v7897_v17  ;;  %v6358_v15 = vld [vmem:[#allocation2 + $0x2e8] sm:$0xff]  ;;  %v11966_v51 = vld [vmem:[#allocation137_spill] sm:$0xff] }
 0x1e4   :  { %v7905_v13 = vsub.f32 %v6357_v21, %v503_v12  ;;  %1402 = vadd.xlane.f32.xlu0 %v1186_v52  ;;  %5769 = vmatprep.subr.bf16.mxu0 %v5768_v22  ;;  %v7925_v12 = vsel %vm745_vm12, 1.0, %v11733_v44 }
 0x1e5   :  { %v348_v47 = vpop.xlane.xlu1 %347  ;;  %5771 = vmatpush1.bf16.msra.mxu0 %v5770_v27  ;;  %v1329_v59 = vpop.xlane.xlu0 %1328  ;;  %11881 = vst [vmem:[#allocation162_spill] sm:$0xff] %v7925_v12  ;;  %v7931_v27 = vsel %vm754_vm1, 1.0, %v11733_v44  ;;  %v11965_v12 = vld [vmem:[#allocation72_spill] sm:$0xff] }
 0x1e6   :  { %11879 = vst [vmem:[#allocation160_spill] sm:$0xff] %v7905_v13  ;;  %v504_v52 = vmul.f32 0.0078125, %v348_v47  ;;  %v1187_v22 = vmul.f32 %v7905_v13, %v7905_v13  ;;  %11882 = vst [vmem:[#allocation163_spill] sm:$0xff] %v7931_v27 }
 0x1e8   :  { %v7941_v4 = vsub.f32 %v6358_v15, %v504_v52  ;;  %1404 = vadd.xlane.f32.xlu1 %v1187_v22  ;;  %v7955_v52 = vsel %vm762_vm3, 1.0, %v11733_v44 }
 0x1e9   :  { %v1331_v39 = vpop.xlane.xlu1 %1330  ;;  %v350_v19 = vpop.xlane.xlu0 %349  ;;  %11885 = vst [vmem:[#allocation166_spill] sm:$0xff] %v7955_v52 }
 0x1ea   :  { %11884 = vst [vmem:[#allocation165_spill] sm:$0xff] %v7941_v4  ;;  %v5772_v18 = vpack.c.bf16 %v1331_v39, %v1329_v59  ;;  %v505_v42 = vmul.f32 0.0078125, %v350_v19  ;;  %v1188_v21 = vmul.f32 %v7941_v4, %v7941_v4  ;;  %v6359_v39 = vld [vmem:[#allocation2 + $0x2f0] sm:$0xff]  ;;  %v7965_v59 = vsel %vm11465_vm13, 1.0, %v11733_v44 }
 0x1eb   :  { %11887 = vst [vmem:[#allocation168_spill] sm:$0xff] %v7965_v59  ;;  %vm833_vm13 = vcmp.eq.s32.totalorder %v7460_v55, %v7799_v1 }
 0x1ec   :  { %v7959_v19 = vsub.f32 %v6359_v39, %v505_v42  ;;  %1406 = vadd.xlane.f32.xlu0 %v1188_v21  ;;  %5773 = vmatprep.subr.bf16.mxu0 %v5772_v18  ;;  %v7973_v42 = vsel %vm11441_vm15, 1.0, %v11733_v44  ;;  %v7997_v39 = vsel %vm11442_vm14, 1.0, %v11733_v44  ;;  %vm11448_vm15 = vcmp.eq.s32.totalorder %v7257_v26, %v7799_v1 }
 0x1ed   :  { %v352_v22 = vpop.xlane.xlu1 %351  ;;  %5775 = vmatpush1.bf16.msra.mxu0 %v5774_v36  ;;  %v1333_v15 = vpop.xlane.xlu0 %1332  ;;  %11888 = vst [vmem:[#allocation169_spill] sm:$0xff] %v7973_v42  ;;  %v7985_v36 = vsel %vm11440_vm0, 1.0, %v11733_v44  ;;  %11891 = vst [vmem:[#allocation172_spill] sm:$0xff] %v7997_v39  ;;  %vm11445_vm0 = vcmp.eq.s32.totalorder %v7277_v34, %v7758_v11  ;;  %vm11447_vm14 = vcmp.eq.s32.totalorder %v7277_v34, %v7799_v1 }
 0x1ee   :  { %11886 = vst [vmem:[#allocation167_spill] sm:$0xff] %v7959_v19  ;;  %v506_v18 = vmul.f32 0.0078125, %v352_v22  ;;  %v1189_v21 = vmul.f32 %v7959_v19, %v7959_v19  ;;  %11889 = vst [vmem:[#allocation170_spill] sm:$0xff] %v7985_v36 }
 0x1f0   :  { %v7989_v38 = vsub.f32 %v6360_v37, %v506_v18  ;;  %1408 = vadd.xlane.f32.xlu1 %v1189_v21  ;;  %v5778_v37 = vpack.c.bf16 %v7134_v43, %v7085_v41  ;;  %v8011_v18 = vsel %vm11445_vm0, 1.0, %v11733_v44  ;;  %vm11450_vm0 = vcmp.eq.s32.totalorder %v7325_v46, %v7758_v11 }
 0x1f1   :  { %v1335_v22 = vpop.xlane.xlu1 %1334  ;;  %v1337_v27 = vpop.xlane.xlu0 %1336  ;;  %11892 = vst [vmem:[#allocation173_spill] sm:$0xff] %v8011_v18 }
 0x1f2   :  { %11890 = vst [vmem:[#allocation171_spill] sm:$0xff] %v7989_v38  ;;  %v5776_v52 = vpack.c.bf16 %v1335_v22, %v1333_v15  ;;  %v1190_v42 = vmul.f32 %v7989_v38, %v7989_v38  ;;  %v8017_v15 = vsel %vm11448_vm15, 1.0, %v11733_v44  ;;  %vm11457_vm15 = vcmp.eq.s32.totalorder %v7325_v46, %v7799_v1 }
 0x1f3   :  { %11893 = vst [vmem:[#allocation174_spill] sm:$0xff] %v8017_v15 }
 0x1f4   :  { %1410 = vadd.xlane.f32.xlu0 %v1190_v42  ;;  %5777 = vmatprep.subr.bf16.mxu0 %v5776_v52  ;;  %v8027_v52 = vsel %vm11447_vm14, 1.0, %v11733_v44  ;;  %v5782_v42 = vpack.c.bf16 %v7165_v2, %v7110_v40  ;;  %vm11454_vm14 = vcmp.eq.s32.totalorder %v7337_v57, %v7758_v11 }
 0x1f5   :  { %v1339_v22 = vpop.xlane.xlu1 %1338  ;;  %5779 = vmatpush1.bf16.msra.mxu0 %v5778_v37  ;;  %v354_v47 = vpop.xlane.xlu0 %353  ;;  %11894 = vst [vmem:[#allocation175_spill] sm:$0xff] %v8027_v52 }
 0x1f6   :  { %v5780_v43 = vpack.c.bf16 %v1339_v22, %v1337_v27  ;;  %v507_v41 = vmul.f32 0.0078125, %v354_v47  ;;  %v8042_v22 = vsel %vm11450_vm0, 1.0, %v11733_v44  ;;  %vm11456_vm0 = vcmp.eq.s32.totalorder %v7337_v57, %v7799_v1 }
 0x1f7   :  { %11896 = vst [vmem:[#allocation177_spill] sm:$0xff] %v8042_v22 }
 0x1f8   :  { %v8034_v37 = vsub.f32 %v7171_v48, %v507_v41  ;;  %5781 = vmatprep.subr.bf16.mxu0 %v5780_v43  ;;  %v8054_v41 = vsel %vm11454_vm14, 1.0, %v11733_v44  ;;  %v8063_v48 = vsel %vm11457_vm15, 1.0, %v11733_v44  ;;  %vm11458_vm14 = vcmp.eq.s32.totalorder %v7385_v3, %v7758_v11 }
 0x1f9   :  { %v356_v27 = vpop.xlane.xlu1 %355  ;;  %5783 = vmatpush1.bf16.msra.mxu0 %v5782_v42  ;;  %v1341_v47 = vpop.xlane.xlu0 %1340  ;;  %11897 = vst [vmem:[#allocation178_spill] sm:$0xff] %v8054_v41  ;;  %11899 = vst [vmem:[#allocation180_spill] sm:$0xff] %v8063_v48  ;;  %vm11462_vm15 = vcmp.eq.s32.totalorder %v7397_v10, %v7758_v11 }
 0x1fa   :  { %11895 = vst [vmem:[#allocation176_spill] sm:$0xff] %v8034_v37  ;;  %v508_v2 = vmul.f32 0.0078125, %v356_v27  ;;  %v1191_v21 = vmul.f32 %v8034_v37, %v8034_v37 }
 0x1fc   :  { %v8057_v43 = vsub.f32 %v7206_v6, %v508_v2  ;;  %1412 = vadd.xlane.f32.xlu1 %v1191_v21  ;;  %v8075_v6 = vsel %vm11456_vm0, 1.0, %v11733_v44  ;;  %v5786_v21 = vpack.c.bf16 %v7218_v60, %v7182_v8  ;;  %vm11464_vm0 = vcmp.eq.s32.totalorder %v7385_v3, %v7799_v1 }
 0x1fd   :  { %v1343_v27 = vpop.xlane.xlu1 %1342  ;;  %v358_v40 = vpop.xlane.xlu0 %357  ;;  %11900 = vst [vmem:[#allocation181_spill] sm:$0xff] %v8075_v6  ;;  %v11940_v6 = vld [vmem:[#allocation62_spill] sm:$0xff] }
 0x1fe   :  { %11898 = vst [vmem:[#allocation179_spill] sm:$0xff] %v8057_v43  ;;  %v5784_v39 = vpack.c.bf16 %v1343_v27, %v1341_v47  ;;  %v509_v18 = vmul.f32 0.0078125, %v358_v40  ;;  %v1192_v2 = vmul.f32 %v8057_v43, %v8057_v43  ;;  %v8090_v27 = vsel %vm11458_vm14, 1.0, %v11733_v44 }
 0x1ff   :  { %11902 = vst [vmem:[#allocation183_spill] sm:$0xff] %v8090_v27  ;;  %vm11463_vm14 = vcmp.eq.s32.totalorder %v7397_v10, %v7799_v1  ;;  %v11914_v27 = vld [vmem:[#allocation111_spill] sm:$0xff] }
 0x200   :  { %v8082_v22 = vsub.f32 %v7229_v63, %v509_v18  ;;  %1414 = vadd.xlane.f32.xlu0 %v1192_v2  ;;  %5785 = vmatprep.subr.bf16.mxu0 %v5784_v39  ;;  %v8102_v63 = vsel %vm11464_vm0, 1.0, %v11733_v44  ;;  %v8108_v39 = vsel %vm11462_vm15, 1.0, %v11733_v44  ;;  %v8121_v8 = vsel %vm11463_vm14, 1.0, %v11733_v44 }
 0x201   :  { %v360_v40 = vpop.xlane.xlu1 %359  ;;  %5787 = vmatpush1.bf16.msra.mxu0 %v5786_v21  ;;  %v1345_v47 = vpop.xlane.xlu0 %1344  ;;  %11903 = vst [vmem:[#allocation184_spill] sm:$0xff] %v8102_v63  ;;  %11904 = vst [vmem:[#allocation185_spill] sm:$0xff] %v8108_v39  ;;  %vm826_vm15 = vcmp.eq.s32.totalorder %v7445_v9, %v7758_v11  ;;  %vm825_vm14 = vcmp.eq.s32.totalorder %v7445_v9, %v7799_v1  ;;  %vm834_vm0 = vcmp.eq.s32.totalorder %v7460_v55, %v7758_v11 }
 0x202   :  { %11901 = vst [vmem:[#allocation182_spill] sm:$0xff] %v8082_v22  ;;  %v510_v60 = vmul.f32 0.0078125, %v360_v40  ;;  %v1193_v42 = vmul.f32 %v8082_v22, %v8082_v22  ;;  %11906 = vst [vmem:[#allocation187_spill] sm:$0xff] %v8121_v8 }
 0x204   :  { %v8111_v18 = vsub.f32 %v7266_v56, %v510_v60  ;;  %1416 = vadd.xlane.f32.xlu1 %v1193_v42  ;;  %v5790_v42 = vpack.c.bf16 %v7280_v62, %v7236_v7 }
 0x205   :  { %v1347_v21 = vpop.xlane.xlu1 %1346  ;;  %v362_v40 = vpop.xlane.xlu0 %361 }
 0x206   :  { %11905 = vst [vmem:[#allocation186_spill] sm:$0xff] %v8111_v18  ;;  %v5788_v41 = vpack.c.bf16 %v1347_v21, %v1345_v47  ;;  %v511_v48 = vmul.f32 0.0078125, %v362_v40  ;;  %v1194_v56 = vmul.f32 %v8111_v18, %v8111_v18  ;;  %v8138_v47 = vsel %vm826_vm15, 1.0, %v11733_v44 }
 0x207   :  { %11908 = vst [vmem:[#allocation189_spill] sm:$0xff] %v8138_v47 }
 0x208   :  { %v8132_v2 = vsub.f32 %v7297_v58, %v511_v48  ;;  %1418 = vadd.xlane.f32.xlu0 %v1194_v56  ;;  %5789 = vmatprep.subr.bf16.mxu0 %v5788_v41  ;;  %v8152_v48 = vsel %vm825_vm14, 1.0, %v11733_v44  ;;  %v8158_v56 = vsel %vm834_vm0, 1.0, %v11733_v44 }
 0x209   :  { %v364_v21 = vpop.xlane.xlu1 %363  ;;  %5791 = vmatpush1.bf16.msra.mxu0 %v5790_v42  ;;  %v1349_v40 = vpop.xlane.xlu0 %1348  ;;  %11909 = vst [vmem:[#allocation190_spill] sm:$0xff] %v8152_v48  ;;  %11910 = vst [vmem:[#allocation191_spill] sm:$0xff] %v8158_v56 }
 0x20a   :  { %11907 = vst [vmem:[#allocation188_spill] sm:$0xff] %v8132_v2  ;;  %v512_v58 = vmul.f32 0.0078125, %v364_v21  ;;  %v1195_v41 = vmul.f32 %v8132_v2, %v8132_v2  ;;  %v8166_v21 = vsel %vm833_vm13, 1.0, %v11733_v44 }
 0x20b   :  { %11911 = vst [vmem:[#allocation192_spill] sm:$0xff] %v8166_v21 }
 0x20c   :  { %v8169_v60 = vsub.f32 %v7328_v5, %v512_v58  ;;  %1420 = vadd.xlane.f32.xlu1 %v1195_v41  ;;  %5567 = vmatmul.mubr.msk.f32.vlgmr.msra.gmra.mrb[0].mxu0 %vm713_vm5, %v11795_v29  ;;  %v11913_v58 = vld [vmem:[#allocation47_spill] sm:$0xff]  ;;  %vm11931_vm5 = vcmp.eq.s32.totalorder %v7215_v45, %v7758_v11 }
 0x20d   :  { %v1351_v7 = vpop.xlane.xlu1 %1350  ;;  %v366_v42 = vpop.xlane.xlu0 %365  ;;  %5568 = vmatprep.mubr.msk.f32.mxu0 %vm722_vm4, %v11795_v29  ;;  %v5794_v41 = vpack.c.bf16 %v11913_v58, %v7304_v53  ;;  %v11925_v53 = vld [vmem:[#allocation125_spill] sm:$0xff]  ;;  %vm11928_vm4 = vcmp.eq.s32.totalorder %v7197_v14, %v7799_v1 }
 0x20e   :  { %11912 = vst [vmem:[#allocation193_spill] sm:$0xff] %v8169_v60  ;;  %v5792_v47 = vpack.c.bf16 %v1351_v7, %v1349_v40  ;;  %v513_v56 = vmul.f32 0.0078125, %v366_v42  ;;  %v1196_v5 = vmul.f32 %v8169_v60, %v8169_v60  ;;  %v11916_v7 = vld [vmem:[#allocation115_spill] sm:$0xff] }
 0x210   :  { %v8186_v39 = vsub.f32 %v11914_v27, %v513_v56  ;;  %1422 = vadd.xlane.f32.xlu0 %v1196_v5  ;;  %5793 = vmatprep.subr.bf16.mxu0 %v5792_v47  ;;  %v11918_v5 = vld [vmem:[#allocation50_spill] sm:$0xff] }
 0x211   :  { %v368_v62 = vpop.xlane.xlu1 %367  ;;  %5795 = vmatpush1.bf16.msra.mxu0 %v5794_v41  ;;  %v1353_v48 = vpop.xlane.xlu0 %1352  ;;  %v11919_v41 = vld [vmem:[#allocation51_spill] sm:$0xff] }
 0x212   :  { %11915 = vst [vmem:[#allocation111_spill] sm:$0xff] %v8186_v39  ;;  %v514_v21 = vmul.f32 0.0078125, %v368_v62  ;;  %v1197_v63 = vmul.f32 %v8186_v39, %v8186_v39  ;;  %5569 = vmatmul.mubr.msk.f32.gmra.mrb[2].mxu0 %vm721_vm6, %v11795_v29  ;;  %v5798_v58 = vpack.c.bf16 %v11919_v41, %v11918_v5  ;;  %v11924_v5 = vld [vmem:[#allocation54_spill] sm:$0xff]  ;;  %vm11934_vm6 = vcmp.eq.s32.totalorder %v7215_v45, %v7799_v1 }
 0x213   :  { %5570 = vmatprep.mubr.msk.f32.mxu0 %vm730_vm7, %v11795_v29  ;;  %v5802_v8 = vpack.c.bf16 %v11925_v53, %v11924_v5  ;;  %v11930_v53 = vld [vmem:[#allocation58_spill] sm:$0xff]  ;;  %vm11935_vm7 = vcmp.eq.s32.totalorder %v7257_v26, %v7758_v11 }
 0x214   :  { %v8199_v27 = vsub.f32 %v11916_v7, %v514_v21  ;;  %1424 = vadd.xlane.f32.xlu1 %v1197_v63  ;;  %v11920_v63 = vld [vmem:[#allocation119_spill] sm:$0xff] }
 0x215   :  { %v1355_v47 = vpop.xlane.xlu1 %1354  ;;  %v370_v40 = vpop.xlane.xlu0 %369 }
 0x216   :  { %11917 = vst [vmem:[#allocation115_spill] sm:$0xff] %v8199_v27  ;;  %v5796_v62 = vpack.c.bf16 %v1355_v47, %v1353_v48  ;;  %v515_v56 = vmul.f32 0.0078125, %v370_v40  ;;  %v1198_v42 = vmul.f32 %v8199_v27, %v8199_v27  ;;  %5571 = vmatmul.mubr.msk.f32.gmra.mrb[4].mxu0 %vm729_vm8, %v11795_v29  ;;  %vm11938_vm8 = vcmp.eq.s32.totalorder %v7257_v26, %v7799_v1 }
 0x217   :  { %5572 = vmatprep.mubr.msk.f32.mxu0 %vm738_vm9, %v11795_v29  ;;  %vm11941_vm9 = vcmp.eq.s32.totalorder %v7277_v34, %v7758_v11 }
 0x218   :  { %v8214_v21 = vsub.f32 %v11920_v63, %v515_v56  ;;  %1426 = vadd.xlane.f32.xlu0 %v1198_v42  ;;  %5797 = vmatprep.subr.bf16.mxu0 %v5796_v62  ;;  %v11922_v56 = vld [vmem:[#allocation123_spill] sm:$0xff] }
 0x219   :  { %v372_v48 = vpop.xlane.xlu1 %371  ;;  %5799 = vmatpush1.bf16.msra.mxu0 %v5798_v58  ;;  %v1357_v7 = vpop.xlane.xlu0 %1356 }
 0x21a   :  { %11921 = vst [vmem:[#allocation119_spill] sm:$0xff] %v8214_v21  ;;  %v516_v47 = vmul.f32 0.0078125, %v372_v48  ;;  %v1199_v40 = vmul.f32 %v8214_v21, %v8214_v21  ;;  %5573 = vmatmul.mubr.msk.f32.gmra.mrb[6].mxu0 %vm737_vm10, %v11795_v29  ;;  %vm11944_vm10 = vcmp.eq.s32.totalorder %v7277_v34, %v7799_v1 }
 0x21b   :  { %5574 = vmatprep.mubr.msk.f32.mxu0 %vm746_vm11, %v11795_v29  ;;  %vm11945_vm11 = vcmp.eq.s32.totalorder %v7325_v46, %v7758_v11 }
 0x21c   :  { %v8227_v42 = vsub.f32 %v11922_v56, %v516_v47  ;;  %1428 = vadd.xlane.f32.xlu1 %v1199_v40 }
 0x21d   :  { %v1359_v58 = vpop.xlane.xlu1 %1358  ;;  %v374_v62 = vpop.xlane.xlu0 %373 }
 0x21e   :  { %11923 = vst [vmem:[#allocation123_spill] sm:$0xff] %v8227_v42  ;;  %v5800_v63 = vpack.c.bf16 %v1359_v58, %v1357_v7  ;;  %v517_v48 = vmul.f32 0.0078125, %v374_v62  ;;  %v1200_v41 = vmul.f32 %v8227_v42, %v8227_v42  ;;  %5575 = vmatmul.mubr.msk.f32.gmra.mrb[8].mxu0 %vm745_vm12, %v11795_v29  ;;  %vm11947_vm12 = vcmp.eq.s32.totalorder %v7325_v46, %v7799_v1 }
 0x21f   :  { %5576 = vmatprep.mubr.msk.f32.mxu0 %vm754_vm1, %v11795_v29  ;;  %vm11950_vm1 = vcmp.eq.s32.totalorder %v7337_v57, %v7758_v11 }
 0x220   :  { %v8242_v47 = vsub.f32 %v7480_v61, %v517_v48  ;;  %1430 = vadd.xlane.f32.xlu0 %v1200_v41  ;;  %5801 = vmatprep.subr.bf16.mxu0 %v5800_v63 }
 0x221   :  { %v376_v7 = vpop.xlane.xlu1 %375  ;;  %5803 = vmatpush1.bf16.msra.mxu0 %v5802_v8  ;;  %v1361_v40 = vpop.xlane.xlu0 %1360 }
 0x222   :  { %11926 = vst [vmem:[#allocation194_spill] sm:$0xff] %v8242_v47  ;;  %v518_v56 = vmul.f32 0.0078125, %v376_v7  ;;  %v1201_v58 = vmul.f32 %v8242_v47, %v8242_v47  ;;  %5577 = vmatmul.mubr.msk.f32.gmra.mrb[10].mxu0 %vm753_vm2, %v11795_v29  ;;  %v11929_v7 = vld [vmem:[#allocation57_spill] sm:$0xff]  ;;  %vm11953_vm2 = vcmp.eq.s32.totalorder %v7337_v57, %v7799_v1 }
 0x223   :  { %5578 = vmatprep.mubr.msk.f32.mxu0 %vm762_vm3, %v11795_v29  ;;  %v5806_v5 = vpack.c.bf16 %v11930_v53, %v11929_v7  ;;  %v11939_v7 = vld [vmem:[#allocation61_spill] sm:$0xff]  ;;  %vm11954_vm3 = vcmp.eq.s32.totalorder %v7385_v3, %v7758_v11 }
 0x224   :  { %v8255_v61 = vsub.f32 %v7512_v54, %v518_v56  ;;  %1432 = vadd.xlane.f32.xlu1 %v1201_v58  ;;  %v11932_v54 = vld [vmem:[#allocation130_spill] sm:$0xff]  ;;  %v5810_v15 = vpack.c.bf16 %v11940_v6, %v11939_v7  ;;  %v11948_v6 = vld [vmem:[#allocation64_spill] sm:$0xff] }
 0x225   :  { %v1363_v8 = vpop.xlane.xlu1 %1362  ;;  %v378_v41 = vpop.xlane.xlu0 %377  ;;  %v11949_v7 = vld [vmem:[#allocation66_spill] sm:$0xff] }
 0x226   :  { %11927 = vst [vmem:[#allocation195_spill] sm:$0xff] %v8255_v61  ;;  %v5804_v62 = vpack.c.bf16 %v1363_v8, %v1361_v40  ;;  %v519_v63 = vmul.f32 0.0078125, %v378_v41  ;;  %v1202_v48 = vmul.f32 %v8255_v61, %v8255_v61  ;;  %5579 = vmatmul.mubr.msk.f32.gmra.mrb[12].mxu0 %vm11928_vm4, %v11795_v29  ;;  %v5814_v52 = vpack.c.bf16 %v11949_v7, %v11948_v6  ;;  %v11957_v7 = vld [vmem:[#allocation68_spill] sm:$0xff]  ;;  %v11958_v6 = vld [vmem:[#allocation134_spill] sm:$0xff] }
 0x227   :  { %5580 = vmatprep.mubr.msk.f32.mxu0 %vm11931_vm5, %v11795_v29  ;;  %vm11956_vm4 = vcmp.eq.s32.totalorder %v7385_v3, %v7799_v1  ;;  %v5818_v59 = vpack.c.bf16 %v11958_v6, %v11957_v7  ;;  %vm11959_vm5 = vcmp.eq.s32.totalorder %v7397_v10, %v7758_v11  ;;  %v11969_v11 = vld [vmem:[#allocation139_spill] sm:$0xff] }
 0x228   :  { %v8270_v56 = vsub.f32 %v11932_v54, %v519_v63  ;;  %1434 = vadd.xlane.f32.xlu0 %v1202_v48  ;;  %5805 = vmatprep.subr.bf16.mxu0 %v5804_v62  ;;  %v11936_v63 = vld [vmem:[#allocation131_spill] sm:$0xff] }
 0x229   :  { %v380_v40 = vpop.xlane.xlu1 %379  ;;  %5807 = vmatpush1.bf16.msra.mxu0 %v5806_v5  ;;  %v1365_v58 = vpop.xlane.xlu0 %1364 }
 0x22a   :  { %11933 = vst [vmem:[#allocation130_spill] sm:$0xff] %v8270_v56  ;;  %v520_v8 = vmul.f32 0.0078125, %v380_v40  ;;  %v1203_v41 = vmul.f32 %v8270_v56, %v8270_v56  ;;  %5581 = vmatmul.mubr.msk.f32.gmra.mrb[14].mxu0 %vm11934_vm6, %v11795_v29  ;;  %vm11962_vm6 = vcmp.eq.s32.totalorder %v7397_v10, %v7799_v1 }
 0x22b   :  { %5582 = vmatprep.mubr.msk.f32.mxu0 %vm11935_vm7, %v11795_v29 }
 0x22c   :  { %v8283_v48 = vsub.f32 %v11936_v63, %v520_v8  ;;  %1436 = vadd.xlane.f32.xlu1 %v1203_v41  ;;  %v11942_v8 = vld [vmem:[#allocation132_spill] sm:$0xff] }
 0x22d   :  { %v1367_v5 = vpop.xlane.xlu1 %1366  ;;  %v382_v62 = vpop.xlane.xlu0 %381 }
 0x22e   :  { %11937 = vst [vmem:[#allocation131_spill] sm:$0xff] %v8283_v48  ;;  %v5808_v54 = vpack.c.bf16 %v1367_v5, %v1365_v58  ;;  %v521_v40 = vmul.f32 0.0078125, %v382_v62  ;;  %v1204_v53 = vmul.f32 %v8283_v48, %v8283_v48  ;;  %5583 = vmatmul.mubr.msk.f32.gmra.mrb[16].mxu0 %vm11938_vm8, %v11795_v29 }
 0x22f   :  { %5584 = vmatprep.mubr.msk.f32.mxu0 %vm11941_vm9, %v11795_v29 }
 0x230   :  { %v8298_v41 = vsub.f32 %v11942_v8, %v521_v40  ;;  %1438 = vadd.xlane.f32.xlu0 %v1204_v53  ;;  %5809 = vmatprep.subr.bf16.mxu0 %v5808_v54 }
 0x231   :  { %v384_v58 = vpop.xlane.xlu1 %383  ;;  %5811 = vmatpush1.bf16.msra.mxu0 %v5810_v15  ;;  %v1369_v63 = vpop.xlane.xlu0 %1368 }
 0x232   :  { %11943 = vst [vmem:[#allocation132_spill] sm:$0xff] %v8298_v41  ;;  %v522_v5 = vmul.f32 0.0078125, %v384_v58  ;;  %v1205_v62 = vmul.f32 %v8298_v41, %v8298_v41  ;;  %5585 = vmatmul.mubr.msk.f32.gmra.mrb[18].mxu0 %vm11944_vm10, %v11795_v29 }
 0x233   :  { %5586 = vmatprep.mubr.msk.f32.mxu0 %vm11945_vm11, %v11795_v29 }
 0x234   :  { %v8311_v53 = vsub.f32 %v7582_v0, %v522_v5  ;;  %1440 = vadd.xlane.f32.xlu1 %v1205_v62  ;;  %v11951_v0 = vld [vmem:[#allocation133_spill] sm:$0xff] }
 0x235   :  { %v1371_v15 = vpop.xlane.xlu1 %1370  ;;  %v386_v54 = vpop.xlane.xlu0 %385 }
 0x236   :  { %11946 = vst [vmem:[#allocation196_spill] sm:$0xff] %v8311_v53  ;;  %v5812_v40 = vpack.c.bf16 %v1371_v15, %v1369_v63  ;;  %v523_v8 = vmul.f32 0.0078125, %v386_v54  ;;  %v1206_v58 = vmul.f32 %v8311_v53, %v8311_v53  ;;  %5587 = vmatmul.mubr.msk.f32.gmra.mrb[20].mxu0 %vm11947_vm12, %v11795_v29 }
 0x237   :  { %5588 = vmatprep.mubr.msk.f32.mxu0 %vm11950_vm1, %v11795_v29 }
 0x238   :  { %v8326_v5 = vsub.f32 %v11951_v0, %v523_v8  ;;  %1442 = vadd.xlane.f32.xlu0 %v1206_v58  ;;  %5813 = vmatprep.subr.bf16.mxu0 %v5812_v40 }
 0x239   :  { %v388_v63 = vpop.xlane.xlu1 %387  ;;  %5815 = vmatpush1.bf16.msra.mxu0 %v5814_v52  ;;  %v1373_v62 = vpop.xlane.xlu0 %1372 }
 0x23a   :  { %11952 = vst [vmem:[#allocation133_spill] sm:$0xff] %v8326_v5  ;;  %v524_v15 = vmul.f32 0.0078125, %v388_v63  ;;  %v1207_v54 = vmul.f32 %v8326_v5, %v8326_v5  ;;  %5589 = vmatmul.mubr.msk.f32.gmra.mrb[22].mxu0 %vm11953_vm2, %v11795_v29 }
 0x23b   :  { %5590 = vmatprep.mubr.msk.f32.mxu0 %vm11954_vm3, %v11795_v29 }
 0x23c   :  { %v8339_v8 = vsub.f32 %v7616_v25, %v524_v15  ;;  %1444 = vadd.xlane.f32.xlu1 %v1207_v54  ;;  %v11960_v25 = vld [vmem:[#allocation135_spill] sm:$0xff] }
 0x23d   :  { %v1375_v52 = vpop.xlane.xlu1 %1374  ;;  %v390_v40 = vpop.xlane.xlu0 %389 }
 0x23e   :  { %11955 = vst [vmem:[#allocation197_spill] sm:$0xff] %v8339_v8  ;;  %v5816_v58 = vpack.c.bf16 %v1375_v52, %v1373_v62  ;;  %v525_v0 = vmul.f32 0.0078125, %v390_v40  ;;  %v1208_v63 = vmul.f32 %v8339_v8, %v8339_v8  ;;  %5591 = vmatmul.mubr.msk.f32.gmra.mrb[24].mxu0 %vm11956_vm4, %v11795_v29  ;;  %v701_v62 = vsub.s32 5, %v6886_v35 }
 0x23f   :  { %5592 = vmatprep.mubr.msk.f32.mxu0 %vm11959_vm5, %v11795_v29 }
 0x240   :  { %v8354_v15 = vsub.f32 %v11960_v25, %v525_v0  ;;  %1446 = vadd.xlane.f32.xlu0 %v1208_v63  ;;  %5817 = vmatprep.subr.bf16.mxu0 %v5816_v58  ;;  %v11963_v58 = vld [vmem:[#allocation136_spill] sm:$0xff] }
 0x241   :  { %v392_v54 = vpop.xlane.xlu1 %391  ;;  %5819 = vmatpush1.bf16.msra.mxu0 %v5818_v59  ;;  %v1377_v52 = vpop.xlane.xlu0 %1376  ;;  %v8371_v59 = vrot.slane %v7755_v50, %v701_v62 }
 0x242   :  { %11961 = vst [vmem:[#allocation135_spill] sm:$0xff] %v8354_v15  ;;  %v526_v40 = vmul.f32 0.0078125, %v392_v54  ;;  %v1209_v36 = vmul.f32 %v8354_v15, %v8354_v15  ;;  %5593 = vmatmul.mubr.msk.f32.gmra.mrb[26].mxu0 %vm11962_vm6, %v11795_v29 }
 0x243   :  { %5594 = vmatprep.mubr.msk.f32.mxu0 %vm826_vm15, %v11795_v29  ;;  %vm716_vm15 = vcmp.eq.s32.totalorder %v6886_v35, %v8371_v59  ;;  %vm732_vm7 = vcmp.eq.s32.totalorder %v7076_v24, %v8371_v59  ;;  %vm740_vm9 = vcmp.eq.s32.totalorder %v7093_v16, %v8371_v59  ;;  %vm748_vm11 = vcmp.eq.s32.totalorder %v7131_v23, %v8371_v59 }
 0x244   :  { %v8368_v0 = vsub.f32 %v11963_v58, %v526_v40  ;;  %1448 = vadd.xlane.f32.xlu1 %v1209_v36  ;;  %v5822_v40 = vpack.c.bf16 %v11966_v51, %v11965_v12  ;;  %v11967_v36 = vld [vmem:[#allocation138_spill] sm:$0xff]  ;;  %v11971_v51 = vld [vmem:[#allocation75_spill] sm:$0xff]  ;;  %v11972_v12 = vld [vmem:[#allocation77_spill] sm:$0xff]  ;;  %vm11546_vm1 = vcmp.eq.s32.totalorder %v7156_v28, %v8371_v59  ;;  %vm11545_vm3 = vcmp.eq.s32.totalorder %v7197_v14, %v8371_v59 }
 0x245   :  { %v1379_v63 = vpop.xlane.xlu1 %1378  ;;  %v394_v25 = vpop.xlane.xlu0 %393  ;;  %v5826_v1 = vpack.c.bf16 %v11972_v12, %v11971_v51  ;;  %vm11544_vm5 = vcmp.eq.s32.totalorder %v7215_v45, %v8371_v59 }
 0x246   :  { %11964 = vst [vmem:[#allocation136_spill] sm:$0xff] %v8368_v0  ;;  %v5820_v54 = vpack.c.bf16 %v1379_v63, %v1377_v52  ;;  %v527_v6 = vmul.f32 0.0078125, %v394_v25  ;;  %v1210_v7 = vmul.f32 %v8368_v0, %v8368_v0  ;;  %5595 = vmatmul.mubr.msk.f32.gmra.mrb[28].mxu0 %vm825_vm14, %v11795_v29  ;;  %vm724_vm14 = vcmp.eq.s32.totalorder %v7453_v49, %v8371_v59 }
 0x247   :  { %5596 = vmatprep.mubr.msk.f32.mxu0 %vm834_vm0, %v11795_v29 }
 0x248   :  { %v8386_v62 = vsub.f32 %v11967_v36, %v527_v6  ;;  %1450 = vadd.xlane.f32.xlu0 %v1210_v7  ;;  %5821 = vmatprep.subr.bf16.mxu0 %v5820_v54 }
 0x249   :  { %v396_v52 = vpop.xlane.xlu1 %395  ;;  %5823 = vmatpush1.bf16.msra.mxu0 %v5822_v40  ;;  %v1381_v58 = vpop.xlane.xlu0 %1380 }
 0x24a   :  { %11968 = vst [vmem:[#allocation138_spill] sm:$0xff] %v8386_v62  ;;  %v528_v63 = vmul.f32 0.0078125, %v396_v52  ;;  %v1211_v25 = vmul.f32 %v8386_v62, %v8386_v62  ;;  %5597 = vmatmul.mubr.msk.f32.gmra.mrb[30].mxu0 %vm833_vm13, %v11795_v29 }
 0x24b   :  { %5598 = vmatprep.mubr.msk.f32.mxu0 %vm716_vm15, %v11795_v29 }
 0x24c   :  { %v8401_v6 = vsub.f32 %v11969_v11, %v528_v63  ;;  %1452 = vadd.xlane.f32.xlu1 %v1211_v25 }
 0x24d   :  { %v1383_v7 = vpop.xlane.xlu1 %1382  ;;  %v398_v54 = vpop.xlane.xlu0 %397 }
 0x24e   :  { %11970 = vst [vmem:[#allocation139_spill] sm:$0xff] %v8401_v6  ;;  %v5824_v40 = vpack.c.bf16 %v1383_v7, %v1381_v58  ;;  %v529_v36 = vmul.f32 0.0078125, %v398_v54  ;;  %v1212_v52 = vmul.f32 %v8401_v6, %v8401_v6 }
 0x250   :  { %v8408_v62 = vsub.f32 %v11973_v32, %v529_v36  ;;  %1454 = vadd.xlane.f32.xlu0 %v1212_v52  ;;  %5825 = vmatprep.subr.bf16.mxu0 %v5824_v40  ;;  %v11976_v36 = vld [vmem:[#allocation79_spill] sm:$0xff]  ;;  %v11977_v40 = vld [vmem:[#allocation81_spill] sm:$0xff] }
 0x251   :  { %v400_v0 = vpop.xlane.xlu1 %399  ;;  %5827 = vmatpush1.bf16.msra.mxu0 %v5826_v1  ;;  %v1385_v63 = vpop.xlane.xlu0 %1384  ;;  %v5830_v52 = vpack.c.bf16 %v11977_v40, %v11976_v36  ;;  %v11978_v1 = vld [vmem:[#allocation141_spill] sm:$0xff] }
 0x252   :  { %11974 = vst [vmem:[#allocation140_spill] sm:$0xff] %v8408_v62  ;;  %v530_v11 = vmul.f32 0.0078125, %v400_v0  ;;  %v1213_v25 = vmul.f32 %v8408_v62, %v8408_v62 }
 0x254   :  { %v8413_v58 = vsub.f32 %v7718_v30, %v530_v11  ;;  %1456 = vadd.xlane.f32.xlu1 %v1213_v25 }
 0x255   :  { %v1387_v7 = vpop.xlane.xlu1 %1386  ;;  %v402_v54 = vpop.xlane.xlu0 %401 }
 0x256   :  { %11975 = vst [vmem:[#allocation198_spill] sm:$0xff] %v8413_v58  ;;  %v5828_v6 = vpack.c.bf16 %v1387_v7, %v1385_v63  ;;  %v531_v12 = vmul.f32 0.0078125, %v402_v54  ;;  %v1214_v32 = vmul.f32 %v8413_v58, %v8413_v58  ;;  %v11980_v63 = vld [vmem:[#allocation142_spill] sm:$0xff] }
 0x258   :  { %v8420_v51 = vsub.f32 %v11978_v1, %v531_v12  ;;  %1458 = vadd.xlane.f32.xlu0 %v1214_v32  ;;  %5829 = vmatprep.subr.bf16.mxu0 %v5828_v6  ;;  %v11982_v32 = vld [vmem:[#allocation83_spill] sm:$0xff] }
 0x259   :  { %v404_v0 = vpop.xlane.xlu1 %403  ;;  %5831 = vmatpush1.bf16.msra.mxu0 %v5830_v52  ;;  %v1389_v30 = vpop.xlane.xlu0 %1388  ;;  %v11983_v6 = vld [vmem:[#allocation143_spill] sm:$0xff]  ;;  %v11984_v52 = vld [vmem:[#allocation144_spill] sm:$0xff] }
 0x25a   :  { %11979 = vst [vmem:[#allocation141_spill] sm:$0xff] %v8420_v51  ;;  %v532_v11 = vmul.f32 0.0078125, %v404_v0  ;;  %v1215_v25 = vmul.f32 %v8420_v51, %v8420_v51  ;;  %v5834_v1 = vpack.c.bf16 %v11983_v6, %v11982_v32  ;;  %v11988_v32 = vld [vmem:[#allocation148_spill] sm:$0xff] }
 0x25c   :  { %v8425_v7 = vsub.f32 %v11980_v63, %v532_v11  ;;  %1460 = vadd.xlane.f32.xlu1 %v1215_v25 }
 0x25d   :  { %v1391_v54 = vpop.xlane.xlu1 %1390  ;;  %v406_v58 = vpop.xlane.xlu0 %405 }
 0x25e   :  { %11981 = vst [vmem:[#allocation142_spill] sm:$0xff] %v8425_v7  ;;  %v5832_v62 = vpack.c.bf16 %v1391_v54, %v1389_v30  ;;  %v533_v40 = vmul.f32 0.0078125, %v406_v58  ;;  %v1216_v12 = vmul.f32 %v8425_v7, %v8425_v7 }
 0x260   :  { %v8432_v36 = vsub.f32 %v11984_v52, %v533_v40  ;;  %1462 = vadd.xlane.f32.xlu0 %v1216_v12  ;;  %5833 = vmatprep.subr.bf16.mxu0 %v5832_v62  ;;  %v11987_v12 = vld [vmem:[#allocation146_spill] sm:$0xff] }
 0x261   :  { %v408_v0 = vpop.xlane.xlu1 %407  ;;  %5835 = vmatpush1.bf16.msra.mxu0 %v5834_v1  ;;  %v1393_v11 = vpop.xlane.xlu0 %1392  ;;  %v5838_v62 = vpack.c.bf16 %v11987_v12, %v7787_v31  ;;  %v11991_v12 = vld [vmem:[#allocation155_spill] sm:$0xff] }
 0x262   :  { %11985 = vst [vmem:[#allocation144_spill] sm:$0xff] %v8432_v36  ;;  %v534_v63 = vmul.f32 0.0078125, %v408_v0  ;;  %v1217_v25 = vmul.f32 %v8432_v36, %v8432_v36 }
 0x264   :  { %v8437_v58 = vsub.f32 %v7796_v20, %v534_v63  ;;  %1464 = vadd.xlane.f32.xlu1 %v1217_v25  ;;  %v5842_v20 = vpack.c.bf16 %v7846_v33, %v11988_v32  ;;  %v11989_v63 = vld [vmem:[#allocation153_spill] sm:$0xff] }
 0x265   :  { %v1395_v30 = vpop.xlane.xlu1 %1394  ;;  %v1397_v54 = vpop.xlane.xlu0 %1396 }
 0x266   :  { %11986 = vst [vmem:[#allocation199_spill] sm:$0xff] %v8437_v58  ;;  %v5836_v7 = vpack.c.bf16 %v1395_v30, %v1393_v11  ;;  %v1218_v40 = vmul.f32 %v8437_v58, %v8437_v58 }
 0x268   :  { %1466 = vadd.xlane.f32.xlu0 %v1218_v40  ;;  %5837 = vmatprep.subr.bf16.mxu0 %v5836_v7 }
 0x269   :  { %v1399_v1 = vpop.xlane.xlu1 %1398  ;;  %5839 = vmatpush1.bf16.msra.mxu0 %v5838_v62  ;;  %v410_v52 = vpop.xlane.xlu0 %409  ;;  %v5846_v62 = vpack.c.bf16 %v7897_v17, %v11991_v12 }
 0x26a   :  { %v5840_v0 = vpack.c.bf16 %v1399_v1, %v1397_v54  ;;  %v535_v6 = vmul.f32 0.0078125, %v410_v52 }
 0x26c   :  { %v8446_v25 = vsub.f32 %v11989_v63, %v535_v6  ;;  %5841 = vmatprep.subr.bf16.mxu0 %v5840_v0  ;;  %v5850_v6 = vpack.c.bf16 %v7941_v4, %v7905_v13  ;;  %v697_v0 = vsub.s32 4, %v6886_v35 }
 0x26d   :  { %5843 = vmatpush1.bf16.msra.mxu0 %v5842_v20  ;;  %v1401_v30 = vpop.xlane.xlu1 %1400 }
 0x26e   :  { %11990 = vst [vmem:[#allocation153_spill] sm:$0xff] %v8446_v25  ;;  %v1219_v11 = vmul.f32 %v8446_v25, %v8446_v25 }
 0x270   :  { %1468 = vadd.xlane.f32.xlu1 %v1219_v11  ;;  %v8456_v11 = vrot.slane %v7755_v50, %v697_v0  ;;  %v5862_v0 = vpack.c.bf16 %v8111_v18, %v8082_v22  ;;  %v11997_v22 = vld [vmem:[#allocation140_spill] sm:$0xff] }
 0x271   :  { %v1403_v40 = vpop.xlane.xlu0 %1402 }
 0x272   :  { %v5844_v7 = vpack.c.bf16 %v1403_v40, %v1401_v30  ;;  %11992 = vst [vmem:[#allocation200_spill] sm:$0xff] %v8456_v11  ;;  %v5854_v40 = vpack.c.bf16 %v7989_v38, %v7959_v19  ;;  %vm11507_vm0 = vcmp.eq.s32.totalorder %v6886_v35, %v8456_v11  ;;  %vm11505_vm13 = vcmp.eq.s32.totalorder %v7453_v49, %v8456_v11 }
 0x273   :  { %vm11503_vm8 = vcmp.eq.s32.totalorder %v7076_v24, %v8456_v11  ;;  %vm11501_vm10 = vcmp.eq.s32.totalorder %v7093_v16, %v8456_v11  ;;  %vm11499_vm12 = vcmp.eq.s32.totalorder %v7131_v23, %v8456_v11  ;;  %vm11497_vm2 = vcmp.eq.s32.totalorder %v7156_v28, %v8456_v11 }
 0x274   :  { %5845 = vmatprep.subr.bf16.mxu0 %v5844_v7  ;;  %vm11498_vm4 = vcmp.eq.s32.totalorder %v7197_v14, %v8456_v11  ;;  %vm11500_vm6 = vcmp.eq.s32.totalorder %v7215_v45, %v8456_v11  ;;  %v705_v19 = vsub.s32 6, %v6886_v35 }
 0x275   :  { %5847 = vmatpush1.bf16.msra.mxu0 %v5846_v62  ;;  %v1405_v54 = vpop.xlane.xlu1 %1404 }
 0x279   :  { %v1407_v1 = vpop.xlane.xlu0 %1406 }
 0x27a   :  { %v5848_v52 = vpack.c.bf16 %v1407_v1, %v1405_v54  ;;  %v5858_v54 = vpack.c.bf16 %v8057_v43, %v8034_v37 }
 0x27c   :  { %5849 = vmatprep.subr.bf16.mxu0 %v5848_v52 }
 0x27d   :  { %5851 = vmatpush1.bf16.msra.mxu0 %v5850_v6  ;;  %v1409_v20 = vpop.xlane.xlu1 %1408 }
 0x281   :  { %v1411_v63 = vpop.xlane.xlu0 %1410 }
 0x282   :  { %v5852_v30 = vpack.c.bf16 %v1411_v63, %v1409_v20 }
 0x284   :  { %5853 = vmatprep.subr.bf16.mxu0 %v5852_v30 }
 0x285   :  { %5855 = vmatpush1.bf16.msra.mxu0 %v5854_v40  ;;  %v5866_v40 = vpack.c.bf16 %v8169_v60, %v8132_v2 }
 0x288   :  { %5599 = vmatmul.mubr.msk.f32.vlgmr.msra.gmra.mrb[0].mxu0 %vm11507_vm0, %v11795_v29  ;;  %vm11513_vm0 = vcmp.eq.s32.totalorder %v7397_v10, %v8371_v59 }
 0x289   :  { %5600 = vmatprep.mubr.msk.f32.mxu0 %vm724_vm14, %v11795_v29  ;;  %v1413_v50 = vpop.xlane.xlu1 %1412 }
 0x28c   :  { %5601 = vmatmul.mubr.msk.f32.gmra.mrb[2].mxu0 %vm11505_vm13, %v11795_v29  ;;  %vm11509_vm13 = vcmp.eq.s32.totalorder %v7385_v3, %v8371_v59 }
 0x28d   :  { %v1415_v7 = vpop.xlane.xlu0 %1414  ;;  %5602 = vmatprep.mubr.msk.f32.mxu0 %vm732_vm7, %v11795_v29 }
 0x28e   :  { %v5856_v62 = vpack.c.bf16 %v1415_v7, %v1413_v50 }
 0x290   :  { %5857 = vmatprep.subr.bf16.mxu0 %v5856_v62  ;;  %5603 = vmatmul.mubr.msk.f32.gmra.mrb[4].mxu0 %vm11503_vm8, %v11795_v29  ;;  %vm11514_vm8 = vcmp.eq.s32.totalorder %v7337_v57, %v8371_v59 }
 0x291   :  { %5859 = vmatpush1.bf16.msra.mxu0 %v5858_v54  ;;  %5604 = vmatprep.mubr.msk.f32.mxu0 %vm740_vm9, %v11795_v29  ;;  %v1417_v1 = vpop.xlane.xlu1 %1416  ;;  %v5870_v54 = vpack.c.bf16 %v8199_v27, %v8186_v39 }
 0x294   :  { %5605 = vmatmul.mubr.msk.f32.gmra.mrb[6].mxu0 %vm11501_vm10, %v11795_v29  ;;  %vm11541_vm10 = vcmp.eq.s32.totalorder %v7325_v46, %v8371_v59 }
 0x295   :  { %v1419_v52 = vpop.xlane.xlu0 %1418  ;;  %5606 = vmatprep.mubr.msk.f32.mxu0 %vm748_vm11, %v11795_v29 }
 0x296   :  { %v5860_v6 = vpack.c.bf16 %v1419_v52, %v1417_v1 }
 0x298   :  { %5861 = vmatprep.subr.bf16.mxu0 %v5860_v6  ;;  %5607 = vmatmul.mubr.msk.f32.gmra.mrb[8].mxu0 %vm11499_vm12, %v11795_v29  ;;  %vm11542_vm12 = vcmp.eq.s32.totalorder %v7277_v34, %v8371_v59 }
 0x299   :  { %5863 = vmatpush1.bf16.msra.mxu0 %v5862_v0  ;;  %5608 = vmatprep.mubr.msk.f32.mxu0 %vm11546_vm1, %v11795_v29  ;;  %v1421_v20 = vpop.xlane.xlu1 %1420  ;;  %v5874_v0 = vpack.c.bf16 %v8227_v42, %v8214_v21 }
 0x29c   :  { %5609 = vmatmul.mubr.msk.f32.gmra.mrb[10].mxu0 %vm11497_vm2, %v11795_v29  ;;  %vm11543_vm2 = vcmp.eq.s32.totalorder %v7257_v26, %v8371_v59 }
 0x29d   :  { %v1423_v63 = vpop.xlane.xlu0 %1422  ;;  %5610 = vmatprep.mubr.msk.f32.mxu0 %vm11545_vm3, %v11795_v29 }
 0x29e   :  { %v5864_v30 = vpack.c.bf16 %v1423_v63, %v1421_v20  ;;  %v2164_v20 = vld [vmem:[%s11199_s2 + $0x8] sm:$0xff] }
 0x29f   :  { %6285 = vrcp.f32 %v2164_v20  ;;  %v2167_v20 = vld [vmem:[%s11199_s2 + $0x20] sm:$0xff] }
 0x2a0   :  { %5865 = vmatprep.subr.bf16.mxu0 %v5864_v30  ;;  %5611 = vmatmul.mubr.msk.f32.gmra.mrb[12].mxu0 %vm11498_vm4, %v11795_v29  ;;  %vm11502_vm4 = vcmp.eq.s32.totalorder %v7257_v26, %v8456_v11 }
 0x2a1   :  { %5867 = vmatpush1.bf16.msra.mxu0 %v5866_v40  ;;  %5612 = vmatprep.mubr.msk.f32.mxu0 %vm11544_vm5, %v11795_v29  ;;  %v1425_v50 = vpop.xlane.xlu1 %1424  ;;  %v2165_v40 = vld [vmem:[%s11199_s2 + $0x10] sm:$0xff] }
 0x2a2   :  { %6287 = vrcp.f32 %v2165_v40  ;;  %v2163_v40 = vld [vmem:[%s11199_s2] sm:$0xff] }
 0x2a4   :  { %5613 = vmatmul.mubr.msk.f32.gmra.mrb[14].mxu0 %vm11500_vm6, %v11795_v29  ;;  %vm11504_vm6 = vcmp.eq.s32.totalorder %v7277_v34, %v8456_v11 }
 0x2a5   :  { %v1427_v7 = vpop.xlane.xlu0 %1426  ;;  %5614 = vmatprep.mubr.msk.f32.mxu0 %vm11543_vm2, %v11795_v29 }
 0x2a6   :  { %v5868_v62 = vpack.c.bf16 %v1427_v7, %v1425_v50  ;;  %v5878_v7 = vpack.c.bf16 %v8255_v61, %v8242_v47  ;;  %v5886_v61 = vpack.c.bf16 %v8311_v53, %v8298_v41  ;;  %v2173_v53 = vld [vmem:[%s11199_s2 + $0x50] sm:$0xff]  ;;  %v5890_v47 = vpack.c.bf16 %v8339_v8, %v8326_v5 }
 0x2a7   :  { %v11994_v5 = vld [vmem:[#allocation136_spill] sm:$0xff] }
 0x2a8   :  { %5869 = vmatprep.subr.bf16.mxu0 %v5868_v62  ;;  %5615 = vmatmul.mubr.msk.f32.gmra.mrb[16].mxu0 %vm11502_vm4, %v11795_v29  ;;  %vm11506_vm4 = vcmp.eq.s32.totalorder %v7325_v46, %v8456_v11  ;;  %v709_v62 = vsub.s32 7, %v6886_v35  ;;  %v5894_v21 = vpack.c.bf16 %v11994_v5, %v8354_v15 }
 0x2a9   :  { %5871 = vmatpush1.bf16.msra.mxu0 %v5870_v54  ;;  %5616 = vmatprep.mubr.msk.f32.mxu0 %vm11542_vm12, %v11795_v29  ;;  %v1429_v1 = vpop.xlane.xlu1 %1428  ;;  %v2166_v54 = vld [vmem:[%s11199_s2 + $0x18] sm:$0xff] }
 0x2aa   :  { %6289 = vrcp.f32 %v2166_v54 }
 0x2ab   :  { %6291 = vrcp.f32 %v2167_v20 }
 0x2ac   :  { %5617 = vmatmul.mubr.msk.f32.gmra.mrb[18].mxu0 %vm11504_vm6, %v11795_v29  ;;  %vm11508_vm6 = vcmp.eq.s32.totalorder %v7337_v57, %v8456_v11  ;;  %6293 = vrcp.f32 %v2163_v40 }
 0x2ad   :  { %v1431_v52 = vpop.xlane.xlu0 %1430  ;;  %5618 = vmatprep.mubr.msk.f32.mxu0 %vm11541_vm10, %v11795_v29 }
 0x2ae   :  { %v5872_v6 = vpack.c.bf16 %v1431_v52, %v1429_v1  ;;  %v8645_v1 = vld [vmem:[%s11198_s1] sm:$0xff] }
 0x2af   :  { %v8648_v52 = vrot.slane %v8645_v1, %v709_v62  ;;  %v5882_v62 = vpack.c.bf16 %v8283_v48, %v8270_v56  ;;  %v2170_v48 = vld [vmem:[%s11199_s2 + $0x38] sm:$0xff] }
 0x2b0   :  { %5873 = vmatprep.subr.bf16.mxu0 %v5872_v6  ;;  %5619 = vmatmul.mubr.msk.f32.gmra.mrb[20].mxu0 %vm11506_vm4, %v11795_v29  ;;  %vm11510_vm4 = vcmp.eq.s32.totalorder %v7385_v3, %v8456_v11  ;;  %v8650_v6 = vpop.eup %6285 }
 0x2b1   :  { %5875 = vmatpush1.bf16.msra.mxu0 %v5874_v0  ;;  %5620 = vmatprep.mubr.msk.f32.mxu0 %vm11514_vm8, %v11795_v29  ;;  %v1433_v63 = vpop.xlane.xlu1 %1432  ;;  %v11515_v0 = vmov 0   ;;  %v8681_v54 = vpop.eup %6287  ;;  %vm1470_vm8 = vcmask 850944  }
 0x2b2   :  { %6284 = vset.pattern.permute.xlu1 %v11515_v0  ;;  %6283 = vset.pattern.permute.xlu0 %v11515_v0 }
 0x2b3   :  { %2218 = vperm.xlu1 %6284, %v8650_v6   ;;  %3285 = vmatprep.mubr.bf16.mxu1 %v11515_v0 }
 0x2b4   :  { %5621 = vmatmul.mubr.msk.f32.gmra.mrb[22].mxu0 %vm11508_vm6, %v11795_v29  ;;  %vm11511_vm6 = vcmp.eq.s32.totalorder %v7397_v10, %v8456_v11  ;;  %v8703_v40 = vpop.eup %6289 }
 0x2b5   :  { %v1435_v30 = vpop.xlane.xlu0 %1434  ;;  %5622 = vmatprep.mubr.msk.f32.mxu0 %vm11509_vm13, %v11795_v29  ;;  %vm11512_vm13 = vcmp.eq.s32.totalorder %v7445_v9, %v8371_v59  ;;  %v8718_v56 = vpop.eup %6291 }
 0x2b6   :  { %v5876_v50 = vpack.c.bf16 %v1435_v30, %v1433_v63 }
 0x2b7   :  { %2223 = vperm.xlu1 %6284, %v8681_v54  }
 0x2b8   :  { %5877 = vmatprep.subr.bf16.mxu0 %v5876_v50  ;;  %5623 = vmatmul.mubr.msk.f32.gmra.mrb[24].mxu0 %vm11510_vm4, %v11795_v29  ;;  %vm11539_vm4 = vcmp.eq.s32.totalorder %v7445_v9, %v8456_v11 }
 0x2b9   :  { %5879 = vmatpush1.bf16.msra.mxu0 %v5878_v7  ;;  %5624 = vmatprep.mubr.msk.f32.mxu0 %vm11513_vm0, %v11795_v29  ;;  %v1437_v63 = vpop.xlane.xlu1 %1436  ;;  %v2168_v7 = vld [vmem:[%s11199_s2 + $0x28] sm:$0xff]  ;;  %vm11538_vm0 = vcmp.eq.s32.totalorder %v7460_v55, %v8456_v11 }
 0x2ba   :  { %6295 = vrcp.f32 %v2168_v7 }
 0x2bb   :  { %2228 = vperm.xlu1 %6284, %v8703_v40  }
 0x2bc   :  { %5625 = vmatmul.mubr.msk.f32.gmra.mrb[26].mxu0 %vm11511_vm6, %v11795_v29  ;;  %vm11540_vm6 = vcmp.eq.s32.totalorder %v7460_v55, %v8371_v59 }
 0x2bd   :  { %v1439_v30 = vpop.xlane.xlu0 %1438  ;;  %5626 = vmatprep.mubr.msk.f32.mxu0 %vm11512_vm13, %v11795_v29  ;;  %vm718_vm13 = vcmp.eq.s32.totalorder %v6886_v35, %v8648_v52 }
 0x2be   :  { %v5880_v50 = vpack.c.bf16 %v1439_v30, %v1437_v63  ;;  %v8694_v20 = vsel %vm718_vm13, 1.0, %v11733_v44  ;;  %v2169_v63 = vld [vmem:[%s11199_s2 + $0x30] sm:$0xff]  ;;  %v2172_v30 = vld [vmem:[%s11199_s2 + $0x48] sm:$0xff]  ;;  %vm726_vm13 = vcmp.eq.s32.totalorder %v7453_v49, %v8648_v52 }
 0x2bf   :  { %11993 = vst [vmem:[#allocation201_spill] sm:$0xff] %v8694_v20  ;;  %6297 = vrcp.f32 %v2169_v63  ;;  %v2176_v63 = vld [vmem:[%s11199_s2 + $0x68] sm:$0xff]  ;;  %2233 = vperm.xlu1 %6284, %v8718_v56  }
 0x2c0   :  { %5881 = vmatprep.subr.bf16.mxu0 %v5880_v50  ;;  %5627 = vmatmul.mubr.msk.f32.gmra.mrb[28].mxu0 %vm11539_vm4, %v11795_v29  ;;  %6299 = vrcp.f32 %v2172_v30  ;;  %v2171_v30 = vld [vmem:[%s11199_s2 + $0x40] sm:$0xff]  ;;  %vm734_vm4 = vcmp.eq.s32.totalorder %v7076_v24, %v8648_v52 }
 0x2c1   :  { %5883 = vmatpush1.bf16.msra.mxu0 %v5882_v62  ;;  %5628 = vmatprep.mubr.msk.f32.mxu0 %vm11540_vm6, %v11795_v29  ;;  %v1441_v50 = vpop.xlane.xlu1 %1440  ;;  %v2174_v62 = vld [vmem:[%s11199_s2 + $0x58] sm:$0xff] }
 0x2c2   :  { %6301 = vrcp.f32 %v2174_v62 }
 0x2c3   :  { %6303 = vrcp.f32 %v2170_v48  ;;  %v2178_v48 = vld [vmem:[%s11199_s2 + $0x78] sm:$0xff] }
 0x2c4   :  { %5629 = vmatmul.mubr.msk.f32.gmra.mrb[30].mxu0 %vm11538_vm0, %v11795_v29  ;;  %6305 = vrcp.f32 %v2176_v63 }
 0x2c5   :  { %v1443_v7 = vpop.xlane.xlu0 %1442  ;;  %5630 = vmatprep.mubr.msk.f32.mxu0 %vm1470_vm8, %v8694_v20  ;;  %6307 = vrcp.f32 %v2171_v30 }
 0x2c6   :  { %v5884_v0 = vpack.c.bf16 %v1443_v7, %v1441_v50  ;;  %v8725_v50 = vpop.eup %6293  ;;  %6309 = vrcp.f32 %v2178_v48 }
 0x2c7   :  { %v8731_v7 = vpop.eup %6295  ;;  %2213 = vperm.xlu0 %6283, %v8725_v50   ;;  %6311 = vrcp.f32 %v2173_v53  ;;  %v2177_v53 = vld [vmem:[%s11199_s2 + $0x70] sm:$0xff] }
 0x2c8   :  { %5885 = vmatprep.subr.bf16.mxu0 %v5884_v0  ;;  %2238 = vperm.xlu1 %6284, %v8731_v7  }
 0x2c9   :  { %5887 = vmatpush1.bf16.msra.mxu0 %v5886_v61  ;;  %v1445_v0 = vpop.xlane.xlu1 %1444  ;;  %v8741_v41 = vpop.eup %6297 }
 0x2ca   :  { %v8745_v63 = vpop.eup %6299 }
 0x2cb   :  { %2258 = vperm.xlu0 %6283, %v8745_v63  }
 0x2cc   :  { %v8748_v30 = vpop.eup %6301  ;;  %2243 = vperm.xlu1 %6284, %v8741_v41  }
 0x2cd   :  { %v1447_v61 = vpop.xlane.xlu0 %1446 }
 0x2ce   :  { %v5888_v62 = vpack.c.bf16 %v1447_v61, %v1445_v0  ;;  %v2175_v0 = vld [vmem:[%s11199_s2 + $0x60] sm:$0xff]  ;;  %v8754_v61 = vpop.eup %6303 }
 0x2cf   :  { %6313 = vrcp.f32 %v2175_v0  ;;  %2268 = vperm.xlu0 %6283, %v8748_v30   ;;  %v8757_v48 = vpop.eup %6305 }
 0x2d0   :  { %5889 = vmatprep.subr.bf16.mxu0 %v5888_v62  ;;  %2248 = vperm.xlu1 %6284, %v8754_v61   ;;  %v8763_v62 = vpop.eup %6307  ;;  %6315 = vrcp.f32 %v2177_v53 }
 0x2d1   :  { %5891 = vmatpush1.bf16.msra.mxu0 %v5890_v47  ;;  %v1449_v42 = vpop.xlane.xlu1 %1448  ;;  %v8768_v0 = vpop.eup %6309 }
 0x2d3   :  { %2278 = vperm.xlu0 %6283, %v8757_v48  }
 0x2d4   :  { %2253 = vperm.xlu1 %6284, %v8763_v62  }
 0x2d5   :  { %v1451_v8 = vpop.xlane.xlu0 %1450 }
 0x2d6   :  { %v5892_v47 = vpack.c.bf16 %v1451_v8, %v1449_v42  ;;  %v8771_v42 = vpop.eup %6311 }
 0x2d7   :  { %2288 = vperm.xlu0 %6283, %v8768_v0  }
 0x2d8   :  { %5893 = vmatprep.subr.bf16.mxu0 %v5892_v47  ;;  %2263 = vperm.xlu1 %6284, %v8771_v42   ;;  %v11995_v47 = vld [vmem:[#allocation138_spill] sm:$0xff] }
 0x2d9   :  { %5895 = vmatpush1.bf16.msra.mxu0 %v5894_v21  ;;  %v1453_v8 = vpop.xlane.xlu1 %1452  ;;  %v8775_v60 = vpop.eup %6313  ;;  %v11996_v21 = vld [vmem:[#allocation139_spill] sm:$0xff] }
 0x2da   :  { %v5898_v53 = vpack.c.bf16 %v11996_v21, %v11995_v47  ;;  %v8780_v5 = vpop.eup %6315 }
 0x2dc   :  { %2273 = vperm.xlu1 %6284, %v8775_v60  }
 0x2dd   :  { %v1455_v27 = vpop.xlane.xlu0 %1454 }
 0x2de   :  { %v5896_v39 = vpack.c.bf16 %v1455_v27, %v1453_v8  ;;  %v11998_v27 = vld [vmem:[#allocation198_spill] sm:$0xff] }
 0x2df   :  { %v5902_v8 = vpack.c.bf16 %v11998_v27, %v11997_v22 }
 0x2e0   :  { %5897 = vmatprep.subr.bf16.mxu0 %v5896_v39  ;;  %2283 = vperm.xlu1 %6284, %v8780_v5   ;;  %v11999_v39 = vld [vmem:[#allocation142_spill] sm:$0xff] }
 0x2e1   :  { %5899 = vmatpush1.bf16.msra.mxu0 %v5898_v53  ;;  %v1457_v15 = vpop.xlane.xlu1 %1456  ;;  %v5906_v53 = vpack.c.bf16 %v11999_v39, %v8420_v51 }
 0x2e5   :  { %v1459_v2 = vpop.xlane.xlu0 %1458 }
 0x2e6   :  { %v5900_v18 = vpack.c.bf16 %v1459_v2, %v1457_v15  ;;  %v5910_v15 = vpack.c.bf16 %v8437_v58, %v8432_v36 }
 0x2e8   :  { %5901 = vmatprep.subr.bf16.mxu0 %v5900_v18  ;;  %v8791_v18 = vrot.slane %v8645_v1, %v705_v19  ;;  %v8812_v19 = vsel %vm734_vm4, 1.0, %v11733_v44  ;;  %vm750_vm4 = vcmp.eq.s32.totalorder %v7131_v23, %v8648_v52 }
 0x2e9   :  { %5903 = vmatpush1.bf16.msra.mxu0 %v5902_v8  ;;  %v1461_v43 = vpop.xlane.xlu1 %1460  ;;  %12001 = vst [vmem:[#allocation203_spill] sm:$0xff] %v8812_v19  ;;  %v8838_v1 = vsel %vm750_vm4, 1.0, %v11733_v44  ;;  %vm766_vm4 = vcmp.eq.s32.totalorder %v7197_v14, %v8648_v52 }
 0x2ea   :  { %vm717_vm0 = vcmp.eq.s32.totalorder %v6886_v35, %v8791_v18  ;;  %vm725_vm6 = vcmp.eq.s32.totalorder %v7453_v49, %v8791_v18  ;;  %vm733_vm10 = vcmp.eq.s32.totalorder %v7076_v24, %v8791_v18  ;;  %vm741_vm12 = vcmp.eq.s32.totalorder %v7093_v16, %v8791_v18  ;;  %12003 = vst [vmem:[#allocation205_spill] sm:$0xff] %v8838_v1 }
 0x2eb   :  { %vm749_vm2 = vcmp.eq.s32.totalorder %v7131_v23, %v8791_v18  ;;  %vm757_vm5 = vcmp.eq.s32.totalorder %v7156_v28, %v8791_v18  ;;  %vm11547_vm3 = vcmp.eq.s32.totalorder %v7197_v14, %v8791_v18  ;;  %vm11548_vm1 = vcmp.eq.s32.totalorder %v7215_v45, %v8791_v18 }
 0x2ed   :  { %v1463_v37 = vpop.xlane.xlu0 %1462 }
 0x2ee   :  { %v5904_v38 = vpack.c.bf16 %v1463_v37, %v1461_v43 }
 0x2f0   :  { %5905 = vmatprep.subr.bf16.mxu0 %v5904_v38  ;;  %v8798_v38 = vsel %vm726_vm13, 1.0, %v11733_v44  ;;  %vm742_vm13 = vcmp.eq.s32.totalorder %v7093_v16, %v8648_v52 }
 0x2f1   :  { %5907 = vmatpush1.bf16.msra.mxu0 %v5906_v53  ;;  %v1465_v21 = vpop.xlane.xlu1 %1464  ;;  %12000 = vst [vmem:[#allocation202_spill] sm:$0xff] %v8798_v38  ;;  %v8825_v43 = vsel %vm742_vm13, 1.0, %v11733_v44  ;;  %vm758_vm13 = vcmp.eq.s32.totalorder %v7156_v28, %v8648_v52 }
 0x2f2   :  { %12002 = vst [vmem:[#allocation204_spill] sm:$0xff] %v8825_v43 }
 0x2f5   :  { %v1467_v47 = vpop.xlane.xlu0 %1466 }
 0x2f6   :  { %v5908_v2 = vpack.c.bf16 %v1467_v47, %v1465_v21  ;;  %v8851_v47 = vsel %vm758_vm13, 1.0, %v11733_v44  ;;  %v8864_v21 = vsel %vm766_vm4, 1.0, %v11733_v44  ;;  %vm774_vm13 = vcmp.eq.s32.totalorder %v7215_v45, %v8648_v52 }
 0x2f7   :  { %12004 = vst [vmem:[#allocation206_spill] sm:$0xff] %v8851_v47  ;;  %12005 = vst [vmem:[#allocation207_spill] sm:$0xff] %v8864_v21  ;;  %v8877_v8 = vsel %vm774_vm13, 1.0, %v11733_v44  ;;  %vm782_vm4 = vcmp.eq.s32.totalorder %v7257_v26, %v8648_v52  ;;  %vm790_vm13 = vcmp.eq.s32.totalorder %v7277_v34, %v8648_v52 }
 0x2f8   :  { %5909 = vmatprep.subr.bf16.mxu0 %v5908_v2  ;;  %12006 = vst [vmem:[#allocation208_spill] sm:$0xff] %v8877_v8  ;;  %v8890_v53 = vsel %vm782_vm4, 1.0, %v11733_v44  ;;  %v8903_v2 = vsel %vm790_vm13, 1.0, %v11733_v44  ;;  %vm798_vm4 = vcmp.eq.s32.totalorder %v7325_v46, %v8648_v52  ;;  %vm806_vm13 = vcmp.eq.s32.totalorder %v7337_v57, %v8648_v52 }
 0x2f9   :  { %5911 = vmatpush1.bf16.msra.mxu0 %v5910_v15  ;;  %12007 = vst [vmem:[#allocation209_spill] sm:$0xff] %v8890_v53  ;;  %12008 = vst [vmem:[#allocation210_spill] sm:$0xff] %v8903_v2  ;;  %v8916_v15 = vsel %vm798_vm4, 1.0, %v11733_v44  ;;  %vm814_vm4 = vcmp.eq.s32.totalorder %v7385_v3, %v8648_v52 }
 0x2fa   :  { %12009 = vst [vmem:[#allocation211_spill] sm:$0xff] %v8916_v15 }
 0x2fd   :  { %v1469_v37 = vpop.xlane.xlu1 %1468 }
 0x2fe   :  { %2058 = vmatprep.subr.mxu0 %v1469_v37  ;;  %v8929_v37 = vsel %vm806_vm13, 1.0, %v11733_v44  ;;  %vm822_vm13 = vcmp.eq.s32.totalorder %v7397_v10, %v8648_v52 }
 0x2ff   :  { %2059 = vmatpush1.msra.mxu0 %v8446_v25  ;;  %12010 = vst [vmem:[#allocation212_spill] sm:$0xff] %v8929_v37  ;;  %v8942_v25 = vsel %vm814_vm4, 1.0, %v11733_v44  ;;  %v8955_v58 = vsel %vm822_vm13, 1.0, %v11733_v44  ;;  %vm830_vm4 = vcmp.eq.s32.totalorder %v7445_v9, %v8648_v52  ;;  %vm838_vm13 = vcmp.eq.s32.totalorder %v7460_v55, %v8648_v52 }
 0x300   :  { %5631 = vmatmul.mubr.msk.f32.vlgmr.msra.gmra.mrb[0].mxu0 %vm717_vm0, %v11795_v29  ;;  %12011 = vst [vmem:[#allocation213_spill] sm:$0xff] %v8942_v25  ;;  %12012 = vst [vmem:[#allocation214_spill] sm:$0xff] %v8955_v58  ;;  %v8968_v36 = vsel %vm830_vm4, 1.0, %v11733_v44  ;;  %v8981_v39 = vsel %vm838_vm13, 1.0, %v11733_v44  ;;  %vm837_vm4 = vcmp.eq.s32.totalorder %v7460_v55, %v8791_v18  ;;  %v12015_v52 = vmov 0  }
 0x301   :  { %5632 = vmatprep.mubr.msk.f32.mxu0 %vm1470_vm8, %v8798_v38  ;;  %12013 = vst [vmem:[#allocation215_spill] sm:$0xff] %v8968_v36  ;;  %12014 = vst [vmem:[#allocation216_spill] sm:$0xff] %v8981_v39 }
 0x304   :  { %5633 = vmatmul.mubr.msk.f32.gmra.mrb[2].mxu0 %vm725_vm6, %v11795_v29 }
 0x305   :  { %5634 = vmatprep.mubr.msk.f32.mxu0 %vm1470_vm8, %v8812_v19 }
 0x308   :  { %5635 = vmatmul.mubr.msk.f32.gmra.mrb[4].mxu0 %vm733_vm10, %v11795_v29 }
 0x309   :  { %5636 = vmatprep.mubr.msk.f32.mxu0 %vm1470_vm8, %v8825_v43 }
 0x30c   :  { %5637 = vmatmul.mubr.msk.f32.gmra.mrb[6].mxu0 %vm741_vm12, %v11795_v29 }
 0x30d   :  { %5638 = vmatprep.mubr.msk.f32.mxu0 %vm1470_vm8, %v8838_v1 }
 0x310   :  { %5639 = vmatmul.mubr.msk.f32.gmra.mrb[8].mxu0 %vm749_vm2, %v11795_v29 }
 0x311   :  { %5640 = vmatprep.mubr.msk.f32.mxu0 %vm1470_vm8, %v8851_v47 }
 0x314   :  { %5641 = vmatmul.mubr.msk.f32.gmra.mrb[10].mxu0 %vm757_vm5, %v11795_v29 }
 0x315   :  { %5642 = vmatprep.mubr.msk.f32.mxu0 %vm1470_vm8, %v8864_v21 }
 0x318   :  { %5643 = vmatmul.mubr.msk.f32.gmra.mrb[12].mxu0 %vm11547_vm3, %v11795_v29  ;;  %vm11549_vm3 = vcmp.eq.s32.totalorder %v7257_v26, %v8791_v18 }
 0x319   :  { %5644 = vmatprep.mubr.msk.f32.mxu0 %vm1470_vm8, %v8877_v8 }
 0x31c   :  { %5645 = vmatmul.mubr.msk.f32.gmra.mrb[14].mxu0 %vm11548_vm1, %v11795_v29  ;;  %vm11550_vm1 = vcmp.eq.s32.totalorder %v7277_v34, %v8791_v18 }
 0x31d   :  { %5646 = vmatprep.mubr.msk.f32.mxu0 %vm1470_vm8, %v8890_v53 }
 0x320   :  { %5647 = vmatmul.mubr.msk.f32.gmra.mrb[16].mxu0 %vm11549_vm3, %v11795_v29  ;;  %vm11552_vm3 = vcmp.eq.s32.totalorder %v7325_v46, %v8791_v18 }
 0x321   :  { %5648 = vmatprep.mubr.msk.f32.mxu0 %vm1470_vm8, %v8903_v2 }
 0x324   :  { %5649 = vmatmul.mubr.msk.f32.gmra.mrb[18].mxu0 %vm11550_vm1, %v11795_v29  ;;  %vm11554_vm1 = vcmp.eq.s32.totalorder %v7337_v57, %v8791_v18 }
 0x325   :  { %5650 = vmatprep.mubr.msk.f32.mxu0 %vm1470_vm8, %v8916_v15 }
 0x328   :  { %5651 = vmatmul.mubr.msk.f32.gmra.mrb[20].mxu0 %vm11552_vm3, %v11795_v29  ;;  %vm11556_vm3 = vcmp.eq.s32.totalorder %v7385_v3, %v8791_v18 }
 0x329   :  { %5652 = vmatprep.mubr.msk.f32.mxu0 %vm1470_vm8, %v8929_v37 }
 0x32c   :  { %5653 = vmatmul.mubr.msk.f32.gmra.mrb[22].mxu0 %vm11554_vm1, %v11795_v29  ;;  %vm821_vm1 = vcmp.eq.s32.totalorder %v7397_v10, %v8791_v18 }
 0x32d   :  { %5654 = vmatprep.mubr.msk.f32.mxu0 %vm1470_vm8, %v8942_v25 }
 0x330   :  { %5655 = vmatmul.mubr.msk.f32.gmra.mrb[24].mxu0 %vm11556_vm3, %v11795_v29  ;;  %vm829_vm3 = vcmp.eq.s32.totalorder %v7445_v9, %v8791_v18 }
 0x331   :  { %5656 = vmatprep.mubr.msk.f32.mxu0 %vm1470_vm8, %v8955_v58 }
 0x332   :  { %v2219_v51 = vpop.permute.xlu1 %2218 }
 0x334   :  { %5657 = vmatmul.mubr.msk.f32.gmra.mrb[26].mxu0 %vm821_vm1, %v11795_v29 }
 0x335   :  { %5658 = vmatprep.mubr.msk.f32.mxu0 %vm1470_vm8, %v8968_v36 }
 0x336   :  { %v2224_v27 = vpop.permute.xlu1 %2223 }
 0x338   :  { %5659 = vmatmul.mubr.msk.f32.gmra.mrb[28].mxu0 %vm829_vm3, %v11795_v29 }
 0x339   :  { %5660 = vmatprep.mubr.msk.f32.mxu0 %vm1470_vm8, %v8981_v39  ;;  %vm12034_vm8 = vcmp.eq.s32.totalorder %v7215_v45, %v8371_v59 }
 0x33a   :  { %v2229_v12 = vpop.permute.xlu1 %2228 }
 0x33c   :  { %5661 = vmatmul.mubr.msk.f32.gmra.mrb[30].mxu0 %vm837_vm4, %v11795_v29 }
 0x33d   :  { %2835 = vmatprep.mubr.bf16.mxu0 %v12015_v52 }
 0x33e   :  { %v2234_v29 = vpop.permute.xlu1 %2233 }
 0x346   :  { %v2214_v22 = vpop.permute.xlu0 %2213 }
 0x347   :  { %v2239_v8 = vpop.permute.xlu1 %2238 }
 0x3d3   :  { %v2068_v4 = vpop.f32.mrb[0].mxu0 }
 0x3d4   :  { %v2291_v13 = vmul.f32 %v2214_v22, %v2068_v4  ;;  %v8996_v17 = vpop.f32.mrb[1].mxu0 }
 0x3d6   :  { %v2323_v33 = vmul.f32 %v2291_v13, %v2291_v13 }
 0x3d7   :  { %v2074_v32 = vpop.f32.mrb[2].mxu0 }
 0x3d8   :  { %v2292_v31 = vmul.f32 %v2219_v51, %v2074_v32  ;;  %v8998_v11 = vpop.f32.mrb[3].mxu0  ;;  %2339 = vadd.xlane.f32.xlu1 %v2323_v33 }
 0x3da   :  { %v9000_v39 = vpack.c.bf16 %v2292_v31, %v2291_v13  ;;  %v2324_v36 = vmul.f32 %v2292_v31, %v2292_v31 }
 0x3db   :  { %v2080_v58 = vpop.f32.mrb[4].mxu0 }
 0x3dc   :  { %12016 = vst [vmem:[#allocation217_spill] sm:$0xff] %v9000_v39  ;;  %v2531_v52 = vunpack.c.l.bf16 %v9000_v39  ;;  %v2533_v25 = vunpack.c.h.bf16 %v9000_v39  ;;  %v2293_v37 = vmul.f32 %v2224_v27, %v2080_v58  ;;  %2341 = vadd.xlane.f32.xlu0 %v2324_v36  ;;  %v9004_v4 = vpop.f32.mrb[5].mxu0 }
 0x3de   :  { %v2563_v22 = vsub.f32 %v2291_v13, %v2531_v52  ;;  %v2565_v15 = vsub.f32 %v2292_v31, %v2533_v25  ;;  %v2325_v2 = vmul.f32 %v2293_v37, %v2293_v37 }
 0x3df   :  { %v2086_v51 = vpop.f32.mrb[6].mxu0 }
 0x3e0   :  { %v9006_v32 = vpack.c.bf16 %v2565_v15, %v2563_v22  ;;  %v2294_v33 = vmul.f32 %v2229_v12, %v2086_v51  ;;  %2343 = vadd.xlane.f32.xlu0 %v2325_v2  ;;  %v9008_v53 = vpop.f32.mrb[7].mxu0  ;;  %v2244_v12 = vpop.permute.xlu1 %2243 }
 0x3e2   :  { %12017 = vst [vmem:[#allocation218_spill] sm:$0xff] %v9006_v32  ;;  %v9010_v21 = vpack.c.bf16 %v2294_v33, %v2293_v37  ;;  %v2326_v47 = vmul.f32 %v2294_v33, %v2294_v33 }
 0x3e3   :  { %v2092_v1 = vpop.f32.mrb[8].mxu0 }
 0x3e4   :  { %12018 = vst [vmem:[#allocation219_spill] sm:$0xff] %v9010_v21  ;;  %v2535_v58 = vunpack.c.l.bf16 %v9010_v21  ;;  %v2537_v36 = vunpack.c.h.bf16 %v9010_v21  ;;  %v2295_v27 = vmul.f32 %v2234_v29, %v2092_v1  ;;  %v9014_v13 = vpop.f32.mrb[9].mxu0  ;;  %2345 = vadd.xlane.f32.xlu1 %v2326_v47 }
 0x3e6   :  { %v2567_v31 = vsub.f32 %v2293_v37, %v2535_v58  ;;  %v2569_v25 = vsub.f32 %v2294_v33, %v2537_v36  ;;  %v2327_v15 = vmul.f32 %v2295_v27, %v2295_v27  ;;  %v2249_v33 = vpop.permute.xlu1 %2248 }
 0x3e7   :  { %v2098_v2 = vpop.f32.mrb[10].mxu0 }
 0x3e8   :  { %v9016_v52 = vpack.c.bf16 %v2569_v25, %v2567_v31  ;;  %v2296_v22 = vmul.f32 %v2239_v8, %v2098_v2  ;;  %2347 = vadd.xlane.f32.xlu0 %v2327_v15  ;;  %v9018_v51 = vpop.f32.mrb[11].mxu0 }
 0x3ea   :  { %12019 = vst [vmem:[#allocation220_spill] sm:$0xff] %v9016_v52  ;;  %v9020_v39 = vpack.c.bf16 %v2296_v22, %v2295_v27  ;;  %v2328_v32 = vmul.f32 %v2296_v22, %v2296_v22  ;;  %v2254_v19 = vpop.permute.xlu1 %2253 }
 0x3eb   :  { %v2104_v43 = vpop.f32.mrb[12].mxu0 }
 0x3ec   :  { %12020 = vst [vmem:[#allocation221_spill] sm:$0xff] %v9020_v39  ;;  %v2539_v1 = vunpack.c.l.bf16 %v9020_v39  ;;  %v2541_v29 = vunpack.c.h.bf16 %v9020_v39  ;;  %v2297_v47 = vmul.f32 %v2244_v12, %v2104_v43  ;;  %v9024_v37 = vpop.f32.mrb[13].mxu0  ;;  %2349 = vadd.xlane.f32.xlu1 %v2328_v32 }
 0x3ee   :  { %v2571_v58 = vsub.f32 %v2295_v27, %v2539_v1  ;;  %v2573_v36 = vsub.f32 %v2296_v22, %v2541_v29  ;;  %v2329_v31 = vmul.f32 %v2297_v47, %v2297_v47  ;;  %v2264_v20 = vpop.permute.xlu1 %2263 }
 0x3ef   :  { %v2110_v8 = vpop.f32.mrb[14].mxu0 }
 0x3f0   :  { %v9026_v25 = vpack.c.bf16 %v2573_v36, %v2571_v58  ;;  %v2298_v15 = vmul.f32 %v2249_v33, %v2110_v8  ;;  %2351 = vadd.xlane.f32.xlu0 %v2329_v31  ;;  %v9028_v2 = vpop.f32.mrb[15].mxu0  ;;  %v2259_v58 = vpop.permute.xlu0 %2258 }
 0x3f2   :  { %12021 = vst [vmem:[#allocation222_spill] sm:$0xff] %v9026_v25  ;;  %v9030_v21 = vpack.c.bf16 %v2298_v15, %v2297_v47  ;;  %v2330_v52 = vmul.f32 %v2298_v15, %v2298_v15  ;;  %v2274_v9 = vpop.permute.xlu1 %2273 }
 0x3f3   :  { %v2116_v39 = vpop.f32.mrb[16].mxu0 }
 0x3f4   :  { %12022 = vst [vmem:[#allocation223_spill] sm:$0xff] %v9030_v21  ;;  %v2543_v43 = vunpack.c.l.bf16 %v9030_v21  ;;  %v2545_v32 = vunpack.c.h.bf16 %v9030_v21  ;;  %v2299_v12 = vmul.f32 %v2254_v19, %v2116_v39  ;;  %v9034_v27 = vpop.f32.mrb[17].mxu0  ;;  %2353 = vadd.xlane.f32.xlu1 %v2330_v52 }
 0x3f6   :  { %v2575_v22 = vsub.f32 %v2297_v47, %v2543_v43  ;;  %v2577_v1 = vsub.f32 %v2298_v15, %v2545_v32  ;;  %v2331_v29 = vmul.f32 %v2299_v12, %v2299_v12  ;;  %v2284_v3 = vpop.permute.xlu1 %2283 }
 0x3f7   :  { %v2122_v33 = vpop.f32.mrb[18].mxu0 }
 0x3f8   :  { %v9036_v36 = vpack.c.bf16 %v2577_v1, %v2575_v22  ;;  %v2300_v31 = vmul.f32 %v2259_v58, %v2122_v33  ;;  %2355 = vadd.xlane.f32.xlu0 %v2331_v29  ;;  %v9038_v8 = vpop.f32.mrb[19].mxu0  ;;  %v2269_v22 = vpop.permute.xlu0 %2268 }
 0x3fa   :  { %12023 = vst [vmem:[#allocation224_spill] sm:$0xff] %v9036_v36  ;;  %v9040_v25 = vpack.c.bf16 %v2300_v31, %v2299_v12  ;;  %v2332_v38 = vmul.f32 %v2300_v31, %v2300_v31 }
 0x3fb   :  { %v2128_v21 = vpop.f32.mrb[20].mxu0 }
 0x3fc   :  { %12024 = vst [vmem:[#allocation225_spill] sm:$0xff] %v9040_v25  ;;  %v2547_v39 = vunpack.c.l.bf16 %v9040_v25  ;;  %v2549_v19 = vunpack.c.h.bf16 %v9040_v25  ;;  %v2301_v52 = vmul.f32 %v2264_v20, %v2128_v21  ;;  %v9044_v47 = vpop.f32.mrb[21].mxu0  ;;  %2357 = vadd.xlane.f32.xlu1 %v2332_v38 }
 0x3fe   :  { %v2579_v15 = vsub.f32 %v2299_v12, %v2547_v39  ;;  %v2581_v43 = vsub.f32 %v2300_v31, %v2549_v19  ;;  %v2333_v32 = vmul.f32 %v2301_v52, %v2301_v52 }
 0x3ff   :  { %v2134_v1 = vpop.f32.mrb[22].mxu0 }
 0x400   :  { %v9046_v29 = vpack.c.bf16 %v2581_v43, %v2579_v15  ;;  %v2302_v33 = vmul.f32 %v2269_v22, %v2134_v1  ;;  %2359 = vadd.xlane.f32.xlu0 %v2333_v32  ;;  %v9048_v58 = vpop.f32.mrb[23].mxu0  ;;  %v2279_v15 = vpop.permute.xlu0 %2278 }
 0x402   :  { %12025 = vst [vmem:[#allocation226_spill] sm:$0xff] %v9046_v29  ;;  %v9050_v36 = vpack.c.bf16 %v2302_v33, %v2301_v52  ;;  %v2334_v55 = vmul.f32 %v2302_v33, %v2302_v33 }
 0x403   :  { %v2140_v25 = vpop.f32.mrb[24].mxu0 }
 0x404   :  { %12026 = vst [vmem:[#allocation227_spill] sm:$0xff] %v9050_v36  ;;  %v2551_v20 = vunpack.c.l.bf16 %v9050_v36  ;;  %v2553_v38 = vunpack.c.h.bf16 %v9050_v36  ;;  %v2303_v21 = vmul.f32 %v2274_v9, %v2140_v25  ;;  %v9054_v12 = vpop.f32.mrb[25].mxu0  ;;  %2361 = vadd.xlane.f32.xlu1 %v2334_v55 }
 0x406   :  { %v2583_v31 = vsub.f32 %v2301_v52, %v2551_v20  ;;  %v2585_v39 = vsub.f32 %v2302_v33, %v2553_v38  ;;  %v2335_v19 = vmul.f32 %v2303_v21, %v2303_v21 }
 0x407   :  { %v2146_v43 = vpop.f32.mrb[26].mxu0 }
 0x408   :  { %v9056_v32 = vpack.c.bf16 %v2585_v39, %v2583_v31  ;;  %v2304_v22 = vmul.f32 %v2279_v15, %v2146_v43  ;;  %2363 = vadd.xlane.f32.xlu0 %v2335_v19  ;;  %v9058_v1 = vpop.f32.mrb[27].mxu0  ;;  %v2289_v31 = vpop.permute.xlu0 %2288 }
 0x40a   :  { %12027 = vst [vmem:[#allocation228_spill] sm:$0xff] %v9056_v32  ;;  %v9060_v29 = vpack.c.bf16 %v2304_v22, %v2303_v21  ;;  %v2336_v10 = vmul.f32 %v2304_v22, %v2304_v22 }
 0x40b   :  { %v2152_v36 = vpop.f32.mrb[28].mxu0 }
 0x40c   :  { %12028 = vst [vmem:[#allocation229_spill] sm:$0xff] %v9060_v29  ;;  %v2555_v9 = vunpack.c.l.bf16 %v9060_v29  ;;  %v2557_v55 = vunpack.c.h.bf16 %v9060_v29  ;;  %v2305_v25 = vmul.f32 %v2284_v3, %v2152_v36  ;;  %v9064_v52 = vpop.f32.mrb[29].mxu0  ;;  %2365 = vadd.xlane.f32.xlu1 %v2336_v10 }
 0x40e   :  { %v2587_v33 = vsub.f32 %v2303_v21, %v2555_v9  ;;  %v2589_v20 = vsub.f32 %v2304_v22, %v2557_v55  ;;  %v2337_v38 = vmul.f32 %v2305_v25, %v2305_v25  ;;  %v2307_v22 = vmul.f32 %v8725_v50, %v8996_v17 }
 0x40f   :  { %v2158_v39 = vpop.f32.mrb[30].mxu0  ;;  %v2310_v17 = vmul.f32 %v8703_v40, %v9008_v53 }
 0x410   :  { %v9066_v19 = vpack.c.bf16 %v2589_v20, %v2587_v33  ;;  %v2306_v15 = vmul.f32 %v2289_v31, %v2158_v39  ;;  %2367 = vadd.xlane.f32.xlu0 %v2337_v38  ;;  %v9068_v43 = vpop.f32.mrb[31].mxu0  ;;  %v2308_v33 = vmul.f32 %v8650_v6, %v8998_v11  ;;  %v2311_v6 = vmul.f32 %v8718_v56, %v9014_v13 }
 0x411   :  { %v2313_v56 = vmul.f32 %v8741_v41, %v9024_v37  ;;  %v2315_v41 = vmul.f32 %v8763_v62, %v9034_v27  ;;  %v2317_v62 = vmul.f32 %v8771_v42, %v9044_v47  ;;  %v2319_v42 = vmul.f32 %v8775_v60, %v9054_v12 }
 0x412   :  { %v9070_v32 = vpack.c.bf16 %v2306_v15, %v2305_v25  ;;  %v2338_v57 = vmul.f32 %v2306_v15, %v2306_v15  ;;  %v2321_v60 = vmul.f32 %v8780_v5, %v9064_v52 }
 0x414   :  { %12029 = vst [vmem:[#allocation230_spill] sm:$0xff] %v9070_v32  ;;  %v2559_v29 = vunpack.c.l.bf16 %v9070_v32  ;;  %v2561_v3 = vunpack.c.h.bf16 %v9070_v32  ;;  %2369 = vadd.xlane.f32.xlu1 %v2338_v57  ;;  %v2309_v32 = vmul.f32 %v8681_v54, %v9004_v4 }
 0x416   :  { %v2591_v10 = vsub.f32 %v2305_v25, %v2559_v29  ;;  %v2593_v36 = vsub.f32 %v2306_v15, %v2561_v3 }
 0x418   :  { %v9074_v21 = vpack.c.bf16 %v2593_v36, %v2591_v10 }
 0x465   :  { %v2340_v9 = vpop.xlane.xlu1 %2339 }
 0x466   :  { %v2371_v55 = vsub.f32 %v2307_v22, %v2340_v9 }
 0x468   :  { %v2387_v20 = vmul.f32 0.0078125, %v2371_v55 }
 0x469   :  { %v2342_v38 = vpop.xlane.xlu0 %2341 }
 0x46a   :  { %v2403_v31 = vadd.f32 1e-06, %v2387_v20  ;;  %v2372_v39 = vsub.f32 %v2308_v33, %v2342_v38 }
 0x46c   :  { %6317 = vrsqrt.f32 %v2403_v31  ;;  %v2388_v57 = vmul.f32 0.0078125, %v2372_v39 }
 0x46d   :  { %v2344_v29 = vpop.xlane.xlu0 %2343 }
 0x46e   :  { %v2404_v25 = vadd.f32 1e-06, %v2388_v57  ;;  %v2373_v15 = vsub.f32 %v2309_v32, %v2344_v29  ;;  %v2312_v32 = vmul.f32 %v8731_v7, %v9018_v51  ;;  %v2314_v7 = vmul.f32 %v8754_v61, %v9028_v2 }
 0x46f   :  { %v2316_v61 = vmul.f32 %v8745_v63, %v9038_v8  ;;  %v2318_v63 = vmul.f32 %v8748_v30, %v9048_v58  ;;  %v2320_v30 = vmul.f32 %v8757_v48, %v9058_v1  ;;  %v2322_v48 = vmul.f32 %v8768_v0, %v9068_v43 }
 0x470   :  { %6319 = vrsqrt.f32 %v2404_v25  ;;  %v2389_v50 = vmul.f32 0.0078125, %v2373_v15  ;;  %v5412_v0 = vsel %vm717_vm0, 1.0, %v11733_v44  ;;  %v5420_v43 = vsel %vm725_vm6, 1.0, %v11733_v44 }
 0x471   :  { %v2346_v3 = vpop.xlane.xlu1 %2345  ;;  %vm12031_vm0 = vcmp.eq.s32.totalorder %v7197_v14, %v8791_v18  ;;  %vm12042_vm6 = vcmp.eq.s32.totalorder %v7325_v46, %v8371_v59 }
 0x472   :  { %v2405_v10 = vadd.f32 1e-06, %v2389_v50  ;;  %v2374_v11 = vsub.f32 %v2310_v17, %v2346_v3 }
 0x474   :  { %6321 = vrsqrt.f32 %v2405_v10  ;;  %v2390_v36 = vmul.f32 0.0078125, %v2374_v11 }
 0x475   :  { %v2348_v22 = vpop.xlane.xlu0 %2347 }
 0x476   :  { %v6318_v54 = vpop.eup %6317  ;;  %v2406_v4 = vadd.f32 1e-06, %v2390_v36  ;;  %v2375_v9 = vsub.f32 %v2311_v6, %v2348_v22 }
 0x477   :  { %2437 = vperm.xlu0 %6283, %v6318_v54  }
 0x478   :  { %6323 = vrsqrt.f32 %v2406_v4  ;;  %v2391_v40 = vmul.f32 0.0078125, %v2375_v9 }
 0x479   :  { %v2350_v53 = vpop.xlane.xlu1 %2349 }
 0x47a   :  { %v6320_v55 = vpop.eup %6319  ;;  %v2407_v33 = vadd.f32 1e-06, %v2391_v40  ;;  %v2376_v20 = vsub.f32 %v2312_v32, %v2350_v53 }
 0x47b   :  { %2442 = vperm.xlu1 %6284, %v6320_v55  }
 0x47c   :  { %6325 = vrsqrt.f32 %v2407_v33  ;;  %v2392_v13 = vmul.f32 0.0078125, %v2376_v20 }
 0x47d   :  { %v2352_v38 = vpop.xlane.xlu0 %2351 }
 0x47e   :  { %v6322_v31 = vpop.eup %6321  ;;  %v2408_v39 = vadd.f32 1e-06, %v2392_v13  ;;  %v2377_v57 = vsub.f32 %v2313_v56, %v2352_v38 }
 0x47f   :  { %2447 = vperm.xlu1 %6284, %v6322_v31  }
 0x480   :  { %6327 = vrsqrt.f32 %v2408_v39  ;;  %v2393_v51 = vmul.f32 0.0078125, %v2377_v57 }
 0x481   :  { %v2354_v29 = vpop.xlane.xlu1 %2353 }
 0x482   :  { %v6324_v25 = vpop.eup %6323  ;;  %v2409_v15 = vadd.f32 1e-06, %v2393_v51  ;;  %v2378_v17 = vsub.f32 %v2314_v7, %v2354_v29 }
 0x483   :  { %2452 = vperm.xlu0 %6283, %v6324_v25  }
 0x484   :  { %6329 = vrsqrt.f32 %v2409_v15  ;;  %v2394_v37 = vmul.f32 0.0078125, %v2378_v17 }
 0x485   :  { %v2356_v50 = vpop.xlane.xlu0 %2355 }
 0x486   :  { %v6326_v3 = vpop.eup %6325  ;;  %v2410_v10 = vadd.f32 1e-06, %v2394_v37  ;;  %v2379_v11 = vsub.f32 %v2315_v41, %v2356_v50 }
 0x487   :  { %2457 = vperm.xlu1 %6284, %v6326_v3  }
 0x488   :  { %6331 = vrsqrt.f32 %v2410_v10  ;;  %v2395_v2 = vmul.f32 0.0078125, %v2379_v11 }
 0x489   :  { %v2358_v6 = vpop.xlane.xlu1 %2357 }
 0x48a   :  { %v6328_v36 = vpop.eup %6327  ;;  %v2411_v22 = vadd.f32 1e-06, %v2395_v2  ;;  %v2380_v54 = vsub.f32 %v2316_v61, %v2358_v6  ;;  %v5411_v6 = vsel %vm716_vm15, 1.0, %v11733_v44  ;;  %vm12030_vm15 = vcmp.eq.s32.totalorder %v7156_v28, %v8371_v59 }
 0x48b   :  { %2462 = vperm.xlu0 %6283, %v6328_v36   ;;  %v5419_v36 = vsel %vm724_vm14, 1.0, %v11733_v44  ;;  %vm12032_vm14 = vcmp.eq.s32.totalorder %v7215_v45, %v8791_v18 }
 0x48c   :  { %6333 = vrsqrt.f32 %v2411_v22  ;;  %v2396_v27 = vmul.f32 0.0078125, %v2380_v54  ;;  %v2617_v22 = vpack.c.bf16 %v5420_v43, %v5412_v0  ;;  %v2616_v54 = vpack.c.bf16 %v5419_v36, %v5411_v6 }
 0x48d   :  { %v2360_v4 = vpop.xlane.xlu0 %2359  ;;  %v5532_v0 = vsel %vm837_vm4, 1.0, %v11733_v44 }
 0x48e   :  { %v6330_v9 = vpop.eup %6329  ;;  %v2412_v32 = vadd.f32 1e-06, %v2396_v27  ;;  %v2381_v40 = vsub.f32 %v2317_v62, %v2360_v4  ;;  %v5428_v62 = vsel %vm733_vm10, 1.0, %v11733_v44  ;;  %v5436_v27 = vsel %vm741_vm12, 1.0, %v11733_v44 }
 0x48f   :  { %2467 = vperm.xlu1 %6284, %v6330_v9   ;;  %v5427_v4 = vsel %vm732_vm7, 1.0, %v11733_v44  ;;  %v5435_v9 = vsel %vm740_vm9, 1.0, %v11733_v44  ;;  %vm12033_vm7 = vcmp.eq.s32.totalorder %v7197_v14, %v8371_v59  ;;  %vm12035_vm9 = vcmp.eq.s32.totalorder %v7257_v26, %v8791_v18 }
 0x490   :  { %6335 = vrsqrt.f32 %v2412_v32  ;;  %v2397_v8 = vmul.f32 0.0078125, %v2381_v40  ;;  %v2625_v32 = vpack.c.bf16 %v5436_v27, %v5428_v62  ;;  %v2624_v40 = vpack.c.bf16 %v5435_v9, %v5427_v4  ;;  %v12056_v27 = vld [vmem:[#allocation201_spill] sm:$0xff]  ;;  %v12057_v4 = vld [vmem:[#allocation202_spill] sm:$0xff] }
 0x491   :  { %v2362_v53 = vpop.xlane.xlu1 %2361  ;;  %vm12036_vm10 = vcmp.eq.s32.totalorder %v7277_v34, %v8791_v18  ;;  %vm12038_vm12 = vcmp.eq.s32.totalorder %v7277_v34, %v8371_v59  ;;  %v2618_v9 = vpack.c.bf16 %v12057_v4, %v12056_v27 }
 0x492   :  { %v6332_v55 = vpop.eup %6331  ;;  %v2413_v33 = vadd.f32 1e-06, %v2397_v8  ;;  %v2382_v20 = vsub.f32 %v2318_v63, %v2362_v53  ;;  %v5444_v63 = vsel %vm749_vm2, 1.0, %v11733_v44  ;;  %v5452_v8 = vsel %vm757_vm5, 1.0, %v11733_v44 }
 0x493   :  { %2472 = vperm.xlu0 %6283, %v6332_v55   ;;  %v5443_v53 = vsel %vm748_vm11, 1.0, %v11733_v44  ;;  %v5451_v55 = vsel %vm12030_vm15, 1.0, %v11733_v44  ;;  %vm12037_vm11 = vcmp.eq.s32.totalorder %v7257_v26, %v8371_v59  ;;  %vm12039_vm2 = vcmp.eq.s32.totalorder %v7325_v46, %v8791_v18 }
 0x494   :  { %6337 = vrsqrt.f32 %v2413_v33  ;;  %v2398_v47 = vmul.f32 0.0078125, %v2382_v20  ;;  %v2633_v33 = vpack.c.bf16 %v5452_v8, %v5444_v63  ;;  %v2632_v20 = vpack.c.bf16 %v5451_v55, %v5443_v53  ;;  %v12060_v8 = vld [vmem:[#allocation205_spill] sm:$0xff]  ;;  %v12061_v53 = vld [vmem:[#allocation206_spill] sm:$0xff] }
 0x495   :  { %v2364_v56 = vpop.xlane.xlu0 %2363  ;;  %v2634_v55 = vpack.c.bf16 %v12061_v53, %v12060_v8  ;;  %v12086_v53 = vld [vmem:[#allocation215_spill] sm:$0xff] }
 0x496   :  { %v6334_v13 = vpop.eup %6333  ;;  %v2414_v38 = vadd.f32 1e-06, %v2398_v47  ;;  %v2383_v31 = vsub.f32 %v2319_v42, %v2364_v56  ;;  %v5460_v42 = vsel %vm12031_vm0, 1.0, %v11733_v44  ;;  %v5468_v47 = vsel %vm12032_vm14, 1.0, %v11733_v44 }
 0x497   :  { %2477 = vperm.xlu1 %6284, %v6334_v13   ;;  %v5459_v56 = vsel %vm12033_vm7, 1.0, %v11733_v44  ;;  %v5467_v13 = vsel %vm12034_vm8, 1.0, %v11733_v44 }
 0x498   :  { %6339 = vrsqrt.f32 %v2414_v38  ;;  %v2399_v58 = vmul.f32 0.0078125, %v2383_v31  ;;  %v2641_v38 = vpack.c.bf16 %v5468_v47, %v5460_v42  ;;  %v2640_v31 = vpack.c.bf16 %v5467_v13, %v5459_v56  ;;  %v12065_v47 = vld [vmem:[#allocation207_spill] sm:$0xff]  ;;  %v12066_v56 = vld [vmem:[#allocation208_spill] sm:$0xff] }
 0x499   :  { %v2366_v39 = vpop.xlane.xlu1 %2365  ;;  %v2642_v13 = vpack.c.bf16 %v12066_v56, %v12065_v47 }
 0x49a   :  { %v6336_v57 = vpop.eup %6335  ;;  %v2415_v7 = vadd.f32 1e-06, %v2399_v58  ;;  %v2384_v51 = vsub.f32 %v2320_v30, %v2366_v39  ;;  %v5476_v30 = vsel %vm12035_vm9, 1.0, %v11733_v44  ;;  %v5484_v58 = vsel %vm12036_vm10, 1.0, %v11733_v44 }
 0x49b   :  { %2482 = vperm.xlu0 %6283, %v6336_v57   ;;  %v5475_v39 = vsel %vm12037_vm11, 1.0, %v11733_v44  ;;  %v5483_v57 = vsel %vm12038_vm12, 1.0, %v11733_v44 }
 0x49c   :  { %6341 = vrsqrt.f32 %v2415_v7  ;;  %v2400_v12 = vmul.f32 0.0078125, %v2384_v51  ;;  %v2649_v7 = vpack.c.bf16 %v5484_v58, %v5476_v30  ;;  %v2648_v51 = vpack.c.bf16 %v5483_v57, %v5475_v39  ;;  %v12067_v30 = vld [vmem:[#allocation98_spill] sm:$0xff]  ;;  %v12068_v58 = vld [vmem:[#allocation97_spill] sm:$0xff] }
 0x49d   :  { %v2368_v29 = vpop.xlane.xlu0 %2367  ;;  %v12069_v39 = vpack.c.bf16 %v12067_v30, %v12068_v58 }
 0x49e   :  { %v6338_v25 = vpop.eup %6337  ;;  %v2416_v15 = vadd.f32 1e-06, %v2400_v12  ;;  %v2385_v17 = vsub.f32 %v2321_v60, %v2368_v29  ;;  %v5492_v60 = vsel %vm12039_vm2, 1.0, %v11733_v44  ;;  %v12040_v12 = vld [vmem:[#allocation108_spill] sm:$0xff] }
 0x49f   :  { %2487 = vperm.xlu1 %6284, %v6338_v25   ;;  %vm12041_vm5 = vcmp.eq.s32.totalorder %v12040_v12, %v8791_v18  ;;  %v5491_v25 = vsel %vm12042_vm6, 1.0, %v11733_v44  ;;  %vm12043_vm13 = vcmp.eq.s32.totalorder %v12040_v12, %v8371_v59 }
 0x4a0   :  { %6343 = vrsqrt.f32 %v2416_v15  ;;  %v2401_v1 = vmul.f32 0.0078125, %v2385_v17  ;;  %v5500_v29 = vsel %vm12041_vm5, 1.0, %v11733_v44  ;;  %v5499_v15 = vsel %vm12043_vm13, 1.0, %v11733_v44 }
 0x4a1   :  { %v2370_v41 = vpop.xlane.xlu1 %2369  ;;  %v2657_v17 = vpack.c.bf16 %v5500_v29, %v5492_v60 }
 0x4a2   :  { %v6340_v37 = vpop.eup %6339  ;;  %v2417_v50 = vadd.f32 1e-06, %v2401_v1  ;;  %v2386_v3 = vsub.f32 %v2322_v48, %v2370_v41  ;;  %v2656_v48 = vpack.c.bf16 %v5499_v15, %v5491_v25  ;;  %v12044_v1 = vld [vmem:[#allocation114_spill] sm:$0xff]  ;;  %v12072_v15 = vld [vmem:[#allocation103_spill] sm:$0xff] }
 0x4a3   :  { %2492 = vperm.xlu0 %6283, %v6340_v37   ;;  %vm12045_vm15 = vcmp.eq.s32.totalorder %v12044_v1, %v8791_v18  ;;  %v12046_v37 = vld [vmem:[#allocation116_spill] sm:$0xff]  ;;  %vm12047_vm0 = vcmp.eq.s32.totalorder %v12044_v1, %v8371_v59 }
 0x4a4   :  { %6345 = vrsqrt.f32 %v2417_v50  ;;  %v2402_v10 = vmul.f32 0.0078125, %v2386_v3  ;;  %v5508_v41 = vsel %vm12045_vm15, 1.0, %v11733_v44  ;;  %v5516_v50 = vsel %vm821_vm1, 1.0, %v11733_v44 }
 0x4a5   :  { %v5507_v3 = vsel %vm12047_vm0, 1.0, %v11733_v44  ;;  %vm12048_vm14 = vcmp.eq.s32.totalorder %v12046_v37, %v8371_v59 }
 0x4a6   :  { %v6342_v5 = vpop.eup %6341  ;;  %v2418_v52 = vadd.f32 1e-06, %v2402_v10  ;;  %v5515_v10 = vsel %vm12048_vm14, 1.0, %v11733_v44 }
 0x4a7   :  { %2497 = vperm.xlu1 %6284, %v6342_v5   ;;  %v2665_v5 = vpack.c.bf16 %v5516_v50, %v5508_v41 }
 0x4a8   :  { %6347 = vrsqrt.f32 %v2418_v52  ;;  %v2664_v52 = vpack.c.bf16 %v5515_v10, %v5507_v3  ;;  %v12075_v3 = vld [vmem:[#allocation211_spill] sm:$0xff]  ;;  %v12076_v10 = vld [vmem:[#allocation212_spill] sm:$0xff] }
 0x4aa   :  { %v6344_v11 = vpop.eup %6343 }
 0x4ab   :  { %2502 = vperm.xlu0 %6283, %v6344_v11   ;;  %v12049_v11 = vld [vmem:[#allocation122_spill] sm:$0xff] }
 0x4ac   :  { %vm12051_vm1 = vcmp.eq.s32.totalorder %v12049_v11, %v8371_v59 }
 0x4ad   :  { %v5523_v43 = vsel %vm12051_vm1, 1.0, %v11733_v44 }
 0x4ae   :  { %v6346_v61 = vpop.eup %6345 }
 0x4af   :  { %2507 = vperm.xlu1 %6284, %v6346_v61   ;;  %v5524_v61 = vsel %vm829_vm3, 1.0, %v11733_v44 }
 0x4b0   :  { %v2673_v36 = vpack.c.bf16 %v5532_v0, %v5524_v61  ;;  %v12077_v0 = vld [vmem:[#allocation107_spill] sm:$0xff] }
 0x4b2   :  { %v6348_v2 = vpop.eup %6347 }
 0x4b3   :  { %2512 = vperm.xlu0 %6283, %v6348_v2   ;;  %v12050_v2 = vld [vmem:[#allocation124_spill] sm:$0xff] }
 0x4b4   :  { %vm12052_vm7 = vcmp.eq.s32.totalorder %v12050_v2, %v8371_v59 }
 0x4b5   :  { %v5531_v6 = vsel %vm12052_vm7, 1.0, %v11733_v44 }
 0x4d1   :  { %2771 = vxpose.xlu0.c.b16.start [1/8] %v2617_v22, 128  ;;  %v2672_v22 = vpack.c.bf16 %v5531_v6, %v5523_v43  ;;  %v12078_v43 = vld [vmem:[#allocation105_spill] sm:$0xff] }
 0x4d2   :  { %2755 = vxpose.xlu1.c.b16.start [1/8] %v2616_v54, 128  ;;  %v12053_v54 = vld [vmem:[#allocation89_spill] sm:$0xff]  ;;  %v12079_v6 = vpack.c.bf16 %v12077_v0, %v12078_v43  ;;  %v12101_v43 = vld [vmem:[#allocation222_spill] sm:$0xff] }
 0x4d3   :  { %vm12054_vm3 = vcmp.eq.s32.totalorder %v6886_v35, %v12053_v54  ;;  %vm12055_vm4 = vcmp.eq.s32.totalorder %v7453_v49, %v12053_v54  ;;  %v12080_v54 = vld [vmem:[#allocation218_spill] sm:$0xff] }
 0x4d4   :  { %v5406_v18 = vsel %vm12054_vm3, 1.0, %v11733_v44  ;;  %v5414_v62 = vsel %vm12055_vm4, 1.0, %v11733_v44 }
 0x4d5   :  { %2772 = vxpose.xlu0.c.b16.cont [2/8] %v2625_v32, 128  ;;  %v2611_v59 = vpack.c.bf16 %v5414_v62, %v5406_v18  ;;  %v12058_v32 = vld [vmem:[#allocation203_spill] sm:$0xff]  ;;  %v12081_v18 = vld [vmem:[#allocation213_spill] sm:$0xff]  ;;  %v12082_v62 = vld [vmem:[#allocation214_spill] sm:$0xff] }
 0x4d6   :  { %2756 = vxpose.xlu1.c.b16.cont [2/8] %v2624_v40, 128  ;;  %v12059_v40 = vld [vmem:[#allocation204_spill] sm:$0xff]  ;;  %v2666_v27 = vpack.c.bf16 %v12082_v62, %v12081_v18  ;;  %v12103_v18 = vld [vmem:[#allocation90_spill] sm:$0xff] }
 0x4d7   :  { %v2626_v63 = vpack.c.bf16 %v12059_v40, %v12058_v32  ;;  %v12084_v32 = vld [vmem:[#allocation110_spill] sm:$0xff] }
 0x4d9   :  { %2773 = vxpose.xlu0.c.b16.cont [3/8] %v2633_v33, 128  ;;  %v12062_v33 = vld [vmem:[#allocation93_spill] sm:$0xff] }
 0x4da   :  { %2757 = vxpose.xlu1.c.b16.cont [3/8] %v2632_v20, 128  ;;  %v12063_v20 = vld [vmem:[#allocation92_spill] sm:$0xff] }
 0x4db   :  { %v12064_v42 = vpack.c.bf16 %v12062_v33, %v12063_v20 }
 0x4dd   :  { %2774 = vxpose.xlu0.c.b16.cont [4/8] %v2641_v38, 128 }
 0x4de   :  { %2758 = vxpose.xlu1.c.b16.cont [4/8] %v2640_v31, 128 }
 0x4e1   :  { %2775 = vxpose.xlu0.c.b16.cont [5/8] %v2649_v7, 128  ;;  %v12070_v7 = vld [vmem:[#allocation209_spill] sm:$0xff] }
 0x4e2   :  { %2759 = vxpose.xlu1.c.b16.cont [5/8] %v2648_v51, 128  ;;  %v12071_v51 = vld [vmem:[#allocation210_spill] sm:$0xff] }
 0x4e3   :  { %v2650_v60 = vpack.c.bf16 %v12071_v51, %v12070_v7  ;;  %v12094_v7 = vld [vmem:[#allocation220_spill] sm:$0xff] }
 0x4e5   :  { %2776 = vxpose.xlu0.c.b16.cont [6/8] %v2657_v17, 128  ;;  %v12073_v17 = vld [vmem:[#allocation101_spill] sm:$0xff] }
 0x4e6   :  { %2760 = vxpose.xlu1.c.b16.cont [6/8] %v2656_v48, 128  ;;  %v12074_v48 = vpack.c.bf16 %v12072_v15, %v12073_v17  ;;  %v12096_v15 = vld [vmem:[#allocation127_spill] sm:$0xff] }
 0x4e9   :  { %2777 = vxpose.xlu0.c.b16.cont [7/8] %v2665_v5, 128  ;;  %v2658_v5 = vpack.c.bf16 %v12076_v10, %v12075_v3 }
 0x4ea   :  { %2761 = vxpose.xlu1.c.b16.cont [7/8] %v2664_v52, 128 }
 0x4ed   :  { %2778 = vxpose.xlu0.c.b16.end [8/8] %v2673_v36, 128 }
 0x4ee   :  { %2762 = vxpose.xlu1.c.b16.end [8/8] %v2672_v22, 128 }
 0x4f1   :  { %2787 = vxpose.xlu0.c.b16.start [1/8] (narrow) %v2618_v9, 112 }
 0x4f2   :  { %2675 = vxpose.xlu1.c.b16.start [1/8] %v2611_v59, 128  ;;  %v12083_v59 = vld [vmem:[#allocation113_spill] sm:$0xff] }
 0x4f3   :  { %v12085_v40 = vpack.c.bf16 %v12083_v59, %v12084_v32 }
 0x4f5   :  { %2788 = vxpose.xlu0.c.b16.cont [2/8] (narrow) %v2626_v63, 112 }
 0x4f6   :  { %2676 = vxpose.xlu1.c.b16.cont [2/8] %v12064_v42, 128  ;;  %v2438_v38 = vpop.permute.xlu0 %2437  ;;  %v12088_v42 = vld [vmem:[#allocation70_spill] sm:$0xff] }
 0x4f7   :  { %vm12089_vm8 = vcmp.eq.s32.totalorder %v6886_v35, %v12088_v42  ;;  %vm12090_vm9 = vcmp.eq.s32.totalorder %v7453_v49, %v12088_v42  ;;  %v12112_v42 = vld [vmem:[#allocation162_spill] sm:$0xff] }
 0x4f8   :  { %v5407_v47 = vsel %vm12089_vm8, 1.0, %v11733_v44  ;;  %v5415_v56 = vsel %vm12090_vm9, 1.0, %v11733_v44 }
 0x4f9   :  { %2789 = vxpose.xlu0.c.b16.cont [3/8] (narrow) %v2634_v55, 112  ;;  %v12087_v55 = vld [vmem:[#allocation216_spill] sm:$0xff]  ;;  %v2612_v51 = vpack.c.bf16 %v5415_v56, %v5407_v47 }
 0x4fa   :  { %v2443_v31 = vpop.permute.xlu1 %2442  ;;  %2677 = vxpose.xlu1.c.b16.cont [3/8] %v12069_v39, 128  ;;  %v2674_v33 = vpack.c.bf16 %v12087_v55, %v12086_v53 }
 0x4fb   :  { %v9258_v57 = vpack.c.bf16 %v2443_v31, %v2438_v38 }
 0x4fd   :  { %v2534_v29 = vunpack.c.h.bf16 %v9258_v57  ;;  %v2532_v25 = vunpack.c.l.bf16 %v9258_v57  ;;  %2790 = vxpose.xlu0.c.b16.cont [4/8] (narrow) %v2642_v13, 112 }
 0x4fe   :  { %2678 = vxpose.xlu1.c.b16.cont [4/8] %v12074_v48, 128  ;;  %v2448_v61 = vpop.permute.xlu1 %2447 }
 0x4ff   :  { %v2566_v41 = vsub.f32 %v2443_v31, %v2534_v29  ;;  %v2564_v50 = vsub.f32 %v2438_v38, %v2532_v25  ;;  %v12091_v38 = vld [vmem:[#allocation121_spill] sm:$0xff]  ;;  %v12092_v31 = vld [vmem:[#allocation118_spill] sm:$0xff] }
 0x500   :  { %v12093_v30 = vpack.c.bf16 %v12091_v38, %v12092_v31  ;;  %v12095_v25 = vld [vmem:[#allocation129_spill] sm:$0xff] }
 0x501   :  { %v2596_v52 = vpack.c.bf16 %v2566_v41, %v2564_v50  ;;  %2791 = vxpose.xlu0.c.b16.cont [5/8] (narrow) %v2650_v60, 112  ;;  %v12097_v17 = vpack.c.bf16 %v12095_v25, %v12096_v15 }
 0x502   :  { %2679 = vxpose.xlu1.c.b16.cont [5/8] %v12079_v6, 128  ;;  %v2453_v36 = vpop.permute.xlu0 %2452 }
 0x503   :  { %v9272_v22 = vpack.c.bf16 %v2453_v36, %v2448_v61  ;;  %2803 = vmatprep.subr.bf16.mxu0 %v2596_v52  ;;  %5912 = vmatprep.subr.bf16.mxu1 %v2596_v52  ;;  %v12099_v52 = vld [vmem:[#allocation150_spill] sm:$0xff] }
 0x504   :  { %2804 = vmatpush1.bf16.msra.mxu0 %v12080_v54  ;;  %5920 = vmatpush1.bf16.msra.mxu1 %v12080_v54  ;;  %v12102_v54 = vld [vmem:[#allocation91_spill] sm:$0xff] }
 0x505   :  { %v2538_v4 = vunpack.c.h.bf16 %v9272_v22  ;;  %v2536_v9 = vunpack.c.l.bf16 %v9272_v22  ;;  %2792 = vxpose.xlu0.c.b16.cont [6/8] (narrow) %v2658_v5, 112  ;;  %v12098_v5 = vld [vmem:[#allocation151_spill] sm:$0xff]  ;;  %v12104_v62 = vpack.c.bf16 %v12102_v54, %v12103_v18  ;;  %v12128_v18 = vld [vmem:[#allocation112_spill] sm:$0xff] }
 0x506   :  { %2680 = vxpose.xlu1.c.b16.cont [6/8] %v12085_v40, 128  ;;  %v2458_v13 = vpop.permute.xlu1 %2457 }
 0x507   :  { %v2570_v63 = vsub.f32 %v2453_v36, %v2538_v4  ;;  %v2568_v8 = vsub.f32 %v2448_v61, %v2536_v9  ;;  %v12100_v61 = vpack.c.bf16 %v12098_v5, %v12099_v52  ;;  %v12106_v4 = vld [vmem:[#allocation156_spill] sm:$0xff]  ;;  %v12124_v5 = vld [vmem:[#allocation175_spill] sm:$0xff]  ;;  %v12125_v52 = vld [vmem:[#allocation174_spill] sm:$0xff] }
 0x509   :  { %v2598_v20 = vpack.c.bf16 %v2570_v63, %v2568_v8  ;;  %2793 = vxpose.xlu0.c.b16.cont [7/8] (narrow) %v2666_v27, 112  ;;  %v12105_v27 = vld [vmem:[#allocation158_spill] sm:$0xff]  ;;  %v12108_v63 = vld [vmem:[#allocation95_spill] sm:$0xff] }
 0x50a   :  { %2681 = vxpose.xlu1.c.b16.cont [7/8] %v12093_v30, 128  ;;  %v2463_v58 = vpop.permute.xlu0 %2462  ;;  %v12107_v9 = vpack.c.bf16 %v12105_v27, %v12106_v4  ;;  %v12109_v8 = vld [vmem:[#allocation94_spill] sm:$0xff]  ;;  %v12131_v4 = vld [vmem:[#allocation181_spill] sm:$0xff] }
 0x50b   :  { %v9296_v39 = vpack.c.bf16 %v2463_v58, %v2458_v13  ;;  %2805 = vmatprep.subr.bf16.mxu0 %v2598_v20  ;;  %5913 = vmatprep.subr.bf16.mxu1 %v2598_v20  ;;  %v12110_v53 = vpack.c.bf16 %v12108_v63, %v12109_v8  ;;  %v12111_v20 = vld [vmem:[#allocation164_spill] sm:$0xff]  ;;  %v12115_v30 = vld [vmem:[#allocation102_spill] sm:$0xff] }
 0x50c   :  { %2806 = vmatpush1.bf16.msra.mxu0 %v12094_v7  ;;  %5921 = vmatpush1.bf16.msra.mxu1 %v12094_v7  ;;  %v12113_v47 = vpack.c.bf16 %v12111_v20, %v12112_v42  ;;  %v12134_v8 = vld [vmem:[#allocation120_spill] sm:$0xff]  ;;  %v12137_v42 = vld [vmem:[#allocation187_spill] sm:$0xff] }
 0x50d   :  { %v2542_v60 = vunpack.c.h.bf16 %v9296_v39  ;;  %v2540_v29 = vunpack.c.l.bf16 %v9296_v39  ;;  %2794 = vxpose.xlu0.c.b16.end [8/8] (narrow) %v2674_v33, 112 }
 0x50e   :  { %2682 = vxpose.xlu1.c.b16.end [8/8] %v12097_v17, 128  ;;  %v2468_v3 = vpop.permute.xlu1 %2467 }
 0x50f   :  { %v2574_v48 = vsub.f32 %v2463_v58, %v2542_v60  ;;  %v2572_v41 = vsub.f32 %v2458_v13, %v2540_v29  ;;  %v12114_v13 = vld [vmem:[#allocation224_spill] sm:$0xff] }
 0x510   :  { %v12116_v58 = vld [vmem:[#allocation100_spill] sm:$0xff] }
 0x511   :  { %v2600_v50 = vpack.c.bf16 %v2574_v48, %v2572_v41  ;;  %2691 = vxpose.xlu0.c.b16.start [1/8] %v2612_v51, 128  ;;  %v12117_v7 = vpack.c.bf16 %v12115_v30, %v12116_v58  ;;  %v12118_v51 = vld [vmem:[#allocation170_spill] sm:$0xff]  ;;  %v12119_v60 = vld [vmem:[#allocation168_spill] sm:$0xff] }
 0x512   :  { %v2473_v10 = vpop.permute.xlu0 %2472  ;;  %2707 = vxpose.xlu1.c.b16.start [1/8] %v12100_v61, 128  ;;  %v12120_v29 = vpack.c.bf16 %v12118_v51, %v12119_v60  ;;  %v12121_v48 = vld [vmem:[#allocation106_spill] sm:$0xff]  ;;  %v12122_v41 = vld [vmem:[#allocation104_spill] sm:$0xff]  ;;  %v12126_v61 = vpack.c.bf16 %v12124_v5, %v12125_v52  ;;  %v12152_v52 = vld [vmem:[#allocation149_spill] sm:$0xff] }
 0x513   :  { %v9308_v0 = vpack.c.bf16 %v2473_v10, %v2468_v3  ;;  %2807 = vmatprep.subr.bf16.mxu0 %v2600_v50  ;;  %5914 = vmatprep.subr.bf16.mxu1 %v2600_v50  ;;  %v12123_v50 = vpack.c.bf16 %v12121_v48, %v12122_v41 }
 0x514   :  { %2808 = vmatpush1.bf16.msra.mxu0 %v12101_v43  ;;  %5922 = vmatpush1.bf16.msra.mxu1 %v12101_v43 }
 0x515   :  { %v2546_v6 = vunpack.c.h.bf16 %v9308_v0  ;;  %v2544_v36 = vunpack.c.l.bf16 %v9308_v0  ;;  %2692 = vxpose.xlu0.c.b16.cont [2/8] %v12104_v62, 128  ;;  %v12129_v62 = vld [vmem:[#allocation109_spill] sm:$0xff] }
 0x516   :  { %2708 = vxpose.xlu1.c.b16.cont [2/8] %v12107_v9, 128  ;;  %v2478_v55 = vpop.permute.xlu1 %2477  ;;  %v12130_v27 = vpack.c.bf16 %v12128_v18, %v12129_v62  ;;  %v12132_v9 = vld [vmem:[#allocation180_spill] sm:$0xff] }
 0x517   :  { %v2578_v59 = vsub.f32 %v2473_v10, %v2546_v6  ;;  %v2576_v32 = vsub.f32 %v2468_v3, %v2544_v36  ;;  %v12127_v6 = vld [vmem:[#allocation226_spill] sm:$0xff] }
 0x519   :  { %v2602_v40 = vpack.c.bf16 %v2578_v59, %v2576_v32  ;;  %2693 = vxpose.xlu0.c.b16.cont [3/8] %v12110_v53, 128  ;;  %v12133_v59 = vpack.c.bf16 %v12131_v4, %v12132_v9  ;;  %v12135_v53 = vld [vmem:[#allocation117_spill] sm:$0xff] }
 0x51a   :  { %v2483_v33 = vpop.permute.xlu0 %2482  ;;  %2709 = vxpose.xlu1.c.b16.cont [3/8] %v12113_v47, 128  ;;  %v12138_v47 = vld [vmem:[#allocation184_spill] sm:$0xff]  ;;  %v12157_v9 = vld [vmem:[#allocation157_spill] sm:$0xff] }
 0x51b   :  { %v9326_v56 = vpack.c.bf16 %v2483_v33, %v2478_v55  ;;  %2809 = vmatprep.subr.bf16.mxu0 %v2602_v40  ;;  %5915 = vmatprep.subr.bf16.mxu1 %v2602_v40 }
 0x51c   :  { %2810 = vmatpush1.bf16.msra.mxu0 %v12114_v13  ;;  %5923 = vmatpush1.bf16.msra.mxu1 %v12114_v13  ;;  %v12139_v13 = vpack.c.bf16 %v12137_v42, %v12138_v47 }
 0x51d   :  { %v2550_v38 = vunpack.c.h.bf16 %v9326_v56  ;;  %v2548_v31 = vunpack.c.l.bf16 %v9326_v56  ;;  %2694 = vxpose.xlu0.c.b16.cont [4/8] %v12117_v7, 128  ;;  %v12143_v7 = vld [vmem:[#allocation228_spill] sm:$0xff] }
 0x51e   :  { %2710 = vxpose.xlu1.c.b16.cont [4/8] %v12120_v29, 128  ;;  %v2488_v3 = vpop.permute.xlu1 %2487  ;;  %v12144_v29 = vld [vmem:[#allocation128_spill] sm:$0xff] }
 0x51f   :  { %v2582_v25 = vsub.f32 %v2483_v33, %v2550_v38  ;;  %v2580_v15 = vsub.f32 %v2478_v55, %v2548_v31  ;;  %v12136_v55 = vpack.c.bf16 %v12134_v8, %v12135_v53  ;;  %v12140_v38 = vld [vmem:[#allocation200_spill] sm:$0xff] }
 0x520   :  { %vm12141_vm10 = vcmp.eq.s32.totalorder %v6886_v35, %v12140_v38  ;;  %vm12142_vm11 = vcmp.eq.s32.totalorder %v7453_v49, %v12140_v38  ;;  %v12145_v35 = vld [vmem:[#allocation126_spill] sm:$0xff]  ;;  %vm12150_vm12 = vcmp.eq.s32.totalorder %v7076_v24, %v12140_v38  ;;  %vm12151_vm2 = vcmp.eq.s32.totalorder %v7093_v16, %v12140_v38 }
 0x521   :  { %v2604_v17 = vpack.c.bf16 %v2582_v25, %v2580_v15  ;;  %2695 = vxpose.xlu0.c.b16.cont [5/8] %v12123_v50, 128  ;;  %v5410_v31 = vsel %vm12141_vm10, 1.0, %v11733_v44  ;;  %v5418_v30 = vsel %vm12142_vm11, 1.0, %v11733_v44  ;;  %v12146_v25 = vpack.c.bf16 %v12144_v29, %v12145_v35  ;;  %v12148_v49 = vld [vmem:[#allocation190_spill] sm:$0xff] }
 0x522   :  { %v2493_v10 = vpop.permute.xlu0 %2492  ;;  %2711 = vxpose.xlu1.c.b16.cont [5/8] %v12126_v61, 128  ;;  %v2615_v15 = vpack.c.bf16 %v5418_v30, %v5410_v31  ;;  %v5426_v41 = vsel %vm12150_vm12, 1.0, %v11733_v44  ;;  %v5434_v50 = vsel %vm12151_vm2, 1.0, %v11733_v44  ;;  %v12153_v61 = vld [vmem:[#allocation147_spill] sm:$0xff]  ;;  %vm12155_vm5 = vcmp.eq.s32.totalorder %v7131_v23, %v12140_v38  ;;  %v12158_v23 = vld [vmem:[#allocation154_spill] sm:$0xff]  ;;  %v12170_v31 = vld [vmem:[#allocation169_spill] sm:$0xff] }
 0x523   :  { %v9344_v43 = vpack.c.bf16 %v2493_v10, %v2488_v3  ;;  %2811 = vmatprep.subr.bf16.mxu0 %v2604_v17  ;;  %5916 = vmatprep.subr.bf16.mxu1 %v2604_v17  ;;  %v12147_v17 = vld [vmem:[#allocation192_spill] sm:$0xff]  ;;  %v5442_v24 = vsel %vm12155_vm5, 1.0, %v11733_v44  ;;  %vm12156_vm6 = vcmp.eq.s32.totalorder %v7156_v28, %v12140_v38  ;;  %vm12160_vm13 = vcmp.eq.s32.totalorder %v7197_v14, %v12140_v38 }
 0x524   :  { %2812 = vmatpush1.bf16.msra.mxu0 %v12127_v6  ;;  %5924 = vmatpush1.bf16.msra.mxu1 %v12127_v6  ;;  %v12149_v48 = vpack.c.bf16 %v12147_v17, %v12148_v49  ;;  %v12154_v6 = vpack.c.bf16 %v12152_v52, %v12153_v61  ;;  %v5450_v16 = vsel %vm12156_vm6, 1.0, %v11733_v44  ;;  %v5458_v28 = vsel %vm12160_vm13, 1.0, %v11733_v44  ;;  %v12182_v17 = vld [vmem:[#allocation178_spill] sm:$0xff]  ;;  %v12183_v49 = vld [vmem:[#allocation177_spill] sm:$0xff] }
 0x525   :  { %v2554_v36 = vunpack.c.h.bf16 %v9344_v43  ;;  %v2552_v54 = vunpack.c.l.bf16 %v9344_v43  ;;  %2696 = vxpose.xlu0.c.b16.cont [6/8] %v12130_v27, 128  ;;  %vm12161_vm15 = vcmp.eq.s32.totalorder %v7215_v45, %v12140_v38  ;;  %vm12166_vm0 = vcmp.eq.s32.totalorder %v7257_v26, %v12140_v38  ;;  %v12171_v26 = vld [vmem:[#allocation166_spill] sm:$0xff] }
 0x526   :  { %2712 = vxpose.xlu1.c.b16.cont [6/8] %v12133_v59, 128  ;;  %v2498_v33 = vpop.permute.xlu1 %2497  ;;  %v12159_v59 = vpack.c.bf16 %v12157_v9, %v12158_v23  ;;  %v5474_v14 = vsel %vm12166_vm0, 1.0, %v11733_v44  ;;  %vm12167_vm14 = vcmp.eq.s32.totalorder %v7277_v34, %v12140_v38  ;;  %v12172_v30 = vpack.c.bf16 %v12170_v31, %v12171_v26  ;;  %v12203_v9 = vld [vmem:[#allocation223_spill] sm:$0xff]  ;;  %v12205_v23 = vld [vmem:[#allocation225_spill] sm:$0xff] }
 0x527   :  { %v2586_v32 = vsub.f32 %v2493_v10, %v2554_v36  ;;  %v2584_v40 = vsub.f32 %v2488_v3, %v2552_v54  ;;  %v2623_v36 = vpack.c.bf16 %v5434_v50, %v5426_v41  ;;  %v5482_v45 = vsel %vm12167_vm14, 1.0, %v11733_v44 }
 0x528   :  { %vm12173_vm1 = vcmp.eq.s32.totalorder %v7325_v46, %v12140_v38  ;;  %vm12174_vm7 = vcmp.eq.s32.totalorder %v12040_v12, %v12140_v38  ;;  %vm12180_vm3 = vcmp.eq.s32.totalorder %v12044_v1, %v12140_v38  ;;  %vm12181_vm4 = vcmp.eq.s32.totalorder %v12046_v37, %v12140_v38 }
 0x529   :  { %v2606_v63 = vpack.c.bf16 %v2586_v32, %v2584_v40  ;;  %2697 = vxpose.xlu0.c.b16.cont [7/8] %v12136_v55, 128  ;;  %v2631_v32 = vpack.c.bf16 %v5450_v16, %v5442_v24  ;;  %v12163_v55 = vld [vmem:[#allocation163_spill] sm:$0xff]  ;;  %v5490_v34 = vsel %vm12173_vm1, 1.0, %v11733_v44  ;;  %v5506_v46 = vsel %vm12180_vm3, 1.0, %v11733_v44 }
 0x52a   :  { %v2503_v20 = vpop.permute.xlu0 %2502  ;;  %2713 = vxpose.xlu1.c.b16.cont [7/8] %v12139_v13, 128  ;;  %v5514_v12 = vsel %vm12181_vm4, 1.0, %v11733_v44  ;;  %vm12185_vm8 = vcmp.eq.s32.totalorder %v12049_v11, %v12140_v38  ;;  %vm12186_vm9 = vcmp.eq.s32.totalorder %v12050_v2, %v12140_v38  ;;  %v12192_v11 = vld [vmem:[#allocation191_spill] sm:$0xff]  ;;  %v12195_v2 = vld [vmem:[#allocation217_spill] sm:$0xff] }
 0x52b   :  { %v9370_v58 = vpack.c.bf16 %v2503_v20, %v2498_v33  ;;  %2813 = vmatprep.subr.bf16.mxu0 %v2606_v63  ;;  %5917 = vmatprep.subr.bf16.mxu1 %v2606_v63  ;;  %v2663_v41 = vpack.c.bf16 %v5514_v12, %v5506_v46  ;;  %v5522_v50 = vsel %vm12185_vm8, 1.0, %v11733_v44  ;;  %v5530_v1 = vsel %vm12186_vm9, 1.0, %v11733_v44  ;;  %v12199_v24 = vld [vmem:[#allocation219_spill] sm:$0xff] }
 0x52c   :  { %2814 = vmatpush1.bf16.msra.mxu0 %v12143_v7  ;;  %5925 = vmatpush1.bf16.msra.mxu1 %v12143_v7  ;;  %v2647_v7 = vpack.c.bf16 %v5482_v45, %v5474_v14  ;;  %v2671_v61 = vpack.c.bf16 %v5530_v1, %v5522_v50 }
 0x52d   :  { %v2558_v51 = vunpack.c.h.bf16 %v9370_v58  ;;  %v2556_v60 = vunpack.c.l.bf16 %v9370_v58  ;;  %2698 = vxpose.xlu0.c.b16.end [8/8] %v12146_v25, 128 }
 0x52e   :  { %2714 = vxpose.xlu1.c.b16.end [8/8] %v12149_v48, 128  ;;  %v2508_v54 = vpop.permute.xlu1 %2507  ;;  %v12184_v48 = vpack.c.bf16 %v12182_v17, %v12183_v49 }
 0x52f   :  { %v2590_v3 = vsub.f32 %v2503_v20, %v2558_v51  ;;  %v2588_v10 = vsub.f32 %v2498_v33, %v2556_v60  ;;  %v12164_v33 = vld [vmem:[#allocation161_spill] sm:$0xff] }
 0x530   :  { %v12165_v20 = vpack.c.bf16 %v12163_v55, %v12164_v33  ;;  %v12176_v60 = vld [vmem:[#allocation173_spill] sm:$0xff] }
 0x531   :  { %v2608_v5 = vpack.c.bf16 %v2590_v3, %v2588_v10  ;;  %2723 = vxpose.xlu0.c.b16.start [1/8] %v12154_v6, 128  ;;  %v12188_v10 = vld [vmem:[#allocation185_spill] sm:$0xff] }
 0x532   :  { %v2513_v18 = vpop.permute.xlu0 %2512  ;;  %2739 = vxpose.xlu1.c.b16.start [1/8] %v2615_v15, 128 }
 0x533   :  { %v9401_v62 = vpack.c.bf16 %v2513_v18, %v2508_v54  ;;  %2815 = vmatprep.subr.bf16.mxu0 %v2608_v5  ;;  %5918 = vmatprep.subr.bf16.mxu1 %v2608_v5  ;;  %v12189_v5 = vld [vmem:[#allocation183_spill] sm:$0xff] }
 0x534   :  { %2816 = vmatpush1.bf16.msra.mxu0 %v9066_v19  ;;  %5926 = vmatpush1.bf16.msra.mxu1 %v9066_v19  ;;  %v5466_v19 = vsel %vm12161_vm15, 1.0, %v11733_v44  ;;  %v12190_v52 = vpack.c.bf16 %v12188_v10, %v12189_v5 }
 0x535   :  { %v2562_v27 = vunpack.c.h.bf16 %v9401_v62  ;;  %v2560_v4 = vunpack.c.l.bf16 %v9401_v62  ;;  %2724 = vxpose.xlu0.c.b16.cont [2/8] %v12159_v59, 128  ;;  %v2639_v42 = vpack.c.bf16 %v5466_v19, %v5458_v28 }
 0x536   :  { %2740 = vxpose.xlu1.c.b16.cont [2/8] %v2623_v36, 128  ;;  %v12193_v36 = vld [vmem:[#allocation189_spill] sm:$0xff] }
 0x537   :  { %v2594_v40 = vsub.f32 %v2513_v18, %v2562_v27  ;;  %v2592_v63 = vsub.f32 %v2508_v54, %v2560_v4  ;;  %v9435_v13 = vpop.trf.xlu0  ;;  %v12194_v54 = vpack.c.bf16 %v12192_v11, %v12193_v36  ;;  %v12202_v4 = vld [vmem:[#allocation221_spill] sm:$0xff] }
 0x538   :  { %v9418_v8 = vpop.trf.xlu1  ;;  %12169 = vst [vmem:[#allocation116_spill] sm:$0xff] %v9435_v13 }
 0x539   :  { %12162 = vst [vmem:[#allocation108_spill] sm:$0xff] %v9418_v8  ;;  %v2610_v53 = vpack.c.bf16 %v2594_v40, %v2592_v63  ;;  %2725 = vxpose.xlu0.c.b16.cont [3/8] %v12165_v20, 128 }
 0x53a   :  { %2741 = vxpose.xlu1.c.b16.cont [3/8] %v2631_v32, 128  ;;  %v12207_v32 = vld [vmem:[#allocation227_spill] sm:$0xff] }
 0x53b   :  { %2817 = vmatprep.subr.bf16.mxu0 %v2610_v53  ;;  %5919 = vmatprep.subr.bf16.mxu1 %v2610_v53  ;;  %v9454_v25 = vpop.trf.xlu0 }
 0x53c   :  { %v9431_v47 = vpop.trf.xlu1  ;;  %2818 = vmatpush1.bf16.msra.mxu0 %v9074_v21  ;;  %5927 = vmatpush1.bf16.msra.mxu1 %v9074_v21  ;;  %v5498_v21 = vsel %vm12174_vm7, 1.0, %v11733_v44  ;;  %12179 = vst [vmem:[#allocation124_spill] sm:$0xff] %v9454_v25  ;;  %v12196_v44 = vmov 0  }
 0x53d   :  { %12168 = vst [vmem:[#allocation114_spill] sm:$0xff] %v9431_v47  ;;  %3464 = vmatprep.subr.bf16.mxu1 %v9258_v57  ;;  %2726 = vxpose.xlu0.c.b16.cont [4/8] %v12172_v30, 128  ;;  %v12177_v57 = vld [vmem:[#allocation172_spill] sm:$0xff]  ;;  %v2655_v35 = vpack.c.bf16 %v5498_v21, %v5490_v34 }
 0x53e   :  { %2742 = vxpose.xlu1.c.b16.cont [4/8] %v2639_v42, 128  ;;  %v12178_v29 = vpack.c.bf16 %v12176_v60, %v12177_v57 }
 0x53f   :  { %v9479_v3 = vpop.trf.xlu0 }
 0x540   :  { %v9449_v51 = vpop.trf.xlu1  ;;  %12187 = vst [vmem:[#allocation89_spill] sm:$0xff] %v9479_v3 }
 0x541   :  { %12175 = vst [vmem:[#allocation122_spill] sm:$0xff] %v9449_v51  ;;  %2727 = vxpose.xlu0.c.b16.cont [5/8] %v12178_v29, 128 }
 0x542   :  { %2743 = vxpose.xlu1.c.b16.cont [5/8] %v2647_v7, 128 }
 0x543   :  { %v9492_v38 = vpop.trf.xlu0 }
 0x544   :  { %v9464_v15 = vpop.trf.xlu1  ;;  %12197 = vst [vmem:[#allocation202_spill] sm:$0xff] %v9492_v38 }
 0x545   :  { %2728 = vxpose.xlu0.c.b16.cont [6/8] %v12184_v48, 128 }
 0x546   :  { %2744 = vxpose.xlu1.c.b16.cont [6/8] %v2655_v35, 128 }
 0x547   :  { %v9501_v27 = vpop.trf.xlu0 }
 0x548   :  { %v9477_v37 = vpop.trf.xlu1  ;;  %12201 = vst [vmem:[#allocation205_spill] sm:$0xff] %v9501_v27 }
 0x549   :  { %2729 = vxpose.xlu0.c.b16.cont [7/8] %v12190_v52, 128 }
 0x54a   :  { %2745 = vxpose.xlu1.c.b16.cont [7/8] %v2663_v41, 128 }
 0x54c   :  { %v9484_v6 = vpop.trf.xlu1 }
 0x54d   :  { %12191 = vst [vmem:[#allocation201_spill] sm:$0xff] %v9484_v6  ;;  %3286 = vmatmul.mubr.bf16.vlgmr.msra.gmra.mrb[0].mxu1 %v9484_v6  ;;  %2730 = vxpose.xlu0.c.b16.end [8/8] %v12194_v54, 128 }
 0x54e   :  { %3465 = vmatpush1.bf16.msra.mxu1 %v12195_v2  ;;  %3295 = vmatprep.mubr.bf16.mxu1 %v12196_v44 }
 0x54f   :  { %3466 = vmatprep.subr.bf16.mxu1 %v9272_v22  ;;  %2746 = vxpose.xlu1.c.b16.end [8/8] %v2671_v61, 128 }
 0x550   :  { %v9495_v18 = vpop.trf.xlu1 }
 0x551   :  { %12198 = vst [vmem:[#allocation203_spill] sm:$0xff] %v9495_v18 }
 0x552   :  { %3467 = vmatpush1.bf16.msra.mxu1 %v12199_v24 }
 0x553   :  { %3468 = vmatprep.subr.bf16.mxu1 %v9296_v39  ;;  %v9512_v39 = vpop.trf.xlu0 }
 0x554   :  { %v9499_v16 = vpop.trf.xlu1  ;;  %12204 = vst [vmem:[#allocation206_spill] sm:$0xff] %v9512_v39 }
 0x555   :  { %12200 = vst [vmem:[#allocation204_spill] sm:$0xff] %v9499_v16  ;;  %3296 = vmatmul.mubr.bf16.gmra.mrb[4].mxu1 %v9495_v18 }
 0x556   :  { %3469 = vmatpush1.bf16.msra.mxu1 %v12202_v4  ;;  %3305 = vmatprep.mubr.bf16.mxu1 %v12196_v44 }
 0x557   :  { %3470 = vmatprep.subr.bf16.mxu1 %v9308_v0  ;;  %v9521_v0 = vpop.trf.xlu0 }
 0x558   :  { %v9507_v22 = vpop.trf.xlu1  ;;  %12206 = vst [vmem:[#allocation93_spill] sm:$0xff] %v9521_v0 }
 0x559   :  { %2836 = vmatmul.mubr.bf16.vlgmr.msra.gmra.mrb[32].mxu0 %v9507_v22 }
 0x55a   :  { %3471 = vmatpush1.bf16.msra.mxu1 %v12203_v9  ;;  %2845 = vmatprep.mubr.bf16.mxu0 %v12196_v44 }
 0x55b   :  { %3472 = vmatprep.subr.bf16.mxu1 %v9326_v56  ;;  %v12208_v56 = vld [vmem:[#allocation229_spill] sm:$0xff]  ;;  %v9532_v19 = vpop.trf.xlu0 }
 0x55c   :  { %v9517_v59 = vpop.trf.xlu1  ;;  %12209 = vst [vmem:[#allocation92_spill] sm:$0xff] %v9532_v19 }
 0x55d   :  { %3306 = vmatmul.mubr.bf16.gmra.mrb[8].mxu1 %v9499_v16 }
 0x55e   :  { %3473 = vmatpush1.bf16.msra.mxu1 %v12205_v23  ;;  %3315 = vmatprep.mubr.bf16.mxu1 %v12196_v44 }
 0x55f   :  { %3474 = vmatprep.subr.bf16.mxu1 %v9344_v43  ;;  %v12210_v43 = vld [vmem:[#allocation230_spill] sm:$0xff]  ;;  %v9538_v40 = vpop.trf.xlu0 }
 0x560   :  { %v9529_v28 = vpop.trf.xlu1  ;;  %12211 = vst [vmem:[#allocation207_spill] sm:$0xff] %v9538_v40 }
 0x561   :  { %2846 = vmatmul.mubr.bf16.gmra.mrb[36].mxu0 %v9517_v59 }
 0x562   :  { %3475 = vmatpush1.bf16.msra.mxu1 %v12207_v32  ;;  %2855 = vmatprep.mubr.bf16.mxu0 %v12196_v44 }
 0x563   :  { %3476 = vmatprep.subr.bf16.mxu1 %v9370_v58  ;;  %v9546_v63 = vpop.trf.xlu0 }
 0x564   :  { %v9541_v58 = vpop.trf.xlu1  ;;  %12212 = vst [vmem:[#allocation208_spill] sm:$0xff] %v9546_v63 }
 0x565   :  { %3316 = vmatmul.mubr.bf16.gmra.mrb[12].mxu1 %v9435_v13 }
 0x566   :  { %3477 = vmatpush1.bf16.msra.mxu1 %v12208_v56  ;;  %3325 = vmatprep.mubr.bf16.mxu1 %v12196_v44 }
 0x567   :  { %3478 = vmatprep.subr.bf16.mxu1 %v9401_v62  ;;  %v9552_v53 = vpop.trf.xlu0 }
 0x568   :  { %v9549_v62 = vpop.trf.xlu1  ;;  %12213 = vst [vmem:[#allocation98_spill] sm:$0xff] %v9552_v53 }
 0x569   :  { %2856 = vmatmul.mubr.bf16.gmra.mrb[40].mxu0 %v9529_v28 }
 0x56a   :  { %3479 = vmatpush1.bf16.msra.mxu1 %v12210_v43  ;;  %2865 = vmatprep.mubr.bf16.mxu0 %v12196_v44 }
 0x56b   :  { %v9560_v33 = vpop.trf.xlu0 }
 0x56c   :  { %v9557_v55 = vpop.trf.xlu1  ;;  %12214 = vst [vmem:[#allocation97_spill] sm:$0xff] %v9560_v33 }
 0x56d   :  { %3326 = vmatmul.mubr.bf16.gmra.mrb[16].mxu1 %v9454_v25 }
 0x56e   :  { %3335 = vmatprep.mubr.bf16.mxu1 %v12196_v44 }
 0x56f   :  { %v9564_v20 = vpop.trf.xlu0 }
 0x570   :  { %12215 = vst [vmem:[#allocation209_spill] sm:$0xff] %v9564_v20  ;;  %v9567_v42 = vpop.trf.xlu1 }
 0x571   :  { %2866 = vmatmul.mubr.bf16.gmra.mrb[44].mxu0 %v9541_v58 }
 0x572   :  { %2875 = vmatprep.mubr.bf16.mxu0 %v12196_v44 }
 0x573   :  { %v9572_v14 = vpop.trf.xlu0 }
 0x574   :  { %12216 = vst [vmem:[#allocation210_spill] sm:$0xff] %v9572_v14  ;;  %v9575_v45 = vpop.trf.xlu1 }
 0x575   :  { %3336 = vmatmul.mubr.bf16.gmra.mrb[20].mxu1 %v9479_v3 }
 0x576   :  { %3345 = vmatprep.mubr.bf16.mxu1 %v12196_v44 }
 0x577   :  { %v9578_v31 = vpop.trf.xlu0 }
 0x578   :  { %12217 = vst [vmem:[#allocation103_spill] sm:$0xff] %v9578_v31  ;;  %v9631_v35 = vpop.trf.xlu1 }
 0x579   :  { %2876 = vmatmul.mubr.bf16.gmra.mrb[48].mxu0 %v9549_v62 }
 0x57a   :  { %2885 = vmatprep.mubr.bf16.mxu0 %v12196_v44 }
 0x57b   :  { %v9583_v26 = vpop.trf.xlu0 }
 0x57c   :  { %v9637_v46 = vpop.trf.xlu1 }
 0x57d   :  { %3346 = vmatmul.mubr.bf16.gmra.mrb[24].mxu1 %v9492_v38 }
 0x57e   :  { %3355 = vmatprep.mubr.bf16.mxu1 %v12196_v44 }
 0x57f   :  { %v9589_v30 = vpop.trf.xlu0 }
 0x580   :  { %v9643_v12 = vpop.trf.xlu1 }
 0x581   :  { %2886 = vmatmul.mubr.bf16.gmra.mrb[52].mxu0 %v9557_v55 }
 0x582   :  { %2895 = vmatprep.mubr.bf16.mxu0 %v12196_v44 }
 0x583   :  { %v9595_v7 = vpop.trf.xlu0 }
 0x584   :  { %v9649_v17 = vpop.trf.xlu1 }
 0x585   :  { %3356 = vmatmul.mubr.bf16.gmra.mrb[28].mxu1 %v9501_v27 }
 0x586   :  { %3365 = vmatprep.mubr.bf16.mxu1 %v12196_v44 }
 0x587   :  { %v9601_v34 = vpop.trf.xlu0 }
 0x588   :  { %v9655_v49 = vpop.trf.xlu1 }
 0x589   :  { %2896 = vmatmul.mubr.bf16.gmra.mrb[56].mxu0 %v9567_v42 }
 0x58a   :  { %2905 = vmatprep.mubr.bf16.mxu0 %v12196_v44 }
 0x58b   :  { %v9607_v21 = vpop.trf.xlu0 }
 0x58c   :  { %v9661_v48 = vpop.trf.xlu1 }
 0x58d   :  { %3366 = vmatmul.mubr.bf16.gmra.mrb[32].mxu1 %v9512_v39 }
 0x58e   :  { %3375 = vmatprep.mubr.bf16.mxu1 %v12196_v44 }
 0x58f   :  { %v9613_v60 = vpop.trf.xlu0 }
 0x590   :  { %v9667_v41 = vpop.trf.xlu1 }
 0x591   :  { %2906 = vmatmul.mubr.bf16.gmra.mrb[60].mxu0 %v9575_v45 }
 0x592   :  { %2915 = vmatprep.mubr.bf16.mxu0 %v12196_v44 }
 0x593   :  { %v9619_v57 = vpop.trf.xlu0 }
 0x594   :  { %v9673_v50 = vpop.trf.xlu1 }
 0x595   :  { %3376 = vmatmul.mubr.bf16.gmra.mrb[36].mxu1 %v9521_v0 }
 0x596   :  { %3385 = vmatprep.mubr.bf16.mxu1 %v12196_v44 }
 0x597   :  { %v9625_v29 = vpop.trf.xlu0 }
 0x599   :  { %2916 = vmatmul.mubr.bf16.gmra.mrb[64].mxu0 %v9583_v26 }
 0x59a   :  { %2925 = vmatprep.mubr.bf16.mxu0 %v12196_v44 }
 0x59b   :  { %v9679_v1 = vpop.trf.xlu0 }
 0x59d   :  { %3386 = vmatmul.mubr.bf16.gmra.mrb[40].mxu1 %v9532_v19 }
 0x59e   :  { %3395 = vmatprep.mubr.bf16.mxu1 %v12196_v44 }
 0x59f   :  { %v9685_v10 = vpop.trf.xlu0 }
 0x5a1   :  { %2926 = vmatmul.mubr.bf16.gmra.mrb[68].mxu0 %v9589_v30 }
 0x5a2   :  { %2935 = vmatprep.mubr.bf16.mxu0 %v12196_v44 }
 0x5a3   :  { %v9691_v5 = vpop.trf.xlu0 }
 0x5a5   :  { %3396 = vmatmul.mubr.bf16.gmra.mrb[44].mxu1 %v9538_v40 }
 0x5a6   :  { %3405 = vmatprep.mubr.bf16.mxu1 %v12196_v44 }
 0x5a7   :  { %v9699_v61 = vpop.trf.xlu0 }
 0x5a9   :  { %2936 = vmatmul.mubr.bf16.gmra.mrb[72].mxu0 %v9595_v7 }
 0x5aa   :  { %2945 = vmatprep.mubr.bf16.mxu0 %v12196_v44 }
 0x5ab   :  { %v9711_v2 = vpop.trf.xlu0 }
 0x5ad   :  { %3406 = vmatmul.mubr.bf16.gmra.mrb[48].mxu1 %v9546_v63 }
 0x5ae   :  { %3415 = vmatprep.mubr.bf16.mxu1 %v12196_v44 }
 0x5af   :  { %v9725_v23 = vpop.trf.xlu0 }
 0x5b1   :  { %2946 = vmatmul.mubr.bf16.gmra.mrb[76].mxu0 %v9601_v34 }
 0x5b2   :  { %2955 = vmatprep.mubr.bf16.mxu0 %v12196_v44 }
 0x5b3   :  { %v9739_v43 = vpop.trf.xlu0 }
 0x5b5   :  { %3416 = vmatmul.mubr.bf16.gmra.mrb[52].mxu1 %v9552_v53 }
 0x5b6   :  { %3425 = vmatprep.mubr.bf16.mxu1 %v12196_v44 }
 0x5b9   :  { %2956 = vmatmul.mubr.bf16.gmra.mrb[80].mxu0 %v9607_v21 }
 0x5ba   :  { %2965 = vmatprep.mubr.bf16.mxu0 %v12196_v44 }
 0x5bd   :  { %3426 = vmatmul.mubr.bf16.gmra.mrb[56].mxu1 %v9560_v33 }
 0x5be   :  { %3435 = vmatprep.mubr.bf16.mxu1 %v12196_v44 }
 0x5c1   :  { %2966 = vmatmul.mubr.bf16.gmra.mrb[84].mxu0 %v9613_v60 }
 0x5c2   :  { %2975 = vmatprep.mubr.bf16.mxu0 %v12196_v44 }
 0x5c5   :  { %3436 = vmatmul.mubr.bf16.gmra.mrb[60].mxu1 %v9564_v20 }
 0x5c6   :  { %3445 = vmatprep.mubr.bf16.mxu1 %v12196_v44 }
 0x5c9   :  { %2976 = vmatmul.mubr.bf16.gmra.mrb[88].mxu0 %v9619_v57 }
 0x5ca   :  { %2985 = vmatprep.mubr.bf16.mxu0 %v12196_v44 }
 0x5cd   :  { %3446 = vmatmul.mubr.bf16.gmra.mrb[64].mxu1 %v9572_v14 }
 0x5ce   :  { %3455 = vmatprep.mubr.bf16.mxu1 %v12196_v44 }
 0x5d1   :  { %2986 = vmatmul.mubr.bf16.gmra.mrb[92].mxu0 %v9625_v29 }
 0x5d2   :  { %2995 = vmatprep.mubr.bf16.mxu0 %v12196_v44 }
 0x5d5   :  { %3456 = vmatmul.mubr.bf16.gmra.mrb[68].mxu1 %v9578_v31 }
 0x5d6   :  { %3496 = vmatprep.mubr.bf16.mxu1 %v12196_v44 }
 0x5d9   :  { %2996 = vmatmul.mubr.bf16.gmra.mrb[96].mxu0 %v9631_v35 }
 0x5da   :  { %3005 = vmatprep.mubr.bf16.mxu0 %v12196_v44 }
 0x5dd   :  { %3497 = vmatmul.mubr.bf16.vlgmr.msra.gmra.mrb[72].mxu1 %v9507_v22 }
 0x5de   :  { %3506 = vmatprep.mubr.bf16.mxu1 %v12196_v44 }
 0x5e1   :  { %3006 = vmatmul.mubr.bf16.gmra.mrb[100].mxu0 %v9637_v46 }
 0x5e2   :  { %3015 = vmatprep.mubr.bf16.mxu0 %v12196_v44 }
 0x5e5   :  { %3507 = vmatmul.mubr.bf16.gmra.mrb[76].mxu1 %v9517_v59 }
 0x5e6   :  { %3516 = vmatprep.mubr.bf16.mxu1 %v12196_v44 }
 0x5e9   :  { %3016 = vmatmul.mubr.bf16.gmra.mrb[104].mxu0 %v9643_v12 }
 0x5ea   :  { %3025 = vmatprep.mubr.bf16.mxu0 %v12196_v44 }
 0x5ed   :  { %3517 = vmatmul.mubr.bf16.gmra.mrb[80].mxu1 %v9529_v28 }
 0x5ee   :  { %3526 = vmatprep.mubr.bf16.mxu1 %v12196_v44 }
 0x5f1   :  { %3026 = vmatmul.mubr.bf16.gmra.mrb[108].mxu0 %v9649_v17 }
 0x5f2   :  { %3035 = vmatprep.mubr.bf16.mxu0 %v12196_v44 }
 0x5f5   :  { %3527 = vmatmul.mubr.bf16.gmra.mrb[84].mxu1 %v9541_v58 }
 0x5f6   :  { %3536 = vmatprep.mubr.bf16.mxu1 %v12196_v44 }
 0x5f9   :  { %3036 = vmatmul.mubr.bf16.gmra.mrb[112].mxu0 %v9655_v49 }
 0x5fa   :  { %3045 = vmatprep.mubr.bf16.mxu0 %v12196_v44 }
 0x5fd   :  { %3537 = vmatmul.mubr.bf16.gmra.mrb[88].mxu1 %v9549_v62 }
 0x5fe   :  { %3546 = vmatprep.mubr.bf16.mxu1 %v12196_v44 }
 0x601   :  { %3046 = vmatmul.mubr.bf16.gmra.mrb[116].mxu0 %v9661_v48 }
 0x602   :  { %3055 = vmatprep.mubr.bf16.mxu0 %v12196_v44 }
 0x605   :  { %3547 = vmatmul.mubr.bf16.gmra.mrb[92].mxu1 %v9557_v55 }
 0x606   :  { %3556 = vmatprep.mubr.bf16.mxu1 %v12196_v44 }
 0x609   :  { %3056 = vmatmul.mubr.bf16.gmra.mrb[120].mxu0 %v9667_v41 }
 0x60a   :  { %3065 = vmatprep.mubr.bf16.mxu0 %v12196_v44 }
 0x60d   :  { %3557 = vmatmul.mubr.bf16.gmra.mrb[96].mxu1 %v9567_v42 }
 0x60e   :  { %3566 = vmatprep.mubr.bf16.mxu1 %v12196_v44 }
 0x611   :  { %3066 = vmatmul.mubr.bf16.gmra.mrb[124].mxu0 %v9673_v50 }
 0x612   :  { %3075 = vmatprep.mubr.bf16.mxu0 %v12196_v44 }
 0x615   :  { %3567 = vmatmul.mubr.bf16.gmra.mrb[100].mxu1 %v9575_v45  ;;  %v9753_v45 = vpop.trf.xlu0 }
 0x616   :  { %3576 = vmatprep.mubr.bf16.mxu1 %v12196_v44 }
 0x619   :  { %3076 = vmatmul.mubr.bf16.gmra.mrb[128].mxu0 %v9679_v1 }
 0x61a   :  { %3085 = vmatprep.mubr.bf16.mxu0 %v12196_v44 }
 0x61d   :  { %3577 = vmatmul.mubr.bf16.gmra.mrb[104].mxu1 %v9583_v26 }
 0x61e   :  { %3586 = vmatprep.mubr.bf16.mxu1 %v12196_v44 }
 0x621   :  { %3086 = vmatmul.mubr.bf16.gmra.mrb[132].mxu0 %v9685_v10 }
 0x622   :  { %3095 = vmatprep.mubr.bf16.mxu0 %v12196_v44 }
 0x625   :  { %3587 = vmatmul.mubr.bf16.gmra.mrb[108].mxu1 %v9589_v30 }
 0x626   :  { %3596 = vmatprep.mubr.bf16.mxu1 %v12196_v44 }
 0x629   :  { %3096 = vmatmul.mubr.bf16.gmra.mrb[136].mxu0 %v9691_v5 }
 0x62a   :  { %3105 = vmatprep.mubr.bf16.mxu0 %v12196_v44 }
 0x62c   :  { %v9697_v52 = vpop.f32.mrb[32].mxu0 }
 0x62d   :  { %3597 = vmatmul.mubr.bf16.gmra.mrb[112].mxu1 %v9595_v7  ;;  %v9702_v11 = vpop.f32.mrb[33].mxu0 }
 0x62e   :  { %3606 = vmatprep.mubr.bf16.mxu1 %v12196_v44  ;;  %v9704_v36 = vpop.f32.mrb[34].mxu0 }
 0x62f   :  { %v9707_v54 = vpop.f32.mrb[35].mxu0 }
 0x631   :  { %3106 = vmatmul.mubr.bf16.gmra.mrb[140].mxu0 %v9699_v61 }
 0x632   :  { %3115 = vmatprep.mubr.bf16.mxu0 %v12196_v44 }
 0x634   :  { %v9714_v24 = vpop.f32.mrb[36].mxu0 }
 0x635   :  { %3607 = vmatmul.mubr.bf16.gmra.mrb[116].mxu1 %v9601_v34  ;;  %v9716_v4 = vpop.f32.mrb[37].mxu0 }
 0x636   :  { %3616 = vmatprep.mubr.bf16.mxu1 %v12196_v44  ;;  %v9718_v22 = vpop.f32.mrb[38].mxu0 }
 0x637   :  { %v9721_v9 = vpop.f32.mrb[39].mxu0 }
 0x639   :  { %3116 = vmatmul.mubr.bf16.gmra.mrb[144].mxu0 %v9711_v2 }
 0x63a   :  { %3125 = vmatprep.mubr.bf16.mxu0 %v12196_v44 }
 0x63c   :  { %v9728_v59 = vpop.f32.mrb[40].mxu0 }
 0x63d   :  { %3617 = vmatmul.mubr.bf16.gmra.mrb[120].mxu1 %v9607_v21  ;;  %v9730_v32 = vpop.f32.mrb[41].mxu0  ;;  %v9767_v21 = vpop.trf.xlu1 }
 0x63e   :  { %3626 = vmatprep.mubr.bf16.mxu1 %v12196_v44  ;;  %v9732_v56 = vpop.f32.mrb[42].mxu0 }
 0x63f   :  { %v9735_v28 = vpop.f32.mrb[43].mxu0 }
 0x641   :  { %3126 = vmatmul.mubr.bf16.gmra.mrb[148].mxu0 %v9725_v23  ;;  %v9781_v20 = vpop.trf.xlu1 }
 0x642   :  { %3135 = vmatprep.mubr.bf16.mxu0 %v12196_v44 }
 0x644   :  { %v9742_v58 = vpop.f32.mrb[44].mxu0 }
 0x645   :  { %3627 = vmatmul.mubr.bf16.gmra.mrb[124].mxu1 %v9613_v60  ;;  %v9744_v62 = vpop.f32.mrb[45].mxu0  ;;  %v9795_v40 = vpop.trf.xlu1 }
 0x646   :  { %3636 = vmatprep.mubr.bf16.mxu1 %v12196_v44  ;;  %v9746_v55 = vpop.f32.mrb[46].mxu0 }
 0x647   :  { %v9749_v42 = vpop.f32.mrb[47].mxu0 }
 0x649   :  { %3136 = vmatmul.mubr.bf16.gmra.mrb[152].mxu0 %v9739_v43 }
 0x64a   :  { %3145 = vmatprep.mubr.bf16.mxu0 %v12196_v44 }
 0x64c   :  { %v9756_v26 = vpop.f32.mrb[48].mxu0 }
 0x64d   :  { %3637 = vmatmul.mubr.bf16.gmra.mrb[128].mxu1 %v9619_v57  ;;  %v9758_v30 = vpop.f32.mrb[49].mxu0 }
 0x64e   :  { %3646 = vmatprep.mubr.bf16.mxu1 %v12196_v44  ;;  %v9760_v7 = vpop.f32.mrb[50].mxu0 }
 0x64f   :  { %v9763_v34 = vpop.f32.mrb[51].mxu0 }
 0x651   :  { %3146 = vmatmul.mubr.bf16.gmra.mrb[156].mxu0 %v9753_v45 }
 0x652   :  { %3155 = vmatprep.mubr.bf16.mxu0 %v12196_v44 }
 0x654   :  { %v9770_v60 = vpop.f32.mrb[52].mxu0 }
 0x655   :  { %3647 = vmatmul.mubr.bf16.gmra.mrb[132].mxu1 %v9625_v29  ;;  %v9772_v57 = vpop.f32.mrb[53].mxu0 }
 0x656   :  { %3656 = vmatprep.mubr.bf16.mxu1 %v12196_v44  ;;  %v9774_v31 = vpop.f32.mrb[54].mxu0 }
 0x657   :  { %v9777_v14 = vpop.f32.mrb[55].mxu0 }
 0x659   :  { %3156 = vmatmul.mubr.bf16.gmra.mrb[160].mxu0 %v9767_v21 }
 0x65a   :  { %3165 = vmatprep.mubr.bf16.mxu0 %v12196_v44 }
 0x65c   :  { %v9784_v29 = vpop.f32.mrb[56].mxu0 }
 0x65d   :  { %3657 = vmatmul.mubr.bf16.gmra.mrb[136].mxu1 %v9631_v35  ;;  %v9786_v33 = vpop.f32.mrb[57].mxu0 }
 0x65e   :  { %3666 = vmatprep.mubr.bf16.mxu1 %v12196_v44  ;;  %v9788_v53 = vpop.f32.mrb[58].mxu0 }
 0x65f   :  { %v9791_v63 = vpop.f32.mrb[59].mxu0 }
 0x661   :  { %3166 = vmatmul.mubr.bf16.gmra.mrb[164].mxu0 %v9781_v20 }
 0x662   :  { %3175 = vmatprep.mubr.bf16.mxu0 %v12196_v44 }
 0x664   :  { %v9798_v35 = vpop.f32.mrb[60].mxu0 }
 0x665   :  { %3667 = vmatmul.mubr.bf16.gmra.mrb[140].mxu1 %v9637_v46  ;;  %v9800_v19 = vpop.f32.mrb[61].mxu0  ;;  %v9811_v46 = vpop.trf.xlu1 }
 0x666   :  { %3676 = vmatprep.mubr.bf16.mxu1 %v12196_v44  ;;  %v9802_v0 = vpop.f32.mrb[62].mxu0  ;;  %12218 = vst [vmem:[#allocation101_spill] sm:$0xff] %v9811_v46 }
 0x667   :  { %v9805_v39 = vpop.f32.mrb[63].mxu0 }
 0x669   :  { %3176 = vmatmul.mubr.bf16.gmra.mrb[168].mxu0 %v9795_v40  ;;  %v9827_v16 = vpop.trf.xlu1 }
 0x66a   :  { %3185 = vmatprep.mubr.bf16.mxu0 %v12196_v44  ;;  %12222 = vst [vmem:[#allocation105_spill] sm:$0xff] %v9827_v16 }
 0x66c   :  { %v9809_v27 = vpop.f32.mrb[64].mxu0 }
 0x66d   :  { %3677 = vmatmul.mubr.bf16.gmra.mrb[144].mxu1 %v9643_v12  ;;  %v9814_v38 = vpop.f32.mrb[65].mxu0 }
 0x66e   :  { %3686 = vmatprep.mubr.bf16.mxu1 %v12196_v44  ;;  %v9816_v3 = vpop.f32.mrb[66].mxu0 }
 0x66f   :  { %v9818_v25 = vpop.f32.mrb[67].mxu0 }
 0x670   :  { %12219 = vst [vmem:[#allocation211_spill] sm:$0xff] %v9818_v25 }
 0x671   :  { %3186 = vmatmul.mubr.bf16.gmra.mrb[172].mxu0 %v9811_v46 }
 0x672   :  { %3195 = vmatprep.mubr.bf16.mxu0 %v12196_v44 }
 0x674   :  { %v9822_v13 = vpop.f32.mrb[68].mxu0 }
 0x675   :  { %12220 = vst [vmem:[#allocation212_spill] sm:$0xff] %v9822_v13  ;;  %3687 = vmatmul.mubr.bf16.gmra.mrb[148].mxu1 %v9649_v17  ;;  %v9825_v12 = vpop.f32.mrb[69].mxu0  ;;  %v9841_v17 = vpop.trf.xlu1 }
 0x676   :  { %12221 = vst [vmem:[#allocation107_spill] sm:$0xff] %v9825_v12  ;;  %3696 = vmatprep.mubr.bf16.mxu1 %v12196_v44  ;;  %v9830_v18 = vpop.f32.mrb[70].mxu0  ;;  %12226 = vst [vmem:[#allocation113_spill] sm:$0xff] %v9841_v17 }
 0x677   :  { %v9832_v6 = vpop.f32.mrb[71].mxu0 }
 0x678   :  { %12223 = vst [vmem:[#allocation218_spill] sm:$0xff] %v9832_v6 }
 0x679   :  { %3196 = vmatmul.mubr.bf16.gmra.mrb[176].mxu0 %v9827_v16 }
 0x67a   :  { %3205 = vmatprep.mubr.bf16.mxu0 %v12196_v44 }
 0x67c   :  { %v9836_v46 = vpop.f32.mrb[72].mxu0 }
 0x67d   :  { %12224 = vst [vmem:[#allocation213_spill] sm:$0xff] %v9836_v46  ;;  %3697 = vmatmul.mubr.bf16.gmra.mrb[152].mxu1 %v9655_v49  ;;  %v9839_v13 = vpop.f32.mrb[73].mxu0  ;;  %v9855_v49 = vpop.trf.xlu1 }
 0x67e   :  { %12225 = vst [vmem:[#allocation214_spill] sm:$0xff] %v9839_v13  ;;  %3706 = vmatprep.mubr.bf16.mxu1 %v12196_v44  ;;  %v9844_v12 = vpop.f32.mrb[74].mxu0  ;;  %12230 = vst [vmem:[#allocation70_spill] sm:$0xff] %v9855_v49 }
 0x67f   :  { %v9846_v25 = vpop.f32.mrb[75].mxu0 }
 0x680   :  { %12227 = vst [vmem:[#allocation110_spill] sm:$0xff] %v9846_v25 }
 0x681   :  { %3206 = vmatmul.mubr.bf16.gmra.mrb[180].mxu0 %v9841_v17 }
 0x682   :  { %3215 = vmatprep.mubr.bf16.mxu0 %v12196_v44 }
 0x684   :  { %v9850_v16 = vpop.f32.mrb[76].mxu0 }
 0x685   :  { %12228 = vst [vmem:[#allocation215_spill] sm:$0xff] %v9850_v16  ;;  %3707 = vmatmul.mubr.bf16.gmra.mrb[156].mxu1 %v9661_v48  ;;  %v9853_v46 = vpop.f32.mrb[77].mxu0  ;;  %v9869_v48 = vpop.trf.xlu1 }
 0x686   :  { %12229 = vst [vmem:[#allocation216_spill] sm:$0xff] %v9853_v46  ;;  %3716 = vmatprep.mubr.bf16.mxu1 %v12196_v44  ;;  %v9858_v13 = vpop.f32.mrb[78].mxu0  ;;  %12233 = vst [vmem:[#allocation220_spill] sm:$0xff] %v9869_v48 }
 0x687   :  { %v9860_v6 = vpop.f32.mrb[79].mxu0 }
 0x689   :  { %3216 = vmatmul.mubr.bf16.gmra.mrb[184].mxu0 %v9855_v49 }
 0x68a   :  { %3225 = vmatprep.mubr.bf16.mxu0 %v12196_v44 }
 0x68c   :  { %v9864_v17 = vpop.f32.mrb[80].mxu0 }
 0x68d   :  { %12231 = vst [vmem:[#allocation121_spill] sm:$0xff] %v9864_v17  ;;  %3717 = vmatmul.mubr.bf16.gmra.mrb[160].mxu1 %v9667_v41  ;;  %v9867_v16 = vpop.f32.mrb[81].mxu0 }
 0x68e   :  { %12232 = vst [vmem:[#allocation118_spill] sm:$0xff] %v9867_v16  ;;  %3726 = vmatprep.mubr.bf16.mxu1 %v12196_v44  ;;  %v9872_v46 = vpop.f32.mrb[82].mxu0 }
 0x68f   :  { %v9874_v25 = vpop.f32.mrb[83].mxu0 }
 0x690   :  { %12234 = vst [vmem:[#allocation129_spill] sm:$0xff] %v9874_v25 }
 0x691   :  { %3226 = vmatmul.mubr.bf16.gmra.mrb[188].mxu0 %v9869_v48 }
 0x692   :  { %3235 = vmatprep.mubr.bf16.mxu0 %v12196_v44 }
 0x694   :  { %v9878_v49 = vpop.f32.mrb[84].mxu0 }
 0x695   :  { %3727 = vmatmul.mubr.bf16.gmra.mrb[164].mxu1 %v9673_v50  ;;  %v9881_v17 = vpop.f32.mrb[85].mxu0 }
 0x696   :  { %12235 = vst [vmem:[#allocation127_spill] sm:$0xff] %v9881_v17  ;;  %3736 = vmatprep.mubr.bf16.mxu1 %v12196_v44  ;;  %v9884_v41 = vpop.f32.mrb[86].mxu0 }
 0x697   :  { %v9886_v16 = vpop.f32.mrb[87].mxu0 }
 0x698   :  { %12236 = vst [vmem:[#allocation151_spill] sm:$0xff] %v9886_v16 }
 0x699   :  { %3236 = vmatmul.mubr.bf16.gmra.mrb[192].mxu0 %v9418_v8 }
 0x69a   :  { %3245 = vmatprep.mubr.bf16.mxu0 %v12196_v44 }
 0x69c   :  { %v9890_v25 = vpop.f32.mrb[88].mxu0 }
 0x69d   :  { %3737 = vmatmul.mubr.bf16.gmra.mrb[168].mxu1 %v9679_v1  ;;  %v9893_v48 = vpop.f32.mrb[89].mxu0 }
 0x69e   :  { %12237 = vst [vmem:[#allocation150_spill] sm:$0xff] %v9893_v48  ;;  %3746 = vmatprep.mubr.bf16.mxu1 %v12196_v44  ;;  %v9896_v50 = vpop.f32.mrb[90].mxu0 }
 0x69f   :  { %v9898_v17 = vpop.f32.mrb[91].mxu0 }
 0x6a0   :  { %12238 = vst [vmem:[#allocation222_spill] sm:$0xff] %v9898_v17 }
 0x6a1   :  { %3246 = vmatmul.mubr.bf16.gmra.mrb[196].mxu0 %v9431_v47 }
 0x6a2   :  { %3255 = vmatprep.mubr.bf16.mxu0 %v12196_v44 }
 0x6a4   :  { %v9902_v16 = vpop.f32.mrb[92].mxu0 }
 0x6a5   :  { %12239 = vst [vmem:[#allocation91_spill] sm:$0xff] %v9902_v16  ;;  %3747 = vmatmul.mubr.bf16.gmra.mrb[172].mxu1 %v9685_v10  ;;  %v9905_v8 = vpop.f32.mrb[93].mxu0 }
 0x6a6   :  { %12240 = vst [vmem:[#allocation90_spill] sm:$0xff] %v9905_v8  ;;  %3756 = vmatprep.mubr.bf16.mxu1 %v12196_v44  ;;  %v9908_v1 = vpop.f32.mrb[94].mxu0 }
 0x6a7   :  { %12241 = vst [vmem:[#allocation158_spill] sm:$0xff] %v9908_v1  ;;  %v9910_v48 = vpop.f32.mrb[95].mxu0 }
 0x6a8   :  { %12242 = vst [vmem:[#allocation156_spill] sm:$0xff] %v9910_v48 }
 0x6a9   :  { %3256 = vmatmul.mubr.bf16.gmra.mrb[200].mxu0 %v9449_v51 }
 0x6aa   :  { %3265 = vmatprep.mubr.bf16.mxu0 %v12196_v44 }
 0x6ac   :  { %v9914_v17 = vpop.f32.mrb[96].mxu0 }
 0x6ad   :  { %12243 = vst [vmem:[#allocation95_spill] sm:$0xff] %v9914_v17  ;;  %3757 = vmatmul.mubr.bf16.gmra.mrb[176].mxu1 %v9691_v5  ;;  %v9917_v47 = vpop.f32.mrb[97].mxu0 }
 0x6ae   :  { %12244 = vst [vmem:[#allocation94_spill] sm:$0xff] %v9917_v47  ;;  %3766 = vmatprep.mubr.bf16.mxu1 %v12196_v44  ;;  %v9920_v10 = vpop.f32.mrb[98].mxu0 }
 0x6af   :  { %12245 = vst [vmem:[#allocation164_spill] sm:$0xff] %v9920_v10  ;;  %v9922_v8 = vpop.f32.mrb[99].mxu0 }
 0x6b0   :  { %12246 = vst [vmem:[#allocation162_spill] sm:$0xff] %v9922_v8  ;;  %v3498_v16 = vpop.f32.mrb[72].mxu1 }
 0x6b1   :  { %v9925_v1 = vadd.f32 %v3498_v16, %v9697_v52  ;;  %3266 = vmatmul.mubr.bf16.gmra.mrb[204].mxu0 %v9464_v15  ;;  %v3500_v51 = vpop.f32.mrb[73].mxu1 }
 0x6b2   :  { %v3501_v48 = vadd.f32 %v3500_v51, %v9702_v11  ;;  %v3502_v17 = vpop.f32.mrb[74].mxu1  ;;  %3275 = vmatprep.mubr.bf16.mxu0 %v12196_v44 }
 0x6b3   :  { %v9931_v5 = vadd.f32 %v3502_v17, %v9704_v36  ;;  %v3504_v47 = vpop.f32.mrb[75].mxu1 }
 0x6b4   :  { %v3505_v10 = vadd.f32 %v3504_v47, %v9707_v54  ;;  %4252 = vperm.xlu0 %6283, %v3501_v48   ;;  %v9934_v8 = vpop.f32.mrb[100].mxu0 }
 0x6b5   :  { %3767 = vmatmul.mubr.bf16.gmra.mrb[180].mxu1 %v9699_v61  ;;  %v9937_v16 = vpop.f32.mrb[101].mxu0 }
 0x6b6   :  { %4257 = vperm.xlu1 %6284, %v3505_v10   ;;  %3776 = vmatprep.mubr.bf16.mxu1 %v12196_v44  ;;  %v9940_v51 = vpop.f32.mrb[102].mxu0 }
 0x6b7   :  { %12247 = vst [vmem:[#allocation224_spill] sm:$0xff] %v9940_v51  ;;  %v9942_v52 = vpop.f32.mrb[103].mxu0 }
 0x6b8   :  { %12248 = vst [vmem:[#allocation102_spill] sm:$0xff] %v9942_v52  ;;  %v3508_v11 = vpop.f32.mrb[76].mxu1 }
 0x6b9   :  { %v9945_v36 = vadd.f32 %v3508_v11, %v9714_v24  ;;  %3276 = vmatmul.mubr.bf16.gmra.mrb[208].mxu0 %v9477_v37  ;;  %v3510_v47 = vpop.f32.mrb[77].mxu1 }
 0x6ba   :  { %v3511_v54 = vadd.f32 %v3510_v47, %v9716_v4  ;;  %v3512_v17 = vpop.f32.mrb[78].mxu1 }
 0x6bb   :  { %v9950_v61 = vadd.f32 %v3512_v17, %v9718_v22  ;;  %v3514_v48 = vpop.f32.mrb[79].mxu1 }
 0x6bc   :  { %v3515_v10 = vadd.f32 %v3514_v48, %v9721_v9  ;;  %4262 = vperm.xlu1 %6284, %v3511_v54   ;;  %v9953_v51 = vpop.f32.mrb[104].mxu0 }
 0x6bd   :  { %3777 = vmatmul.mubr.bf16.gmra.mrb[184].mxu1 %v9711_v2  ;;  %v9956_v52 = vpop.f32.mrb[105].mxu0 }
 0x6be   :  { %4267 = vperm.xlu0 %6283, %v3515_v10   ;;  %3786 = vmatprep.mubr.bf16.mxu1 %v12196_v44  ;;  %v9959_v24 = vpop.f32.mrb[106].mxu0 }
 0x6bf   :  { %v9961_v4 = vpop.f32.mrb[107].mxu0 }
 0x6c0   :  { %12249 = vst [vmem:[#allocation100_spill] sm:$0xff] %v9961_v4  ;;  %v3518_v11 = vpop.f32.mrb[80].mxu1 }
 0x6c1   :  { %v9964_v22 = vadd.f32 %v3518_v11, %v9728_v59  ;;  %v3520_v47 = vpop.f32.mrb[81].mxu1 }
 0x6c2   :  { %v3521_v9 = vadd.f32 %v3520_v47, %v9730_v32  ;;  %v3522_v54 = vpop.f32.mrb[82].mxu1 }
 0x6c3   :  { %v9968_v17 = vadd.f32 %v3522_v54, %v9732_v56  ;;  %v3524_v2 = vpop.f32.mrb[83].mxu1 }
 0x6c4   :  { %v3525_v48 = vadd.f32 %v3524_v2, %v9735_v28  ;;  %4272 = vperm.xlu1 %6284, %v3521_v9   ;;  %v9971_v10 = vpop.f32.mrb[108].mxu0 }
 0x6c5   :  { %3787 = vmatmul.mubr.bf16.gmra.mrb[188].mxu1 %v9725_v23  ;;  %v9974_v4 = vpop.f32.mrb[109].mxu0 }
 0x6c6   :  { %4277 = vperm.xlu0 %6283, %v3525_v48   ;;  %3796 = vmatprep.mubr.bf16.mxu1 %v12196_v44  ;;  %v9977_v59 = vpop.f32.mrb[110].mxu0 }
 0x6c7   :  { %v9979_v32 = vpop.f32.mrb[111].mxu0 }
 0x6c8   :  { %12250 = vst [vmem:[#allocation170_spill] sm:$0xff] %v9979_v32  ;;  %v3528_v11 = vpop.f32.mrb[84].mxu1 }
 0x6c9   :  { %v9982_v56 = vadd.f32 %v3528_v11, %v9742_v58  ;;  %v3530_v47 = vpop.f32.mrb[85].mxu1 }
 0x6ca   :  { %v3531_v28 = vadd.f32 %v3530_v47, %v9744_v62  ;;  %v3532_v9 = vpop.f32.mrb[86].mxu1 }
 0x6cb   :  { %v9986_v54 = vadd.f32 %v3532_v9, %v9746_v55  ;;  %v3534_v23 = vpop.f32.mrb[87].mxu1 }
 0x6cc   :  { %v3535_v2 = vadd.f32 %v3534_v23, %v9749_v42  ;;  %4282 = vperm.xlu1 %6284, %v3531_v28   ;;  %v9989_v48 = vpop.f32.mrb[112].mxu0 }
 0x6cd   :  { %3797 = vmatmul.mubr.bf16.gmra.mrb[192].mxu1 %v9739_v43  ;;  %v9992_v32 = vpop.f32.mrb[113].mxu0 }
 0x6ce   :  { %4287 = vperm.xlu0 %6283, %v3535_v2   ;;  %3806 = vmatprep.mubr.bf16.mxu1 %v12196_v44  ;;  %v9995_v58 = vpop.f32.mrb[114].mxu0 }
 0x6cf   :  { %v9997_v62 = vpop.f32.mrb[115].mxu0 }
 0x6d0   :  { %12251 = vst [vmem:[#allocation168_spill] sm:$0xff] %v9997_v62  ;;  %v3538_v11 = vpop.f32.mrb[88].mxu1 }
 0x6d1   :  { %v10000_v55 = vadd.f32 %v3538_v11, %v9756_v26  ;;  %v3540_v47 = vpop.f32.mrb[89].mxu1 }
 0x6d2   :  { %v3541_v42 = vadd.f32 %v3540_v47, %v9758_v30  ;;  %v3542_v28 = vpop.f32.mrb[90].mxu1 }
 0x6d3   :  { %v10004_v9 = vadd.f32 %v3542_v28, %v9760_v7  ;;  %v3544_v43 = vpop.f32.mrb[91].mxu1 }
 0x6d4   :  { %v3545_v23 = vadd.f32 %v3544_v43, %v9763_v34  ;;  %4292 = vperm.xlu1 %6284, %v3541_v42   ;;  %v10007_v2 = vpop.f32.mrb[116].mxu0 }
 0x6d5   :  { %3807 = vmatmul.mubr.bf16.gmra.mrb[196].mxu1 %v9753_v45  ;;  %v10010_v62 = vpop.f32.mrb[117].mxu0 }
 0x6d6   :  { %4297 = vperm.xlu0 %6283, %v3545_v23   ;;  %3816 = vmatprep.mubr.bf16.mxu1 %v12196_v44  ;;  %v10013_v26 = vpop.f32.mrb[118].mxu0 }
 0x6d7   :  { %v10015_v30 = vpop.f32.mrb[119].mxu0 }
 0x6d8   :  { %12252 = vst [vmem:[#allocation106_spill] sm:$0xff] %v10015_v30  ;;  %v3548_v11 = vpop.f32.mrb[92].mxu1 }
 0x6d9   :  { %v10018_v7 = vadd.f32 %v3548_v11, %v9770_v60  ;;  %v3550_v47 = vpop.f32.mrb[93].mxu1 }
 0x6da   :  { %v3551_v34 = vadd.f32 %v3550_v47, %v9772_v57  ;;  %v3552_v42 = vpop.f32.mrb[94].mxu1 }
 0x6db   :  { %v10022_v28 = vadd.f32 %v3552_v42, %v9774_v31  ;;  %v3554_v45 = vpop.f32.mrb[95].mxu1 }
 0x6dc   :  { %v3555_v43 = vadd.f32 %v3554_v45, %v9777_v14  ;;  %4302 = vperm.xlu1 %6284, %v3551_v34   ;;  %v10025_v23 = vpop.f32.mrb[120].mxu0 }
 0x6dd   :  { %3817 = vmatmul.mubr.bf16.gmra.mrb[200].mxu1 %v9767_v21  ;;  %v10028_v30 = vpop.f32.mrb[121].mxu0 }
 0x6de   :  { %4307 = vperm.xlu0 %6283, %v3555_v43   ;;  %3826 = vmatprep.mubr.bf16.mxu1 %v12196_v44  ;;  %v10031_v60 = vpop.f32.mrb[122].mxu0 }
 0x6df   :  { %v10033_v57 = vpop.f32.mrb[123].mxu0 }
 0x6e0   :  { %12253 = vst [vmem:[#allocation104_spill] sm:$0xff] %v10033_v57  ;;  %v3558_v11 = vpop.f32.mrb[96].mxu1 }
 0x6e1   :  { %v10036_v31 = vadd.f32 %v3558_v11, %v9784_v29  ;;  %v3560_v47 = vpop.f32.mrb[97].mxu1 }
 0x6e2   :  { %v3561_v14 = vadd.f32 %v3560_v47, %v9786_v33  ;;  %v3562_v34 = vpop.f32.mrb[98].mxu1 }
 0x6e3   :  { %v10040_v42 = vadd.f32 %v3562_v34, %v9788_v53  ;;  %v3564_v21 = vpop.f32.mrb[99].mxu1 }
 0x6e4   :  { %v3565_v45 = vadd.f32 %v3564_v21, %v9791_v63  ;;  %4312 = vperm.xlu1 %6284, %v3561_v14   ;;  %v10043_v43 = vpop.f32.mrb[124].mxu0 }
 0x6e5   :  { %3827 = vmatmul.mubr.bf16.gmra.mrb[204].mxu1 %v9781_v20  ;;  %v10046_v57 = vpop.f32.mrb[125].mxu0 }
 0x6e6   :  { %4317 = vperm.xlu0 %6283, %v3565_v45   ;;  %3836 = vmatprep.mubr.bf16.mxu1 %v12196_v44  ;;  %v10049_v29 = vpop.f32.mrb[126].mxu0 }
 0x6e7   :  { %v10051_v33 = vpop.f32.mrb[127].mxu0 }
 0x6e8   :  { %12254 = vst [vmem:[#allocation175_spill] sm:$0xff] %v10051_v33  ;;  %v3568_v11 = vpop.f32.mrb[100].mxu1 }
 0x6e9   :  { %v10054_v53 = vadd.f32 %v3568_v11, %v9798_v35  ;;  %v3570_v47 = vpop.f32.mrb[101].mxu1 }
 0x6ea   :  { %v3571_v63 = vadd.f32 %v3570_v47, %v9800_v19  ;;  %v3572_v14 = vpop.f32.mrb[102].mxu1 }
 0x6eb   :  { %v10058_v34 = vadd.f32 %v3572_v14, %v9802_v0  ;;  %v3574_v20 = vpop.f32.mrb[103].mxu1 }
 0x6ec   :  { %v3575_v21 = vadd.f32 %v3574_v20, %v9805_v39  ;;  %4322 = vperm.xlu1 %6284, %v3571_v63   ;;  %v10061_v45 = vpop.f32.mrb[128].mxu0  ;;  %v12259_v20 = vld [vmem:[#allocation211_spill] sm:$0xff] }
 0x6ed   :  { %3837 = vmatmul.mubr.bf16.gmra.mrb[208].mxu1 %v9795_v40  ;;  %v10064_v33 = vpop.f32.mrb[129].mxu0 }
 0x6ee   :  { %12255 = vst [vmem:[#allocation174_spill] sm:$0xff] %v10064_v33  ;;  %4327 = vperm.xlu0 %6283, %v3575_v21   ;;  %3846 = vmatprep.mubr.bf16.mxu1 %v12196_v44  ;;  %v10067_v35 = vpop.f32.mrb[130].mxu0 }
 0x6ef   :  { %12256 = vst [vmem:[#allocation226_spill] sm:$0xff] %v10067_v35  ;;  %v10069_v19 = vpop.f32.mrb[131].mxu0  ;;  %v12261_v35 = vld [vmem:[#allocation101_spill] sm:$0xff] }
 0x6f0   :  { %12257 = vst [vmem:[#allocation112_spill] sm:$0xff] %v10069_v19  ;;  %v3578_v11 = vpop.f32.mrb[104].mxu1 }
 0x6f1   :  { %v10072_v0 = vadd.f32 %v3578_v11, %v9809_v27  ;;  %v3580_v47 = vpop.f32.mrb[105].mxu1 }
 0x6f2   :  { %v3581_v39 = vadd.f32 %v3580_v47, %v9814_v38  ;;  %v3582_v63 = vpop.f32.mrb[106].mxu1 }
 0x6f3   :  { %v10076_v14 = vadd.f32 %v3582_v63, %v9816_v3  ;;  %v3584_v40 = vpop.f32.mrb[107].mxu1  ;;  %v12265_v3 = vld [vmem:[#allocation212_spill] sm:$0xff] }
 0x6f4   :  { %v3585_v21 = vadd.f32 %v3584_v40, %v12259_v20  ;;  %4332 = vperm.xlu1 %6284, %v3581_v39   ;;  %v10079_v33 = vpop.f32.mrb[132].mxu0  ;;  %v12266_v40 = vld [vmem:[#allocation107_spill] sm:$0xff] }
 0x6f5   :  { %12258 = vst [vmem:[#allocation109_spill] sm:$0xff] %v10076_v14  ;;  %12260 = vst [vmem:[#allocation181_spill] sm:$0xff] %v10079_v33  ;;  %3847 = vmatmul.mubr.bf16.gmra.mrb[212].mxu1 %v12261_v35  ;;  %v10082_v19 = vpop.f32.mrb[133].mxu0 }
 0x6f6   :  { %12262 = vst [vmem:[#allocation180_spill] sm:$0xff] %v10082_v19  ;;  %4337 = vperm.xlu0 %6283, %v3585_v21   ;;  %3856 = vmatprep.mubr.bf16.mxu1 %v12196_v44  ;;  %v10085_v27 = vpop.f32.mrb[134].mxu0  ;;  %v12268_v19 = vld [vmem:[#allocation218_spill] sm:$0xff] }
 0x6f7   :  { %12263 = vst [vmem:[#allocation120_spill] sm:$0xff] %v10085_v27  ;;  %v10087_v38 = vpop.f32.mrb[135].mxu0  ;;  %v12270_v27 = vld [vmem:[#allocation105_spill] sm:$0xff] }
 0x6f8   :  { %12264 = vst [vmem:[#allocation117_spill] sm:$0xff] %v10087_v38  ;;  %v3588_v11 = vpop.f32.mrb[108].mxu1 }
 0x6f9   :  { %v10090_v47 = vadd.f32 %v3588_v11, %v12265_v3  ;;  %v3590_v63 = vpop.f32.mrb[109].mxu1 }
 0x6fa   :  { %v3591_v39 = vadd.f32 %v3590_v63, %v12266_v40  ;;  %v3592_v20 = vpop.f32.mrb[110].mxu1 }
 0x6fb   :  { %v10094_v33 = vadd.f32 %v3592_v20, %v9830_v18  ;;  %v3594_v35 = vpop.f32.mrb[111].mxu1  ;;  %v12274_v18 = vld [vmem:[#allocation213_spill] sm:$0xff] }
 0x6fc   :  { %v3595_v21 = vadd.f32 %v3594_v35, %v12268_v19  ;;  %4342 = vperm.xlu1 %6284, %v3591_v39   ;;  %v10097_v14 = vpop.f32.mrb[136].mxu0  ;;  %v12275_v19 = vld [vmem:[#allocation214_spill] sm:$0xff] }
 0x6fd   :  { %12267 = vst [vmem:[#allocation187_spill] sm:$0xff] %v10094_v33  ;;  %12269 = vst [vmem:[#allocation184_spill] sm:$0xff] %v10097_v14  ;;  %3857 = vmatmul.mubr.bf16.gmra.mrb[216].mxu1 %v12270_v27  ;;  %v10100_v38 = vpop.f32.mrb[137].mxu0 }
 0x6fe   :  { %12271 = vst [vmem:[#allocation200_spill] sm:$0xff] %v10100_v38  ;;  %4347 = vperm.xlu0 %6283, %v3595_v21   ;;  %3866 = vmatprep.mubr.bf16.mxu1 %v12196_v44  ;;  %v10103_v11 = vpop.f32.mrb[138].mxu0  ;;  %v12276_v38 = vld [vmem:[#allocation110_spill] sm:$0xff] }
 0x6ff   :  { %12272 = vst [vmem:[#allocation228_spill] sm:$0xff] %v10103_v11  ;;  %v10105_v3 = vpop.f32.mrb[139].mxu0  ;;  %v12278_v11 = vld [vmem:[#allocation113_spill] sm:$0xff] }
 0x700   :  { %12273 = vst [vmem:[#allocation128_spill] sm:$0xff] %v10105_v3  ;;  %v3598_v63 = vpop.f32.mrb[112].mxu1 }
 0x701   :  { %v10108_v40 = vadd.f32 %v3598_v63, %v12274_v18  ;;  %v3600_v20 = vpop.f32.mrb[113].mxu1 }
 0x702   :  { %v3601_v39 = vadd.f32 %v3600_v20, %v12275_v19  ;;  %v3602_v35 = vpop.f32.mrb[114].mxu1 }
 0x703   :  { %v10112_v14 = vadd.f32 %v3602_v35, %v9844_v12  ;;  %v3604_v27 = vpop.f32.mrb[115].mxu1  ;;  %v12282_v12 = vld [vmem:[#allocation215_spill] sm:$0xff] }
 0x704   :  { %v3605_v21 = vadd.f32 %v3604_v27, %v12276_v38  ;;  %4352 = vperm.xlu1 %6284, %v3601_v39   ;;  %v10115_v33 = vpop.f32.mrb[140].mxu0  ;;  %v12283_v38 = vld [vmem:[#allocation216_spill] sm:$0xff] }
 0x705   :  { %12277 = vst [vmem:[#allocation126_spill] sm:$0xff] %v10115_v33  ;;  %3867 = vmatmul.mubr.bf16.gmra.mrb[220].mxu1 %v12278_v11  ;;  %v10118_v3 = vpop.f32.mrb[141].mxu0 }
 0x706   :  { %12279 = vst [vmem:[#allocation192_spill] sm:$0xff] %v10118_v3  ;;  %4357 = vperm.xlu0 %6283, %v3605_v21   ;;  %3876 = vmatprep.mubr.bf16.mxu1 %v12196_v44  ;;  %v10121_v63 = vpop.f32.mrb[142].mxu0 }
 0x707   :  { %12280 = vst [vmem:[#allocation190_spill] sm:$0xff] %v10121_v63  ;;  %v10123_v18 = vpop.f32.mrb[143].mxu0  ;;  %v12286_v63 = vld [vmem:[#allocation70_spill] sm:$0xff] }
 0x708   :  { %12281 = vst [vmem:[#allocation149_spill] sm:$0xff] %v10123_v18  ;;  %v3608_v20 = vpop.f32.mrb[116].mxu1 }
 0x709   :  { %v10126_v19 = vadd.f32 %v3608_v20, %v12282_v12  ;;  %v3610_v35 = vpop.f32.mrb[117].mxu1 }
 0x70a   :  { %v3611_v39 = vadd.f32 %v3610_v35, %v12283_v38  ;;  %v3612_v27 = vpop.f32.mrb[118].mxu1 }
 0x70b   :  { %v10130_v33 = vadd.f32 %v3612_v27, %v9858_v13  ;;  %v3614_v11 = vpop.f32.mrb[119].mxu1  ;;  %v12290_v13 = vld [vmem:[#allocation121_spill] sm:$0xff] }
 0x70c   :  { %v3615_v21 = vadd.f32 %v3614_v11, %v9860_v6  ;;  %4362 = vperm.xlu1 %6284, %v3611_v39   ;;  %v10133_v3 = vpop.f32.mrb[144].mxu0  ;;  %v12291_v6 = vld [vmem:[#allocation118_spill] sm:$0xff] }
 0x70d   :  { %12284 = vst [vmem:[#allocation147_spill] sm:$0xff] %v10130_v33  ;;  %12285 = vst [vmem:[#allocation157_spill] sm:$0xff] %v10133_v3  ;;  %3877 = vmatmul.mubr.bf16.gmra.mrb[224].mxu1 %v12286_v63  ;;  %v10136_v18 = vpop.f32.mrb[145].mxu0 }
 0x70e   :  { %12287 = vst [vmem:[#allocation154_spill] sm:$0xff] %v10136_v18  ;;  %4367 = vperm.xlu0 %6283, %v3615_v21   ;;  %3886 = vmatprep.mubr.bf16.mxu1 %v12196_v44  ;;  %v10139_v20 = vpop.f32.mrb[146].mxu0  ;;  %v12292_v18 = vld [vmem:[#allocation129_spill] sm:$0xff] }
 0x70f   :  { %12288 = vst [vmem:[#allocation163_spill] sm:$0xff] %v10139_v20  ;;  %v10141_v12 = vpop.f32.mrb[147].mxu0  ;;  %v12294_v20 = vld [vmem:[#allocation220_spill] sm:$0xff] }
 0x710   :  { %12289 = vst [vmem:[#allocation161_spill] sm:$0xff] %v10141_v12  ;;  %v3618_v35 = vpop.f32.mrb[120].mxu1 }
 0x711   :  { %v10144_v38 = vadd.f32 %v3618_v35, %v12290_v13  ;;  %v3620_v27 = vpop.f32.mrb[121].mxu1 }
 0x712   :  { %v3621_v39 = vadd.f32 %v3620_v27, %v12291_v6  ;;  %v3622_v11 = vpop.f32.mrb[122].mxu1 }
 0x713   :  { %v10148_v3 = vadd.f32 %v3622_v11, %v9872_v46  ;;  %v3624_v63 = vpop.f32.mrb[123].mxu1 }
 0x714   :  { %v3625_v21 = vadd.f32 %v3624_v63, %v12292_v18  ;;  %4372 = vperm.xlu1 %6284, %v3621_v39   ;;  %v10151_v33 = vpop.f32.mrb[148].mxu0  ;;  %v12298_v18 = vld [vmem:[#allocation127_spill] sm:$0xff] }
 0x715   :  { %12293 = vst [vmem:[#allocation169_spill] sm:$0xff] %v10151_v33  ;;  %3887 = vmatmul.mubr.bf16.gmra.mrb[228].mxu1 %v12294_v20  ;;  %v10154_v12 = vpop.f32.mrb[149].mxu0 }
 0x716   :  { %12295 = vst [vmem:[#allocation166_spill] sm:$0xff] %v10154_v12  ;;  %4377 = vperm.xlu0 %6283, %v3625_v21   ;;  %3896 = vmatprep.mubr.bf16.mxu1 %v12196_v44  ;;  %v10157_v35 = vpop.f32.mrb[150].mxu0  ;;  %v12300_v12 = vld [vmem:[#allocation151_spill] sm:$0xff] }
 0x717   :  { %12296 = vst [vmem:[#allocation173_spill] sm:$0xff] %v10157_v35  ;;  %v10159_v13 = vpop.f32.mrb[151].mxu0  ;;  %v12302_v35 = vld [vmem:[#allocation108_spill] sm:$0xff] }
 0x718   :  { %12297 = vst [vmem:[#allocation172_spill] sm:$0xff] %v10159_v13  ;;  %v3628_v27 = vpop.f32.mrb[124].mxu1 }
 0x719   :  { %v10162_v46 = vadd.f32 %v3628_v27, %v9878_v49  ;;  %v3630_v6 = vpop.f32.mrb[125].mxu1 }
 0x71a   :  { %v3631_v39 = vadd.f32 %v3630_v6, %v12298_v18  ;;  %v3632_v11 = vpop.f32.mrb[126].mxu1 }
 0x71b   :  { %v10166_v63 = vadd.f32 %v3632_v11, %v9884_v41  ;;  %v3634_v20 = vpop.f32.mrb[127].mxu1 }
 0x71c   :  { %v3635_v21 = vadd.f32 %v3634_v20, %v12300_v12  ;;  %4382 = vperm.xlu1 %6284, %v3631_v39   ;;  %v10169_v33 = vpop.f32.mrb[152].mxu0  ;;  %v12307_v12 = vld [vmem:[#allocation150_spill] sm:$0xff] }
 0x71d   :  { %12299 = vst [vmem:[#allocation178_spill] sm:$0xff] %v10166_v63  ;;  %12301 = vst [vmem:[#allocation177_spill] sm:$0xff] %v10169_v33  ;;  %3897 = vmatmul.mubr.bf16.gmra.mrb[232].mxu1 %v12302_v35  ;;  %v10172_v13 = vpop.f32.mrb[153].mxu0 }
 0x71e   :  { %12303 = vst [vmem:[#allocation185_spill] sm:$0xff] %v10172_v13  ;;  %4387 = vperm.xlu0 %6283, %v3635_v21   ;;  %3906 = vmatprep.mubr.bf16.mxu1 %v12196_v44  ;;  %v10175_v49 = vpop.f32.mrb[154].mxu0  ;;  %v12309_v13 = vld [vmem:[#allocation222_spill] sm:$0xff] }
 0x71f   :  { %12304 = vst [vmem:[#allocation183_spill] sm:$0xff] %v10175_v49  ;;  %v10177_v27 = vpop.f32.mrb[155].mxu0  ;;  %v12311_v49 = vld [vmem:[#allocation114_spill] sm:$0xff] }
 0x720   :  { %12305 = vst [vmem:[#allocation191_spill] sm:$0xff] %v10177_v27  ;;  %v3638_v6 = vpop.f32.mrb[128].mxu1 }
 0x721   :  { %v10180_v41 = vadd.f32 %v3638_v6, %v9890_v25  ;;  %v3640_v18 = vpop.f32.mrb[129].mxu1 }
 0x722   :  { %v3641_v39 = vadd.f32 %v3640_v18, %v12307_v12  ;;  %v3642_v11 = vpop.f32.mrb[130].mxu1 }
 0x723   :  { %12306 = vst [vmem:[#allocation189_spill] sm:$0xff] %v10180_v41  ;;  %v10184_v20 = vadd.f32 %v3642_v11, %v9896_v50  ;;  %v3644_v35 = vpop.f32.mrb[131].mxu1  ;;  %v12315_v50 = vld [vmem:[#allocation91_spill] sm:$0xff] }
 0x724   :  { %v3645_v21 = vadd.f32 %v3644_v35, %v12309_v13  ;;  %4392 = vperm.xlu1 %6284, %v3641_v39   ;;  %v10187_v33 = vpop.f32.mrb[156].mxu0  ;;  %v12317_v13 = vld [vmem:[#allocation90_spill] sm:$0xff] }
 0x725   :  { %12308 = vst [vmem:[#allocation217_spill] sm:$0xff] %v10184_v20  ;;  %12310 = vst [vmem:[#allocation219_spill] sm:$0xff] %v10187_v33  ;;  %3907 = vmatmul.mubr.bf16.gmra.mrb[236].mxu1 %v12311_v49  ;;  %v10190_v27 = vpop.f32.mrb[157].mxu0  ;;  %v12318_v33 = vld [vmem:[#allocation158_spill] sm:$0xff] }
 0x726   :  { %12312 = vst [vmem:[#allocation221_spill] sm:$0xff] %v10190_v27  ;;  %4397 = vperm.xlu0 %6283, %v3645_v21   ;;  %3916 = vmatprep.mubr.bf16.mxu1 %v12196_v44  ;;  %v10193_v25 = vpop.f32.mrb[158].mxu0  ;;  %v12320_v27 = vld [vmem:[#allocation156_spill] sm:$0xff] }
 0x727   :  { %12313 = vst [vmem:[#allocation223_spill] sm:$0xff] %v10193_v25  ;;  %v10195_v6 = vpop.f32.mrb[159].mxu0  ;;  %v12322_v25 = vld [vmem:[#allocation122_spill] sm:$0xff] }
 0x728   :  { %12314 = vst [vmem:[#allocation225_spill] sm:$0xff] %v10195_v6  ;;  %v3648_v18 = vpop.f32.mrb[132].mxu1 }
 0x729   :  { %v10198_v12 = vadd.f32 %v3648_v18, %v12315_v50  ;;  %v3650_v11 = vpop.f32.mrb[133].mxu1 }
 0x72a   :  { %v3651_v39 = vadd.f32 %v3650_v11, %v12317_v13  ;;  %v3652_v35 = vpop.f32.mrb[134].mxu1 }
 0x72b   :  { %12316 = vst [vmem:[#allocation227_spill] sm:$0xff] %v10198_v12  ;;  %v10202_v20 = vadd.f32 %v3652_v35, %v12318_v33  ;;  %v3654_v49 = vpop.f32.mrb[135].mxu1  ;;  %v12326_v33 = vld [vmem:[#allocation95_spill] sm:$0xff] }
 0x72c   :  { %v3655_v21 = vadd.f32 %v3654_v49, %v12320_v27  ;;  %4402 = vperm.xlu1 %6284, %v3651_v39   ;;  %v10205_v41 = vpop.f32.mrb[160].mxu0  ;;  %v12328_v27 = vld [vmem:[#allocation18_spill] sm:$0xff] }
 0x72d   :  { %12319 = vst [vmem:[#allocation229_spill] sm:$0xff] %v10202_v20  ;;  %12321 = vst [vmem:[#allocation230_spill] sm:$0xff] %v10205_v41  ;;  %3917 = vmatmul.mubr.bf16.gmra.mrb[240].mxu1 %v12322_v25  ;;  %v10208_v6 = vpop.f32.mrb[161].mxu0  ;;  %v4125_v39 = vsub.f32 %v12328_v27, %v9925_v1  ;;  %v12329_v49 = vld [vmem:[#allocation94_spill] sm:$0xff]  ;;  %v12330_v20 = vld [vmem:[#allocation164_spill] sm:$0xff] }
 0x72e   :  { %12323 = vst [vmem:[#allocation211_spill] sm:$0xff] %v10208_v6  ;;  %4407 = vperm.xlu0 %6283, %v3655_v21   ;;  %3926 = vmatprep.mubr.bf16.mxu1 %v12196_v44  ;;  %v10211_v18 = vpop.f32.mrb[162].mxu0 }
 0x72f   :  { %12324 = vst [vmem:[#allocation101_spill] sm:$0xff] %v10211_v18  ;;  %v10213_v50 = vpop.f32.mrb[163].mxu0  ;;  %v10227_v18 = vld [vmem:[%s11200_s3] ss:$0 sm:$0xff] }
 0x730   :  { %12325 = vst [vmem:[#allocation212_spill] sm:$0xff] %v10213_v50  ;;  %v3658_v11 = vpop.f32.mrb[136].mxu1 }
 0x731   :  { %v10216_v13 = vadd.f32 %v3658_v11, %v12326_v33  ;;  %v3660_v35 = vpop.f32.mrb[137].mxu1  ;;  %v12331_v11 = vld [vmem:[#allocation19_spill] sm:$0xff] }
 0x732   :  { %v3661_v41 = vadd.f32 %v3660_v35, %v12329_v49  ;;  %v3662_v25 = vpop.f32.mrb[138].mxu1  ;;  %v4126_v33 = vsub.f32 %v12331_v11, %v9931_v5  ;;  %v12338_v11 = vld [vmem:[#allocation17_spill] sm:$0xff] }
 0x733   :  { %12327 = vst [vmem:[#allocation107_spill] sm:$0xff] %v10216_v13  ;;  %v10222_v6 = vadd.f32 %v3662_v25, %v12330_v20  ;;  %v3664_v21 = vpop.f32.mrb[139].mxu1  ;;  %v4253_v50 = vpop.permute.xlu0 %4252  ;;  %v12332_v13 = vld [vmem:[#allocation162_spill] sm:$0xff] }
 0x734   :  { %v3665_v12 = vadd.f32 %v3664_v21, %v12332_v13  ;;  %v4875_v63 = vmul.f32 %v4253_v50, %v4125_v39  ;;  %4412 = vperm.xlu1 %6284, %v3661_v41   ;;  %v10232_v1 = vpop.f32.mrb[164].mxu0  ;;  %v10237_v20 = vld [vmem:[%s11201_s4] ss:$0 sm:$0xff] }
 0x735   :  { %12333 = vst [vmem:[#allocation218_spill] sm:$0xff] %v10232_v1  ;;  %v4258_v35 = vpop.permute.xlu1 %4257  ;;  %3927 = vmatmul.mubr.bf16.gmra.mrb[244].mxu1 %v9464_v15  ;;  %v10240_v27 = vpop.f32.mrb[165].mxu0 }
 0x736   :  { %12334 = vst [vmem:[#allocation105_spill] sm:$0xff] %v10240_v27  ;;  %v5007_v49 = vmul.f32 %v10227_v18, %v4875_v63  ;;  %v4876_v25 = vmul.f32 %v4258_v35, %v4126_v33  ;;  %4417 = vperm.xlu0 %6283, %v3665_v12   ;;  %3936 = vmatprep.mubr.bf16.mxu1 %v12196_v44  ;;  %v10244_v5 = vpop.f32.mrb[166].mxu0 }
 0x737   :  { %12335 = vst [vmem:[#allocation213_spill] sm:$0xff] %v10244_v5  ;;  %v10246_v41 = vpop.f32.mrb[167].mxu0  ;;  %v4127_v63 = vsub.f32 %v12338_v11, %v9945_v36  ;;  %v12339_v5 = vld [vmem:[#allocation224_spill] sm:$0xff] }
 0x738   :  { %12336 = vst [vmem:[#allocation214_spill] sm:$0xff] %v10246_v41  ;;  %v5139_v50 = vadd.f32 %v10237_v20, %v5007_v49  ;;  %v5008_v13 = vmul.f32 %v10227_v18, %v4876_v25  ;;  %v3668_v39 = vpop.f32.mrb[140].mxu1  ;;  %v12340_v25 = vld [vmem:[#allocation20_spill] sm:$0xff] }
 0x739   :  { %v10251_v21 = vadd.f32 %v3668_v39, %v9934_v8  ;;  %v3670_v15 = vpop.f32.mrb[141].mxu1  ;;  %v4128_v1 = vsub.f32 %v12340_v25, %v9950_v61  ;;  %v12341_v39 = vld [vmem:[#allocation102_spill] sm:$0xff] }
 0x73a   :  { %5264 = vst [vmem:[#allocation5] sm:$0xff] %v5139_v50  ;;  %v5140_v12 = vadd.f32 %v10237_v20, %v5008_v13  ;;  %v3671_v33 = vadd.f32 %v3670_v15, %v9937_v16  ;;  %v3672_v35 = vpop.f32.mrb[142].mxu1 }
 0x73b   :  { %12337 = vst [vmem:[#allocation110_spill] sm:$0xff] %v10251_v21  ;;  %v10258_v41 = vadd.f32 %v3672_v35, %v12339_v5  ;;  %v4263_v49 = vpop.permute.xlu1 %4262  ;;  %v3674_v27 = vpop.f32.mrb[143].mxu1 }
 0x73c   :  { %5265 = vst [vmem:[#allocation5 + $0x8] sm:$0xff] %v5140_v12  ;;  %v4877_v8 = vmul.f32 %v4263_v49, %v4127_v63  ;;  %v3675_v21 = vadd.f32 %v3674_v27, %v12341_v39  ;;  %4422 = vperm.xlu1 %6284, %v3671_v33   ;;  %v10263_v36 = vpop.f32.mrb[168].mxu0  ;;  %v12342_v33 = vld [vmem:[#allocation21_spill] sm:$0xff] }
 0x73d   :  { %3937 = vmatmul.mubr.bf16.gmra.mrb[248].mxu1 %v9477_v37  ;;  %v4268_v50 = vpop.permute.xlu0 %4267  ;;  %v10266_v16 = vpop.f32.mrb[169].mxu0  ;;  %v4129_v35 = vsub.f32 %v12342_v33, %v9964_v22 }
 0x73e   :  { %v5009_v5 = vmul.f32 %v10227_v18, %v4877_v8  ;;  %v4878_v13 = vmul.f32 %v4268_v50, %v4128_v1  ;;  %4427 = vperm.xlu0 %6283, %v3675_v21   ;;  %3946 = vmatprep.mubr.bf16.mxu1 %v12196_v44  ;;  %v10270_v15 = vpop.f32.mrb[170].mxu0  ;;  %v12343_v50 = vld [vmem:[#allocation22_spill] sm:$0xff] }
 0x73f   :  { %v10272_v61 = vpop.f32.mrb[171].mxu0 }
 0x740   :  { %v5141_v27 = vadd.f32 %v10237_v20, %v5009_v5  ;;  %v5010_v11 = vmul.f32 %v10227_v18, %v4878_v13  ;;  %v3678_v63 = vpop.f32.mrb[144].mxu1  ;;  %v4130_v5 = vsub.f32 %v12343_v50, %v9968_v17  ;;  %v12344_v13 = vld [vmem:[#allocation100_spill] sm:$0xff] }
 0x741   :  { %v10277_v37 = vadd.f32 %v3678_v63, %v9953_v51  ;;  %v3680_v12 = vpop.f32.mrb[145].mxu1 }
 0x742   :  { %5266 = vst [vmem:[#allocation5 + $0x10] sm:$0xff] %v5141_v27  ;;  %v5142_v1 = vadd.f32 %v10237_v20, %v5010_v11  ;;  %v3681_v21 = vadd.f32 %v3680_v12, %v9956_v52  ;;  %v3682_v49 = vpop.f32.mrb[146].mxu1  ;;  %v12345_v27 = vld [vmem:[#allocation201_spill] sm:$0xff] }
 0x743   :  { %v10284_v25 = vadd.f32 %v3682_v49, %v9959_v24  ;;  %v4273_v8 = vpop.permute.xlu1 %4272  ;;  %v3684_v39 = vpop.f32.mrb[147].mxu1 }
 0x744   :  { %5267 = vst [vmem:[#allocation5 + $0x18] sm:$0xff] %v5142_v1  ;;  %v4879_v51 = vmul.f32 %v4273_v8, %v4129_v35  ;;  %v3685_v63 = vadd.f32 %v3684_v39, %v12344_v13  ;;  %4432 = vperm.xlu1 %6284, %v3681_v21   ;;  %v10289_v22 = vpop.f32.mrb[172].mxu0  ;;  %v12347_v39 = vld [vmem:[#allocation23_spill] sm:$0xff] }
 0x745   :  { %3947 = vmatmul.mubr.bf16.gmra.mrb[0].mxu1 %v12345_v27  ;;  %v4278_v11 = vpop.permute.xlu0 %4277  ;;  %v10292_v52 = vpop.f32.mrb[173].mxu0  ;;  %v4131_v50 = vsub.f32 %v12347_v39, %v9982_v56 }
 0x746   :  { %v5011_v24 = vmul.f32 %v10227_v18, %v4879_v51  ;;  %v4880_v12 = vmul.f32 %v4278_v11, %v4130_v5  ;;  %4437 = vperm.xlu0 %6283, %v3685_v63   ;;  %3956 = vmatprep.mubr.bf16.mxu1 %v12196_v44  ;;  %v10296_v33 = vpop.f32.mrb[174].mxu0 }
 0x747   :  { %v10298_v17 = vpop.f32.mrb[175].mxu0 }
 0x748   :  { %12346 = vst [vmem:[#allocation113_spill] sm:$0xff] %v10298_v17  ;;  %v5143_v35 = vadd.f32 %v10237_v20, %v5011_v24  ;;  %v5012_v1 = vmul.f32 %v10227_v18, %v4880_v12  ;;  %v3688_v21 = vpop.f32.mrb[148].mxu1  ;;  %v12348_v24 = vld [vmem:[#allocation24_spill] sm:$0xff] }
 0x749   :  { %v10303_v49 = vadd.f32 %v3688_v21, %v9971_v10  ;;  %v3690_v8 = vpop.f32.mrb[149].mxu1  ;;  %v4132_v12 = vsub.f32 %v12348_v24, %v9986_v54  ;;  %v12349_v21 = vld [vmem:[#allocation170_spill] sm:$0xff] }
 0x74a   :  { %5268 = vst [vmem:[#allocation5 + $0x20] sm:$0xff] %v5143_v35  ;;  %v5144_v5 = vadd.f32 %v10237_v20, %v5012_v1  ;;  %v3691_v51 = vadd.f32 %v3690_v8, %v9974_v4  ;;  %v3692_v13 = vpop.f32.mrb[150].mxu1  ;;  %v12350_v35 = vld [vmem:[#allocation203_spill] sm:$0xff] }
 0x74b   :  { %v10310_v63 = vadd.f32 %v3692_v13, %v9977_v59  ;;  %v4283_v27 = vpop.permute.xlu1 %4282  ;;  %v3694_v11 = vpop.f32.mrb[151].mxu1 }
 0x74c   :  { %5269 = vst [vmem:[#allocation5 + $0x28] sm:$0xff] %v5144_v5  ;;  %v4881_v10 = vmul.f32 %v4283_v27, %v4131_v50  ;;  %v3695_v17 = vadd.f32 %v3694_v11, %v12349_v21  ;;  %4442 = vperm.xlu1 %6284, %v3691_v51   ;;  %v10315_v56 = vpop.f32.mrb[176].mxu0  ;;  %v12352_v11 = vld [vmem:[#allocation25_spill] sm:$0xff] }
 0x74d   :  { %3957 = vmatmul.mubr.bf16.gmra.mrb[4].mxu1 %v12350_v35  ;;  %v4288_v1 = vpop.permute.xlu0 %4287  ;;  %v10318_v4 = vpop.f32.mrb[177].mxu0  ;;  %v4133_v24 = vsub.f32 %v12352_v11, %v10000_v55 }
 0x74e   :  { %v5013_v59 = vmul.f32 %v10227_v18, %v4881_v10  ;;  %v4882_v8 = vmul.f32 %v4288_v1, %v4132_v12  ;;  %4447 = vperm.xlu0 %6283, %v3695_v17   ;;  %3966 = vmatprep.mubr.bf16.mxu1 %v12196_v44  ;;  %v10322_v39 = vpop.f32.mrb[178].mxu0 }
 0x74f   :  { %v10324_v54 = vpop.f32.mrb[179].mxu0 }
 0x750   :  { %12351 = vst [vmem:[#allocation215_spill] sm:$0xff] %v10324_v54  ;;  %v5145_v50 = vadd.f32 %v10237_v20, %v5013_v59  ;;  %v5014_v5 = vmul.f32 %v10227_v18, %v4882_v8  ;;  %v3698_v51 = vpop.f32.mrb[152].mxu1  ;;  %v12353_v59 = vld [vmem:[#allocation26_spill] sm:$0xff] }
 0x751   :  { %v10329_v13 = vadd.f32 %v3698_v51, %v9989_v48  ;;  %v3700_v27 = vpop.f32.mrb[153].mxu1  ;;  %v4134_v8 = vsub.f32 %v12353_v59, %v10004_v9  ;;  %v12354_v51 = vld [vmem:[#allocation168_spill] sm:$0xff] }
 0x752   :  { %5270 = vst [vmem:[#allocation5 + $0x30] sm:$0xff] %v5145_v50  ;;  %v5146_v17 = vadd.f32 %v10237_v20, %v5014_v5  ;;  %v3701_v12 = vadd.f32 %v3700_v27, %v9992_v32  ;;  %v3702_v10 = vpop.f32.mrb[154].mxu1  ;;  %v12355_v50 = vld [vmem:[#allocation204_spill] sm:$0xff] }
 0x753   :  { %v10336_v21 = vadd.f32 %v3702_v10, %v9995_v58  ;;  %v4293_v35 = vpop.permute.xlu1 %4292  ;;  %v3704_v1 = vpop.f32.mrb[155].mxu1 }
 0x754   :  { %5271 = vst [vmem:[#allocation5 + $0x38] sm:$0xff] %v5146_v17  ;;  %v4883_v48 = vmul.f32 %v4293_v35, %v4133_v24  ;;  %v3705_v54 = vadd.f32 %v3704_v1, %v12354_v51  ;;  %4452 = vperm.xlu1 %6284, %v3701_v12   ;;  %v10341_v55 = vpop.f32.mrb[180].mxu0  ;;  %v12357_v1 = vld [vmem:[#allocation27_spill] sm:$0xff] }
 0x755   :  { %3967 = vmatmul.mubr.bf16.gmra.mrb[8].mxu1 %v12355_v50  ;;  %v4298_v5 = vpop.permute.xlu0 %4297  ;;  %v10344_v32 = vpop.f32.mrb[181].mxu0  ;;  %v4135_v59 = vsub.f32 %v12357_v1, %v10018_v7 }
 0x756   :  { %v5015_v58 = vmul.f32 %v10227_v18, %v4883_v48  ;;  %v4884_v27 = vmul.f32 %v4298_v5, %v4134_v8  ;;  %4457 = vperm.xlu0 %6283, %v3705_v54   ;;  %3976 = vmatprep.mubr.bf16.mxu1 %v12196_v44  ;;  %v10348_v11 = vpop.f32.mrb[182].mxu0 }
 0x757   :  { %v10350_v9 = vpop.f32.mrb[183].mxu0 }
 0x758   :  { %12356 = vst [vmem:[#allocation216_spill] sm:$0xff] %v10350_v9  ;;  %v5147_v24 = vadd.f32 %v10237_v20, %v5015_v58  ;;  %v5016_v17 = vmul.f32 %v10227_v18, %v4884_v27  ;;  %v3708_v12 = vpop.f32.mrb[156].mxu1  ;;  %v12358_v58 = vld [vmem:[#allocation28_spill] sm:$0xff] }
 0x759   :  { %v10355_v10 = vadd.f32 %v3708_v12, %v10007_v2  ;;  %v3710_v35 = vpop.f32.mrb[157].mxu1  ;;  %v4136_v27 = vsub.f32 %v12358_v58, %v10022_v28  ;;  %v12359_v12 = vld [vmem:[#allocation106_spill] sm:$0xff] }
 0x75a   :  { %5272 = vst [vmem:[#allocation5 + $0x40] sm:$0xff] %v5147_v24  ;;  %v5148_v54 = vadd.f32 %v10237_v20, %v5016_v17  ;;  %v3711_v8 = vadd.f32 %v3710_v35, %v10010_v62  ;;  %v3712_v48 = vpop.f32.mrb[158].mxu1  ;;  %v12360_v24 = vld [vmem:[#allocation116_spill] sm:$0xff] }
 0x75b   :  { %v10362_v51 = vadd.f32 %v3712_v48, %v10013_v26  ;;  %v4303_v50 = vpop.permute.xlu1 %4302  ;;  %v3714_v5 = vpop.f32.mrb[159].mxu1 }
 0x75c   :  { %5273 = vst [vmem:[#allocation5 + $0x48] sm:$0xff] %v5148_v54  ;;  %v4885_v2 = vmul.f32 %v4303_v50, %v4135_v59  ;;  %v3715_v9 = vadd.f32 %v3714_v5, %v12359_v12  ;;  %4462 = vperm.xlu1 %6284, %v3711_v8   ;;  %v10367_v7 = vpop.f32.mrb[184].mxu0  ;;  %v12362_v5 = vld [vmem:[#allocation29_spill] sm:$0xff] }
 0x75d   :  { %3977 = vmatmul.mubr.bf16.gmra.mrb[12].mxu1 %v12360_v24  ;;  %v4308_v17 = vpop.permute.xlu0 %4307  ;;  %v10370_v62 = vpop.f32.mrb[185].mxu0  ;;  %v4137_v58 = vsub.f32 %v12362_v5, %v10036_v31 }
 0x75e   :  { %v5017_v26 = vmul.f32 %v10227_v18, %v4885_v2  ;;  %v4886_v35 = vmul.f32 %v4308_v17, %v4136_v27  ;;  %4467 = vperm.xlu0 %6283, %v3715_v9   ;;  %3986 = vmatprep.mubr.bf16.mxu1 %v12196_v44  ;;  %v10374_v1 = vpop.f32.mrb[186].mxu0 }
 0x75f   :  { %v10376_v28 = vpop.f32.mrb[187].mxu0 }
 0x760   :  { %12361 = vst [vmem:[#allocation70_spill] sm:$0xff] %v10376_v28  ;;  %v5149_v59 = vadd.f32 %v10237_v20, %v5017_v26  ;;  %v5018_v54 = vmul.f32 %v10227_v18, %v4886_v35  ;;  %v3718_v8 = vpop.f32.mrb[160].mxu1  ;;  %v12363_v26 = vld [vmem:[#allocation30_spill] sm:$0xff] }
 0x761   :  { %v10381_v48 = vadd.f32 %v3718_v8, %v10025_v23  ;;  %v3720_v50 = vpop.f32.mrb[161].mxu1  ;;  %v4138_v35 = vsub.f32 %v12363_v26, %v10040_v42  ;;  %v12364_v8 = vld [vmem:[#allocation104_spill] sm:$0xff] }
 0x762   :  { %5274 = vst [vmem:[#allocation5 + $0x50] sm:$0xff] %v5149_v59  ;;  %v5150_v9 = vadd.f32 %v10237_v20, %v5018_v54  ;;  %v3721_v27 = vadd.f32 %v3720_v50, %v10028_v30  ;;  %v3722_v2 = vpop.f32.mrb[162].mxu1  ;;  %v12365_v59 = vld [vmem:[#allocation124_spill] sm:$0xff] }
 0x763   :  { %v10388_v12 = vadd.f32 %v3722_v2, %v10031_v60  ;;  %v4313_v24 = vpop.permute.xlu1 %4312  ;;  %v3724_v17 = vpop.f32.mrb[163].mxu1 }
 0x764   :  { %5275 = vst [vmem:[#allocation5 + $0x58] sm:$0xff] %v5150_v9  ;;  %v4887_v23 = vmul.f32 %v4313_v24, %v4137_v58  ;;  %v3725_v28 = vadd.f32 %v3724_v17, %v12364_v8  ;;  %4472 = vperm.xlu1 %6284, %v3721_v27   ;;  %v10393_v31 = vpop.f32.mrb[188].mxu0  ;;  %v12367_v17 = vld [vmem:[#allocation31_spill] sm:$0xff] }
 0x765   :  { %3987 = vmatmul.mubr.bf16.gmra.mrb[16].mxu1 %v12365_v59  ;;  %v4318_v54 = vpop.permute.xlu0 %4317  ;;  %v10396_v30 = vpop.f32.mrb[189].mxu0  ;;  %v4139_v26 = vsub.f32 %v12367_v17, %v10054_v53 }
 0x766   :  { %v5019_v60 = vmul.f32 %v10227_v18, %v4887_v23  ;;  %v4888_v50 = vmul.f32 %v4318_v54, %v4138_v35  ;;  %4477 = vperm.xlu0 %6283, %v3725_v28   ;;  %v10399_v5 = vpop.f32.mrb[190].mxu0  ;;  %3996 = vmatprep.mubr.bf16.mxu1 %v12196_v44 }
 0x767   :  { %v10402_v42 = vpop.f32.mrb[191].mxu0 }
 0x768   :  { %12366 = vst [vmem:[#allocation121_spill] sm:$0xff] %v10402_v42  ;;  %v5151_v58 = vadd.f32 %v10237_v20, %v5019_v60  ;;  %v5020_v9 = vmul.f32 %v10227_v18, %v4888_v50  ;;  %v3728_v27 = vpop.f32.mrb[164].mxu1  ;;  %v12368_v60 = vld [vmem:[#allocation32_spill] sm:$0xff] }
 0x769   :  { %v10407_v2 = vadd.f32 %v3728_v27, %v10043_v43  ;;  %v3730_v24 = vpop.f32.mrb[165].mxu1  ;;  %v4140_v50 = vsub.f32 %v12368_v60, %v10058_v34  ;;  %v12369_v27 = vld [vmem:[#allocation175_spill] sm:$0xff] }
 0x76a   :  { %5276 = vst [vmem:[#allocation5 + $0x60] sm:$0xff] %v5151_v58  ;;  %v5152_v28 = vadd.f32 %v10237_v20, %v5020_v9  ;;  %v3731_v35 = vadd.f32 %v3730_v24, %v10046_v57  ;;  %v3732_v23 = vpop.f32.mrb[166].mxu1  ;;  %v12371_v9 = vld [vmem:[#allocation89_spill] sm:$0xff] }
 0x76b   :  { %v10414_v8 = vadd.f32 %v3732_v23, %v10049_v29  ;;  %v4323_v59 = vpop.permute.xlu1 %4322  ;;  %v3734_v54 = vpop.f32.mrb[167].mxu1 }
 0x76c   :  { %5277 = vst [vmem:[#allocation5 + $0x68] sm:$0xff] %v5152_v28  ;;  %v4889_v43 = vmul.f32 %v4323_v59, %v4139_v26  ;;  %v3735_v42 = vadd.f32 %v3734_v54, %v12369_v27  ;;  %4482 = vperm.xlu1 %6284, %v3731_v35   ;;  %v10419_v53 = vpop.f32.mrb[192].mxu0  ;;  %v12375_v54 = vld [vmem:[#allocation33_spill] sm:$0xff] }
 0x76d   :  { %v10421_v58 = vpop.f32.mrb[193].mxu0  ;;  %3997 = vmatmul.mubr.bf16.gmra.mrb[20].mxu1 %v12371_v9  ;;  %v4328_v57 = vpop.permute.xlu0 %4327  ;;  %v4141_v60 = vsub.f32 %v12375_v54, %v10072_v0  ;;  %v12377_v9 = vld [vmem:[#allocation226_spill] sm:$0xff] }
 0x76e   :  { %12370 = vst [vmem:[#allocation118_spill] sm:$0xff] %v10421_v58  ;;  %v5021_v29 = vmul.f32 %v10227_v18, %v4889_v43  ;;  %v4890_v24 = vmul.f32 %v4328_v57, %v4140_v50  ;;  %4487 = vperm.xlu0 %6283, %v3735_v42   ;;  %v10425_v17 = vpop.f32.mrb[194].mxu0  ;;  %4006 = vmatprep.mubr.bf16.mxu1 %v12196_v44  ;;  %v12376_v50 = vld [vmem:[#allocation174_spill] sm:$0xff] }
 0x76f   :  { %12372 = vst [vmem:[#allocation129_spill] sm:$0xff] %v10425_v17  ;;  %v10428_v34 = vpop.f32.mrb[195].mxu0  ;;  %v12379_v17 = vld [vmem:[#allocation34_spill] sm:$0xff] }
 0x770   :  { %12373 = vst [vmem:[#allocation220_spill] sm:$0xff] %v10428_v34  ;;  %v5153_v26 = vadd.f32 %v10237_v20, %v5021_v29  ;;  %v5022_v28 = vmul.f32 %v10227_v18, %v4890_v24  ;;  %v3738_v35 = vpop.f32.mrb[168].mxu1  ;;  %v12378_v24 = vld [vmem:[#allocation109_spill] sm:$0xff] }
 0x771   :  { %v10433_v23 = vadd.f32 %v3738_v35, %v10061_v45  ;;  %v3740_v59 = vpop.f32.mrb[169].mxu1  ;;  %v4142_v58 = vsub.f32 %v12379_v17, %v12378_v24  ;;  %v12380_v35 = vld [vmem:[#allocation112_spill] sm:$0xff]  ;;  %v12388_v24 = vld [vmem:[#allocation35_spill] sm:$0xff] }
 0x772   :  { %5278 = vst [vmem:[#allocation5 + $0x70] sm:$0xff] %v5153_v26  ;;  %v5154_v42 = vadd.f32 %v10237_v20, %v5022_v28  ;;  %v3741_v43 = vadd.f32 %v3740_v59, %v12376_v50  ;;  %v3742_v27 = vpop.f32.mrb[170].mxu1  ;;  %v12383_v28 = vld [vmem:[#allocation202_spill] sm:$0xff] }
 0x773   :  { %12374 = vst [vmem:[#allocation127_spill] sm:$0xff] %v10433_v23  ;;  %v10440_v57 = vadd.f32 %v3742_v27, %v12377_v9  ;;  %v4333_v29 = vpop.permute.xlu1 %4332  ;;  %v3744_v34 = vpop.f32.mrb[171].mxu1 }
 0x774   :  { %5279 = vst [vmem:[#allocation5 + $0x78] sm:$0xff] %v5154_v42  ;;  %v4891_v45 = vmul.f32 %v4333_v29, %v4141_v60  ;;  %v3745_v23 = vadd.f32 %v3744_v34, %v12380_v35  ;;  %4492 = vperm.xlu1 %6284, %v3741_v43   ;;  %v10445_v0 = vpop.f32.mrb[196].mxu0  ;;  %v12386_v43 = vld [vmem:[#allocation181_spill] sm:$0xff] }
 0x775   :  { %12381 = vst [vmem:[#allocation151_spill] sm:$0xff] %v10445_v0  ;;  %v10447_v26 = vpop.f32.mrb[197].mxu0  ;;  %4007 = vmatmul.mubr.bf16.gmra.mrb[24].mxu1 %v12383_v28  ;;  %v4338_v59 = vpop.permute.xlu0 %4337 }
 0x776   :  { %12382 = vst [vmem:[#allocation108_spill] sm:$0xff] %v10447_v26  ;;  %v5023_v54 = vmul.f32 %v10227_v18, %v4891_v45  ;;  %v4892_v50 = vmul.f32 %v4338_v59, %v4142_v58  ;;  %4497 = vperm.xlu0 %6283, %v3745_v23   ;;  %v10451_v27 = vpop.f32.mrb[198].mxu0  ;;  %4016 = vmatprep.mubr.bf16.mxu1 %v12196_v44  ;;  %v12389_v23 = vld [vmem:[#allocation180_spill] sm:$0xff] }
 0x777   :  { %12384 = vst [vmem:[#allocation150_spill] sm:$0xff] %v10451_v27  ;;  %v10454_v17 = vpop.f32.mrb[199].mxu0  ;;  %v4143_v45 = vsub.f32 %v12388_v24, %v10090_v47  ;;  %v12390_v59 = vld [vmem:[#allocation120_spill] sm:$0xff] }
 0x778   :  { %12385 = vst [vmem:[#allocation222_spill] sm:$0xff] %v10454_v17  ;;  %v5155_v34 = vadd.f32 %v10237_v20, %v5023_v54  ;;  %v5024_v60 = vmul.f32 %v10227_v18, %v4892_v50  ;;  %v3748_v42 = vpop.f32.mrb[172].mxu1  ;;  %v12391_v50 = vld [vmem:[#allocation187_spill] sm:$0xff]  ;;  %v12392_v26 = vld [vmem:[#allocation36_spill] sm:$0xff] }
 0x779   :  { %v10459_v9 = vadd.f32 %v3748_v42, %v12386_v43  ;;  %v3750_v29 = vpop.f32.mrb[173].mxu1  ;;  %v4144_v0 = vsub.f32 %v12392_v26, %v12391_v50  ;;  %v12393_v43 = vld [vmem:[#allocation117_spill] sm:$0xff] }
 0x77a   :  { %5280 = vst [vmem:[#allocation5 + $0x80] sm:$0xff] %v5155_v34  ;;  %v5156_v58 = vadd.f32 %v10237_v20, %v5024_v60  ;;  %v3751_v35 = vadd.f32 %v3750_v29, %v12389_v23  ;;  %v3752_v28 = vpop.f32.mrb[174].mxu1  ;;  %v12395_v60 = vld [vmem:[#allocation205_spill] sm:$0xff] }
 0x77b   :  { %12387 = vst [vmem:[#allocation114_spill] sm:$0xff] %v10459_v9  ;;  %v10466_v17 = vadd.f32 %v3752_v28, %v12390_v59  ;;  %v4343_v54 = vpop.permute.xlu1 %4342  ;;  %v3754_v27 = vpop.f32.mrb[175].mxu1  ;;  %v12400_v50 = vld [vmem:[#allocation37_spill] sm:$0xff] }
 0x77c   :  { %5281 = vst [vmem:[#allocation5 + $0x88] sm:$0xff] %v5156_v58  ;;  %v4893_v42 = vmul.f32 %v4343_v54, %v4143_v45  ;;  %v3755_v9 = vadd.f32 %v3754_v27, %v12393_v43  ;;  %4502 = vperm.xlu1 %6284, %v3751_v35   ;;  %v10471_v47 = vpop.f32.mrb[200].mxu0  ;;  %v12398_v35 = vld [vmem:[#allocation184_spill] sm:$0xff] }
 0x77d   :  { %v10473_v34 = vpop.f32.mrb[201].mxu0  ;;  %4017 = vmatmul.mubr.bf16.gmra.mrb[28].mxu1 %v12395_v60  ;;  %v4348_v29 = vpop.permute.xlu0 %4347 }
 0x77e   :  { %12394 = vst [vmem:[#allocation91_spill] sm:$0xff] %v10473_v34  ;;  %v5025_v24 = vmul.f32 %v10227_v18, %v4893_v42  ;;  %v4894_v23 = vmul.f32 %v4348_v29, %v4144_v0  ;;  %4507 = vperm.xlu0 %6283, %v3755_v9   ;;  %v10477_v28 = vpop.f32.mrb[202].mxu0  ;;  %4026 = vmatprep.mubr.bf16.mxu1 %v12196_v44  ;;  %v12401_v9 = vld [vmem:[#allocation200_spill] sm:$0xff] }
 0x77f   :  { %12396 = vst [vmem:[#allocation90_spill] sm:$0xff] %v10477_v28  ;;  %v10480_v26 = vpop.f32.mrb[203].mxu0  ;;  %v4145_v42 = vsub.f32 %v12400_v50, %v10108_v40  ;;  %v12402_v29 = vld [vmem:[#allocation228_spill] sm:$0xff] }
 0x780   :  { %12397 = vst [vmem:[#allocation158_spill] sm:$0xff] %v10480_v26  ;;  %v5157_v27 = vadd.f32 %v10237_v20, %v5025_v24  ;;  %v5026_v45 = vmul.f32 %v10227_v18, %v4894_v23  ;;  %v3758_v58 = vpop.f32.mrb[176].mxu1  ;;  %v12403_v23 = vld [vmem:[#allocation38_spill] sm:$0xff] }
 0x781   :  { %v10485_v59 = vadd.f32 %v3758_v58, %v12398_v35  ;;  %v3760_v54 = vpop.f32.mrb[177].mxu1  ;;  %v4146_v34 = vsub.f32 %v12403_v23, %v10112_v14  ;;  %v12404_v35 = vld [vmem:[#allocation128_spill] sm:$0xff]  ;;  %v12412_v23 = vld [vmem:[#allocation39_spill] sm:$0xff] }
 0x782   :  { %5282 = vst [vmem:[#allocation5 + $0x90] sm:$0xff] %v5157_v27  ;;  %v5158_v0 = vadd.f32 %v10237_v20, %v5026_v45  ;;  %v3761_v43 = vadd.f32 %v3760_v54, %v12401_v9  ;;  %v3762_v60 = vpop.f32.mrb[178].mxu1  ;;  %v12407_v45 = vld [vmem:[#allocation206_spill] sm:$0xff] }
 0x783   :  { %12399 = vst [vmem:[#allocation156_spill] sm:$0xff] %v10485_v59  ;;  %v10492_v26 = vadd.f32 %v3762_v60, %v12402_v29  ;;  %v4353_v24 = vpop.permute.xlu1 %4352  ;;  %v3764_v28 = vpop.f32.mrb[179].mxu1 }
 0x784   :  { %5283 = vst [vmem:[#allocation5 + $0x98] sm:$0xff] %v5158_v0  ;;  %v4895_v58 = vmul.f32 %v4353_v24, %v4145_v42  ;;  %v3765_v59 = vadd.f32 %v3764_v28, %v12404_v35  ;;  %4512 = vperm.xlu1 %6284, %v3761_v43   ;;  %v10497_v40 = vpop.f32.mrb[204].mxu0  ;;  %v12410_v43 = vld [vmem:[#allocation126_spill] sm:$0xff] }
 0x785   :  { %12405 = vst [vmem:[#allocation122_spill] sm:$0xff] %v10497_v40  ;;  %v10499_v27 = vpop.f32.mrb[205].mxu0  ;;  %4027 = vmatmul.mubr.bf16.gmra.mrb[32].mxu1 %v12407_v45  ;;  %v4358_v54 = vpop.permute.xlu0 %4357 }
 0x786   :  { %12406 = vst [vmem:[#allocation95_spill] sm:$0xff] %v10499_v27  ;;  %v5027_v50 = vmul.f32 %v10227_v18, %v4895_v58  ;;  %v4896_v9 = vmul.f32 %v4358_v54, %v4146_v34  ;;  %4517 = vperm.xlu0 %6283, %v3765_v59   ;;  %v10503_v60 = vpop.f32.mrb[206].mxu0  ;;  %4036 = vmatprep.mubr.bf16.mxu1 %v12196_v44  ;;  %v12413_v59 = vld [vmem:[#allocation192_spill] sm:$0xff]  ;;  %v12414_v54 = vld [vmem:[#allocation190_spill] sm:$0xff] }
 0x787   :  { %12408 = vst [vmem:[#allocation18_spill] sm:$0xff] %v10503_v60  ;;  %v10506_v14 = vpop.f32.mrb[207].mxu0  ;;  %v4147_v58 = vsub.f32 %v12412_v23, %v10126_v19  ;;  %v12416_v27 = vld [vmem:[#allocation40_spill] sm:$0xff] }
 0x788   :  { %12409 = vst [vmem:[#allocation94_spill] sm:$0xff] %v10506_v14  ;;  %v5159_v28 = vadd.f32 %v10237_v20, %v5027_v50  ;;  %v5028_v42 = vmul.f32 %v10227_v18, %v4896_v9  ;;  %v3768_v0 = vpop.f32.mrb[180].mxu1  ;;  %v12415_v9 = vld [vmem:[#allocation147_spill] sm:$0xff] }
 0x789   :  { %v10511_v29 = vadd.f32 %v3768_v0, %v12410_v43  ;;  %v3770_v24 = vpop.f32.mrb[181].mxu1  ;;  %v4148_v40 = vsub.f32 %v12416_v27, %v12415_v9  ;;  %v12417_v43 = vld [vmem:[#allocation149_spill] sm:$0xff] }
 0x78a   :  { %5284 = vst [vmem:[#allocation5 + $0xa0] sm:$0xff] %v5159_v28  ;;  %v5160_v34 = vadd.f32 %v10237_v20, %v5028_v42  ;;  %v3771_v35 = vadd.f32 %v3770_v24, %v12413_v59  ;;  %v3772_v45 = vpop.f32.mrb[182].mxu1  ;;  %v12419_v42 = vld [vmem:[#allocation93_spill] sm:$0xff] }
 0x78b   :  { %12411 = vst [vmem:[#allocation164_spill] sm:$0xff] %v10511_v29  ;;  %v10518_v14 = vadd.f32 %v3772_v45, %v12414_v54  ;;  %v4363_v50 = vpop.permute.xlu1 %4362  ;;  %v3774_v60 = vpop.f32.mrb[183].mxu1  ;;  %v12424_v9 = vld [vmem:[#allocation41_spill] sm:$0xff] }
 0x78c   :  { %5285 = vst [vmem:[#allocation5 + $0xa8] sm:$0xff] %v5160_v34  ;;  %v4897_v0 = vmul.f32 %v4363_v50, %v4147_v58  ;;  %v3775_v29 = vadd.f32 %v3774_v60, %v12417_v43  ;;  %4522 = vperm.xlu1 %6284, %v3771_v35   ;;  %v10523_v19 = vpop.f32.mrb[208].mxu0  ;;  %v12422_v35 = vld [vmem:[#allocation157_spill] sm:$0xff] }
 0x78d   :  { %v10525_v28 = vpop.f32.mrb[209].mxu0  ;;  %4037 = vmatmul.mubr.bf16.gmra.mrb[36].mxu1 %v12419_v42  ;;  %v4368_v24 = vpop.permute.xlu0 %4367 }
 0x78e   :  { %12418 = vst [vmem:[#allocation19_spill] sm:$0xff] %v10525_v28  ;;  %v5029_v23 = vmul.f32 %v10227_v18, %v4897_v0  ;;  %v4898_v59 = vmul.f32 %v4368_v24, %v4148_v40  ;;  %4527 = vperm.xlu0 %6283, %v3775_v29   ;;  %v10529_v45 = vpop.f32.mrb[210].mxu0  ;;  %4046 = vmatprep.mubr.bf16.mxu1 %v12196_v44  ;;  %v12425_v29 = vld [vmem:[#allocation154_spill] sm:$0xff]  ;;  %v12426_v24 = vld [vmem:[#allocation163_spill] sm:$0xff] }
 0x78f   :  { %12420 = vst [vmem:[#allocation162_spill] sm:$0xff] %v10529_v45  ;;  %v10532_v27 = vpop.f32.mrb[211].mxu0  ;;  %v4149_v0 = vsub.f32 %v12424_v9, %v10144_v38  ;;  %v12429_v38 = vld [vmem:[#allocation92_spill] sm:$0xff] }
 0x790   :  { %12421 = vst [vmem:[#allocation17_spill] sm:$0xff] %v10532_v27  ;;  %v5161_v60 = vadd.f32 %v10237_v20, %v5029_v23  ;;  %v5030_v58 = vmul.f32 %v10227_v18, %v4898_v59  ;;  %v3778_v34 = vpop.f32.mrb[184].mxu1  ;;  %v12427_v59 = vld [vmem:[#allocation44_spill] sm:$0xff] }
 0x791   :  { %v10537_v54 = vadd.f32 %v3778_v34, %v12422_v35  ;;  %v3780_v50 = vpop.f32.mrb[185].mxu1  ;;  %v4150_v28 = vsub.f32 %v12427_v59, %v10148_v3  ;;  %v12428_v35 = vld [vmem:[#allocation161_spill] sm:$0xff] }
 0x792   :  { %5286 = vst [vmem:[#allocation5 + $0xb0] sm:$0xff] %v5161_v60  ;;  %v5162_v40 = vadd.f32 %v10237_v20, %v5030_v58  ;;  %v3781_v43 = vadd.f32 %v3780_v50, %v12425_v29  ;;  %v3782_v42 = vpop.f32.mrb[186].mxu1  ;;  %v12430_v3 = vld [vmem:[#allocation169_spill] sm:$0xff] }
 0x793   :  { %12423 = vst [vmem:[#allocation224_spill] sm:$0xff] %v10537_v54  ;;  %v10544_v27 = vadd.f32 %v3782_v42, %v12426_v24  ;;  %v4373_v23 = vpop.permute.xlu1 %4372  ;;  %v3784_v45 = vpop.f32.mrb[187].mxu1  ;;  %v12434_v59 = vld [vmem:[#allocation173_spill] sm:$0xff] }
 0x794   :  { %5287 = vst [vmem:[#allocation5 + $0xb8] sm:$0xff] %v5162_v40  ;;  %v4899_v34 = vmul.f32 %v4373_v23, %v4149_v0  ;;  %v3785_v54 = vadd.f32 %v3784_v45, %v12428_v35  ;;  %4532 = vperm.xlu1 %6284, %v3781_v43   ;;  %v12432_v45 = vld [vmem:[#allocation45_spill] sm:$0xff]  ;;  %v12433_v23 = vld [vmem:[#allocation166_spill] sm:$0xff] }
 0x795   :  { %4047 = vmatmul.mubr.bf16.gmra.mrb[40].mxu1 %v12429_v38  ;;  %v4378_v60 = vpop.permute.xlu0 %4377  ;;  %v4151_v43 = vsub.f32 %v12432_v45, %v10162_v46  ;;  %v12439_v46 = vld [vmem:[#allocation207_spill] sm:$0xff] }
 0x796   :  { %v5031_v58 = vmul.f32 %v10227_v18, %v4899_v34  ;;  %v4900_v50 = vmul.f32 %v4378_v60, %v4150_v28  ;;  %4537 = vperm.xlu0 %6283, %v3785_v54   ;;  %4056 = vmatprep.mubr.bf16.mxu1 %v12196_v44 }
 0x798   :  { %v5163_v9 = vadd.f32 %v10237_v20, %v5031_v58  ;;  %v5032_v29 = vmul.f32 %v10227_v18, %v4900_v50  ;;  %v3788_v42 = vpop.f32.mrb[188].mxu1  ;;  %v12436_v58 = vld [vmem:[#allocation172_spill] sm:$0xff] }
 0x799   :  { %v10555_v40 = vadd.f32 %v3788_v42, %v12430_v3  ;;  %v3790_v0 = vpop.f32.mrb[189].mxu1  ;;  %v12437_v42 = vld [vmem:[#allocation178_spill] sm:$0xff]  ;;  %v12438_v3 = vld [vmem:[#allocation48_spill] sm:$0xff] }
 0x79a   :  { %5288 = vst [vmem:[#allocation5 + $0xc0] sm:$0xff] %v5163_v9  ;;  %v5164_v24 = vadd.f32 %v10237_v20, %v5032_v29  ;;  %v3791_v28 = vadd.f32 %v3790_v0, %v12433_v23  ;;  %v3792_v54 = vpop.f32.mrb[190].mxu1  ;;  %v12440_v23 = vld [vmem:[#allocation177_spill] sm:$0xff] }
 0x79b   :  { %12431 = vst [vmem:[#allocation20_spill] sm:$0xff] %v10555_v40  ;;  %v10562_v34 = vadd.f32 %v3792_v54, %v12434_v59  ;;  %v4383_v35 = vpop.permute.xlu1 %4382  ;;  %v3794_v38 = vpop.f32.mrb[191].mxu1  ;;  %v4152_v40 = vsub.f32 %v12438_v3, %v12437_v42  ;;  %v12445_v42 = vld [vmem:[#allocation183_spill] sm:$0xff] }
 0x79c   :  { %5289 = vst [vmem:[#allocation5 + $0xc8] sm:$0xff] %v5164_v24  ;;  %v4901_v60 = vmul.f32 %v4383_v35, %v4151_v43  ;;  %v3795_v50 = vadd.f32 %v3794_v38, %v12436_v58  ;;  %4542 = vperm.xlu1 %6284, %v3791_v28   ;;  %v12442_v35 = vld [vmem:[#allocation185_spill] sm:$0xff] }
 0x79d   :  { %12435 = vst [vmem:[#allocation102_spill] sm:$0xff] %v10562_v34  ;;  %4057 = vmatmul.mubr.bf16.gmra.mrb[44].mxu1 %v12439_v46  ;;  %v4388_v9 = vpop.permute.xlu0 %4387 }
 0x79e   :  { %v5033_v29 = vmul.f32 %v10227_v18, %v4901_v60  ;;  %v4902_v0 = vmul.f32 %v4388_v9, %v4152_v40  ;;  %4547 = vperm.xlu0 %6283, %v3795_v50   ;;  %4066 = vmatprep.mubr.bf16.mxu1 %v12196_v44  ;;  %v12443_v60 = vld [vmem:[#allocation189_spill] sm:$0xff] }
 0x79f   :  { %v12444_v40 = vld [vmem:[#allocation49_spill] sm:$0xff] }
 0x7a0   :  { %v5165_v45 = vadd.f32 %v10237_v20, %v5033_v29  ;;  %v5034_v24 = vmul.f32 %v10227_v18, %v4902_v0  ;;  %v3798_v43 = vpop.f32.mrb[192].mxu1  ;;  %v4153_v50 = vsub.f32 %v12444_v40, %v12443_v60  ;;  %v12447_v0 = vld [vmem:[#allocation191_spill] sm:$0xff] }
 0x7a1   :  { %v10573_v54 = vadd.f32 %v3798_v43, %v12440_v23  ;;  %v3800_v28 = vpop.f32.mrb[193].mxu1  ;;  %v12448_v23 = vld [vmem:[#allocation217_spill] sm:$0xff]  ;;  %v12451_v40 = vld [vmem:[#allocation219_spill] sm:$0xff] }
 0x7a2   :  { %5290 = vst [vmem:[#allocation5 + $0xd0] sm:$0xff] %v5165_v45  ;;  %v5166_v59 = vadd.f32 %v10237_v20, %v5034_v24  ;;  %v3801_v38 = vadd.f32 %v3800_v28, %v12442_v35  ;;  %v3802_v58 = vpop.f32.mrb[194].mxu1  ;;  %v12449_v45 = vld [vmem:[#allocation52_spill] sm:$0xff] }
 0x7a3   :  { %12441 = vst [vmem:[#allocation21_spill] sm:$0xff] %v10573_v54  ;;  %v10580_v3 = vadd.f32 %v3802_v58, %v12445_v42  ;;  %v4393_v46 = vpop.permute.xlu1 %4392  ;;  %v3804_v9 = vpop.f32.mrb[195].mxu1  ;;  %v4154_v54 = vsub.f32 %v12449_v45, %v12448_v23  ;;  %v12450_v24 = vld [vmem:[#allocation208_spill] sm:$0xff]  ;;  %v12456_v23 = vld [vmem:[#allocation223_spill] sm:$0xff] }
 0x7a4   :  { %5291 = vst [vmem:[#allocation5 + $0xd8] sm:$0xff] %v5166_v59  ;;  %v4903_v29 = vmul.f32 %v4393_v46, %v4153_v50  ;;  %v3805_v43 = vadd.f32 %v3804_v9, %v12447_v0  ;;  %4552 = vperm.xlu1 %6284, %v3801_v38   ;;  %v12453_v46 = vld [vmem:[#allocation221_spill] sm:$0xff] }
 0x7a5   :  { %12446 = vst [vmem:[#allocation22_spill] sm:$0xff] %v10580_v3  ;;  %4067 = vmatmul.mubr.bf16.gmra.mrb[48].mxu1 %v12450_v24  ;;  %v4398_v28 = vpop.permute.xlu0 %4397 }
 0x7a6   :  { %v5035_v35 = vmul.f32 %v10227_v18, %v4903_v29  ;;  %v4904_v34 = vmul.f32 %v4398_v28, %v4154_v54  ;;  %4557 = vperm.xlu0 %6283, %v3805_v43   ;;  %4076 = vmatprep.mubr.bf16.mxu1 %v12196_v44  ;;  %v12454_v29 = vld [vmem:[#allocation227_spill] sm:$0xff]  ;;  %v12455_v54 = vld [vmem:[#allocation53_spill] sm:$0xff] }
 0x7a7   :  { %v4155_v43 = vsub.f32 %v12455_v54, %v12454_v29  ;;  %v12461_v54 = vld [vmem:[#allocation230_spill] sm:$0xff] }
 0x7a8   :  { %v5167_v58 = vadd.f32 %v10237_v20, %v5035_v35  ;;  %v5036_v59 = vmul.f32 %v10227_v18, %v4904_v34  ;;  %v3808_v60 = vpop.f32.mrb[196].mxu1  ;;  %v12457_v35 = vld [vmem:[#allocation225_spill] sm:$0xff] }
 0x7a9   :  { %v10591_v50 = vadd.f32 %v3808_v60, %v12451_v40  ;;  %v3810_v38 = vpop.f32.mrb[197].mxu1  ;;  %v12458_v40 = vld [vmem:[#allocation229_spill] sm:$0xff] }
 0x7aa   :  { %5292 = vst [vmem:[#allocation5 + $0xe0] sm:$0xff] %v5167_v58  ;;  %v5168_v42 = vadd.f32 %v10237_v20, %v5036_v59  ;;  %v3811_v9 = vadd.f32 %v3810_v38, %v12453_v46  ;;  %v3812_v0 = vpop.f32.mrb[198].mxu1  ;;  %v12459_v58 = vld [vmem:[#allocation55_spill] sm:$0xff]  ;;  %v12460_v59 = vld [vmem:[#allocation98_spill] sm:$0xff] }
 0x7ab   :  { %12452 = vst [vmem:[#allocation100_spill] sm:$0xff] %v10591_v50  ;;  %v10598_v45 = vadd.f32 %v3812_v0, %v12456_v23  ;;  %v4403_v24 = vpop.permute.xlu1 %4402  ;;  %v3814_v28 = vpop.f32.mrb[199].mxu1  ;;  %v4156_v50 = vsub.f32 %v12459_v58, %v12458_v40  ;;  %v12466_v40 = vld [vmem:[#allocation101_spill] sm:$0xff] }
 0x7ac   :  { %5293 = vst [vmem:[#allocation5 + $0xe8] sm:$0xff] %v5168_v42  ;;  %v4905_v34 = vmul.f32 %v4403_v24, %v4155_v43  ;;  %v3815_v60 = vadd.f32 %v3814_v28, %v12457_v35  ;;  %4562 = vperm.xlu1 %6284, %v3811_v9   ;;  %v12463_v24 = vld [vmem:[#allocation211_spill] sm:$0xff] }
 0x7ad   :  { %4077 = vmatmul.mubr.bf16.gmra.mrb[52].mxu1 %v12460_v59  ;;  %v4408_v38 = vpop.permute.xlu0 %4407 }
 0x7ae   :  { %v5037_v46 = vmul.f32 %v10227_v18, %v4905_v34  ;;  %v4906_v3 = vmul.f32 %v4408_v38, %v4156_v50  ;;  %4567 = vperm.xlu0 %6283, %v3815_v60   ;;  %4086 = vmatprep.mubr.bf16.mxu1 %v12196_v44  ;;  %v12464_v34 = vld [vmem:[#allocation107_spill] sm:$0xff]  ;;  %v12465_v50 = vld [vmem:[#allocation56_spill] sm:$0xff] }
 0x7af   :  { %v4157_v60 = vsub.f32 %v12465_v50, %v12464_v34  ;;  %v12470_v50 = vld [vmem:[#allocation218_spill] sm:$0xff] }
 0x7b0   :  { %v5169_v0 = vadd.f32 %v10237_v20, %v5037_v46  ;;  %v5038_v42 = vmul.f32 %v10227_v18, %v4906_v3  ;;  %v3818_v29 = vpop.f32.mrb[200].mxu1  ;;  %v12467_v46 = vld [vmem:[#allocation212_spill] sm:$0xff] }
 0x7b1   :  { %v10609_v43 = vadd.f32 %v3818_v29, %v12461_v54  ;;  %v3820_v9 = vpop.f32.mrb[201].mxu1 }
 0x7b2   :  { %5294 = vst [vmem:[#allocation5 + $0xf0] sm:$0xff] %v5169_v0  ;;  %v5170_v23 = vadd.f32 %v10237_v20, %v5038_v42  ;;  %v3821_v28 = vadd.f32 %v3820_v9, %v12463_v24  ;;  %v3822_v35 = vpop.f32.mrb[202].mxu1  ;;  %v12468_v0 = vld [vmem:[#allocation59_spill] sm:$0xff]  ;;  %v12469_v42 = vld [vmem:[#allocation97_spill] sm:$0xff] }
 0x7b3   :  { %12462 = vst [vmem:[#allocation201_spill] sm:$0xff] %v10609_v43  ;;  %v10616_v58 = vadd.f32 %v3822_v35, %v12466_v40  ;;  %v4413_v59 = vpop.permute.xlu1 %4412  ;;  %v3824_v38 = vpop.f32.mrb[203].mxu1  ;;  %v4158_v54 = vsub.f32 %v12468_v0, %v10222_v6  ;;  %v12472_v40 = vld [vmem:[#allocation105_spill] sm:$0xff] }
 0x7b4   :  { %5295 = vst [vmem:[#allocation5 + $0xf8] sm:$0xff] %v5170_v23  ;;  %v4907_v3 = vmul.f32 %v4413_v59, %v4157_v60  ;;  %v3825_v29 = vadd.f32 %v3824_v38, %v12467_v46  ;;  %4572 = vperm.xlu1 %6284, %v3821_v28   ;;  %v12474_v46 = vld [vmem:[#allocation60_spill] sm:$0xff]  ;;  %v12475_v0 = vld [vmem:[#allocation213_spill] sm:$0xff] }
 0x7b5   :  { %4087 = vmatmul.mubr.bf16.gmra.mrb[56].mxu1 %v12469_v42  ;;  %v4418_v9 = vpop.permute.xlu0 %4417 }
 0x7b6   :  { %v5039_v24 = vmul.f32 %v10227_v18, %v4907_v3  ;;  %v4908_v43 = vmul.f32 %v4418_v9, %v4158_v54  ;;  %4577 = vperm.xlu0 %6283, %v3825_v29   ;;  %4096 = vmatprep.mubr.bf16.mxu1 %v12196_v44  ;;  %v12473_v3 = vld [vmem:[#allocation110_spill] sm:$0xff] }
 0x7b7   :  { %v4159_v29 = vsub.f32 %v12474_v46, %v12473_v3 }
 0x7b8   :  { %v5171_v35 = vadd.f32 %v10237_v20, %v5039_v24  ;;  %v5040_v23 = vmul.f32 %v10227_v18, %v4908_v43  ;;  %v3828_v34 = vpop.f32.mrb[204].mxu1  ;;  %v12476_v24 = vld [vmem:[#allocation214_spill] sm:$0xff] }
 0x7b9   :  { %v10627_v60 = vadd.f32 %v3828_v34, %v12470_v50  ;;  %v3830_v28 = vpop.f32.mrb[205].mxu1 }
 0x7ba   :  { %5296 = vst [vmem:[#allocation5 + $0x100] sm:$0xff] %v5171_v35  ;;  %v5172_v6 = vadd.f32 %v10237_v20, %v5040_v23  ;;  %v3831_v59 = vadd.f32 %v3830_v28, %v12472_v40  ;;  %v3832_v38 = vpop.f32.mrb[206].mxu1  ;;  %v12477_v35 = vld [vmem:[#allocation63_spill] sm:$0xff]  ;;  %v12478_v23 = vld [vmem:[#allocation209_spill] sm:$0xff] }
 0x7bb   :  { %12471 = vst [vmem:[#allocation23_spill] sm:$0xff] %v10627_v60  ;;  %v10634_v54 = vadd.f32 %v3832_v38, %v12475_v0  ;;  %v4423_v42 = vpop.permute.xlu1 %4422  ;;  %v3834_v9 = vpop.f32.mrb[207].mxu1  ;;  %v4160_v50 = vsub.f32 %v12477_v35, %v10258_v41  ;;  %v12480_v35 = vld [vmem:[#allocation67_spill] sm:$0xff] }
 0x7bc   :  { %5297 = vst [vmem:[#allocation5 + $0x108] sm:$0xff] %v5172_v6  ;;  %v4909_v43 = vmul.f32 %v4423_v42, %v4159_v29  ;;  %v3835_v34 = vadd.f32 %v3834_v9, %v12476_v24  ;;  %4582 = vperm.xlu1 %6284, %v3831_v59   ;;  %v12479_v42 = vld [vmem:[#allocation65_spill] sm:$0xff] }
 0x7bd   :  { %4097 = vmatmul.mubr.bf16.gmra.mrb[60].mxu1 %v12478_v23  ;;  %v4428_v28 = vpop.permute.xlu0 %4427  ;;  %v4161_v9 = vsub.f32 %v12479_v42, %v10277_v37  ;;  %v12481_v23 = vld [vmem:[#allocation210_spill] sm:$0xff] }
 0x7be   :  { %v5041_v40 = vmul.f32 %v10227_v18, %v4909_v43  ;;  %v4910_v60 = vmul.f32 %v4428_v28, %v4160_v50  ;;  %4587 = vperm.xlu0 %6283, %v3835_v34   ;;  %4106 = vmatprep.mubr.bf16.mxu1 %v12196_v44  ;;  %v4162_v50 = vsub.f32 %v12480_v35, %v10284_v25 }
 0x7c0   :  { %v5173_v38 = vadd.f32 %v10237_v20, %v5041_v40  ;;  %v5042_v6 = vmul.f32 %v10227_v18, %v4910_v60  ;;  %v3838_v3 = vpop.f32.mrb[208].mxu1 }
 0x7c1   :  { %v10645_v46 = vadd.f32 %v3838_v3, %v10263_v36  ;;  %v3840_v59 = vpop.f32.mrb[209].mxu1 }
 0x7c2   :  { %5298 = vst [vmem:[#allocation5 + $0x110] sm:$0xff] %v5173_v38  ;;  %v5174_v41 = vadd.f32 %v10237_v20, %v5042_v6  ;;  %v3841_v29 = vadd.f32 %v3840_v59, %v10266_v16  ;;  %v3842_v0 = vpop.f32.mrb[210].mxu1 }
 0x7c3   :  { %v10652_v43 = vadd.f32 %v3842_v0, %v10270_v15  ;;  %v4433_v24 = vpop.permute.xlu1 %4432  ;;  %v3844_v34 = vpop.f32.mrb[211].mxu1 }
 0x7c4   :  { %5299 = vst [vmem:[#allocation5 + $0x118] sm:$0xff] %v5174_v41  ;;  %v4911_v60 = vmul.f32 %v4433_v24, %v4161_v9  ;;  %v3845_v36 = vadd.f32 %v3844_v34, %v10272_v61  ;;  %4592 = vperm.xlu1 %6284, %v3841_v29   ;;  %v12482_v41 = vld [vmem:[#allocation69_spill] sm:$0xff]  ;;  %v12484_v24 = vld [vmem:[#allocation71_spill] sm:$0xff] }
 0x7c5   :  { %4107 = vmatmul.mubr.bf16.gmra.mrb[64].mxu1 %v12481_v23  ;;  %v4438_v16 = vpop.permute.xlu0 %4437  ;;  %v4163_v29 = vsub.f32 %v12482_v41, %v10303_v49  ;;  %v12483_v9 = vld [vmem:[#allocation113_spill] sm:$0xff]  ;;  %v4164_v34 = vsub.f32 %v12484_v24, %v10310_v63  ;;  %v10679_v49 = vld [vmem:[%s11200_s3] ss:$0 sm:$0xff] }
 0x7c6   :  { %v5043_v28 = vmul.f32 %v10227_v18, %v4911_v60  ;;  %v4912_v40 = vmul.f32 %v4438_v16, %v4162_v50  ;;  %4597 = vperm.xlu0 %6283, %v3845_v36   ;;  %4116 = vmatprep.mubr.bf16.mxu1 %v12196_v44  ;;  %v12485_v60 = vld [vmem:[#allocation103_spill] sm:$0xff] }
 0x7c8   :  { %v5175_v15 = vadd.f32 %v10237_v20, %v5043_v28  ;;  %v5044_v37 = vmul.f32 %v10227_v18, %v4912_v40  ;;  %v3848_v38 = vpop.f32.mrb[212].mxu1  ;;  %v10690_v28 = vld [vmem:[%s11201_s4] ss:$0 sm:$0xff] }
 0x7c9   :  { %v10663_v61 = vadd.f32 %v3848_v38, %v10289_v22  ;;  %v3850_v6 = vpop.f32.mrb[213].mxu1 }
 0x7ca   :  { %5300 = vst [vmem:[#allocation5 + $0x120] sm:$0xff] %v5175_v15  ;;  %v5176_v25 = vadd.f32 %v10237_v20, %v5044_v37  ;;  %v3851_v3 = vadd.f32 %v3850_v6, %v10292_v52  ;;  %v3852_v59 = vpop.f32.mrb[214].mxu1 }
 0x7cb   :  { %v10670_v44 = vadd.f32 %v3852_v59, %v10296_v33  ;;  %v4443_v0 = vpop.permute.xlu1 %4442  ;;  %v3854_v42 = vpop.f32.mrb[215].mxu1  ;;  %v12487_v59 = vld [vmem:[#allocation215_spill] sm:$0xff] }
 0x7cc   :  { %5301 = vst [vmem:[#allocation5 + $0x128] sm:$0xff] %v5176_v25  ;;  %v4913_v18 = vmul.f32 %v4443_v0, %v4163_v29  ;;  %v3855_v22 = vadd.f32 %v3854_v42, %v12483_v9  ;;  %4602 = vperm.xlu1 %6284, %v3851_v3   ;;  %v12488_v29 = vld [vmem:[#allocation74_spill] sm:$0xff] }
 0x7cd   :  { %4117 = vmatmul.mubr.bf16.gmra.mrb[68].mxu1 %v12485_v60  ;;  %v4448_v52 = vpop.permute.xlu0 %4447  ;;  %v4166_v0 = vsub.f32 %v12488_v29, %v10336_v21 }
 0x7ce   :  { %v5045_v33 = vmul.f32 %v10679_v49, %v4913_v18  ;;  %v4914_v36 = vmul.f32 %v4448_v52, %v4164_v34  ;;  %4607 = vperm.xlu0 %6283, %v3855_v22   ;;  %v12489_v52 = vld [vmem:[#allocation76_spill] sm:$0xff] }
 0x7d0   :  { %v5177_v35 = vadd.f32 %v10237_v20, %v5045_v33  ;;  %v5046_v50 = vmul.f32 %v10679_v49, %v4914_v36  ;;  %v3858_v23 = vpop.f32.mrb[216].mxu1  ;;  %v12486_v20 = vld [vmem:[#allocation73_spill] sm:$0xff]  ;;  %v4167_v33 = vsub.f32 %v12489_v52, %v10355_v10 }
 0x7d1   :  { %v10685_v16 = vadd.f32 %v3858_v23, %v10315_v56  ;;  %v3860_v63 = vpop.f32.mrb[217].mxu1  ;;  %v4165_v38 = vsub.f32 %v12486_v20, %v10329_v13 }
 0x7d2   :  { %5302 = vst [vmem:[#allocation5 + $0x130] sm:$0xff] %v5177_v35  ;;  %v5178_v40 = vadd.f32 %v10690_v28, %v5046_v50  ;;  %v3861_v15 = vadd.f32 %v3860_v63, %v10318_v4  ;;  %v3862_v37 = vpop.f32.mrb[218].mxu1  ;;  %v12490_v63 = vld [vmem:[#allocation216_spill] sm:$0xff] }
 0x7d3   :  { %v10697_v6 = vadd.f32 %v3862_v37, %v10322_v39  ;;  %v4453_v56 = vpop.permute.xlu1 %4452  ;;  %v3864_v25 = vpop.f32.mrb[219].mxu1 }
 0x7d4   :  { %5303 = vst [vmem:[#allocation5 + $0x138] sm:$0xff] %v5178_v40  ;;  %v4915_v3 = vmul.f32 %v4453_v56, %v4165_v38  ;;  %v3865_v41 = vadd.f32 %v3864_v25, %v12487_v59  ;;  %4612 = vperm.xlu1 %6284, %v3861_v15   ;;  %v12491_v40 = vld [vmem:[#allocation78_spill] sm:$0xff] }
 0x7d5   :  { %v4458_v42 = vpop.permute.xlu0 %4457  ;;  %v4168_v15 = vsub.f32 %v12491_v40, %v10362_v51 }
 0x7d6   :  { %v5047_v4 = vmul.f32 %v10679_v49, %v4915_v3  ;;  %v4916_v18 = vmul.f32 %v4458_v42, %v4166_v0  ;;  %4617 = vperm.xlu0 %6283, %v3865_v41   ;;  %v12492_v41 = vld [vmem:[#allocation80_spill] sm:$0xff] }
 0x7d7   :  { %v4169_v29 = vsub.f32 %v12492_v41, %v10381_v48 }
 0x7d8   :  { %v5179_v13 = vadd.f32 %v10690_v28, %v5047_v4  ;;  %v5048_v39 = vmul.f32 %v10679_v49, %v4916_v18  ;;  %v3868_v9 = vpop.f32.mrb[220].mxu1 }
 0x7d9   :  { %v10706_v22 = vadd.f32 %v3868_v9, %v10341_v55  ;;  %v3870_v24 = vpop.f32.mrb[221].mxu1 }
 0x7da   :  { %5304 = vst [vmem:[#allocation5 + $0x140] sm:$0xff] %v5179_v13  ;;  %v5180_v34 = vadd.f32 %v10690_v28, %v5048_v39  ;;  %v3871_v60 = vadd.f32 %v3870_v24, %v10344_v32  ;;  %v3872_v21 = vpop.f32.mrb[222].mxu1  ;;  %v12493_v13 = vld [vmem:[#allocation70_spill] sm:$0xff] }
 0x7db   :  { %v10713_v36 = vadd.f32 %v3872_v21, %v10348_v11  ;;  %v4463_v35 = vpop.permute.xlu1 %4462  ;;  %v3874_v50 = vpop.f32.mrb[223].mxu1  ;;  %v12494_v39 = vld [vmem:[#allocation82_spill] sm:$0xff] }
 0x7dc   :  { %5305 = vst [vmem:[#allocation5 + $0x148] sm:$0xff] %v5180_v34  ;;  %v4917_v23 = vmul.f32 %v4463_v35, %v4167_v33  ;;  %v3875_v55 = vadd.f32 %v3874_v50, %v12490_v63  ;;  %4622 = vperm.xlu1 %6284, %v3871_v60   ;;  %v4170_v9 = vsub.f32 %v12494_v39, %v10388_v12  ;;  %v12495_v50 = vld [vmem:[#allocation84_spill] sm:$0xff] }
 0x7dd   :  { %v4468_v37 = vpop.permute.xlu0 %4467 }
 0x7de   :  { %v5049_v32 = vmul.f32 %v10679_v49, %v4917_v23  ;;  %v4918_v20 = vmul.f32 %v4468_v37, %v4168_v15  ;;  %4627 = vperm.xlu0 %6283, %v3875_v55   ;;  %v4171_v23 = vsub.f32 %v12495_v50, %v10407_v2  ;;  %v12496_v37 = vld [vmem:[#allocation121_spill] sm:$0xff] }
 0x7e0   :  { %v5181_v10 = vadd.f32 %v10690_v28, %v5049_v32  ;;  %v5050_v11 = vmul.f32 %v10679_v49, %v4918_v20  ;;  %v3878_v38 = vpop.f32.mrb[224].mxu1  ;;  %v12497_v32 = vld [vmem:[#allocation85_spill] sm:$0xff] }
 0x7e1   :  { %v10722_v56 = vadd.f32 %v3878_v38, %v10367_v7  ;;  %v3880_v25 = vpop.f32.mrb[225].mxu1  ;;  %v4172_v20 = vsub.f32 %v12497_v32, %v10414_v8 }
 0x7e2   :  { %5306 = vst [vmem:[#allocation5 + $0x150] sm:$0xff] %v5181_v10  ;;  %v5182_v3 = vadd.f32 %v10690_v28, %v5050_v11  ;;  %v3881_v59 = vadd.f32 %v3880_v25, %v10370_v62  ;;  %v3882_v51 = vpop.f32.mrb[226].mxu1 }
 0x7e3   :  { %v10729_v0 = vadd.f32 %v3882_v51, %v10374_v1  ;;  %v4473_v42 = vpop.permute.xlu1 %4472  ;;  %v3884_v4 = vpop.f32.mrb[227].mxu1  ;;  %v12498_v51 = vld [vmem:[#allocation118_spill] sm:$0xff] }
 0x7e4   :  { %5307 = vst [vmem:[#allocation5 + $0x158] sm:$0xff] %v5182_v3  ;;  %v4919_v18 = vmul.f32 %v4473_v42, %v4169_v29  ;;  %v3885_v7 = vadd.f32 %v3884_v4, %v12493_v13  ;;  %4632 = vperm.xlu1 %6284, %v3881_v59   ;;  %v12499_v29 = vld [vmem:[#allocation127_spill] sm:$0xff]  ;;  %v12500_v42 = vld [vmem:[#allocation86_spill] sm:$0xff] }
 0x7e5   :  { %v4478_v24 = vpop.permute.xlu0 %4477  ;;  %v4173_v4 = vsub.f32 %v12500_v42, %v12499_v29 }
 0x7e6   :  { %v5051_v62 = vmul.f32 %v10679_v49, %v4919_v18  ;;  %v4920_v34 = vmul.f32 %v4478_v24, %v4170_v9  ;;  %4637 = vperm.xlu0 %6283, %v3885_v7   ;;  %v12501_v18 = vld [vmem:[#allocation129_spill] sm:$0xff]  ;;  %v12502_v24 = vld [vmem:[#allocation220_spill] sm:$0xff] }
 0x7e8   :  { %v5183_v48 = vadd.f32 %v10690_v28, %v5051_v62  ;;  %v5052_v1 = vmul.f32 %v10679_v49, %v4920_v34  ;;  %v3888_v60 = vpop.f32.mrb[228].mxu1  ;;  %v12503_v62 = vld [vmem:[#allocation87_spill] sm:$0xff] }
 0x7e9   :  { %v10738_v21 = vadd.f32 %v3888_v60, %v10393_v31  ;;  %v3890_v52 = vpop.f32.mrb[229].mxu1  ;;  %v4174_v34 = vsub.f32 %v12503_v62, %v10440_v57  ;;  %v12513_v62 = vld [vmem:[#allocation10_spill] sm:$0xff] }
 0x7ea   :  { %5308 = vst [vmem:[#allocation5 + $0x160] sm:$0xff] %v5183_v48  ;;  %v5184_v33 = vadd.f32 %v10690_v28, %v5052_v1  ;;  %v3891_v35 = vadd.f32 %v3890_v52, %v10396_v30  ;;  %v3892_v12 = vpop.f32.mrb[230].mxu1 }
 0x7eb   :  { %v10745_v63 = vadd.f32 %v3892_v12, %v10399_v5  ;;  %v4483_v55 = vpop.permute.xlu1 %4482  ;;  %v3894_v40 = vpop.f32.mrb[231].mxu1  ;;  %v12504_v12 = vld [vmem:[#allocation151_spill] sm:$0xff] }
 0x7ec   :  { %5309 = vst [vmem:[#allocation5 + $0x168] sm:$0xff] %v5184_v33  ;;  %v4921_v15 = vmul.f32 %v4483_v55, %v4171_v23  ;;  %v3895_v31 = vadd.f32 %v3894_v40, %v12496_v37  ;;  %4642 = vperm.xlu1 %6284, %v3891_v35   ;;  %v12505_v40 = vld [vmem:[#allocation108_spill] sm:$0xff]  ;;  %v12506_v37 = vld [vmem:[#allocation114_spill] sm:$0xff] }
 0x7ed   :  { %v4488_v10 = vpop.permute.xlu0 %4487 }
 0x7ee   :  { %v5053_v30 = vmul.f32 %v10679_v49, %v4921_v15  ;;  %v4922_v11 = vmul.f32 %v4488_v10, %v4172_v20  ;;  %4647 = vperm.xlu0 %6283, %v3895_v31   ;;  %v12507_v31 = vld [vmem:[#allocation88_spill] sm:$0xff]  ;;  %v12508_v20 = vld [vmem:[#allocation150_spill] sm:$0xff] }
 0x7ef   :  { %v4175_v32 = vsub.f32 %v12507_v31, %v12506_v37 }
 0x7f0   :  { %v5185_v2 = vadd.f32 %v10690_v28, %v5053_v30  ;;  %v5054_v5 = vmul.f32 %v10679_v49, %v4922_v11  ;;  %v3898_v38 = vpop.f32.mrb[232].mxu1 }
 0x7f1   :  { %v10754_v25 = vadd.f32 %v3898_v38, %v10419_v53  ;;  %v3900_v3 = vpop.f32.mrb[233].mxu1 }
 0x7f2   :  { %5310 = vst [vmem:[#allocation5 + $0x170] sm:$0xff] %v5185_v2  ;;  %v5186_v59 = vadd.f32 %v10690_v28, %v5054_v5  ;;  %v3901_v41 = vadd.f32 %v3900_v3, %v12498_v51  ;;  %v3902_v8 = vpop.f32.mrb[234].mxu1  ;;  %v12509_v5 = vld [vmem:[#allocation222_spill] sm:$0xff]  ;;  %v12510_v3 = vld [vmem:[#allocation8_spill] sm:$0xff] }
 0x7f3   :  { %v10761_v13 = vadd.f32 %v3902_v8, %v12501_v18  ;;  %v4493_v7 = vpop.permute.xlu1 %4492  ;;  %v3904_v39 = vpop.f32.mrb[235].mxu1 }
 0x7f4   :  { %5311 = vst [vmem:[#allocation5 + $0x178] sm:$0xff] %v5186_v59  ;;  %v4923_v9 = vmul.f32 %v4493_v7, %v4173_v4  ;;  %v3905_v53 = vadd.f32 %v3904_v39, %v12502_v24  ;;  %4652 = vperm.xlu1 %6284, %v3901_v41   ;;  %v4176_v59 = vsub.f32 %v12510_v3, %v10466_v17  ;;  %v12520_v3 = vld [vmem:[#allocation12_spill] sm:$0xff] }
 0x7f5   :  { %v4498_v48 = vpop.permute.xlu0 %4497 }
 0x7f6   :  { %v5055_v1 = vmul.f32 %v10679_v49, %v4923_v9  ;;  %v4924_v60 = vmul.f32 %v4498_v48, %v4174_v34  ;;  %4657 = vperm.xlu0 %6283, %v3905_v53   ;;  %v12511_v9 = vld [vmem:[#allocation91_spill] sm:$0xff]  ;;  %v12512_v53 = vld [vmem:[#allocation156_spill] sm:$0xff]  ;;  %v12514_v48 = vld [vmem:[#allocation90_spill] sm:$0xff] }
 0x7f7   :  { %v4177_v34 = vsub.f32 %v12513_v62, %v12512_v53 }
 0x7f8   :  { %v5187_v52 = vadd.f32 %v10690_v28, %v5055_v1  ;;  %v5056_v33 = vmul.f32 %v10679_v49, %v4924_v60  ;;  %v3908_v35 = vpop.f32.mrb[236].mxu1 }
 0x7f9   :  { %v10770_v50 = vadd.f32 %v3908_v35, %v12504_v12  ;;  %v3910_v23 = vpop.f32.mrb[237].mxu1  ;;  %v12515_v35 = vld [vmem:[#allocation158_spill] sm:$0xff]  ;;  %v12516_v12 = vld [vmem:[#allocation9_spill] sm:$0xff] }
 0x7fa   :  { %5312 = vst [vmem:[#allocation5 + $0x180] sm:$0xff] %v5187_v52  ;;  %v5188_v55 = vadd.f32 %v10690_v28, %v5056_v33  ;;  %v3911_v15 = vadd.f32 %v3910_v23, %v12505_v40  ;;  %v3912_v57 = vpop.f32.mrb[238].mxu1  ;;  %v4178_v23 = vsub.f32 %v12516_v12, %v10492_v26  ;;  %v12525_v12 = vld [vmem:[#allocation224_spill] sm:$0xff] }
 0x7fb   :  { %v10777_v10 = vadd.f32 %v3912_v57, %v12508_v20  ;;  %v4503_v30 = vpop.permute.xlu1 %4502  ;;  %v3914_v11 = vpop.f32.mrb[239].mxu1 }
 0x7fc   :  { %5313 = vst [vmem:[#allocation5 + $0x188] sm:$0xff] %v5188_v55  ;;  %v4925_v2 = vmul.f32 %v4503_v30, %v4175_v32  ;;  %v3915_v38 = vadd.f32 %v3914_v11, %v12509_v5  ;;  %4662 = vperm.xlu1 %6284, %v3911_v15   ;;  %v12517_v32 = vld [vmem:[#allocation122_spill] sm:$0xff] }
 0x7fd   :  { %v4508_v51 = vpop.permute.xlu0 %4507 }
 0x7fe   :  { %v5057_v41 = vmul.f32 %v10679_v49, %v4925_v2  ;;  %v4926_v8 = vmul.f32 %v4508_v51, %v4176_v59  ;;  %4667 = vperm.xlu0 %6283, %v3915_v38   ;;  %v12518_v2 = vld [vmem:[#allocation95_spill] sm:$0xff]  ;;  %v12519_v38 = vld [vmem:[#allocation164_spill] sm:$0xff]  ;;  %v12521_v51 = vld [vmem:[#allocation18_spill] sm:$0xff] }
 0x7ff   :  { %v4179_v59 = vsub.f32 %v12520_v3, %v12519_v38 }
 0x800   :  { %v5189_v29 = vadd.f32 %v10690_v28, %v5057_v41  ;;  %v5058_v42 = vmul.f32 %v10679_v49, %v4926_v8  ;;  %v3918_v4 = vpop.f32.mrb[240].mxu1 }
 0x801   :  { %v10786_v18 = vadd.f32 %v3918_v4, %v10471_v47  ;;  %v3920_v7 = vpop.f32.mrb[241].mxu1  ;;  %v12522_v4 = vld [vmem:[#allocation94_spill] sm:$0xff] }
 0x802   :  { %5314 = vst [vmem:[#allocation5 + $0x190] sm:$0xff] %v5189_v29  ;;  %v5190_v39 = vadd.f32 %v10690_v28, %v5058_v42  ;;  %v3921_v24 = vadd.f32 %v3920_v7, %v12511_v9  ;;  %v3922_v17 = vpop.f32.mrb[242].mxu1 }
 0x803   :  { %v10793_v1 = vadd.f32 %v3922_v17, %v12514_v48  ;;  %v4513_v60 = vpop.permute.xlu1 %4512  ;;  %v3924_v52 = vpop.f32.mrb[243].mxu1 }
 0x804   :  { %5315 = vst [vmem:[#allocation5 + $0x198] sm:$0xff] %v5190_v39  ;;  %v4927_v33 = vmul.f32 %v4513_v60, %v4177_v34  ;;  %v3925_v47 = vadd.f32 %v3924_v52, %v12515_v35  ;;  %4672 = vperm.xlu1 %6284, %v3921_v24   ;;  %v12523_v39 = vld [vmem:[#allocation11_spill] sm:$0xff] }
 0x805   :  { %v4518_v55 = vpop.permute.xlu0 %4517  ;;  %v4180_v9 = vsub.f32 %v12523_v39, %v10518_v14  ;;  %v12524_v35 = vld [vmem:[#allocation19_spill] sm:$0xff] }
 0x806   :  { %v5059_v40 = vmul.f32 %v10679_v49, %v4927_v33  ;;  %v4928_v15 = vmul.f32 %v4518_v55, %v4178_v23  ;;  %4677 = vperm.xlu0 %6283, %v3925_v47   ;;  %v12526_v23 = vld [vmem:[#allocation14_spill] sm:$0xff] }
 0x807   :  { %v4181_v55 = vsub.f32 %v12526_v23, %v12525_v12  ;;  %v12534_v23 = vld [vmem:[#allocation21_spill] sm:$0xff] }
 0x808   :  { %v5191_v57 = vadd.f32 %v10690_v28, %v5059_v40  ;;  %v5060_v37 = vmul.f32 %v10679_v49, %v4928_v15  ;;  %v3928_v31 = vpop.f32.mrb[244].mxu1  ;;  %v12527_v40 = vld [vmem:[#allocation162_spill] sm:$0xff] }
 0x809   :  { %v10802_v20 = vadd.f32 %v3928_v31, %v12517_v32  ;;  %v3930_v30 = vpop.f32.mrb[245].mxu1  ;;  %v12528_v32 = vld [vmem:[#allocation17_spill] sm:$0xff] }
 0x80a   :  { %5316 = vst [vmem:[#allocation5 + $0x1a0] sm:$0xff] %v5191_v57  ;;  %v5192_v11 = vadd.f32 %v10690_v28, %v5060_v37  ;;  %v3931_v5 = vadd.f32 %v3930_v30, %v12518_v2  ;;  %v3932_v26 = vpop.f32.mrb[246].mxu1  ;;  %v12529_v30 = vld [vmem:[#allocation13_spill] sm:$0xff] }
 0x80b   :  { %v10809_v41 = vadd.f32 %v3932_v26, %v12521_v51  ;;  %v4523_v8 = vpop.permute.xlu1 %4522  ;;  %v3934_v29 = vpop.f32.mrb[247].mxu1 }
 0x80c   :  { %5317 = vst [vmem:[#allocation5 + $0x1a8] sm:$0xff] %v5192_v11  ;;  %v4929_v42 = vmul.f32 %v4523_v8, %v4179_v59  ;;  %v3935_v7 = vadd.f32 %v3934_v29, %v12522_v4  ;;  %4682 = vperm.xlu1 %6284, %v3931_v5   ;;  %v4182_v11 = vsub.f32 %v12529_v30, %v10544_v27  ;;  %v12531_v27 = vld [vmem:[#allocation16_spill] sm:$0xff] }
 0x80d   :  { %v4528_v24 = vpop.permute.xlu0 %4527 }
 0x80e   :  { %v5061_v17 = vmul.f32 %v10679_v49, %v4929_v42  ;;  %v4930_v53 = vmul.f32 %v4528_v24, %v4180_v9  ;;  %4687 = vperm.xlu0 %6283, %v3935_v7   ;;  %v12530_v42 = vld [vmem:[#allocation20_spill] sm:$0xff]  ;;  %v12532_v24 = vld [vmem:[#allocation102_spill] sm:$0xff] }
 0x80f   :  { %v4183_v4 = vsub.f32 %v12531_v27, %v12530_v42  ;;  %v12538_v27 = vld [vmem:[#allocation100_spill] sm:$0xff] }
 0x810   :  { %v5193_v62 = vadd.f32 %v10690_v28, %v5061_v17  ;;  %v5062_v34 = vmul.f32 %v10679_v49, %v4930_v53  ;;  %v3938_v48 = vpop.f32.mrb[248].mxu1  ;;  %v12533_v17 = vld [vmem:[#allocation15_spill] sm:$0xff] }
 0x811   :  { %v10818_v60 = vadd.f32 %v3938_v48, %v10523_v19  ;;  %v3940_v52 = vpop.f32.mrb[249].mxu1  ;;  %v4184_v53 = vsub.f32 %v12533_v17, %v12532_v24  ;;  %v12540_v17 = vld [vmem:[#allocation43_spill] sm:$0xff] }
 0x812   :  { %5318 = vst [vmem:[#allocation5 + $0x1b0] sm:$0xff] %v5193_v62  ;;  %v5194_v33 = vadd.f32 %v10690_v28, %v5062_v34  ;;  %v3941_v47 = vadd.f32 %v3940_v52, %v12524_v35  ;;  %v3942_v14 = vpop.f32.mrb[250].mxu1 }
 0x813   :  { %v10825_v15 = vadd.f32 %v3942_v14, %v12527_v40  ;;  %v4533_v57 = vpop.permute.xlu1 %4532  ;;  %v3944_v37 = vpop.f32.mrb[251].mxu1 }
 0x814   :  { %5319 = vst [vmem:[#allocation5 + $0x1b8] sm:$0xff] %v5194_v33  ;;  %v4931_v31 = vmul.f32 %v4533_v57, %v4181_v55  ;;  %v3945_v19 = vadd.f32 %v3944_v37, %v12528_v32  ;;  %4692 = vperm.xlu1 %6284, %v3941_v47   ;;  %v12535_v55 = vld [vmem:[#allocation96_spill] sm:$0xff]  ;;  %v12536_v32 = vld [vmem:[#allocation22_spill] sm:$0xff] }
 0x815   :  { %v4538_v2 = vpop.permute.xlu0 %4537  ;;  %v4185_v40 = vsub.f32 %v12535_v55, %v12534_v23 }
 0x816   :  { %v5063_v5 = vmul.f32 %v10679_v49, %v4931_v31  ;;  %v4932_v26 = vmul.f32 %v4538_v2, %v4182_v11  ;;  %4697 = vperm.xlu0 %6283, %v3945_v19   ;;  %v12537_v19 = vld [vmem:[#allocation99_spill] sm:$0xff] }
 0x817   :  { %v4186_v30 = vsub.f32 %v12537_v19, %v12536_v32  ;;  %v12543_v19 = vld [vmem:[#allocation47_spill] sm:$0xff] }
 0x818   :  { %v5195_v38 = vadd.f32 %v10690_v28, %v5063_v5  ;;  %v5064_v3 = vmul.f32 %v10679_v49, %v4932_v26  ;;  %v10833_v59 = vpop.f32.mrb[0].mxu1 }
 0x819   :  { %v3950_v51 = vpop.f32.mrb[1].mxu1 }
 0x81a   :  { %5320 = vst [vmem:[#allocation5 + $0x1c0] sm:$0xff] %v5195_v38  ;;  %v5196_v8 = vadd.f32 %v10690_v28, %v5064_v3  ;;  %v10836_v29 = vpop.f32.mrb[2].mxu1  ;;  %4702 = vperm.xlu1 %6284, %v3950_v51  }
 0x81b   :  { %v4543_v7 = vpop.permute.xlu1 %4542  ;;  %v3954_v39 = vpop.f32.mrb[3].mxu1 }
 0x81c   :  { %5321 = vst [vmem:[#allocation5 + $0x1c8] sm:$0xff] %v5196_v8  ;;  %v4933_v9 = vmul.f32 %v4543_v7, %v4183_v4  ;;  %4707 = vperm.xlu0 %6283, %v3954_v39   ;;  %v12539_v4 = vld [vmem:[#allocation42_spill] sm:$0xff] }
 0x81d   :  { %v4548_v62 = vpop.permute.xlu0 %4547  ;;  %v4187_v7 = vsub.f32 %v12539_v4, %v12538_v27 }
 0x81e   :  { %v5065_v34 = vmul.f32 %v10679_v49, %v4933_v9  ;;  %v4934_v48 = vmul.f32 %v4548_v62, %v4184_v53  ;;  %v4188_v53 = vsub.f32 %v12540_v17, %v10598_v45 }
 0x820   :  { %v5197_v52 = vadd.f32 %v10690_v28, %v5065_v34  ;;  %v5066_v33 = vmul.f32 %v10679_v49, %v4934_v48  ;;  %v10845_v35 = vpop.f32.mrb[4].mxu1 }
 0x821   :  { %v3960_v47 = vpop.f32.mrb[5].mxu1 }
 0x822   :  { %5322 = vst [vmem:[#allocation5 + $0x1d0] sm:$0xff] %v5197_v52  ;;  %v5198_v14 = vadd.f32 %v10690_v28, %v5066_v33  ;;  %v10848_v12 = vpop.f32.mrb[6].mxu1  ;;  %4712 = vperm.xlu1 %6284, %v3960_v47  }
 0x823   :  { %v4553_v57 = vpop.permute.xlu1 %4552  ;;  %v3964_v37 = vpop.f32.mrb[7].mxu1 }
 0x824   :  { %5323 = vst [vmem:[#allocation5 + $0x1d8] sm:$0xff] %v5198_v14  ;;  %v4935_v31 = vmul.f32 %v4553_v57, %v4185_v40  ;;  %4717 = vperm.xlu0 %6283, %v3964_v37   ;;  %v12541_v40 = vld [vmem:[#allocation201_spill] sm:$0xff]  ;;  %v12542_v57 = vld [vmem:[#allocation46_spill] sm:$0xff] }
 0x825   :  { %v4558_v11 = vpop.permute.xlu0 %4557  ;;  %v4189_v45 = vsub.f32 %v12542_v57, %v12541_v40 }
 0x826   :  { %v5067_v2 = vmul.f32 %v10679_v49, %v4935_v31  ;;  %v4936_v5 = vmul.f32 %v4558_v11, %v4186_v30  ;;  %v4190_v30 = vsub.f32 %v12543_v19, %v10616_v58 }
 0x828   :  { %v5199_v26 = vadd.f32 %v10690_v28, %v5067_v2  ;;  %v5068_v38 = vmul.f32 %v10679_v49, %v4936_v5  ;;  %v10857_v3 = vpop.f32.mrb[8].mxu1 }
 0x829   :  { %v3970_v51 = vpop.f32.mrb[9].mxu1 }
 0x82a   :  { %5324 = vst [vmem:[#allocation5 + $0x1e0] sm:$0xff] %v5199_v26  ;;  %v5200_v8 = vadd.f32 %v10690_v28, %v5068_v38  ;;  %v10860_v42 = vpop.f32.mrb[10].mxu1  ;;  %4722 = vperm.xlu1 %6284, %v3970_v51  }
 0x82b   :  { %v3974_v39 = vpop.f32.mrb[11].mxu1  ;;  %v4563_v9 = vpop.permute.xlu1 %4562 }
 0x82c   :  { %5325 = vst [vmem:[#allocation5 + $0x1e8] sm:$0xff] %v5200_v8  ;;  %v4937_v24 = vmul.f32 %v4563_v9, %v4187_v7  ;;  %4727 = vperm.xlu0 %6283, %v3974_v39   ;;  %v12544_v7 = vld [vmem:[#allocation23_spill] sm:$0xff]  ;;  %v12545_v39 = vld [vmem:[#allocation50_spill] sm:$0xff] }
 0x82d   :  { %v4568_v62 = vpop.permute.xlu0 %4567  ;;  %v4191_v58 = vsub.f32 %v12545_v39, %v12544_v7 }
 0x82e   :  { %v5069_v34 = vmul.f32 %v10679_v49, %v4937_v24  ;;  %v4938_v48 = vmul.f32 %v4568_v62, %v4188_v53  ;;  %v12546_v53 = vld [vmem:[#allocation51_spill] sm:$0xff] }
 0x82f   :  { %v4192_v62 = vsub.f32 %v12546_v53, %v10634_v54  ;;  %v12550_v53 = vld [vmem:[#allocation58_spill] sm:$0xff] }
 0x830   :  { %v5201_v52 = vadd.f32 %v10690_v28, %v5069_v34  ;;  %v5070_v33 = vmul.f32 %v10679_v49, %v4938_v48  ;;  %v10869_v47 = vpop.f32.mrb[12].mxu1 }
 0x831   :  { %v3980_v14 = vpop.f32.mrb[13].mxu1 }
 0x832   :  { %5326 = vst [vmem:[#allocation5 + $0x1f0] sm:$0xff] %v5201_v52  ;;  %v5202_v23 = vadd.f32 %v10690_v28, %v5070_v33  ;;  %v10872_v55 = vpop.f32.mrb[14].mxu1  ;;  %4732 = vperm.xlu1 %6284, %v3980_v14  }
 0x833   :  { %v3984_v37 = vpop.f32.mrb[15].mxu1  ;;  %v4573_v31 = vpop.permute.xlu1 %4572 }
 0x834   :  { %5327 = vst [vmem:[#allocation5 + $0x1f8] sm:$0xff] %v5202_v23  ;;  %v4939_v32 = vmul.f32 %v4573_v31, %v4189_v45  ;;  %4737 = vperm.xlu0 %6283, %v3984_v37   ;;  %v12547_v37 = vld [vmem:[#allocation54_spill] sm:$0xff] }
 0x835   :  { %v4578_v11 = vpop.permute.xlu0 %4577  ;;  %v4193_v54 = vsub.f32 %v12547_v37, %v10645_v46 }
 0x836   :  { %v5071_v2 = vmul.f32 %v10679_v49, %v4939_v32  ;;  %v4940_v5 = vmul.f32 %v4578_v11, %v4190_v30  ;;  %v12548_v30 = vld [vmem:[#allocation125_spill] sm:$0xff] }
 0x837   :  { %v4194_v11 = vsub.f32 %v12548_v30, %v10652_v43  ;;  %v12552_v30 = vld [vmem:[#allocation62_spill] sm:$0xff] }
 0x838   :  { %v5203_v26 = vadd.f32 %v10690_v28, %v5071_v2  ;;  %v5072_v38 = vmul.f32 %v10679_v49, %v4940_v5  ;;  %v10881_v51 = vpop.f32.mrb[16].mxu1 }
 0x839   :  { %v3990_v8 = vpop.f32.mrb[17].mxu1 }
 0x83a   :  { %5328 = vst [vmem:[#allocation5 + $0x200] sm:$0xff] %v5203_v26  ;;  %v5204_v27 = vadd.f32 %v10690_v28, %v5072_v38  ;;  %v10884_v4 = vpop.f32.mrb[18].mxu1  ;;  %4742 = vperm.xlu1 %6284, %v3990_v8  }
 0x83b   :  { %v3994_v9 = vpop.f32.mrb[19].mxu1  ;;  %v4583_v24 = vpop.permute.xlu1 %4582 }
 0x83c   :  { %5329 = vst [vmem:[#allocation5 + $0x208] sm:$0xff] %v5204_v27  ;;  %v4941_v17 = vmul.f32 %v4583_v24, %v4191_v58  ;;  %4747 = vperm.xlu0 %6283, %v3994_v9   ;;  %v12549_v58 = vld [vmem:[#allocation57_spill] sm:$0xff] }
 0x83d   :  { %v4588_v34 = vpop.permute.xlu0 %4587  ;;  %v4195_v43 = vsub.f32 %v12549_v58, %v10663_v61 }
 0x83e   :  { %v5073_v48 = vmul.f32 %v10679_v49, %v4941_v17  ;;  %v4942_v52 = vmul.f32 %v4588_v34, %v4192_v62  ;;  %v4196_v62 = vsub.f32 %v12550_v53, %v10670_v44  ;;  %v12554_v53 = vld [vmem:[#allocation66_spill] sm:$0xff] }
 0x840   :  { %v5205_v33 = vadd.f32 %v10690_v28, %v5073_v48  ;;  %v5074_v14 = vmul.f32 %v10679_v49, %v4942_v52  ;;  %v10893_v23 = vpop.f32.mrb[20].mxu1 }
 0x841   :  { %v4000_v40 = vpop.f32.mrb[21].mxu1 }
 0x842   :  { %5330 = vst [vmem:[#allocation5 + $0x210] sm:$0xff] %v5205_v33  ;;  %v5206_v57 = vadd.f32 %v10690_v28, %v5074_v14  ;;  %v10896_v45 = vpop.f32.mrb[22].mxu1  ;;  %4752 = vperm.xlu1 %6284, %v4000_v40  }
 0x843   :  { %v4004_v31 = vpop.f32.mrb[23].mxu1  ;;  %v4593_v32 = vpop.permute.xlu1 %4592 }
 0x844   :  { %5331 = vst [vmem:[#allocation5 + $0x218] sm:$0xff] %v5206_v57  ;;  %v4943_v19 = vmul.f32 %v4593_v32, %v4193_v54  ;;  %4757 = vperm.xlu0 %6283, %v4004_v31   ;;  %v12551_v54 = vld [vmem:[#allocation61_spill] sm:$0xff] }
 0x845   :  { %v4598_v2 = vpop.permute.xlu0 %4597  ;;  %v4197_v44 = vsub.f32 %v12551_v54, %v10685_v16 }
 0x846   :  { %v5075_v5 = vmul.f32 %v10679_v49, %v4943_v19  ;;  %v4944_v26 = vmul.f32 %v4598_v2, %v4194_v11  ;;  %v4198_v11 = vsub.f32 %v12552_v30, %v10697_v6  ;;  %v12556_v30 = vld [vmem:[#allocation134_spill] sm:$0xff] }
 0x848   :  { %v5207_v38 = vadd.f32 %v10690_v28, %v5075_v5  ;;  %v5076_v8 = vmul.f32 %v10679_v49, %v4944_v26  ;;  %v10905_v27 = vpop.f32.mrb[24].mxu1 }
 0x849   :  { %v4010_v7 = vpop.f32.mrb[25].mxu1 }
 0x84a   :  { %5332 = vst [vmem:[#allocation5 + $0x220] sm:$0xff] %v5207_v38  ;;  %v5208_v46 = vadd.f32 %v10690_v28, %v5076_v8  ;;  %v10908_v39 = vpop.f32.mrb[26].mxu1  ;;  %4762 = vperm.xlu1 %6284, %v4010_v7  }
 0x84b   :  { %v4014_v9 = vpop.f32.mrb[27].mxu1  ;;  %v4603_v24 = vpop.permute.xlu1 %4602 }
 0x84c   :  { %5333 = vst [vmem:[#allocation5 + $0x228] sm:$0xff] %v5208_v46  ;;  %v4945_v17 = vmul.f32 %v4603_v24, %v4195_v43  ;;  %4767 = vperm.xlu0 %6283, %v4014_v9   ;;  %v12553_v43 = vld [vmem:[#allocation64_spill] sm:$0xff] }
 0x84d   :  { %v4608_v34 = vpop.permute.xlu0 %4607  ;;  %v4199_v6 = vsub.f32 %v12553_v43, %v10706_v22 }
 0x84e   :  { %v5077_v48 = vmul.f32 %v10679_v49, %v4945_v17  ;;  %v4946_v52 = vmul.f32 %v4608_v34, %v4196_v62  ;;  %v4200_v62 = vsub.f32 %v12554_v53, %v10713_v36  ;;  %v12558_v53 = vld [vmem:[#allocation137_spill] sm:$0xff] }
 0x850   :  { %v5209_v33 = vadd.f32 %v10690_v28, %v5077_v48  ;;  %v5078_v14 = vmul.f32 %v10679_v49, %v4946_v52  ;;  %v10917_v40 = vpop.f32.mrb[28].mxu1 }
 0x851   :  { %v4020_v57 = vpop.f32.mrb[29].mxu1 }
 0x852   :  { %5334 = vst [vmem:[#allocation5 + $0x230] sm:$0xff] %v5209_v33  ;;  %v5210_v61 = vadd.f32 %v10690_v28, %v5078_v14  ;;  %v10920_v37 = vpop.f32.mrb[30].mxu1  ;;  %4772 = vperm.xlu1 %6284, %v4020_v57  }
 0x853   :  { %v4024_v31 = vpop.f32.mrb[31].mxu1  ;;  %v4613_v32 = vpop.permute.xlu1 %4612 }
 0x854   :  { %5335 = vst [vmem:[#allocation5 + $0x238] sm:$0xff] %v5210_v61  ;;  %v4947_v19 = vmul.f32 %v4613_v32, %v4197_v44  ;;  %4777 = vperm.xlu0 %6283, %v4024_v31   ;;  %v12555_v44 = vld [vmem:[#allocation68_spill] sm:$0xff] }
 0x855   :  { %v4618_v2 = vpop.permute.xlu0 %4617  ;;  %v4201_v36 = vsub.f32 %v12555_v44, %v10722_v56 }
 0x856   :  { %v5079_v5 = vmul.f32 %v10679_v49, %v4947_v19  ;;  %v4948_v26 = vmul.f32 %v4618_v2, %v4198_v11  ;;  %v4202_v11 = vsub.f32 %v12556_v30, %v10729_v0  ;;  %v12560_v30 = vld [vmem:[#allocation77_spill] sm:$0xff] }
 0x858   :  { %v5211_v38 = vadd.f32 %v10690_v28, %v5079_v5  ;;  %v5080_v8 = vmul.f32 %v10679_v49, %v4948_v26  ;;  %v10929_v7 = vpop.f32.mrb[32].mxu1 }
 0x859   :  { %v4030_v46 = vpop.f32.mrb[33].mxu1 }
 0x85a   :  { %5336 = vst [vmem:[#allocation5 + $0x240] sm:$0xff] %v5211_v38  ;;  %v5212_v16 = vadd.f32 %v10690_v28, %v5080_v8  ;;  %v10932_v58 = vpop.f32.mrb[34].mxu1  ;;  %4782 = vperm.xlu1 %6284, %v4030_v46  }
 0x85b   :  { %v4034_v9 = vpop.f32.mrb[35].mxu1  ;;  %v4623_v24 = vpop.permute.xlu1 %4622 }
 0x85c   :  { %5337 = vst [vmem:[#allocation5 + $0x248] sm:$0xff] %v5212_v16  ;;  %v4949_v17 = vmul.f32 %v4623_v24, %v4199_v6  ;;  %4787 = vperm.xlu0 %6283, %v4034_v9   ;;  %v12557_v6 = vld [vmem:[#allocation72_spill] sm:$0xff] }
 0x85d   :  { %v4628_v34 = vpop.permute.xlu0 %4627  ;;  %v4203_v0 = vsub.f32 %v12557_v6, %v10738_v21 }
 0x85e   :  { %v5081_v48 = vmul.f32 %v10679_v49, %v4949_v17  ;;  %v4950_v52 = vmul.f32 %v4628_v34, %v4200_v62  ;;  %v4204_v62 = vsub.f32 %v12558_v53, %v10745_v63  ;;  %v12562_v53 = vld [vmem:[#allocation81_spill] sm:$0xff] }
 0x860   :  { %v5213_v33 = vadd.f32 %v10690_v28, %v5081_v48  ;;  %v5082_v14 = vmul.f32 %v10679_v49, %v4950_v52  ;;  %v10941_v57 = vpop.f32.mrb[36].mxu1 }
 0x861   :  { %v4040_v61 = vpop.f32.mrb[37].mxu1 }
 0x862   :  { %5338 = vst [vmem:[#allocation5 + $0x250] sm:$0xff] %v5213_v33  ;;  %v5214_v22 = vadd.f32 %v10690_v28, %v5082_v14  ;;  %v10944_v54 = vpop.f32.mrb[38].mxu1  ;;  %4792 = vperm.xlu1 %6284, %v4040_v61  }
 0x863   :  { %v4044_v31 = vpop.f32.mrb[39].mxu1  ;;  %v4633_v32 = vpop.permute.xlu1 %4632 }
 0x864   :  { %5339 = vst [vmem:[#allocation5 + $0x258] sm:$0xff] %v5214_v22  ;;  %v4951_v19 = vmul.f32 %v4633_v32, %v4201_v36  ;;  %4797 = vperm.xlu0 %6283, %v4044_v31   ;;  %v12559_v36 = vld [vmem:[#allocation75_spill] sm:$0xff] }
 0x865   :  { %v4638_v2 = vpop.permute.xlu0 %4637  ;;  %v4205_v63 = vsub.f32 %v12559_v36, %v10754_v25 }
 0x866   :  { %v5083_v5 = vmul.f32 %v10679_v49, %v4951_v19  ;;  %v4952_v26 = vmul.f32 %v4638_v2, %v4202_v11  ;;  %v4206_v11 = vsub.f32 %v12560_v30, %v10761_v13  ;;  %v12564_v30 = vld [vmem:[#allocation143_spill] sm:$0xff] }
 0x868   :  { %v5215_v38 = vadd.f32 %v10690_v28, %v5083_v5  ;;  %v5084_v8 = vmul.f32 %v10679_v49, %v4952_v26  ;;  %v10953_v46 = vpop.f32.mrb[40].mxu1 }
 0x869   :  { %v4050_v16 = vpop.f32.mrb[41].mxu1 }
 0x86a   :  { %5340 = vst [vmem:[#allocation5 + $0x260] sm:$0xff] %v5215_v38  ;;  %v5216_v56 = vadd.f32 %v10690_v28, %v5084_v8  ;;  %v10956_v43 = vpop.f32.mrb[42].mxu1  ;;  %4802 = vperm.xlu1 %6284, %v4050_v16  }
 0x86b   :  { %v4054_v9 = vpop.f32.mrb[43].mxu1  ;;  %v4643_v24 = vpop.permute.xlu1 %4642 }
 0x86c   :  { %5341 = vst [vmem:[#allocation5 + $0x268] sm:$0xff] %v5216_v56  ;;  %v4953_v17 = vmul.f32 %v4643_v24, %v4203_v0  ;;  %4807 = vperm.xlu0 %6283, %v4054_v9   ;;  %v12561_v0 = vld [vmem:[#allocation79_spill] sm:$0xff] }
 0x86d   :  { %v4648_v34 = vpop.permute.xlu0 %4647  ;;  %v4207_v13 = vsub.f32 %v12561_v0, %v10770_v50 }
 0x86e   :  { %v5085_v48 = vmul.f32 %v10679_v49, %v4953_v17  ;;  %v4954_v52 = vmul.f32 %v4648_v34, %v4204_v62  ;;  %v4208_v62 = vsub.f32 %v12562_v53, %v10777_v10  ;;  %v12566_v53 = vld [vmem:[#allocation146_spill] sm:$0xff] }
 0x870   :  { %v5217_v33 = vadd.f32 %v10690_v28, %v5085_v48  ;;  %v5086_v14 = vmul.f32 %v10679_v49, %v4954_v52  ;;  %v10965_v61 = vpop.f32.mrb[44].mxu1 }
 0x871   :  { %v4060_v22 = vpop.f32.mrb[45].mxu1 }
 0x872   :  { %5342 = vst [vmem:[#allocation5 + $0x270] sm:$0xff] %v5217_v33  ;;  %v5218_v21 = vadd.f32 %v10690_v28, %v5086_v14  ;;  %v10968_v44 = vpop.f32.mrb[46].mxu1  ;;  %4812 = vperm.xlu1 %6284, %v4060_v22  }
 0x873   :  { %v4064_v31 = vpop.f32.mrb[47].mxu1  ;;  %v4653_v32 = vpop.permute.xlu1 %4652 }
 0x874   :  { %5343 = vst [vmem:[#allocation5 + $0x278] sm:$0xff] %v5218_v21  ;;  %v4955_v19 = vmul.f32 %v4653_v32, %v4205_v63  ;;  %4817 = vperm.xlu0 %6283, %v4064_v31   ;;  %v12563_v63 = vld [vmem:[#allocation83_spill] sm:$0xff] }
 0x875   :  { %v4658_v2 = vpop.permute.xlu0 %4657  ;;  %v4209_v10 = vsub.f32 %v12563_v63, %v10786_v18 }
 0x876   :  { %v5087_v5 = vmul.f32 %v10679_v49, %v4955_v19  ;;  %v4956_v26 = vmul.f32 %v4658_v2, %v4206_v11  ;;  %v4210_v11 = vsub.f32 %v12564_v30, %v10793_v1  ;;  %v12568_v30 = vld [vmem:[#allocation152_spill] sm:$0xff] }
 0x878   :  { %v5219_v38 = vadd.f32 %v10690_v28, %v5087_v5  ;;  %v5088_v8 = vmul.f32 %v10679_v49, %v4956_v26  ;;  %v10977_v16 = vpop.f32.mrb[48].mxu1 }
 0x879   :  { %v4070_v56 = vpop.f32.mrb[49].mxu1 }
 0x87a   :  { %5344 = vst [vmem:[#allocation5 + $0x280] sm:$0xff] %v5219_v38  ;;  %v5220_v25 = vadd.f32 %v10690_v28, %v5088_v8  ;;  %v10980_v6 = vpop.f32.mrb[50].mxu1  ;;  %4822 = vperm.xlu1 %6284, %v4070_v56  }
 0x87b   :  { %v4074_v9 = vpop.f32.mrb[51].mxu1  ;;  %v4663_v24 = vpop.permute.xlu1 %4662 }
 0x87c   :  { %5345 = vst [vmem:[#allocation5 + $0x288] sm:$0xff] %v5220_v25  ;;  %v4957_v17 = vmul.f32 %v4663_v24, %v4207_v13  ;;  %4827 = vperm.xlu0 %6283, %v4074_v9   ;;  %v12565_v13 = vld [vmem:[#allocation145_spill] sm:$0xff] }
 0x87d   :  { %v4668_v34 = vpop.permute.xlu0 %4667  ;;  %v4211_v1 = vsub.f32 %v12565_v13, %v10802_v20 }
 0x87e   :  { %v5089_v48 = vmul.f32 %v10679_v49, %v4957_v17  ;;  %v4958_v52 = vmul.f32 %v4668_v34, %v4208_v62  ;;  %v4212_v62 = vsub.f32 %v12566_v53, %v10809_v41 }
 0x880   :  { %v5221_v33 = vadd.f32 %v10690_v28, %v5089_v48  ;;  %v5090_v14 = vmul.f32 %v10679_v49, %v4958_v52  ;;  %v10989_v22 = vpop.f32.mrb[52].mxu1 }
 0x881   :  { %v4080_v21 = vpop.f32.mrb[53].mxu1 }
 0x882   :  { %5346 = vst [vmem:[#allocation5 + $0x290] sm:$0xff] %v5221_v33  ;;  %v5222_v50 = vadd.f32 %v10690_v28, %v5090_v14  ;;  %v10992_v36 = vpop.f32.mrb[54].mxu1  ;;  %4832 = vperm.xlu1 %6284, %v4080_v21  }
 0x883   :  { %v4084_v31 = vpop.f32.mrb[55].mxu1  ;;  %v4673_v32 = vpop.permute.xlu1 %4672 }
 0x884   :  { %5347 = vst [vmem:[#allocation5 + $0x298] sm:$0xff] %v5222_v50  ;;  %v4959_v19 = vmul.f32 %v4673_v32, %v4209_v10  ;;  %4837 = vperm.xlu0 %6283, %v4084_v31   ;;  %v12567_v10 = vld [vmem:[#allocation148_spill] sm:$0xff] }
 0x885   :  { %v4678_v2 = vpop.permute.xlu0 %4677  ;;  %v4213_v41 = vsub.f32 %v12567_v10, %v10818_v60 }
 0x886   :  { %v5091_v5 = vmul.f32 %v10679_v49, %v4959_v19  ;;  %v4960_v26 = vmul.f32 %v4678_v2, %v4210_v11  ;;  %v4214_v11 = vsub.f32 %v12568_v30, %v10825_v15 }
 0x888   :  { %v5223_v38 = vadd.f32 %v10690_v28, %v5091_v5  ;;  %v5092_v8 = vmul.f32 %v10679_v49, %v4960_v26  ;;  %v11001_v56 = vpop.f32.mrb[56].mxu1 }
 0x889   :  { %v4090_v25 = vpop.f32.mrb[57].mxu1 }
 0x88a   :  { %5348 = vst [vmem:[#allocation5 + $0x2a0] sm:$0xff] %v5223_v38  ;;  %v5224_v18 = vadd.f32 %v10690_v28, %v5092_v8  ;;  %v11004_v0 = vpop.f32.mrb[58].mxu1  ;;  %4842 = vperm.xlu1 %6284, %v4090_v25   ;;  %v12569_v38 = vld [vmem:[#allocation155_spill] sm:$0xff] }
 0x88b   :  { %v4094_v9 = vpop.f32.mrb[59].mxu1  ;;  %v4683_v24 = vpop.permute.xlu1 %4682  ;;  %v4215_v8 = vsub.f32 %v12569_v38, %v10833_v59  ;;  %v12573_v38 = vld [vmem:[#allocation167_spill] sm:$0xff] }
 0x88c   :  { %5349 = vst [vmem:[#allocation5 + $0x2a8] sm:$0xff] %v5224_v18  ;;  %v4961_v17 = vmul.f32 %v4683_v24, %v4211_v1  ;;  %4847 = vperm.xlu0 %6283, %v4094_v9   ;;  %v12570_v9 = vld [vmem:[#allocation159_spill] sm:$0xff] }
 0x88d   :  { %v4688_v34 = vpop.permute.xlu0 %4687  ;;  %v4216_v24 = vsub.f32 %v12570_v9, %v10836_v29  ;;  %v12571_v29 = vld [vmem:[#allocation160_spill] sm:$0xff] }
 0x88e   :  { %v5093_v48 = vmul.f32 %v10679_v49, %v4961_v17  ;;  %v4962_v52 = vmul.f32 %v4688_v34, %v4212_v62 }
 0x890   :  { %v5225_v33 = vadd.f32 %v10690_v28, %v5093_v48  ;;  %v5094_v14 = vmul.f32 %v10679_v49, %v4962_v52  ;;  %v11013_v21 = vpop.f32.mrb[60].mxu1 }
 0x891   :  { %v4100_v50 = vpop.f32.mrb[61].mxu1 }
 0x892   :  { %5350 = vst [vmem:[#allocation5 + $0x2b0] sm:$0xff] %v5225_v33  ;;  %v5226_v20 = vadd.f32 %v10690_v28, %v5094_v14  ;;  %v11016_v63 = vpop.f32.mrb[62].mxu1  ;;  %4852 = vperm.xlu1 %6284, %v4100_v50   ;;  %v4217_v14 = vsub.f32 %v12571_v29, %v10845_v35 }
 0x893   :  { %v4104_v31 = vpop.f32.mrb[63].mxu1  ;;  %v4693_v32 = vpop.permute.xlu1 %4692 }
 0x894   :  { %5351 = vst [vmem:[#allocation5 + $0x2b8] sm:$0xff] %v5226_v20  ;;  %v4963_v19 = vmul.f32 %v4693_v32, %v4213_v41  ;;  %4857 = vperm.xlu0 %6283, %v4104_v31   ;;  %v12572_v31 = vld [vmem:[#allocation165_spill] sm:$0xff] }
 0x895   :  { %v4698_v2 = vpop.permute.xlu0 %4697  ;;  %v4218_v32 = vsub.f32 %v12572_v31, %v10848_v12 }
 0x896   :  { %v5095_v5 = vmul.f32 %v10679_v49, %v4963_v19  ;;  %v4964_v26 = vmul.f32 %v4698_v2, %v4214_v11 }
 0x898   :  { %v5227_v25 = vadd.f32 %v10690_v28, %v5095_v5  ;;  %v5096_v18 = vmul.f32 %v10679_v49, %v4964_v26  ;;  %v11027_v60 = vpop.f32.mrb[64].mxu1  ;;  %v11053_v5 = vld [vmem:[%s11201_s4] ss:$0 sm:$0xff] }
 0x899   :  { %v4110_v13 = vpop.f32.mrb[65].mxu1  ;;  %v4703_v1 = vpop.permute.xlu1 %4702 }
 0x89a   :  { %5352 = vst [vmem:[#allocation5 + $0x2c0] sm:$0xff] %v5227_v25  ;;  %v5228_v15 = vadd.f32 %v10690_v28, %v5096_v18  ;;  %v4965_v17 = vmul.f32 %v4703_v1, %v4215_v8  ;;  %v11032_v53 = vpop.f32.mrb[66].mxu1  ;;  %4862 = vperm.xlu1 %6284, %v4110_v13   ;;  %v4219_v8 = vsub.f32 %v12573_v38, %v10857_v3  ;;  %v12574_v13 = vld [vmem:[#allocation171_spill] sm:$0xff] }
 0x89b   :  { %v4114_v62 = vpop.f32.mrb[67].mxu1  ;;  %v4708_v59 = vpop.permute.xlu0 %4707  ;;  %v4220_v1 = vsub.f32 %v12574_v13, %v10860_v42  ;;  %v12580_v13 = vld [vmem:[#allocation193_spill] sm:$0xff] }
 0x89c   :  { %5353 = vst [vmem:[#allocation5 + $0x2c8] sm:$0xff] %v5228_v15  ;;  %v5097_v34 = vmul.f32 %v10679_v49, %v4965_v17  ;;  %v4966_v48 = vmul.f32 %v4708_v59, %v4216_v24  ;;  %4867 = vperm.xlu0 %6283, %v4114_v62  }
 0x89e   :  { %v5229_v52 = vadd.f32 %v10690_v28, %v5097_v34  ;;  %v5098_v33 = vmul.f32 %v10679_v49, %v4966_v48  ;;  %v11047_v49 = vld [vmem:[%s11200_s3] ss:$0 sm:$0xff]  ;;  %v12575_v34 = vld [vmem:[#allocation176_spill] sm:$0xff]  ;;  %s6420_s3 = smov [#allocation5]  }
 0x89f   :  { %v4221_v3 = vsub.f32 %v12575_v34, %v10869_v47  ;;  %s5394_s4 = sshll.u32 %s6420_s3, 4  ;;  %s5395_s4 = int_to_ptr.vmem [resolvable:$true] %s5394_s4 }
 0x8a0   :  { %5354 = vst [vmem:[#allocation5 + $0x2d0] sm:$0xff] %v5229_v52  ;;  %v5230_v50 = vadd.f32 %v10690_v28, %v5098_v33  ;;  %v11040_v20 = vpop.f32.mrb[68].mxu1  ;;  %v12576_v33 = vld [vmem:[#allocation179_spill] sm:$0xff]  ;;  %s6388_s6 = scalar_lea.vmem %s5395_s4, 16000  ;;  %p6393_p9 = scmp.lt.s32.totalorder %s5395_s4, %s5395_s4 }
 0x8a1   :  { %v4120_v10 = vpop.f32.mrb[69].mxu1  ;;  %v4713_v41 = vpop.permute.xlu1 %4712  ;;  %v4222_v42 = vsub.f32 %v12576_v33, %v10872_v55  ;;  %p6389_p8 = scmp.ne.s32.totalorder %s5395_s4, %s6388_s6  ;;  %p6394_p10 = scmp.lt.s32.totalorder %s6388_s6, %s6388_s6 }
 0x8a2   :  { %5355 = vst [vmem:[#allocation5 + $0x2d8] sm:$0xff] %v5230_v50  ;;  %v4967_v19 = vmul.f32 %v4713_v41, %v4217_v14  ;;  %v4122_v30 = vpop.f32.mrb[70].mxu1  ;;  %4872 = vperm.xlu1 %6284, %v4120_v10  }
 0x8a3   :  { %v4123_v11 = vpop.f32.mrb[71].mxu1  ;;  %v4718_v2 = vpop.permute.xlu0 %4717  ;;  %p6395_p11 = por %p6394_p10, %p6393_p9 }
 0x8a4   :  { %v5099_v28 = vmul.f32 %v11047_v49, %v4967_v19  ;;  %v4968_v35 = vmul.f32 %v4718_v2, %v4218_v32  ;;  %v12577_v32 = vld [vmem:[#allocation182_spill] sm:$0xff] }
 0x8a5   :  { %v4223_v47 = vsub.f32 %v12577_v32, %v10881_v51  ;;  %v12578_v11 = vld [vmem:[#allocation186_spill] sm:$0xff]  ;;  %v12584_v32 = vld [vmem:[#allocation123_spill] sm:$0xff]  ;;  %p6396_p12 = pnand %p6395_p11, %p6389_p8 }
 0x8a6   :  { %v5231_v12 = vadd.f32 %v11053_v5, %v5099_v28  ;;  %v5100_v26 = vmul.f32 %v11047_v49, %v4968_v35  ;;  %v4224_v55 = vsub.f32 %v12578_v11, %v10884_v4  ;;  %v4226_v4 = vsub.f32 %v12580_v13, %v10896_v45 }
 0x8a8   :  { %5356 = vst [vmem:[#allocation5 + $0x2e0] sm:$0xff] %v5231_v12  ;;  %v5232_v25 = vadd.f32 %v11053_v5, %v5100_v26 }
 0x8a9   :  { %v4723_v18 = vpop.permute.xlu1 %4722 }
 0x8aa   :  { %5357 = vst [vmem:[#allocation5 + $0x2e8] sm:$0xff] %v5232_v25  ;;  %v4969_v9 = vmul.f32 %v4723_v18, %v4219_v8  ;;  %v12579_v8 = vld [vmem:[#allocation188_spill] sm:$0xff] }
 0x8ab   :  { %v4728_v24 = vpop.permute.xlu0 %4727  ;;  %v4225_v51 = vsub.f32 %v12579_v8, %v10893_v23 }
 0x8ac   :  { %v5101_v15 = vmul.f32 %v11047_v49, %v4969_v9  ;;  %v4970_v17 = vmul.f32 %v4728_v24, %v4220_v1 }
 0x8ae   :  { %v5233_v62 = vadd.f32 %v11053_v5, %v5101_v15  ;;  %v5102_v59 = vmul.f32 %v11047_v49, %v4970_v17 }
 0x8b0   :  { %5358 = vst [vmem:[#allocation5 + $0x2f0] sm:$0xff] %v5233_v62  ;;  %v5234_v48 = vadd.f32 %v11053_v5, %v5102_v59  ;;  %v12581_v59 = vld [vmem:[#allocation111_spill] sm:$0xff] }
 0x8b1   :  { %v4733_v52 = vpop.permute.xlu1 %4732  ;;  %v4227_v23 = vsub.f32 %v12581_v59, %v10905_v27 }
 0x8b2   :  { %5359 = vst [vmem:[#allocation5 + $0x2f8] sm:$0xff] %v5234_v48  ;;  %v4971_v29 = vmul.f32 %v4733_v52, %v4221_v3  ;;  %v12582_v48 = vld [vmem:[#allocation115_spill] sm:$0xff] }
 0x8b3   :  { %v4738_v14 = vpop.permute.xlu0 %4737  ;;  %v4228_v45 = vsub.f32 %v12582_v48, %v10908_v39  ;;  %v4230_v39 = vsub.f32 %v12584_v32, %v10920_v37  ;;  %v12592_v32 = vld [vmem:[#allocation197_spill] sm:$0xff] }
 0x8b4   :  { %v5103_v50 = vmul.f32 %v11047_v49, %v4971_v29  ;;  %v4972_v10 = vmul.f32 %v4738_v14, %v4222_v42 }
 0x8b6   :  { %v5235_v41 = vadd.f32 %v11053_v5, %v5103_v50  ;;  %v5104_v31 = vmul.f32 %v11047_v49, %v4972_v10  ;;  %v12583_v10 = vld [vmem:[#allocation119_spill] sm:$0xff] }
 0x8b7   :  { %v4229_v27 = vsub.f32 %v12583_v10, %v10917_v40 }
 0x8b8   :  { %5360 = vst [vmem:[#allocation5 + $0x300] sm:$0xff] %v5235_v41  ;;  %v5236_v19 = vadd.f32 %v11053_v5, %v5104_v31 }
 0x8b9   :  { %v4743_v30 = vpop.permute.xlu1 %4742 }
 0x8ba   :  { %5361 = vst [vmem:[#allocation5 + $0x308] sm:$0xff] %v5236_v19  ;;  %v4973_v2 = vmul.f32 %v4743_v30, %v4223_v47 }
 0x8bb   :  { %v4748_v28 = vpop.permute.xlu0 %4747 }
 0x8bc   :  { %v5105_v35 = vmul.f32 %v11047_v49, %v4973_v2  ;;  %v4974_v12 = vmul.f32 %v4748_v28, %v4224_v55  ;;  %v12585_v28 = vld [vmem:[#allocation194_spill] sm:$0xff] }
 0x8bd   :  { %v4231_v40 = vsub.f32 %v12585_v28, %v10929_v7 }
 0x8be   :  { %v5237_v26 = vadd.f32 %v11053_v5, %v5105_v35  ;;  %v5106_v38 = vmul.f32 %v11047_v49, %v4974_v12 }
 0x8c0   :  { %5362 = vst [vmem:[#allocation5 + $0x310] sm:$0xff] %v5237_v26  ;;  %v5238_v25 = vadd.f32 %v11053_v5, %v5106_v38  ;;  %v12586_v26 = vld [vmem:[#allocation195_spill] sm:$0xff] }
 0x8c1   :  { %v4753_v18 = vpop.permute.xlu1 %4752  ;;  %v4232_v37 = vsub.f32 %v12586_v26, %v10932_v58 }
 0x8c2   :  { %5363 = vst [vmem:[#allocation5 + $0x318] sm:$0xff] %v5238_v25  ;;  %v4975_v1 = vmul.f32 %v4753_v18, %v4225_v51 }
 0x8c3   :  { %v4758_v9 = vpop.permute.xlu0 %4757 }
 0x8c4   :  { %v5107_v24 = vmul.f32 %v11047_v49, %v4975_v1  ;;  %v4976_v15 = vmul.f32 %v4758_v9, %v4226_v4  ;;  %v12587_v4 = vld [vmem:[#allocation130_spill] sm:$0xff] }
 0x8c5   :  { %v4233_v7 = vsub.f32 %v12587_v4, %v10941_v57  ;;  %v12596_v4 = vld [vmem:[#allocation139_spill] sm:$0xff] }
 0x8c6   :  { %v5239_v17 = vadd.f32 %v11053_v5, %v5107_v24  ;;  %v5108_v62 = vmul.f32 %v11047_v49, %v4976_v15  ;;  %v12588_v24 = vld [vmem:[#allocation131_spill] sm:$0xff] }
 0x8c7   :  { %v4234_v58 = vsub.f32 %v12588_v24, %v10944_v54 }
 0x8c8   :  { %5364 = vst [vmem:[#allocation5 + $0x320] sm:$0xff] %v5239_v17  ;;  %v5240_v34 = vadd.f32 %v11053_v5, %v5108_v62 }
 0x8c9   :  { %v4763_v3 = vpop.permute.xlu1 %4762 }
 0x8ca   :  { %5365 = vst [vmem:[#allocation5 + $0x328] sm:$0xff] %v5240_v34  ;;  %v4977_v52 = vmul.f32 %v4763_v3, %v4227_v23  ;;  %v12589_v3 = vld [vmem:[#allocation132_spill] sm:$0xff] }
 0x8cb   :  { %v4768_v33 = vpop.permute.xlu0 %4767  ;;  %v4235_v57 = vsub.f32 %v12589_v3, %v10953_v46 }
 0x8cc   :  { %v5109_v42 = vmul.f32 %v11047_v49, %v4977_v52  ;;  %v4978_v29 = vmul.f32 %v4768_v33, %v4228_v45  ;;  %v12590_v52 = vld [vmem:[#allocation196_spill] sm:$0xff] }
 0x8cd   :  { %v4236_v54 = vsub.f32 %v12590_v52, %v10956_v43  ;;  %v4238_v43 = vsub.f32 %v12592_v32, %v10968_v44 }
 0x8ce   :  { %v5241_v14 = vadd.f32 %v11053_v5, %v5109_v42  ;;  %v5110_v50 = vmul.f32 %v11047_v49, %v4978_v29 }
 0x8d0   :  { %5366 = vst [vmem:[#allocation5 + $0x330] sm:$0xff] %v5241_v14  ;;  %v5242_v41 = vadd.f32 %v11053_v5, %v5110_v50 }
 0x8d1   :  { %v4773_v31 = vpop.permute.xlu1 %4772 }
 0x8d2   :  { %5367 = vst [vmem:[#allocation5 + $0x338] sm:$0xff] %v5242_v41  ;;  %v4979_v47 = vmul.f32 %v4773_v31, %v4229_v27  ;;  %v12591_v27 = vld [vmem:[#allocation133_spill] sm:$0xff] }
 0x8d3   :  { %v4778_v19 = vpop.permute.xlu0 %4777  ;;  %v4237_v46 = vsub.f32 %v12591_v27, %v10965_v61 }
 0x8d4   :  { %v5111_v30 = vmul.f32 %v11047_v49, %v4979_v47  ;;  %v4980_v11 = vmul.f32 %v4778_v19, %v4230_v39 }
 0x8d6   :  { %v5243_v55 = vadd.f32 %v11053_v5, %v5111_v30  ;;  %v5112_v2 = vmul.f32 %v11047_v49, %v4980_v11 }
 0x8d8   :  { %5368 = vst [vmem:[#allocation5 + $0x340] sm:$0xff] %v5243_v55  ;;  %v5244_v35 = vadd.f32 %v11053_v5, %v5112_v2  ;;  %v12593_v2 = vld [vmem:[#allocation135_spill] sm:$0xff] }
 0x8d9   :  { %v4783_v12 = vpop.permute.xlu1 %4782  ;;  %v4239_v61 = vsub.f32 %v12593_v2, %v10977_v16 }
 0x8da   :  { %5369 = vst [vmem:[#allocation5 + $0x348] sm:$0xff] %v5244_v35  ;;  %v4981_v38 = vmul.f32 %v4783_v12, %v4231_v40  ;;  %v12594_v35 = vld [vmem:[#allocation136_spill] sm:$0xff] }
 0x8db   :  { %v4788_v8 = vpop.permute.xlu0 %4787  ;;  %v4240_v44 = vsub.f32 %v12594_v35, %v10980_v6  ;;  %v4242_v6 = vsub.f32 %v12596_v4, %v10992_v36 }
 0x8dc   :  { %v5113_v51 = vmul.f32 %v11047_v49, %v4981_v38  ;;  %v4982_v25 = vmul.f32 %v4788_v8, %v4232_v37 }
 0x8de   :  { %v5245_v18 = vadd.f32 %v11053_v5, %v5113_v51  ;;  %v5114_v13 = vmul.f32 %v11047_v49, %v4982_v25  ;;  %v12595_v25 = vld [vmem:[#allocation138_spill] sm:$0xff] }
 0x8df   :  { %v4241_v16 = vsub.f32 %v12595_v25, %v10989_v22 }
 0x8e0   :  { %5370 = vst [vmem:[#allocation5 + $0x350] sm:$0xff] %v5245_v18  ;;  %v5246_v1 = vadd.f32 %v11053_v5, %v5114_v13 }
 0x8e1   :  { %v4793_v9 = vpop.permute.xlu1 %4792 }
 0x8e2   :  { %5371 = vst [vmem:[#allocation5 + $0x358] sm:$0xff] %v5246_v1  ;;  %v4983_v15 = vmul.f32 %v4793_v9, %v4233_v7 }
 0x8e3   :  { %v4798_v17 = vpop.permute.xlu0 %4797 }
 0x8e4   :  { %v5115_v62 = vmul.f32 %v11047_v49, %v4983_v15  ;;  %v4984_v59 = vmul.f32 %v4798_v17, %v4234_v58  ;;  %v12597_v17 = vld [vmem:[#allocation140_spill] sm:$0xff] }
 0x8e5   :  { %v4243_v22 = vsub.f32 %v12597_v17, %v11001_v56 }
 0x8e6   :  { %v5247_v23 = vadd.f32 %v11053_v5, %v5115_v62  ;;  %v5116_v34 = vmul.f32 %v11047_v49, %v4984_v59 }
 0x8e8   :  { %5372 = vst [vmem:[#allocation5 + $0x360] sm:$0xff] %v5247_v23  ;;  %v5248_v48 = vadd.f32 %v11053_v5, %v5116_v34  ;;  %v12598_v23 = vld [vmem:[#allocation198_spill] sm:$0xff] }
 0x8e9   :  { %v4803_v45 = vpop.permute.xlu1 %4802  ;;  %v4244_v36 = vsub.f32 %v12598_v23, %v11004_v0 }
 0x8ea   :  { %5373 = vst [vmem:[#allocation5 + $0x368] sm:$0xff] %v5248_v48  ;;  %v4985_v33 = vmul.f32 %v4803_v45, %v4235_v57 }
 0x8eb   :  { %v4808_v42 = vpop.permute.xlu0 %4807 }
 0x8ec   :  { %v5117_v29 = vmul.f32 %v11047_v49, %v4985_v33  ;;  %v4986_v14 = vmul.f32 %v4808_v42, %v4236_v54  ;;  %v12599_v54 = vld [vmem:[#allocation141_spill] sm:$0xff] }
 0x8ed   :  { %v4245_v56 = vsub.f32 %v12599_v54, %v11013_v21 }
 0x8ee   :  { %v5249_v50 = vadd.f32 %v11053_v5, %v5117_v29  ;;  %v5118_v10 = vmul.f32 %v11047_v49, %v4986_v14  ;;  %v12600_v29 = vld [vmem:[#allocation142_spill] sm:$0xff] }
 0x8ef   :  { %v4246_v0 = vsub.f32 %v12600_v29, %v11016_v63 }
 0x8f0   :  { %5374 = vst [vmem:[#allocation5 + $0x370] sm:$0xff] %v5249_v50  ;;  %v5250_v41 = vadd.f32 %v11053_v5, %v5118_v10 }
 0x8f1   :  { %v4813_v31 = vpop.permute.xlu1 %4812 }
 0x8f2   :  { %5375 = vst [vmem:[#allocation5 + $0x378] sm:$0xff] %v5250_v41  ;;  %v4987_v39 = vmul.f32 %v4813_v31, %v4237_v46  ;;  %v12601_v31 = vld [vmem:[#allocation144_spill] sm:$0xff] }
 0x8f3   :  { %v4818_v47 = vpop.permute.xlu0 %4817  ;;  %v4247_v21 = vsub.f32 %v12601_v31, %v11027_v60 }
 0x8f4   :  { %v5119_v19 = vmul.f32 %v11047_v49, %v4987_v39  ;;  %v4988_v30 = vmul.f32 %v4818_v47, %v4238_v43  ;;  %v12602_v39 = vld [vmem:[#allocation199_spill] sm:$0xff] }
 0x8f5   :  { %v4248_v63 = vsub.f32 %v12602_v39, %v11032_v53 }
 0x8f6   :  { %v5251_v11 = vadd.f32 %v11053_v5, %v5119_v19  ;;  %v5120_v55 = vmul.f32 %v11047_v49, %v4988_v30 }
 0x8f8   :  { %5376 = vst [vmem:[#allocation5 + $0x380] sm:$0xff] %v5251_v11  ;;  %v5252_v28 = vadd.f32 %v11053_v5, %v5120_v55 }
 0x8f9   :  { %v4823_v40 = vpop.permute.xlu1 %4822 }
 0x8fa   :  { %5377 = vst [vmem:[#allocation5 + $0x388] sm:$0xff] %v5252_v28  ;;  %v4989_v12 = vmul.f32 %v4823_v40, %v4239_v61  ;;  %v12603_v61 = vld [vmem:[#allocation153_spill] sm:$0xff] }
 0x8fb   :  { %v4828_v26 = vpop.permute.xlu0 %4827  ;;  %v4249_v60 = vsub.f32 %v12603_v61, %v11040_v20 }
 0x8fc   :  { %v5121_v37 = vmul.f32 %v11047_v49, %v4989_v12  ;;  %v4990_v38 = vmul.f32 %v4828_v26, %v4240_v44 }
 0x8fe   :  { %v5253_v8 = vadd.f32 %v11053_v5, %v5121_v37  ;;  %v5122_v51 = vmul.f32 %v11047_v49, %v4990_v38 }
 0x900   :  { %5378 = vst [vmem:[#allocation5 + $0x390] sm:$0xff] %v5253_v8  ;;  %v5254_v18 = vadd.f32 %v11053_v5, %v5122_v51 }
 0x901   :  { %v4833_v13 = vpop.permute.xlu1 %4832 }
 0x902   :  { %5379 = vst [vmem:[#allocation5 + $0x398] sm:$0xff] %v5254_v18  ;;  %v4991_v7 = vmul.f32 %v4833_v13, %v4241_v16 }
 0x903   :  { %v4838_v1 = vpop.permute.xlu0 %4837 }
 0x904   :  { %v5123_v9 = vmul.f32 %v11047_v49, %v4991_v7  ;;  %v4992_v24 = vmul.f32 %v4838_v1, %v4242_v6 }
 0x906   :  { %v5255_v58 = vadd.f32 %v11053_v5, %v5123_v9  ;;  %v5124_v15 = vmul.f32 %v11047_v49, %v4992_v24 }
 0x908   :  { %5380 = vst [vmem:[#allocation5 + $0x3a0] sm:$0xff] %v5255_v58  ;;  %v5256_v62 = vadd.f32 %v11053_v5, %v5124_v15 }
 0x909   :  { %v4843_v59 = vpop.permute.xlu1 %4842 }
 0x90a   :  { %5381 = vst [vmem:[#allocation5 + $0x3a8] sm:$0xff] %v5256_v62  ;;  %v4993_v34 = vmul.f32 %v4843_v59, %v4243_v22 }
 0x90b   :  { %v4848_v3 = vpop.permute.xlu0 %4847 }
 0x90c   :  { %v5125_v57 = vmul.f32 %v11047_v49, %v4993_v34  ;;  %v4994_v48 = vmul.f32 %v4848_v3, %v4244_v36 }
 0x90e   :  { %v5257_v45 = vadd.f32 %v11053_v5, %v5125_v57  ;;  %v5126_v52 = vmul.f32 %v11047_v49, %v4994_v48 }
 0x910   :  { %5382 = vst [vmem:[#allocation5 + $0x3b0] sm:$0xff] %v5257_v45  ;;  %v5258_v33 = vadd.f32 %v11053_v5, %v5126_v52 }
 0x911   :  { %v4853_v42 = vpop.permute.xlu1 %4852 }
 0x912   :  { %5383 = vst [vmem:[#allocation5 + $0x3b8] sm:$0xff] %v5258_v33  ;;  %v4995_v14 = vmul.f32 %v4853_v42, %v4245_v56 }
 0x913   :  { %v4858_v50 = vpop.permute.xlu0 %4857 }
 0x914   :  { %v5127_v10 = vmul.f32 %v11047_v49, %v4995_v14  ;;  %v4996_v27 = vmul.f32 %v4858_v50, %v4246_v0 }
 0x916   :  { %v5259_v46 = vadd.f32 %v11053_v5, %v5127_v10  ;;  %v5128_v41 = vmul.f32 %v11047_v49, %v4996_v27 }
 0x918   :  { %5384 = vst [vmem:[#allocation5 + $0x3c0] sm:$0xff] %v5259_v46  ;;  %v5260_v32 = vadd.f32 %v11053_v5, %v5128_v41 }
 0x919   :  { %v4863_v43 = vpop.permute.xlu1 %4862 }
 0x91a   :  { %5385 = vst [vmem:[#allocation5 + $0x3c8] sm:$0xff] %v5260_v32  ;;  %v4997_v47 = vmul.f32 %v4863_v43, %v4247_v21 }
 0x91b   :  { %v4868_v19 = vpop.permute.xlu0 %4867 }
 0x91c   :  { %v5129_v30 = vmul.f32 %v11047_v49, %v4997_v47  ;;  %v4998_v11 = vmul.f32 %v4868_v19, %v4248_v63 }
 0x91e   :  { %v5261_v55 = vadd.f32 %v11053_v5, %v5129_v30  ;;  %v5130_v2 = vmul.f32 %v11047_v49, %v4998_v11 }
 0x920   :  { %5386 = vst [vmem:[#allocation5 + $0x3d0] sm:$0xff] %v5261_v55  ;;  %v5262_v28 = vadd.f32 %v11053_v5, %v5130_v2 }
 0x921   :  { %v4873_v40 = vpop.permute.xlu1 %4872 }
 0x922   :  { %5387 = vst [vmem:[#allocation5 + $0x3d8] sm:$0xff] %v5262_v28  ;;  %v4999_v35 = vmul.f32 %v4873_v40, %v4249_v60 }
 0x924   :  { %v5131_v53 = vmul.f32 %v11047_v49, %v4999_v35 }
 0x926   :  { %v5263_v44 = vadd.f32 %v11053_v5, %v5131_v53 }
 0x928   :  { %5388 = vst [vmem:[#allocation5 + $0x3e0] sm:$0xff] %v5263_v44 }
 0x929   :  { %6399 = shalt.err (!%p6396_p12)
}
 0x92a   :  { %s6400_s8 = scalar_lea.hbm %s11202_s5, 16000 }
 0x92b   :  { %p6401_p13 = scmp.ne.s32.totalorder %s11202_s5, %s6400_s8  ;;  %p6404_p0 = scmp.lt.u32.totalorder %s6400_s8, %s11202_s5 }
 0x92d   :  { %p6406_p1 = pnand %p6404_p0, %p6401_p13 }
 0x92f   :  { %6409 = shalt.err (!%p6406_p1)
}
 0x930   :  { %5400 = dma.vmem_to_hbm [thread:$0]  %s5395_s4, 16000, %s11202_s5, [#allocation4], %s6415_s28, %s6415_s28, %s6416_s29  }
 0x931   :  { %6412 = dma.done.wait [#allocation4], 16000  }
 0x932   :  { %6413 = vsyncadd [#allocation4], 4294951296 }
 0x933   :  { %5404 = vsyncpa [#allocation3], 1 }
 0x934   :  { %5405 = vsyncpa [#allocation4], 1 }

</bundles_post_ra>
